<compile_context>
chip_gen: v5e
topology: v5e:2x2
jax: 0.10.0
libtpu: 0.0.40
codegen_flags: <defaults>
</compile_context>

<pallas_src>
import functools

import jax
import jax.numpy as jnp
from jax import lax
from jax.experimental import pallas as pl
from jax.experimental.pallas import tpu as pltpu

CPAD = 8  # channels padded to one sublane tile (6 -> 8)


def _im2col(slab_ref, src, K, T_out):
    """slab[j*CPAD + c, t] = src[c, j + t]   (static unroll, aligned sublane stores)."""
    for j in range(K):                                   # K is a Python int -> static
        slab_ref[j * CPAD:(j + 1) * CPAD, :] = src[:, j:j + T_out]


def _decoder_kernel(x_ref, w1_ref, b1_ref, w2_ref, b2_ref, w3_ref, b3_ref,
                    w4_ref, b4_ref, o_ref,
                    slab1, xpad2, slab2, xpad3, slab3, xpad4, slab4, *, dims):
    (K1, K2, K3, K4, T1, T2, T3, T4, off2, off3, off4) = dims

    # ---------------- layer 1: deconv1 + sigmoid ----------------
    x0 = x_ref[...]                                      # (CPAD, P1) padded input
    _im2col(slab1, x0, K1, T1)
    y1 = jnp.dot(w1_ref[...], slab1[...],
                 preferred_element_type=jnp.float32) + b1_ref[...]
    y1 = jax.nn.sigmoid(y1)                              # (6, T1), lane-dense

    # ---------------- layer 2 ----------------
    xpad2[...] = jnp.zeros_like(xpad2)                   # exact zero padding
    xpad2[0:6, off2:off2 + T1] = y1
    _im2col(slab2, xpad2[...], K2, T2)
    y2 = jnp.dot(w2_ref[...], slab2[...],
                 preferred_element_type=jnp.float32) + b2_ref[...]

    # ---------------- layer 3 ----------------
    xpad3[...] = jnp.zeros_like(xpad3)
    xpad3[0:6, off3:off3 + T2] = y2
    _im2col(slab3, xpad3[...], K3, T3)
    y3 = jnp.dot(w3_ref[...], slab3[...],
                 preferred_element_type=jnp.float32) + b3_ref[...]

    # ---------------- layer 4 ----------------
    xpad4[...] = jnp.zeros_like(xpad4)
    xpad4[0:6, off4:off4 + T3] = y3
    _im2col(slab4, xpad4[...], K4, T4)
    y4 = jnp.dot(w4_ref[...], slab4[...],
                 preferred_element_type=jnp.float32) + b4_ref[...]

    o_ref[...] = y4.astype(o_ref.dtype)                  # (1, T4)


def _prep_weight(w):
    """(Cin, Cout, K) torch ConvTranspose1d weight -> (Cout, K*CPAD), taps flipped,
    channel axis zero-padded so it matches the CPAD-channel im2col slab."""
    Cin, Cout, K = w.shape
    wf = jnp.flip(w, axis=2)                             # (Cin, Cout, K)
    wf = jnp.transpose(wf, (1, 2, 0))                    # (Cout, K, Cin)
    wf = jnp.pad(wf, ((0, 0), (0, 0), (0, CPAD - Cin)))  # (Cout, K, CPAD)
    return wf.reshape(Cout, K * CPAD)


def decoder_forward(params, x):
    """x: (N, 6, L) f32 -> (N, 1, L + 200). Matches the PyTorch Decoder forward."""
    N, Cin, L = x.shape
    K1 = K2 = K3 = 51
    K4 = 201
    p1, p2, p3, p4 = 0, 25, 25, 25

    T1 = L + (K1 - 1) - 2 * p1                           # L + 50
    T2 = T1
    T3 = T2
    T4 = T3 + (K4 - 1) - 2 * p4                          # L + 200
    off1 = K1 - 1 - p1                                   # per-layer correlation pad
    off2 = K2 - 1 - p2
    off3 = K3 - 1 - p3
    off4 = K4 - 1 - p4
    P1 = L + 2 * off1
    P2 = T1 + 2 * off2
    P3 = T2 + 2 * off3
    P4 = T3 + 2 * off4

    # One-time layout prep: channels 6 -> 8, zero time pad for layer 1.
    xp = jnp.pad(x, ((0, 0), (0, CPAD - Cin), (off1, off1)))   # (N, CPAD, P1)

    w1, b1 = params["deconv1"]
    w2, b2 = params["deconv2"]
    w3, b3 = params["deconv3"]
    w4, b4 = params["deconv4"]
    W1, W2, W3, W4 = (_prep_weight(w) for w in (w1, w2, w3, w4))
    B1, B2, B3, B4 = (b.reshape(-1, 1) for b in (b1, b2, b3, b4))

    dims = (K1, K2, K3, K4, T1, T2, T3, T4, off2, off3, off4)
    kern = functools.partial(_decoder_kernel, dims=dims)

    def full2d(a):
        return pl.BlockSpec(a.shape, lambda n: (0, 0))

    out = pl.pallas_call(
        kern,
        out_shape=jax.ShapeDtypeStruct((N, 1, T4), x.dtype),
        grid_spec=pltpu.PrefetchScalarGridSpec(
            num_scalar_prefetch=0,
            grid=(N,),
            in_specs=[
                pl.BlockSpec((None, CPAD, P1), lambda n: (n, 0, 0)),
                full2d(W1), full2d(B1),
                full2d(W2), full2d(B2),
                full2d(W3), full2d(B3),
                full2d(W4), full2d(B4),
            ],
            out_specs=pl.BlockSpec((None, 1, T4), lambda n: (n, 0, 0)),
            scratch_shapes=[
                pltpu.VMEM((K1 * CPAD, T1), jnp.float32),   # slab1
                pltpu.VMEM((CPAD, P2), jnp.float32),        # padded act for layer 2
                pltpu.VMEM((K2 * CPAD, T2), jnp.float32),   # slab2
                pltpu.VMEM((CPAD, P3), jnp.float32),        # padded act for layer 3
                pltpu.VMEM((K3 * CPAD, T3), jnp.float32),   # slab3
                pltpu.VMEM((CPAD, P4), jnp.float32),        # padded act for layer 4
                pltpu.VMEM((K4 * CPAD, T4), jnp.float32),   # slab4
            ],
        ),
        compiler_params=pltpu.CompilerParams(
            dimension_semantics=("parallel",)),
    )(xp, W1, B1, W2, B2, W3, B3, W4, B4)
    return out


def init_params(key):
    def make(k, cin, cout, ksz):
        kw, kb = jax.random.split(k)
        bound = 1.0 / (cin * ksz) ** 0.5
        w = jax.random.uniform(kw, (cin, cout, ksz), jnp.float32, -bound, bound)
        b = jax.random.uniform(kb, (cout,), jnp.float32, -bound, bound)
        return w, b

    k1, k2, k3, k4 = jax.random.split(key, 4)
    return {
        "deconv1": make(k1, 6, 6, 51),
        "deconv2": make(k2, 6, 6, 51),
        "deconv3": make(k3, 6, 6, 51),
        "deconv4": make(k4, 6, 1, 201),
    }


# ---------------- pure-JAX reference (XLA conv path) for a sanity check ----------------
def _ref_conv_transpose1d(x, w, b, padding):
    K = w.shape[2]
    rhs = jnp.transpose(jnp.flip(w, axis=2), (1, 0, 2))            # (Cout, Cin, K)
    out = lax.conv_general_dilated(
        x, rhs, window_strides=(1,),
        padding=[(K - 1 - padding, K - 1 - padding)],
        dimension_numbers=("NCH", "OIH", "NCH"))
    return out + b[None, :, None]


def _ref_forward(params, x):
    x = jax.nn.sigmoid(_ref_conv_transpose1d(x, *params["deconv1"], 0))
    x = _ref_conv_transpose1d(x, *params["deconv2"], 25)
    x = _ref_conv_transpose1d(x, *params["deconv3"], 25)
    x = _ref_conv_transpose1d(x, *params["deconv4"], 25)
    return x


if __name__ == "__main__":
    key = jax.random.PRNGKey(0)
    pkey, xkey = jax.random.split(key)
    params = init_params(pkey)

    N, C, L = 2, 6, 16
    x = jax.random.normal(xkey, (N, C, L), jnp.float32)

    fwd = jax.jit(decoder_forward)
    out = jax.block_until_ready(fwd(params, x))
    assert out.shape == (N, 1, L + 200), out.shape

    ref = jax.block_until_ready(_ref_forward(params, x))
    assert jnp.allclose(out, ref, rtol=1e-4, atol=1e-4), float(jnp.abs(out - ref).max())

    print("KERNEL_OK")
</pallas_src>

<mosaic_0001>
module attributes {stable_mosaic.version = 11 : i64} {
  func.func @_decoder_kernel(%arg0: i32, %arg1: memref<1x8x116xf32, #tpu.memory_space<vmem>>, %arg2: memref<6x408xf32, #tpu.memory_space<vmem>>, %arg3: memref<6x1xf32, #tpu.memory_space<vmem>>, %arg4: memref<6x408xf32, #tpu.memory_space<vmem>>, %arg5: memref<6x1xf32, #tpu.memory_space<vmem>>, %arg6: memref<6x408xf32, #tpu.memory_space<vmem>>, %arg7: memref<6x1xf32, #tpu.memory_space<vmem>>, %arg8: memref<1x1608xf32, #tpu.memory_space<vmem>>, %arg9: memref<1x1xf32, #tpu.memory_space<vmem>>, %arg10: memref<1x1x216xf32, #tpu.memory_space<vmem>>, %arg11: memref<408x66xf32, #tpu.memory_space<vmem>>, %arg12: memref<8x116xf32, #tpu.memory_space<vmem>>, %arg13: memref<408x66xf32, #tpu.memory_space<vmem>>, %arg14: memref<8x116xf32, #tpu.memory_space<vmem>>, %arg15: memref<408x66xf32, #tpu.memory_space<vmem>>, %arg16: memref<8x416xf32, #tpu.memory_space<vmem>>, %arg17: memref<1608x216xf32, #tpu.memory_space<vmem>>) attributes {dimension_semantics = [#tpu.dimension_semantics<parallel>], iteration_bounds = array<i64: 2>, scalar_prefetch = 0 : i64, scratch_operands = 7 : i64, tpu.core_type = #tpu.core_type<tc>, window_params = [{transform_indices = @transform_0, window_bounds = array<i64: 1, 8, 116>}, {pipeline_mode = #tpu.pipeline_mode<synchronous>, transform_indices = @transform_1, window_bounds = array<i64: 6, 408>}, {pipeline_mode = #tpu.pipeline_mode<synchronous>, transform_indices = @transform_2, window_bounds = array<i64: 6, 1>}, {pipeline_mode = #tpu.pipeline_mode<synchronous>, transform_indices = @transform_3, window_bounds = array<i64: 6, 408>}, {pipeline_mode = #tpu.pipeline_mode<synchronous>, transform_indices = @transform_4, window_bounds = array<i64: 6, 1>}, {pipeline_mode = #tpu.pipeline_mode<synchronous>, transform_indices = @transform_5, window_bounds = array<i64: 6, 408>}, {pipeline_mode = #tpu.pipeline_mode<synchronous>, transform_indices = @transform_6, window_bounds = array<i64: 6, 1>}, {pipeline_mode = #tpu.pipeline_mode<synchronous>, transform_indices = @transform_7, window_bounds = array<i64: 1, 1608>}, {pipeline_mode = #tpu.pipeline_mode<synchronous>, transform_indices = @transform_8, window_bounds = array<i64: 1, 1>}, {transform_indices = @transform_9, window_bounds = array<i64: 1, 1, 216>}]} {
    %c0 = arith.constant 0 : index
    %c0_0 = arith.constant 0 : index
    %c0_1 = arith.constant 0 : index
    %0 = vector.load %arg1[%c0, %c0_0, %c0_1] : memref<1x8x116xf32, #tpu.memory_space<vmem>>, vector<1x8x116xf32>
    %1 = vector.shape_cast %0 : vector<1x8x116xf32> to vector<8x116xf32>
    %2 = vector.extract_strided_slice %1 {offsets = [0, 0], sizes = [8, 66], strides = [1, 1]} : vector<8x116xf32> to vector<8x66xf32>
    %c0_2 = arith.constant 0 : index
    %c0_3 = arith.constant 0 : index
    %3 = vector.load %arg11[%c0_2, %c0_3] : memref<408x66xf32, #tpu.memory_space<vmem>>, vector<8x66xf32>
    tpu.vector_store %arg11[%c0_2, %c0_3], %2 {strides = array<i32>} : memref<408x66xf32, #tpu.memory_space<vmem>>, vector<8x66xf32>,
    %4 = vector.extract_strided_slice %1 {offsets = [0, 1], sizes = [8, 66], strides = [1, 1]} : vector<8x116xf32> to vector<8x66xf32>
    %c8 = arith.constant 8 : index
    %c0_4 = arith.constant 0 : index
    %5 = vector.load %arg11[%c8, %c0_4] : memref<408x66xf32, #tpu.memory_space<vmem>>, vector<8x66xf32>
    tpu.vector_store %arg11[%c8, %c0_4], %4 {strides = array<i32>} : memref<408x66xf32, #tpu.memory_space<vmem>>, vector<8x66xf32>,
    %6 = vector.extract_strided_slice %1 {offsets = [0, 2], sizes = [8, 66], strides = [1, 1]} : vector<8x116xf32> to vector<8x66xf32>
    %c16 = arith.constant 16 : index
    %c0_5 = arith.constant 0 : index
    %7 = vector.load %arg11[%c16, %c0_5] : memref<408x66xf32, #tpu.memory_space<vmem>>, vector<8x66xf32>
    tpu.vector_store %arg11[%c16, %c0_5], %6 {strides = array<i32>} : memref<408x66xf32, #tpu.memory_space<vmem>>, vector<8x66xf32>,
    %8 = vector.extract_strided_slice %1 {offsets = [0, 3], sizes = [8, 66], strides = [1, 1]} : vector<8x116xf32> to vector<8x66xf32>
    %c24 = arith.constant 24 : index
    %c0_6 = arith.constant 0 : index
    %9 = vector.load %arg11[%c24, %c0_6] : memref<408x66xf32, #tpu.memory_space<vmem>>, vector<8x66xf32>
    tpu.vector_store %arg11[%c24, %c0_6], %8 {strides = array<i32>} : memref<408x66xf32, #tpu.memory_space<vmem>>, vector<8x66xf32>,
    %10 = vector.extract_strided_slice %1 {offsets = [0, 4], sizes = [8, 66], strides = [1, 1]} : vector<8x116xf32> to vector<8x66xf32>
    %c32 = arith.constant 32 : index
    %c0_7 = arith.constant 0 : index
    %11 = vector.load %arg11[%c32, %c0_7] : memref<408x66xf32, #tpu.memory_space<vmem>>, vector<8x66xf32>
    tpu.vector_store %arg11[%c32, %c0_7], %10 {strides = array<i32>} : memref<408x66xf32, #tpu.memory_space<vmem>>, vector<8x66xf32>,
    %12 = vector.extract_strided_slice %1 {offsets = [0, 5], sizes = [8, 66], strides = [1, 1]} : vector<8x116xf32> to vector<8x66xf32>
    %c40 = arith.constant 40 : index
    %c0_8 = arith.constant 0 : index
    %13 = vector.load %arg11[%c40, %c0_8] : memref<408x66xf32, #tpu.memory_space<vmem>>, vector<8x66xf32>
    tpu.vector_store %arg11[%c40, %c0_8], %12 {strides = array<i32>} : memref<408x66xf32, #tpu.memory_space<vmem>>, vector<8x66xf32>,
    %14 = vector.extract_strided_slice %1 {offsets = [0, 6], sizes = [8, 66], strides = [1, 1]} : vector<8x116xf32> to vector<8x66xf32>
    %c48 = arith.constant 48 : index
    %c0_9 = arith.constant 0 : index
    %15 = vector.load %arg11[%c48, %c0_9] : memref<408x66xf32, #tpu.memory_space<vmem>>, vector<8x66xf32>
    tpu.vector_store %arg11[%c48, %c0_9], %14 {strides = array<i32>} : memref<408x66xf32, #tpu.memory_space<vmem>>, vector<8x66xf32>,
    %16 = vector.extract_strided_slice %1 {offsets = [0, 7], sizes = [8, 66], strides = [1, 1]} : vector<8x116xf32> to vector<8x66xf32>
    %c56 = arith.constant 56 : index
    %c0_10 = arith.constant 0 : index
    %17 = vector.load %arg11[%c56, %c0_10] : memref<408x66xf32, #tpu.memory_space<vmem>>, vector<8x66xf32>
    tpu.vector_store %arg11[%c56, %c0_10], %16 {strides = array<i32>} : memref<408x66xf32, #tpu.memory_space<vmem>>, vector<8x66xf32>,
    %18 = vector.extract_strided_slice %1 {offsets = [0, 8], sizes = [8, 66], strides = [1, 1]} : vector<8x116xf32> to vector<8x66xf32>
    %c64 = arith.constant 64 : index
    %c0_11 = arith.constant 0 : index
    %19 = vector.load %arg11[%c64, %c0_11] : memref<408x66xf32, #tpu.memory_space<vmem>>, vector<8x66xf32>
    tpu.vector_store %arg11[%c64, %c0_11], %18 {strides = array<i32>} : memref<408x66xf32, #tpu.memory_space<vmem>>, vector<8x66xf32>,
    %20 = vector.extract_strided_slice %1 {offsets = [0, 9], sizes = [8, 66], strides = [1, 1]} : vector<8x116xf32> to vector<8x66xf32>
    %c72 = arith.constant 72 : index
    %c0_12 = arith.constant 0 : index
    %21 = vector.load %arg11[%c72, %c0_12] : memref<408x66xf32, #tpu.memory_space<vmem>>, vector<8x66xf32>
    tpu.vector_store %arg11[%c72, %c0_12], %20 {strides = array<i32>} : memref<408x66xf32, #tpu.memory_space<vmem>>, vector<8x66xf32>,
    %22 = vector.extract_strided_slice %1 {offsets = [0, 10], sizes = [8, 66], strides = [1, 1]} : vector<8x116xf32> to vector<8x66xf32>
    %c80 = arith.constant 80 : index
    %c0_13 = arith.constant 0 : index
    %23 = vector.load %arg11[%c80, %c0_13] : memref<408x66xf32, #tpu.memory_space<vmem>>, vector<8x66xf32>
    tpu.vector_store %arg11[%c80, %c0_13], %22 {strides = array<i32>} : memref<408x66xf32, #tpu.memory_space<vmem>>, vector<8x66xf32>,
    %24 = vector.extract_strided_slice %1 {offsets = [0, 11], sizes = [8, 66], strides = [1, 1]} : vector<8x116xf32> to vector<8x66xf32>
    %c88 = arith.constant 88 : index
    %c0_14 = arith.constant 0 : index
    %25 = vector.load %arg11[%c88, %c0_14] : memref<408x66xf32, #tpu.memory_space<vmem>>, vector<8x66xf32>
    tpu.vector_store %arg11[%c88, %c0_14], %24 {strides = array<i32>} : memref<408x66xf32, #tpu.memory_space<vmem>>, vector<8x66xf32>,
    %26 = vector.extract_strided_slice %1 {offsets = [0, 12], sizes = [8, 66], strides = [1, 1]} : vector<8x116xf32> to vector<8x66xf32>
    %c96 = arith.constant 96 : index
    %c0_15 = arith.constant 0 : index
    %27 = vector.load %arg11[%c96, %c0_15] : memref<408x66xf32, #tpu.memory_space<vmem>>, vector<8x66xf32>
    tpu.vector_store %arg11[%c96, %c0_15], %26 {strides = array<i32>} : memref<408x66xf32, #tpu.memory_space<vmem>>, vector<8x66xf32>,
    %28 = vector.extract_strided_slice %1 {offsets = [0, 13], sizes = [8, 66], strides = [1, 1]} : vector<8x116xf32> to vector<8x66xf32>
    %c104 = arith.constant 104 : index
    %c0_16 = arith.constant 0 : index
    %29 = vector.load %arg11[%c104, %c0_16] : memref<408x66xf32, #tpu.memory_space<vmem>>, vector<8x66xf32>
    tpu.vector_store %arg11[%c104, %c0_16], %28 {strides = array<i32>} : memref<408x66xf32, #tpu.memory_space<vmem>>, vector<8x66xf32>,
    %30 = vector.extract_strided_slice %1 {offsets = [0, 14], sizes = [8, 66], strides = [1, 1]} : vector<8x116xf32> to vector<8x66xf32>
    %c112 = arith.constant 112 : index
    %c0_17 = arith.constant 0 : index
    %31 = vector.load %arg11[%c112, %c0_17] : memref<408x66xf32, #tpu.memory_space<vmem>>, vector<8x66xf32>
    tpu.vector_store %arg11[%c112, %c0_17], %30 {strides = array<i32>} : memref<408x66xf32, #tpu.memory_space<vmem>>, vector<8x66xf32>,
    %32 = vector.extract_strided_slice %1 {offsets = [0, 15], sizes = [8, 66], strides = [1, 1]} : vector<8x116xf32> to vector<8x66xf32>
    %c120 = arith.constant 120 : index
    %c0_18 = arith.constant 0 : index
    %33 = vector.load %arg11[%c120, %c0_18] : memref<408x66xf32, #tpu.memory_space<vmem>>, vector<8x66xf32>
    tpu.vector_store %arg11[%c120, %c0_18], %32 {strides = array<i32>} : memref<408x66xf32, #tpu.memory_space<vmem>>, vector<8x66xf32>,
    %34 = vector.extract_strided_slice %1 {offsets = [0, 16], sizes = [8, 66], strides = [1, 1]} : vector<8x116xf32> to vector<8x66xf32>
    %c128 = arith.constant 128 : index
    %c0_19 = arith.constant 0 : index
    %35 = vector.load %arg11[%c128, %c0_19] : memref<408x66xf32, #tpu.memory_space<vmem>>, vector<8x66xf32>
    tpu.vector_store %arg11[%c128, %c0_19], %34 {strides = array<i32>} : memref<408x66xf32, #tpu.memory_space<vmem>>, vector<8x66xf32>,
    %36 = vector.extract_strided_slice %1 {offsets = [0, 17], sizes = [8, 66], strides = [1, 1]} : vector<8x116xf32> to vector<8x66xf32>
    %c136 = arith.constant 136 : index
    %c0_20 = arith.constant 0 : index
    %37 = vector.load %arg11[%c136, %c0_20] : memref<408x66xf32, #tpu.memory_space<vmem>>, vector<8x66xf32>
    tpu.vector_store %arg11[%c136, %c0_20], %36 {strides = array<i32>} : memref<408x66xf32, #tpu.memory_space<vmem>>, vector<8x66xf32>,
    %38 = vector.extract_strided_slice %1 {offsets = [0, 18], sizes = [8, 66], strides = [1, 1]} : vector<8x116xf32> to vector<8x66xf32>
    %c144 = arith.constant 144 : index
    %c0_21 = arith.constant 0 : index
    %39 = vector.load %arg11[%c144, %c0_21] : memref<408x66xf32, #tpu.memory_space<vmem>>, vector<8x66xf32>
    tpu.vector_store %arg11[%c144, %c0_21], %38 {strides = array<i32>} : memref<408x66xf32, #tpu.memory_space<vmem>>, vector<8x66xf32>,
    %40 = vector.extract_strided_slice %1 {offsets = [0, 19], sizes = [8, 66], strides = [1, 1]} : vector<8x116xf32> to vector<8x66xf32>
    %c152 = arith.constant 152 : index
    %c0_22 = arith.constant 0 : index
    %41 = vector.load %arg11[%c152, %c0_22] : memref<408x66xf32, #tpu.memory_space<vmem>>, vector<8x66xf32>
    tpu.vector_store %arg11[%c152, %c0_22], %40 {strides = array<i32>} : memref<408x66xf32, #tpu.memory_space<vmem>>, vector<8x66xf32>,
    %42 = vector.extract_strided_slice %1 {offsets = [0, 20], sizes = [8, 66], strides = [1, 1]} : vector<8x116xf32> to vector<8x66xf32>
    %c160 = arith.constant 160 : index
    %c0_23 = arith.constant 0 : index
    %43 = vector.load %arg11[%c160, %c0_23] : memref<408x66xf32, #tpu.memory_space<vmem>>, vector<8x66xf32>
    tpu.vector_store %arg11[%c160, %c0_23], %42 {strides = array<i32>} : memref<408x66xf32, #tpu.memory_space<vmem>>, vector<8x66xf32>,
    %44 = vector.extract_strided_slice %1 {offsets = [0, 21], sizes = [8, 66], strides = [1, 1]} : vector<8x116xf32> to vector<8x66xf32>
    %c168 = arith.constant 168 : index
    %c0_24 = arith.constant 0 : index
    %45 = vector.load %arg11[%c168, %c0_24] : memref<408x66xf32, #tpu.memory_space<vmem>>, vector<8x66xf32>
    tpu.vector_store %arg11[%c168, %c0_24], %44 {strides = array<i32>} : memref<408x66xf32, #tpu.memory_space<vmem>>, vector<8x66xf32>,
    %46 = vector.extract_strided_slice %1 {offsets = [0, 22], sizes = [8, 66], strides = [1, 1]} : vector<8x116xf32> to vector<8x66xf32>
    %c176 = arith.constant 176 : index
    %c0_25 = arith.constant 0 : index
    %47 = vector.load %arg11[%c176, %c0_25] : memref<408x66xf32, #tpu.memory_space<vmem>>, vector<8x66xf32>
    tpu.vector_store %arg11[%c176, %c0_25], %46 {strides = array<i32>} : memref<408x66xf32, #tpu.memory_space<vmem>>, vector<8x66xf32>,
    %48 = vector.extract_strided_slice %1 {offsets = [0, 23], sizes = [8, 66], strides = [1, 1]} : vector<8x116xf32> to vector<8x66xf32>
    %c184 = arith.constant 184 : index
    %c0_26 = arith.constant 0 : index
    %49 = vector.load %arg11[%c184, %c0_26] : memref<408x66xf32, #tpu.memory_space<vmem>>, vector<8x66xf32>
    tpu.vector_store %arg11[%c184, %c0_26], %48 {strides = array<i32>} : memref<408x66xf32, #tpu.memory_space<vmem>>, vector<8x66xf32>,
    %50 = vector.extract_strided_slice %1 {offsets = [0, 24], sizes = [8, 66], strides = [1, 1]} : vector<8x116xf32> to vector<8x66xf32>
    %c192 = arith.constant 192 : index
    %c0_27 = arith.constant 0 : index
    %51 = vector.load %arg11[%c192, %c0_27] : memref<408x66xf32, #tpu.memory_space<vmem>>, vector<8x66xf32>
    tpu.vector_store %arg11[%c192, %c0_27], %50 {strides = array<i32>} : memref<408x66xf32, #tpu.memory_space<vmem>>, vector<8x66xf32>,
    %52 = vector.extract_strided_slice %1 {offsets = [0, 25], sizes = [8, 66], strides = [1, 1]} : vector<8x116xf32> to vector<8x66xf32>
    %c200 = arith.constant 200 : index
    %c0_28 = arith.constant 0 : index
    %53 = vector.load %arg11[%c200, %c0_28] : memref<408x66xf32, #tpu.memory_space<vmem>>, vector<8x66xf32>
    tpu.vector_store %arg11[%c200, %c0_28], %52 {strides = array<i32>} : memref<408x66xf32, #tpu.memory_space<vmem>>, vector<8x66xf32>,
    %54 = vector.extract_strided_slice %1 {offsets = [0, 26], sizes = [8, 66], strides = [1, 1]} : vector<8x116xf32> to vector<8x66xf32>
    %c208 = arith.constant 208 : index
    %c0_29 = arith.constant 0 : index
    %55 = vector.load %arg11[%c208, %c0_29] : memref<408x66xf32, #tpu.memory_space<vmem>>, vector<8x66xf32>
    tpu.vector_store %arg11[%c208, %c0_29], %54 {strides = array<i32>} : memref<408x66xf32, #tpu.memory_space<vmem>>, vector<8x66xf32>,
    %56 = vector.extract_strided_slice %1 {offsets = [0, 27], sizes = [8, 66], strides = [1, 1]} : vector<8x116xf32> to vector<8x66xf32>
    %c216 = arith.constant 216 : index
    %c0_30 = arith.constant 0 : index
    %57 = vector.load %arg11[%c216, %c0_30] : memref<408x66xf32, #tpu.memory_space<vmem>>, vector<8x66xf32>
    tpu.vector_store %arg11[%c216, %c0_30], %56 {strides = array<i32>} : memref<408x66xf32, #tpu.memory_space<vmem>>, vector<8x66xf32>,
    %58 = vector.extract_strided_slice %1 {offsets = [0, 28], sizes = [8, 66], strides = [1, 1]} : vector<8x116xf32> to vector<8x66xf32>
    %c224 = arith.constant 224 : index
    %c0_31 = arith.constant 0 : index
    %59 = vector.load %arg11[%c224, %c0_31] : memref<408x66xf32, #tpu.memory_space<vmem>>, vector<8x66xf32>
    tpu.vector_store %arg11[%c224, %c0_31], %58 {strides = array<i32>} : memref<408x66xf32, #tpu.memory_space<vmem>>, vector<8x66xf32>,
    %60 = vector.extract_strided_slice %1 {offsets = [0, 29], sizes = [8, 66], strides = [1, 1]} : vector<8x116xf32> to vector<8x66xf32>
    %c232 = arith.constant 232 : index
    %c0_32 = arith.constant 0 : index
    %61 = vector.load %arg11[%c232, %c0_32] : memref<408x66xf32, #tpu.memory_space<vmem>>, vector<8x66xf32>
    tpu.vector_store %arg11[%c232, %c0_32], %60 {strides = array<i32>} : memref<408x66xf32, #tpu.memory_space<vmem>>, vector<8x66xf32>,
    %62 = vector.extract_strided_slice %1 {offsets = [0, 30], sizes = [8, 66], strides = [1, 1]} : vector<8x116xf32> to vector<8x66xf32>
    %c240 = arith.constant 240 : index
    %c0_33 = arith.constant 0 : index
    %63 = vector.load %arg11[%c240, %c0_33] : memref<408x66xf32, #tpu.memory_space<vmem>>, vector<8x66xf32>
    tpu.vector_store %arg11[%c240, %c0_33], %62 {strides = array<i32>} : memref<408x66xf32, #tpu.memory_space<vmem>>, vector<8x66xf32>,
    %64 = vector.extract_strided_slice %1 {offsets = [0, 31], sizes = [8, 66], strides = [1, 1]} : vector<8x116xf32> to vector<8x66xf32>
    %c248 = arith.constant 248 : index
    %c0_34 = arith.constant 0 : index
    %65 = vector.load %arg11[%c248, %c0_34] : memref<408x66xf32, #tpu.memory_space<vmem>>, vector<8x66xf32>
    tpu.vector_store %arg11[%c248, %c0_34], %64 {strides = array<i32>} : memref<408x66xf32, #tpu.memory_space<vmem>>, vector<8x66xf32>,
    %66 = vector.extract_strided_slice %1 {offsets = [0, 32], sizes = [8, 66], strides = [1, 1]} : vector<8x116xf32> to vector<8x66xf32>
    %c256 = arith.constant 256 : index
    %c0_35 = arith.constant 0 : index
    %67 = vector.load %arg11[%c256, %c0_35] : memref<408x66xf32, #tpu.memory_space<vmem>>, vector<8x66xf32>
    tpu.vector_store %arg11[%c256, %c0_35], %66 {strides = array<i32>} : memref<408x66xf32, #tpu.memory_space<vmem>>, vector<8x66xf32>,
    %68 = vector.extract_strided_slice %1 {offsets = [0, 33], sizes = [8, 66], strides = [1, 1]} : vector<8x116xf32> to vector<8x66xf32>
    %c264 = arith.constant 264 : index
    %c0_36 = arith.constant 0 : index
    %69 = vector.load %arg11[%c264, %c0_36] : memref<408x66xf32, #tpu.memory_space<vmem>>, vector<8x66xf32>
    tpu.vector_store %arg11[%c264, %c0_36], %68 {strides = array<i32>} : memref<408x66xf32, #tpu.memory_space<vmem>>, vector<8x66xf32>,
    %70 = vector.extract_strided_slice %1 {offsets = [0, 34], sizes = [8, 66], strides = [1, 1]} : vector<8x116xf32> to vector<8x66xf32>
    %c272 = arith.constant 272 : index
    %c0_37 = arith.constant 0 : index
    %71 = vector.load %arg11[%c272, %c0_37] : memref<408x66xf32, #tpu.memory_space<vmem>>, vector<8x66xf32>
    tpu.vector_store %arg11[%c272, %c0_37], %70 {strides = array<i32>} : memref<408x66xf32, #tpu.memory_space<vmem>>, vector<8x66xf32>,
    %72 = vector.extract_strided_slice %1 {offsets = [0, 35], sizes = [8, 66], strides = [1, 1]} : vector<8x116xf32> to vector<8x66xf32>
    %c280 = arith.constant 280 : index
    %c0_38 = arith.constant 0 : index
    %73 = vector.load %arg11[%c280, %c0_38] : memref<408x66xf32, #tpu.memory_space<vmem>>, vector<8x66xf32>
    tpu.vector_store %arg11[%c280, %c0_38], %72 {strides = array<i32>} : memref<408x66xf32, #tpu.memory_space<vmem>>, vector<8x66xf32>,
    %74 = vector.extract_strided_slice %1 {offsets = [0, 36], sizes = [8, 66], strides = [1, 1]} : vector<8x116xf32> to vector<8x66xf32>
    %c288 = arith.constant 288 : index
    %c0_39 = arith.constant 0 : index
    %75 = vector.load %arg11[%c288, %c0_39] : memref<408x66xf32, #tpu.memory_space<vmem>>, vector<8x66xf32>
    tpu.vector_store %arg11[%c288, %c0_39], %74 {strides = array<i32>} : memref<408x66xf32, #tpu.memory_space<vmem>>, vector<8x66xf32>,
    %76 = vector.extract_strided_slice %1 {offsets = [0, 37], sizes = [8, 66], strides = [1, 1]} : vector<8x116xf32> to vector<8x66xf32>
    %c296 = arith.constant 296 : index
    %c0_40 = arith.constant 0 : index
    %77 = vector.load %arg11[%c296, %c0_40] : memref<408x66xf32, #tpu.memory_space<vmem>>, vector<8x66xf32>
    tpu.vector_store %arg11[%c296, %c0_40], %76 {strides = array<i32>} : memref<408x66xf32, #tpu.memory_space<vmem>>, vector<8x66xf32>,
    %78 = vector.extract_strided_slice %1 {offsets = [0, 38], sizes = [8, 66], strides = [1, 1]} : vector<8x116xf32> to vector<8x66xf32>
    %c304 = arith.constant 304 : index
    %c0_41 = arith.constant 0 : index
    %79 = vector.load %arg11[%c304, %c0_41] : memref<408x66xf32, #tpu.memory_space<vmem>>, vector<8x66xf32>
    tpu.vector_store %arg11[%c304, %c0_41], %78 {strides = array<i32>} : memref<408x66xf32, #tpu.memory_space<vmem>>, vector<8x66xf32>,
    %80 = vector.extract_strided_slice %1 {offsets = [0, 39], sizes = [8, 66], strides = [1, 1]} : vector<8x116xf32> to vector<8x66xf32>
    %c312 = arith.constant 312 : index
    %c0_42 = arith.constant 0 : index
    %81 = vector.load %arg11[%c312, %c0_42] : memref<408x66xf32, #tpu.memory_space<vmem>>, vector<8x66xf32>
    tpu.vector_store %arg11[%c312, %c0_42], %80 {strides = array<i32>} : memref<408x66xf32, #tpu.memory_space<vmem>>, vector<8x66xf32>,
    %82 = vector.extract_strided_slice %1 {offsets = [0, 40], sizes = [8, 66], strides = [1, 1]} : vector<8x116xf32> to vector<8x66xf32>
    %c320 = arith.constant 320 : index
    %c0_43 = arith.constant 0 : index
    %83 = vector.load %arg11[%c320, %c0_43] : memref<408x66xf32, #tpu.memory_space<vmem>>, vector<8x66xf32>
    tpu.vector_store %arg11[%c320, %c0_43], %82 {strides = array<i32>} : memref<408x66xf32, #tpu.memory_space<vmem>>, vector<8x66xf32>,
    %84 = vector.extract_strided_slice %1 {offsets = [0, 41], sizes = [8, 66], strides = [1, 1]} : vector<8x116xf32> to vector<8x66xf32>
    %c328 = arith.constant 328 : index
    %c0_44 = arith.constant 0 : index
    %85 = vector.load %arg11[%c328, %c0_44] : memref<408x66xf32, #tpu.memory_space<vmem>>, vector<8x66xf32>
    tpu.vector_store %arg11[%c328, %c0_44], %84 {strides = array<i32>} : memref<408x66xf32, #tpu.memory_space<vmem>>, vector<8x66xf32>,
    %86 = vector.extract_strided_slice %1 {offsets = [0, 42], sizes = [8, 66], strides = [1, 1]} : vector<8x116xf32> to vector<8x66xf32>
    %c336 = arith.constant 336 : index
    %c0_45 = arith.constant 0 : index
    %87 = vector.load %arg11[%c336, %c0_45] : memref<408x66xf32, #tpu.memory_space<vmem>>, vector<8x66xf32>
    tpu.vector_store %arg11[%c336, %c0_45], %86 {strides = array<i32>} : memref<408x66xf32, #tpu.memory_space<vmem>>, vector<8x66xf32>,
    %88 = vector.extract_strided_slice %1 {offsets = [0, 43], sizes = [8, 66], strides = [1, 1]} : vector<8x116xf32> to vector<8x66xf32>
    %c344 = arith.constant 344 : index
    %c0_46 = arith.constant 0 : index
    %89 = vector.load %arg11[%c344, %c0_46] : memref<408x66xf32, #tpu.memory_space<vmem>>, vector<8x66xf32>
    tpu.vector_store %arg11[%c344, %c0_46], %88 {strides = array<i32>} : memref<408x66xf32, #tpu.memory_space<vmem>>, vector<8x66xf32>,
    %90 = vector.extract_strided_slice %1 {offsets = [0, 44], sizes = [8, 66], strides = [1, 1]} : vector<8x116xf32> to vector<8x66xf32>
    %c352 = arith.constant 352 : index
    %c0_47 = arith.constant 0 : index
    %91 = vector.load %arg11[%c352, %c0_47] : memref<408x66xf32, #tpu.memory_space<vmem>>, vector<8x66xf32>
    tpu.vector_store %arg11[%c352, %c0_47], %90 {strides = array<i32>} : memref<408x66xf32, #tpu.memory_space<vmem>>, vector<8x66xf32>,
    %92 = vector.extract_strided_slice %1 {offsets = [0, 45], sizes = [8, 66], strides = [1, 1]} : vector<8x116xf32> to vector<8x66xf32>
    %c360 = arith.constant 360 : index
    %c0_48 = arith.constant 0 : index
    %93 = vector.load %arg11[%c360, %c0_48] : memref<408x66xf32, #tpu.memory_space<vmem>>, vector<8x66xf32>
    tpu.vector_store %arg11[%c360, %c0_48], %92 {strides = array<i32>} : memref<408x66xf32, #tpu.memory_space<vmem>>, vector<8x66xf32>,
    %94 = vector.extract_strided_slice %1 {offsets = [0, 46], sizes = [8, 66], strides = [1, 1]} : vector<8x116xf32> to vector<8x66xf32>
    %c368 = arith.constant 368 : index
    %c0_49 = arith.constant 0 : index
    %95 = vector.load %arg11[%c368, %c0_49] : memref<408x66xf32, #tpu.memory_space<vmem>>, vector<8x66xf32>
    tpu.vector_store %arg11[%c368, %c0_49], %94 {strides = array<i32>} : memref<408x66xf32, #tpu.memory_space<vmem>>, vector<8x66xf32>,
    %96 = vector.extract_strided_slice %1 {offsets = [0, 47], sizes = [8, 66], strides = [1, 1]} : vector<8x116xf32> to vector<8x66xf32>
    %c376 = arith.constant 376 : index
    %c0_50 = arith.constant 0 : index
    %97 = vector.load %arg11[%c376, %c0_50] : memref<408x66xf32, #tpu.memory_space<vmem>>, vector<8x66xf32>
    tpu.vector_store %arg11[%c376, %c0_50], %96 {strides = array<i32>} : memref<408x66xf32, #tpu.memory_space<vmem>>, vector<8x66xf32>,
    %98 = vector.extract_strided_slice %1 {offsets = [0, 48], sizes = [8, 66], strides = [1, 1]} : vector<8x116xf32> to vector<8x66xf32>
    %c384 = arith.constant 384 : index
    %c0_51 = arith.constant 0 : index
    %99 = vector.load %arg11[%c384, %c0_51] : memref<408x66xf32, #tpu.memory_space<vmem>>, vector<8x66xf32>
    tpu.vector_store %arg11[%c384, %c0_51], %98 {strides = array<i32>} : memref<408x66xf32, #tpu.memory_space<vmem>>, vector<8x66xf32>,
    %100 = vector.extract_strided_slice %1 {offsets = [0, 49], sizes = [8, 66], strides = [1, 1]} : vector<8x116xf32> to vector<8x66xf32>
    %c392 = arith.constant 392 : index
    %c0_52 = arith.constant 0 : index
    %101 = vector.load %arg11[%c392, %c0_52] : memref<408x66xf32, #tpu.memory_space<vmem>>, vector<8x66xf32>
    tpu.vector_store %arg11[%c392, %c0_52], %100 {strides = array<i32>} : memref<408x66xf32, #tpu.memory_space<vmem>>, vector<8x66xf32>,
    %102 = vector.extract_strided_slice %1 {offsets = [0, 50], sizes = [8, 66], strides = [1, 1]} : vector<8x116xf32> to vector<8x66xf32>
    %c400 = arith.constant 400 : index
    %c0_53 = arith.constant 0 : index
    %103 = vector.load %arg11[%c400, %c0_53] : memref<408x66xf32, #tpu.memory_space<vmem>>, vector<8x66xf32>
    tpu.vector_store %arg11[%c400, %c0_53], %102 {strides = array<i32>} : memref<408x66xf32, #tpu.memory_space<vmem>>, vector<8x66xf32>,
    %c0_54 = arith.constant 0 : index
    %c0_55 = arith.constant 0 : index
    %104 = vector.load %arg2[%c0_54, %c0_55] : memref<6x408xf32, #tpu.memory_space<vmem>>, vector<6x408xf32>
    %c0_56 = arith.constant 0 : index
    %c0_57 = arith.constant 0 : index
    %105 = vector.load %arg11[%c0_56, %c0_57] : memref<408x66xf32, #tpu.memory_space<vmem>>, vector<408x66xf32>
    %cst = arith.constant dense<0.000000e+00> : vector<6x66xf32>
    %106 = tpu.matmul %104, %105, %cst {dimension_numbers = #tpu.dot_dimension_numbers<[1], [0], [0], [1], [0, 0, 1, 1], [], []>} : vector<6x408xf32>, vector<408x66xf32>, vector<6x66xf32> -> vector<6x66xf32>
    %c0_58 = arith.constant 0 : index
    %c0_59 = arith.constant 0 : index
    %107 = vector.load %arg3[%c0_58, %c0_59] : memref<6x1xf32, #tpu.memory_space<vmem>>, vector<6x1xf32>
    %108 = vector.broadcast %107 : vector<6x1xf32> to vector<6x66xf32>
    %109 = arith.addf %106, %108 : vector<6x66xf32>
    %110 = arith.negf %109 : vector<6x66xf32>
    %111 = math.exp %110 : vector<6x66xf32>
    %cst_60 = arith.constant 1.000000e+00 : f32
    %112 = vector.broadcast %cst_60 : f32 to vector<6x66xf32>
    %113 = arith.addf %112, %111 : vector<6x66xf32>
    %114 = arith.divf %112, %113 : vector<6x66xf32>
    %cst_61 = arith.constant 0.000000e+00 : f32
    %115 = vector.broadcast %cst_61 : f32 to vector<8x116xf32>
    %c0_62 = arith.constant 0 : index
    %c0_63 = arith.constant 0 : index
    %116 = vector.load %arg12[%c0_62, %c0_63] : memref<8x116xf32, #tpu.memory_space<vmem>>, vector<8x116xf32>
    tpu.vector_store %arg12[%c0_62, %c0_63], %115 {strides = array<i32>} : memref<8x116xf32, #tpu.memory_space<vmem>>, vector<8x116xf32>,
    %c0_64 = arith.constant 0 : index
    %c25 = arith.constant 25 : index
    %117 = vector.load %arg12[%c0_64, %c25] : memref<8x116xf32, #tpu.memory_space<vmem>>, vector<6x66xf32>
    tpu.vector_store %arg12[%c0_64, %c25], %114 {strides = array<i32>} : memref<8x116xf32, #tpu.memory_space<vmem>>, vector<6x66xf32>,
    %c0_65 = arith.constant 0 : index
    %c0_66 = arith.constant 0 : index
    %118 = vector.load %arg12[%c0_65, %c0_66] : memref<8x116xf32, #tpu.memory_space<vmem>>, vector<8x116xf32>
    %119 = vector.extract_strided_slice %118 {offsets = [0, 0], sizes = [8, 66], strides = [1, 1]} : vector<8x116xf32> to vector<8x66xf32>
    %c0_67 = arith.constant 0 : index
    %c0_68 = arith.constant 0 : index
    %120 = vector.load %arg13[%c0_67, %c0_68] : memref<408x66xf32, #tpu.memory_space<vmem>>, vector<8x66xf32>
    tpu.vector_store %arg13[%c0_67, %c0_68], %119 {strides = array<i32>} : memref<408x66xf32, #tpu.memory_space<vmem>>, vector<8x66xf32>,
    %121 = vector.extract_strided_slice %118 {offsets = [0, 1], sizes = [8, 66], strides = [1, 1]} : vector<8x116xf32> to vector<8x66xf32>
    %c8_69 = arith.constant 8 : index
    %c0_70 = arith.constant 0 : index
    %122 = vector.load %arg13[%c8_69, %c0_70] : memref<408x66xf32, #tpu.memory_space<vmem>>, vector<8x66xf32>
    tpu.vector_store %arg13[%c8_69, %c0_70], %121 {strides = array<i32>} : memref<408x66xf32, #tpu.memory_space<vmem>>, vector<8x66xf32>,
    %123 = vector.extract_strided_slice %118 {offsets = [0, 2], sizes = [8, 66], strides = [1, 1]} : vector<8x116xf32> to vector<8x66xf32>
    %c16_71 = arith.constant 16 : index
    %c0_72 = arith.constant 0 : index
    %124 = vector.load %arg13[%c16_71, %c0_72] : memref<408x66xf32, #tpu.memory_space<vmem>>, vector<8x66xf32>
    tpu.vector_store %arg13[%c16_71, %c0_72], %123 {strides = array<i32>} : memref<408x66xf32, #tpu.memory_space<vmem>>, vector<8x66xf32>,
    %125 = vector.extract_strided_slice %118 {offsets = [0, 3], sizes = [8, 66], strides = [1, 1]} : vector<8x116xf32> to vector<8x66xf32>
    %c24_73 = arith.constant 24 : index
    %c0_74 = arith.constant 0 : index
    %126 = vector.load %arg13[%c24_73, %c0_74] : memref<408x66xf32, #tpu.memory_space<vmem>>, vector<8x66xf32>
    tpu.vector_store %arg13[%c24_73, %c0_74], %125 {strides = array<i32>} : memref<408x66xf32, #tpu.memory_space<vmem>>, vector<8x66xf32>,
    %127 = vector.extract_strided_slice %118 {offsets = [0, 4], sizes = [8, 66], strides = [1, 1]} : vector<8x116xf32> to vector<8x66xf32>
    %c32_75 = arith.constant 32 : index
    %c0_76 = arith.constant 0 : index
    %128 = vector.load %arg13[%c32_75, %c0_76] : memref<408x66xf32, #tpu.memory_space<vmem>>, vector<8x66xf32>
    tpu.vector_store %arg13[%c32_75, %c0_76], %127 {strides = array<i32>} : memref<408x66xf32, #tpu.memory_space<vmem>>, vector<8x66xf32>,
    %129 = vector.extract_strided_slice %118 {offsets = [0, 5], sizes = [8, 66], strides = [1, 1]} : vector<8x116xf32> to vector<8x66xf32>
    %c40_77 = arith.constant 40 : index
    %c0_78 = arith.constant 0 : index
    %130 = vector.load %arg13[%c40_77, %c0_78] : memref<408x66xf32, #tpu.memory_space<vmem>>, vector<8x66xf32>
    tpu.vector_store %arg13[%c40_77, %c0_78], %129 {strides = array<i32>} : memref<408x66xf32, #tpu.memory_space<vmem>>, vector<8x66xf32>,
    %131 = vector.extract_strided_slice %118 {offsets = [0, 6], sizes = [8, 66], strides = [1, 1]} : vector<8x116xf32> to vector<8x66xf32>
    %c48_79 = arith.constant 48 : index
    %c0_80 = arith.constant 0 : index
    %132 = vector.load %arg13[%c48_79, %c0_80] : memref<408x66xf32, #tpu.memory_space<vmem>>, vector<8x66xf32>
    tpu.vector_store %arg13[%c48_79, %c0_80], %131 {strides = array<i32>} : memref<408x66xf32, #tpu.memory_space<vmem>>, vector<8x66xf32>,
    %133 = vector.extract_strided_slice %118 {offsets = [0, 7], sizes = [8, 66], strides = [1, 1]} : vector<8x116xf32> to vector<8x66xf32>
    %c56_81 = arith.constant 56 : index
    %c0_82 = arith.constant 0 : index
    %134 = vector.load %arg13[%c56_81, %c0_82] : memref<408x66xf32, #tpu.memory_space<vmem>>, vector<8x66xf32>
    tpu.vector_store %arg13[%c56_81, %c0_82], %133 {strides = array<i32>} : memref<408x66xf32, #tpu.memory_space<vmem>>, vector<8x66xf32>,
    %135 = vector.extract_strided_slice %118 {offsets = [0, 8], sizes = [8, 66], strides = [1, 1]} : vector<8x116xf32> to vector<8x66xf32>
    %c64_83 = arith.constant 64 : index
    %c0_84 = arith.constant 0 : index
    %136 = vector.load %arg13[%c64_83, %c0_84] : memref<408x66xf32, #tpu.memory_space<vmem>>, vector<8x66xf32>
    tpu.vector_store %arg13[%c64_83, %c0_84], %135 {strides = array<i32>} : memref<408x66xf32, #tpu.memory_space<vmem>>, vector<8x66xf32>,
    %137 = vector.extract_strided_slice %118 {offsets = [0, 9], sizes = [8, 66], strides = [1, 1]} : vector<8x116xf32> to vector<8x66xf32>
    %c72_85 = arith.constant 72 : index
    %c0_86 = arith.constant 0 : index
    %138 = vector.load %arg13[%c72_85, %c0_86] : memref<408x66xf32, #tpu.memory_space<vmem>>, vector<8x66xf32>
    tpu.vector_store %arg13[%c72_85, %c0_86], %137 {strides = array<i32>} : memref<408x66xf32, #tpu.memory_space<vmem>>, vector<8x66xf32>,
    %139 = vector.extract_strided_slice %118 {offsets = [0, 10], sizes = [8, 66], strides = [1, 1]} : vector<8x116xf32> to vector<8x66xf32>
    %c80_87 = arith.constant 80 : index
    %c0_88 = arith.constant 0 : index
    %140 = vector.load %arg13[%c80_87, %c0_88] : memref<408x66xf32, #tpu.memory_space<vmem>>, vector<8x66xf32>
    tpu.vector_store %arg13[%c80_87, %c0_88], %139 {strides = array<i32>} : memref<408x66xf32, #tpu.memory_space<vmem>>, vector<8x66xf32>,
    %141 = vector.extract_strided_slice %118 {offsets = [0, 11], sizes = [8, 66], strides = [1, 1]} : vector<8x116xf32> to vector<8x66xf32>
    %c88_89 = arith.constant 88 : index
    %c0_90 = arith.constant 0 : index
    %142 = vector.load %arg13[%c88_89, %c0_90] : memref<408x66xf32, #tpu.memory_space<vmem>>, vector<8x66xf32>
    tpu.vector_store %arg13[%c88_89, %c0_90], %141 {strides = array<i32>} : memref<408x66xf32, #tpu.memory_space<vmem>>, vector<8x66xf32>,
    %143 = vector.extract_strided_slice %118 {offsets = [0, 12], sizes = [8, 66], strides = [1, 1]} : vector<8x116xf32> to vector<8x66xf32>
    %c96_91 = arith.constant 96 : index
    %c0_92 = arith.constant 0 : index
    %144 = vector.load %arg13[%c96_91, %c0_92] : memref<408x66xf32, #tpu.memory_space<vmem>>, vector<8x66xf32>
    tpu.vector_store %arg13[%c96_91, %c0_92], %143 {strides = array<i32>} : memref<408x66xf32, #tpu.memory_space<vmem>>, vector<8x66xf32>,
    %145 = vector.extract_strided_slice %118 {offsets = [0, 13], sizes = [8, 66], strides = [1, 1]} : vector<8x116xf32> to vector<8x66xf32>
    %c104_93 = arith.constant 104 : index
    %c0_94 = arith.constant 0 : index
    %146 = vector.load %arg13[%c104_93, %c0_94] : memref<408x66xf32, #tpu.memory_space<vmem>>, vector<8x66xf32>
    tpu.vector_store %arg13[%c104_93, %c0_94], %145 {strides = array<i32>} : memref<408x66xf32, #tpu.memory_space<vmem>>, vector<8x66xf32>,
    %147 = vector.extract_strided_slice %118 {offsets = [0, 14], sizes = [8, 66], strides = [1, 1]} : vector<8x116xf32> to vector<8x66xf32>
    %c112_95 = arith.constant 112 : index
    %c0_96 = arith.constant 0 : index
    %148 = vector.load %arg13[%c112_95, %c0_96] : memref<408x66xf32, #tpu.memory_space<vmem>>, vector<8x66xf32>
    tpu.vector_store %arg13[%c112_95, %c0_96], %147 {strides = array<i32>} : memref<408x66xf32, #tpu.memory_space<vmem>>, vector<8x66xf32>,
    %149 = vector.extract_strided_slice %118 {offsets = [0, 15], sizes = [8, 66], strides = [1, 1]} : vector<8x116xf32> to vector<8x66xf32>
    %c120_97 = arith.constant 120 : index
    %c0_98 = arith.constant 0 : index
    %150 = vector.load %arg13[%c120_97, %c0_98] : memref<408x66xf32, #tpu.memory_space<vmem>>, vector<8x66xf32>
    tpu.vector_store %arg13[%c120_97, %c0_98], %149 {strides = array<i32>} : memref<408x66xf32, #tpu.memory_space<vmem>>, vector<8x66xf32>,
    %151 = vector.extract_strided_slice %118 {offsets = [0, 16], sizes = [8, 66], strides = [1, 1]} : vector<8x116xf32> to vector<8x66xf32>
    %c128_99 = arith.constant 128 : index
    %c0_100 = arith.constant 0 : index
    %152 = vector.load %arg13[%c128_99, %c0_100] : memref<408x66xf32, #tpu.memory_space<vmem>>, vector<8x66xf32>
    tpu.vector_store %arg13[%c128_99, %c0_100], %151 {strides = array<i32>} : memref<408x66xf32, #tpu.memory_space<vmem>>, vector<8x66xf32>,
    %153 = vector.extract_strided_slice %118 {offsets = [0, 17], sizes = [8, 66], strides = [1, 1]} : vector<8x116xf32> to vector<8x66xf32>
    %c136_101 = arith.constant 136 : index
    %c0_102 = arith.constant 0 : index
    %154 = vector.load %arg13[%c136_101, %c0_102] : memref<408x66xf32, #tpu.memory_space<vmem>>, vector<8x66xf32>
    tpu.vector_store %arg13[%c136_101, %c0_102], %153 {strides = array<i32>} : memref<408x66xf32, #tpu.memory_space<vmem>>, vector<8x66xf32>,
    %155 = vector.extract_strided_slice %118 {offsets = [0, 18], sizes = [8, 66], strides = [1, 1]} : vector<8x116xf32> to vector<8x66xf32>
    %c144_103 = arith.constant 144 : index
    %c0_104 = arith.constant 0 : index
    %156 = vector.load %arg13[%c144_103, %c0_104] : memref<408x66xf32, #tpu.memory_space<vmem>>, vector<8x66xf32>
    tpu.vector_store %arg13[%c144_103, %c0_104], %155 {strides = array<i32>} : memref<408x66xf32, #tpu.memory_space<vmem>>, vector<8x66xf32>,
    %157 = vector.extract_strided_slice %118 {offsets = [0, 19], sizes = [8, 66], strides = [1, 1]} : vector<8x116xf32> to vector<8x66xf32>
    %c152_105 = arith.constant 152 : index
    %c0_106 = arith.constant 0 : index
    %158 = vector.load %arg13[%c152_105, %c0_106] : memref<408x66xf32, #tpu.memory_space<vmem>>, vector<8x66xf32>
    tpu.vector_store %arg13[%c152_105, %c0_106], %157 {strides = array<i32>} : memref<408x66xf32, #tpu.memory_space<vmem>>, vector<8x66xf32>,
    %159 = vector.extract_strided_slice %118 {offsets = [0, 20], sizes = [8, 66], strides = [1, 1]} : vector<8x116xf32> to vector<8x66xf32>
    %c160_107 = arith.constant 160 : index
    %c0_108 = arith.constant 0 : index
    %160 = vector.load %arg13[%c160_107, %c0_108] : memref<408x66xf32, #tpu.memory_space<vmem>>, vector<8x66xf32>
    tpu.vector_store %arg13[%c160_107, %c0_108], %159 {strides = array<i32>} : memref<408x66xf32, #tpu.memory_space<vmem>>, vector<8x66xf32>,
    %161 = vector.extract_strided_slice %118 {offsets = [0, 21], sizes = [8, 66], strides = [1, 1]} : vector<8x116xf32> to vector<8x66xf32>
    %c168_109 = arith.constant 168 : index
    %c0_110 = arith.constant 0 : index
    %162 = vector.load %arg13[%c168_109, %c0_110] : memref<408x66xf32, #tpu.memory_space<vmem>>, vector<8x66xf32>
    tpu.vector_store %arg13[%c168_109, %c0_110], %161 {strides = array<i32>} : memref<408x66xf32, #tpu.memory_space<vmem>>, vector<8x66xf32>,
    %163 = vector.extract_strided_slice %118 {offsets = [0, 22], sizes = [8, 66], strides = [1, 1]} : vector<8x116xf32> to vector<8x66xf32>
    %c176_111 = arith.constant 176 : index
    %c0_112 = arith.constant 0 : index
    %164 = vector.load %arg13[%c176_111, %c0_112] : memref<408x66xf32, #tpu.memory_space<vmem>>, vector<8x66xf32>
    tpu.vector_store %arg13[%c176_111, %c0_112], %163 {strides = array<i32>} : memref<408x66xf32, #tpu.memory_space<vmem>>, vector<8x66xf32>,
    %165 = vector.extract_strided_slice %118 {offsets = [0, 23], sizes = [8, 66], strides = [1, 1]} : vector<8x116xf32> to vector<8x66xf32>
    %c184_113 = arith.constant 184 : index
    %c0_114 = arith.constant 0 : index
    %166 = vector.load %arg13[%c184_113, %c0_114] : memref<408x66xf32, #tpu.memory_space<vmem>>, vector<8x66xf32>
    tpu.vector_store %arg13[%c184_113, %c0_114], %165 {strides = array<i32>} : memref<408x66xf32, #tpu.memory_space<vmem>>, vector<8x66xf32>,
    %167 = vector.extract_strided_slice %118 {offsets = [0, 24], sizes = [8, 66], strides = [1, 1]} : vector<8x116xf32> to vector<8x66xf32>
    %c192_115 = arith.constant 192 : index
    %c0_116 = arith.constant 0 : index
    %168 = vector.load %arg13[%c192_115, %c0_116] : memref<408x66xf32, #tpu.memory_space<vmem>>, vector<8x66xf32>
    tpu.vector_store %arg13[%c192_115, %c0_116], %167 {strides = array<i32>} : memref<408x66xf32, #tpu.memory_space<vmem>>, vector<8x66xf32>,
    %169 = vector.extract_strided_slice %118 {offsets = [0, 25], sizes = [8, 66], strides = [1, 1]} : vector<8x116xf32> to vector<8x66xf32>
    %c200_117 = arith.constant 200 : index
    %c0_118 = arith.constant 0 : index
    %170 = vector.load %arg13[%c200_117, %c0_118] : memref<408x66xf32, #tpu.memory_space<vmem>>, vector<8x66xf32>
    tpu.vector_store %arg13[%c200_117, %c0_118], %169 {strides = array<i32>} : memref<408x66xf32, #tpu.memory_space<vmem>>, vector<8x66xf32>,
    %171 = vector.extract_strided_slice %118 {offsets = [0, 26], sizes = [8, 66], strides = [1, 1]} : vector<8x116xf32> to vector<8x66xf32>
    %c208_119 = arith.constant 208 : index
    %c0_120 = arith.constant 0 : index
    %172 = vector.load %arg13[%c208_119, %c0_120] : memref<408x66xf32, #tpu.memory_space<vmem>>, vector<8x66xf32>
    tpu.vector_store %arg13[%c208_119, %c0_120], %171 {strides = array<i32>} : memref<408x66xf32, #tpu.memory_space<vmem>>, vector<8x66xf32>,
    %173 = vector.extract_strided_slice %118 {offsets = [0, 27], sizes = [8, 66], strides = [1, 1]} : vector<8x116xf32> to vector<8x66xf32>
    %c216_121 = arith.constant 216 : index
    %c0_122 = arith.constant 0 : index
    %174 = vector.load %arg13[%c216_121, %c0_122] : memref<408x66xf32, #tpu.memory_space<vmem>>, vector<8x66xf32>
    tpu.vector_store %arg13[%c216_121, %c0_122], %173 {strides = array<i32>} : memref<408x66xf32, #tpu.memory_space<vmem>>, vector<8x66xf32>,
    %175 = vector.extract_strided_slice %118 {offsets = [0, 28], sizes = [8, 66], strides = [1, 1]} : vector<8x116xf32> to vector<8x66xf32>
    %c224_123 = arith.constant 224 : index
    %c0_124 = arith.constant 0 : index
    %176 = vector.load %arg13[%c224_123, %c0_124] : memref<408x66xf32, #tpu.memory_space<vmem>>, vector<8x66xf32>
    tpu.vector_store %arg13[%c224_123, %c0_124], %175 {strides = array<i32>} : memref<408x66xf32, #tpu.memory_space<vmem>>, vector<8x66xf32>,
    %177 = vector.extract_strided_slice %118 {offsets = [0, 29], sizes = [8, 66], strides = [1, 1]} : vector<8x116xf32> to vector<8x66xf32>
    %c232_125 = arith.constant 232 : index
    %c0_126 = arith.constant 0 : index
    %178 = vector.load %arg13[%c232_125, %c0_126] : memref<408x66xf32, #tpu.memory_space<vmem>>, vector<8x66xf32>
    tpu.vector_store %arg13[%c232_125, %c0_126], %177 {strides = array<i32>} : memref<408x66xf32, #tpu.memory_space<vmem>>, vector<8x66xf32>,
    %179 = vector.extract_strided_slice %118 {offsets = [0, 30], sizes = [8, 66], strides = [1, 1]} : vector<8x116xf32> to vector<8x66xf32>
    %c240_127 = arith.constant 240 : index
    %c0_128 = arith.constant 0 : index
    %180 = vector.load %arg13[%c240_127, %c0_128] : memref<408x66xf32, #tpu.memory_space<vmem>>, vector<8x66xf32>
    tpu.vector_store %arg13[%c240_127, %c0_128], %179 {strides = array<i32>} : memref<408x66xf32, #tpu.memory_space<vmem>>, vector<8x66xf32>,
    %181 = vector.extract_strided_slice %118 {offsets = [0, 31], sizes = [8, 66], strides = [1, 1]} : vector<8x116xf32> to vector<8x66xf32>
    %c248_129 = arith.constant 248 : index
    %c0_130 = arith.constant 0 : index
    %182 = vector.load %arg13[%c248_129, %c0_130] : memref<408x66xf32, #tpu.memory_space<vmem>>, vector<8x66xf32>
    tpu.vector_store %arg13[%c248_129, %c0_130], %181 {strides = array<i32>} : memref<408x66xf32, #tpu.memory_space<vmem>>, vector<8x66xf32>,
    %183 = vector.extract_strided_slice %118 {offsets = [0, 32], sizes = [8, 66], strides = [1, 1]} : vector<8x116xf32> to vector<8x66xf32>
    %c256_131 = arith.constant 256 : index
    %c0_132 = arith.constant 0 : index
    %184 = vector.load %arg13[%c256_131, %c0_132] : memref<408x66xf32, #tpu.memory_space<vmem>>, vector<8x66xf32>
    tpu.vector_store %arg13[%c256_131, %c0_132], %183 {strides = array<i32>} : memref<408x66xf32, #tpu.memory_space<vmem>>, vector<8x66xf32>,
    %185 = vector.extract_strided_slice %118 {offsets = [0, 33], sizes = [8, 66], strides = [1, 1]} : vector<8x116xf32> to vector<8x66xf32>
    %c264_133 = arith.constant 264 : index
    %c0_134 = arith.constant 0 : index
    %186 = vector.load %arg13[%c264_133, %c0_134] : memref<408x66xf32, #tpu.memory_space<vmem>>, vector<8x66xf32>
    tpu.vector_store %arg13[%c264_133, %c0_134], %185 {strides = array<i32>} : memref<408x66xf32, #tpu.memory_space<vmem>>, vector<8x66xf32>,
    %187 = vector.extract_strided_slice %118 {offsets = [0, 34], sizes = [8, 66], strides = [1, 1]} : vector<8x116xf32> to vector<8x66xf32>
    %c272_135 = arith.constant 272 : index
    %c0_136 = arith.constant 0 : index
    %188 = vector.load %arg13[%c272_135, %c0_136] : memref<408x66xf32, #tpu.memory_space<vmem>>, vector<8x66xf32>
    tpu.vector_store %arg13[%c272_135, %c0_136], %187 {strides = array<i32>} : memref<408x66xf32, #tpu.memory_space<vmem>>, vector<8x66xf32>,
    %189 = vector.extract_strided_slice %118 {offsets = [0, 35], sizes = [8, 66], strides = [1, 1]} : vector<8x116xf32> to vector<8x66xf32>
    %c280_137 = arith.constant 280 : index
    %c0_138 = arith.constant 0 : index
    %190 = vector.load %arg13[%c280_137, %c0_138] : memref<408x66xf32, #tpu.memory_space<vmem>>, vector<8x66xf32>
    tpu.vector_store %arg13[%c280_137, %c0_138], %189 {strides = array<i32>} : memref<408x66xf32, #tpu.memory_space<vmem>>, vector<8x66xf32>,
    %191 = vector.extract_strided_slice %118 {offsets = [0, 36], sizes = [8, 66], strides = [1, 1]} : vector<8x116xf32> to vector<8x66xf32>
    %c288_139 = arith.constant 288 : index
    %c0_140 = arith.constant 0 : index
    %192 = vector.load %arg13[%c288_139, %c0_140] : memref<408x66xf32, #tpu.memory_space<vmem>>, vector<8x66xf32>
    tpu.vector_store %arg13[%c288_139, %c0_140], %191 {strides = array<i32>} : memref<408x66xf32, #tpu.memory_space<vmem>>, vector<8x66xf32>,
    %193 = vector.extract_strided_slice %118 {offsets = [0, 37], sizes = [8, 66], strides = [1, 1]} : vector<8x116xf32> to vector<8x66xf32>
    %c296_141 = arith.constant 296 : index
    %c0_142 = arith.constant 0 : index
    %194 = vector.load %arg13[%c296_141, %c0_142] : memref<408x66xf32, #tpu.memory_space<vmem>>, vector<8x66xf32>
    tpu.vector_store %arg13[%c296_141, %c0_142], %193 {strides = array<i32>} : memref<408x66xf32, #tpu.memory_space<vmem>>, vector<8x66xf32>,
    %195 = vector.extract_strided_slice %118 {offsets = [0, 38], sizes = [8, 66], strides = [1, 1]} : vector<8x116xf32> to vector<8x66xf32>
    %c304_143 = arith.constant 304 : index
    %c0_144 = arith.constant 0 : index
    %196 = vector.load %arg13[%c304_143, %c0_144] : memref<408x66xf32, #tpu.memory_space<vmem>>, vector<8x66xf32>
    tpu.vector_store %arg13[%c304_143, %c0_144], %195 {strides = array<i32>} : memref<408x66xf32, #tpu.memory_space<vmem>>, vector<8x66xf32>,
    %197 = vector.extract_strided_slice %118 {offsets = [0, 39], sizes = [8, 66], strides = [1, 1]} : vector<8x116xf32> to vector<8x66xf32>
    %c312_145 = arith.constant 312 : index
    %c0_146 = arith.constant 0 : index
    %198 = vector.load %arg13[%c312_145, %c0_146] : memref<408x66xf32, #tpu.memory_space<vmem>>, vector<8x66xf32>
    tpu.vector_store %arg13[%c312_145, %c0_146], %197 {strides = array<i32>} : memref<408x66xf32, #tpu.memory_space<vmem>>, vector<8x66xf32>,
    %199 = vector.extract_strided_slice %118 {offsets = [0, 40], sizes = [8, 66], strides = [1, 1]} : vector<8x116xf32> to vector<8x66xf32>
    %c320_147 = arith.constant 320 : index
    %c0_148 = arith.constant 0 : index
    %200 = vector.load %arg13[%c320_147, %c0_148] : memref<408x66xf32, #tpu.memory_space<vmem>>, vector<8x66xf32>
    tpu.vector_store %arg13[%c320_147, %c0_148], %199 {strides = array<i32>} : memref<408x66xf32, #tpu.memory_space<vmem>>, vector<8x66xf32>,
    %201 = vector.extract_strided_slice %118 {offsets = [0, 41], sizes = [8, 66], strides = [1, 1]} : vector<8x116xf32> to vector<8x66xf32>
    %c328_149 = arith.constant 328 : index
    %c0_150 = arith.constant 0 : index
    %202 = vector.load %arg13[%c328_149, %c0_150] : memref<408x66xf32, #tpu.memory_space<vmem>>, vector<8x66xf32>
    tpu.vector_store %arg13[%c328_149, %c0_150], %201 {strides = array<i32>} : memref<408x66xf32, #tpu.memory_space<vmem>>, vector<8x66xf32>,
    %203 = vector.extract_strided_slice %118 {offsets = [0, 42], sizes = [8, 66], strides = [1, 1]} : vector<8x116xf32> to vector<8x66xf32>
    %c336_151 = arith.constant 336 : index
    %c0_152 = arith.constant 0 : index
    %204 = vector.load %arg13[%c336_151, %c0_152] : memref<408x66xf32, #tpu.memory_space<vmem>>, vector<8x66xf32>
    tpu.vector_store %arg13[%c336_151, %c0_152], %203 {strides = array<i32>} : memref<408x66xf32, #tpu.memory_space<vmem>>, vector<8x66xf32>,
    %205 = vector.extract_strided_slice %118 {offsets = [0, 43], sizes = [8, 66], strides = [1, 1]} : vector<8x116xf32> to vector<8x66xf32>
    %c344_153 = arith.constant 344 : index
    %c0_154 = arith.constant 0 : index
    %206 = vector.load %arg13[%c344_153, %c0_154] : memref<408x66xf32, #tpu.memory_space<vmem>>, vector<8x66xf32>
    tpu.vector_store %arg13[%c344_153, %c0_154], %205 {strides = array<i32>} : memref<408x66xf32, #tpu.memory_space<vmem>>, vector<8x66xf32>,
    %207 = vector.extract_strided_slice %118 {offsets = [0, 44], sizes = [8, 66], strides = [1, 1]} : vector<8x116xf32> to vector<8x66xf32>
    %c352_155 = arith.constant 352 : index
    %c0_156 = arith.constant 0 : index
    %208 = vector.load %arg13[%c352_155, %c0_156] : memref<408x66xf32, #tpu.memory_space<vmem>>, vector<8x66xf32>
    tpu.vector_store %arg13[%c352_155, %c0_156], %207 {strides = array<i32>} : memref<408x66xf32, #tpu.memory_space<vmem>>, vector<8x66xf32>,
    %209 = vector.extract_strided_slice %118 {offsets = [0, 45], sizes = [8, 66], strides = [1, 1]} : vector<8x116xf32> to vector<8x66xf32>
    %c360_157 = arith.constant 360 : index
    %c0_158 = arith.constant 0 : index
    %210 = vector.load %arg13[%c360_157, %c0_158] : memref<408x66xf32, #tpu.memory_space<vmem>>, vector<8x66xf32>
    tpu.vector_store %arg13[%c360_157, %c0_158], %209 {strides = array<i32>} : memref<408x66xf32, #tpu.memory_space<vmem>>, vector<8x66xf32>,
    %211 = vector.extract_strided_slice %118 {offsets = [0, 46], sizes = [8, 66], strides = [1, 1]} : vector<8x116xf32> to vector<8x66xf32>
    %c368_159 = arith.constant 368 : index
    %c0_160 = arith.constant 0 : index
    %212 = vector.load %arg13[%c368_159, %c0_160] : memref<408x66xf32, #tpu.memory_space<vmem>>, vector<8x66xf32>
    tpu.vector_store %arg13[%c368_159, %c0_160], %211 {strides = array<i32>} : memref<408x66xf32, #tpu.memory_space<vmem>>, vector<8x66xf32>,
    %213 = vector.extract_strided_slice %118 {offsets = [0, 47], sizes = [8, 66], strides = [1, 1]} : vector<8x116xf32> to vector<8x66xf32>
    %c376_161 = arith.constant 376 : index
    %c0_162 = arith.constant 0 : index
    %214 = vector.load %arg13[%c376_161, %c0_162] : memref<408x66xf32, #tpu.memory_space<vmem>>, vector<8x66xf32>
    tpu.vector_store %arg13[%c376_161, %c0_162], %213 {strides = array<i32>} : memref<408x66xf32, #tpu.memory_space<vmem>>, vector<8x66xf32>,
    %215 = vector.extract_strided_slice %118 {offsets = [0, 48], sizes = [8, 66], strides = [1, 1]} : vector<8x116xf32> to vector<8x66xf32>
    %c384_163 = arith.constant 384 : index
    %c0_164 = arith.constant 0 : index
    %216 = vector.load %arg13[%c384_163, %c0_164] : memref<408x66xf32, #tpu.memory_space<vmem>>, vector<8x66xf32>
    tpu.vector_store %arg13[%c384_163, %c0_164], %215 {strides = array<i32>} : memref<408x66xf32, #tpu.memory_space<vmem>>, vector<8x66xf32>,
    %217 = vector.extract_strided_slice %118 {offsets = [0, 49], sizes = [8, 66], strides = [1, 1]} : vector<8x116xf32> to vector<8x66xf32>
    %c392_165 = arith.constant 392 : index
    %c0_166 = arith.constant 0 : index
    %218 = vector.load %arg13[%c392_165, %c0_166] : memref<408x66xf32, #tpu.memory_space<vmem>>, vector<8x66xf32>
    tpu.vector_store %arg13[%c392_165, %c0_166], %217 {strides = array<i32>} : memref<408x66xf32, #tpu.memory_space<vmem>>, vector<8x66xf32>,
    %219 = vector.extract_strided_slice %118 {offsets = [0, 50], sizes = [8, 66], strides = [1, 1]} : vector<8x116xf32> to vector<8x66xf32>
    %c400_167 = arith.constant 400 : index
    %c0_168 = arith.constant 0 : index
    %220 = vector.load %arg13[%c400_167, %c0_168] : memref<408x66xf32, #tpu.memory_space<vmem>>, vector<8x66xf32>
    tpu.vector_store %arg13[%c400_167, %c0_168], %219 {strides = array<i32>} : memref<408x66xf32, #tpu.memory_space<vmem>>, vector<8x66xf32>,
    %c0_169 = arith.constant 0 : index
    %c0_170 = arith.constant 0 : index
    %221 = vector.load %arg4[%c0_169, %c0_170] : memref<6x408xf32, #tpu.memory_space<vmem>>, vector<6x408xf32>
    %c0_171 = arith.constant 0 : index
    %c0_172 = arith.constant 0 : index
    %222 = vector.load %arg13[%c0_171, %c0_172] : memref<408x66xf32, #tpu.memory_space<vmem>>, vector<408x66xf32>
    %cst_173 = arith.constant dense<0.000000e+00> : vector<6x66xf32>
    %223 = tpu.matmul %221, %222, %cst_173 {dimension_numbers = #tpu.dot_dimension_numbers<[1], [0], [0], [1], [0, 0, 1, 1], [], []>} : vector<6x408xf32>, vector<408x66xf32>, vector<6x66xf32> -> vector<6x66xf32>
    %c0_174 = arith.constant 0 : index
    %c0_175 = arith.constant 0 : index
    %224 = vector.load %arg5[%c0_174, %c0_175] : memref<6x1xf32, #tpu.memory_space<vmem>>, vector<6x1xf32>
    %225 = vector.broadcast %224 : vector<6x1xf32> to vector<6x66xf32>
    %226 = arith.addf %223, %225 : vector<6x66xf32>
    %cst_176 = arith.constant 0.000000e+00 : f32
    %227 = vector.broadcast %cst_176 : f32 to vector<8x116xf32>
    %c0_177 = arith.constant 0 : index
    %c0_178 = arith.constant 0 : index
    %228 = vector.load %arg14[%c0_177, %c0_178] : memref<8x116xf32, #tpu.memory_space<vmem>>, vector<8x116xf32>
    tpu.vector_store %arg14[%c0_177, %c0_178], %227 {strides = array<i32>} : memref<8x116xf32, #tpu.memory_space<vmem>>, vector<8x116xf32>,
    %c0_179 = arith.constant 0 : index
    %c25_180 = arith.constant 25 : index
    %229 = vector.load %arg14[%c0_179, %c25_180] : memref<8x116xf32, #tpu.memory_space<vmem>>, vector<6x66xf32>
    tpu.vector_store %arg14[%c0_179, %c25_180], %226 {strides = array<i32>} : memref<8x116xf32, #tpu.memory_space<vmem>>, vector<6x66xf32>,
    %c0_181 = arith.constant 0 : index
    %c0_182 = arith.constant 0 : index
    %230 = vector.load %arg14[%c0_181, %c0_182] : memref<8x116xf32, #tpu.memory_space<vmem>>, vector<8x116xf32>
    %231 = vector.extract_strided_slice %230 {offsets = [0, 0], sizes = [8, 66], strides = [1, 1]} : vector<8x116xf32> to vector<8x66xf32>
    %c0_183 = arith.constant 0 : index
    %c0_184 = arith.constant 0 : index
    %232 = vector.load %arg15[%c0_183, %c0_184] : memref<408x66xf32, #tpu.memory_space<vmem>>, vector<8x66xf32>
    tpu.vector_store %arg15[%c0_183, %c0_184], %231 {strides = array<i32>} : memref<408x66xf32, #tpu.memory_space<vmem>>, vector<8x66xf32>,
    %233 = vector.extract_strided_slice %230 {offsets = [0, 1], sizes = [8, 66], strides = [1, 1]} : vector<8x116xf32> to vector<8x66xf32>
    %c8_185 = arith.constant 8 : index
    %c0_186 = arith.constant 0 : index
    %234 = vector.load %arg15[%c8_185, %c0_186] : memref<408x66xf32, #tpu.memory_space<vmem>>, vector<8x66xf32>
    tpu.vector_store %arg15[%c8_185, %c0_186], %233 {strides = array<i32>} : memref<408x66xf32, #tpu.memory_space<vmem>>, vector<8x66xf32>,
    %235 = vector.extract_strided_slice %230 {offsets = [0, 2], sizes = [8, 66], strides = [1, 1]} : vector<8x116xf32> to vector<8x66xf32>
    %c16_187 = arith.constant 16 : index
    %c0_188 = arith.constant 0 : index
    %236 = vector.load %arg15[%c16_187, %c0_188] : memref<408x66xf32, #tpu.memory_space<vmem>>, vector<8x66xf32>
    tpu.vector_store %arg15[%c16_187, %c0_188], %235 {strides = array<i32>} : memref<408x66xf32, #tpu.memory_space<vmem>>, vector<8x66xf32>,
    %237 = vector.extract_strided_slice %230 {offsets = [0, 3], sizes = [8, 66], strides = [1, 1]} : vector<8x116xf32> to vector<8x66xf32>
    %c24_189 = arith.constant 24 : index
    %c0_190 = arith.constant 0 : index
    %238 = vector.load %arg15[%c24_189, %c0_190] : memref<408x66xf32, #tpu.memory_space<vmem>>, vector<8x66xf32>
    tpu.vector_store %arg15[%c24_189, %c0_190], %237 {strides = array<i32>} : memref<408x66xf32, #tpu.memory_space<vmem>>, vector<8x66xf32>,
    %239 = vector.extract_strided_slice %230 {offsets = [0, 4], sizes = [8, 66], strides = [1, 1]} : vector<8x116xf32> to vector<8x66xf32>
    %c32_191 = arith.constant 32 : index
    %c0_192 = arith.constant 0 : index
    %240 = vector.load %arg15[%c32_191, %c0_192] : memref<408x66xf32, #tpu.memory_space<vmem>>, vector<8x66xf32>
    tpu.vector_store %arg15[%c32_191, %c0_192], %239 {strides = array<i32>} : memref<408x66xf32, #tpu.memory_space<vmem>>, vector<8x66xf32>,
    %241 = vector.extract_strided_slice %230 {offsets = [0, 5], sizes = [8, 66], strides = [1, 1]} : vector<8x116xf32> to vector<8x66xf32>
    %c40_193 = arith.constant 40 : index
    %c0_194 = arith.constant 0 : index
    %242 = vector.load %arg15[%c40_193, %c0_194] : memref<408x66xf32, #tpu.memory_space<vmem>>, vector<8x66xf32>
    tpu.vector_store %arg15[%c40_193, %c0_194], %241 {strides = array<i32>} : memref<408x66xf32, #tpu.memory_space<vmem>>, vector<8x66xf32>,
    %243 = vector.extract_strided_slice %230 {offsets = [0, 6], sizes = [8, 66], strides = [1, 1]} : vector<8x116xf32> to vector<8x66xf32>
    %c48_195 = arith.constant 48 : index
    %c0_196 = arith.constant 0 : index
    %244 = vector.load %arg15[%c48_195, %c0_196] : memref<408x66xf32, #tpu.memory_space<vmem>>, vector<8x66xf32>
    tpu.vector_store %arg15[%c48_195, %c0_196], %243 {strides = array<i32>} : memref<408x66xf32, #tpu.memory_space<vmem>>, vector<8x66xf32>,
    %245 = vector.extract_strided_slice %230 {offsets = [0, 7], sizes = [8, 66], strides = [1, 1]} : vector<8x116xf32> to vector<8x66xf32>
    %c56_197 = arith.constant 56 : index
    %c0_198 = arith.constant 0 : index
    %246 = vector.load %arg15[%c56_197, %c0_198] : memref<408x66xf32, #tpu.memory_space<vmem>>, vector<8x66xf32>
    tpu.vector_store %arg15[%c56_197, %c0_198], %245 {strides = array<i32>} : memref<408x66xf32, #tpu.memory_space<vmem>>, vector<8x66xf32>,
    %247 = vector.extract_strided_slice %230 {offsets = [0, 8], sizes = [8, 66], strides = [1, 1]} : vector<8x116xf32> to vector<8x66xf32>
    %c64_199 = arith.constant 64 : index
    %c0_200 = arith.constant 0 : index
    %248 = vector.load %arg15[%c64_199, %c0_200] : memref<408x66xf32, #tpu.memory_space<vmem>>, vector<8x66xf32>
    tpu.vector_store %arg15[%c64_199, %c0_200], %247 {strides = array<i32>} : memref<408x66xf32, #tpu.memory_space<vmem>>, vector<8x66xf32>,
    %249 = vector.extract_strided_slice %230 {offsets = [0, 9], sizes = [8, 66], strides = [1, 1]} : vector<8x116xf32> to vector<8x66xf32>
    %c72_201 = arith.constant 72 : index
    %c0_202 = arith.constant 0 : index
    %250 = vector.load %arg15[%c72_201, %c0_202] : memref<408x66xf32, #tpu.memory_space<vmem>>, vector<8x66xf32>
    tpu.vector_store %arg15[%c72_201, %c0_202], %249 {strides = array<i32>} : memref<408x66xf32, #tpu.memory_space<vmem>>, vector<8x66xf32>,
    %251 = vector.extract_strided_slice %230 {offsets = [0, 10], sizes = [8, 66], strides = [1, 1]} : vector<8x116xf32> to vector<8x66xf32>
    %c80_203 = arith.constant 80 : index
    %c0_204 = arith.constant 0 : index
    %252 = vector.load %arg15[%c80_203, %c0_204] : memref<408x66xf32, #tpu.memory_space<vmem>>, vector<8x66xf32>
    tpu.vector_store %arg15[%c80_203, %c0_204], %251 {strides = array<i32>} : memref<408x66xf32, #tpu.memory_space<vmem>>, vector<8x66xf32>,
    %253 = vector.extract_strided_slice %230 {offsets = [0, 11], sizes = [8, 66], strides = [1, 1]} : vector<8x116xf32> to vector<8x66xf32>
    %c88_205 = arith.constant 88 : index
    %c0_206 = arith.constant 0 : index
    %254 = vector.load %arg15[%c88_205, %c0_206] : memref<408x66xf32, #tpu.memory_space<vmem>>, vector<8x66xf32>
    tpu.vector_store %arg15[%c88_205, %c0_206], %253 {strides = array<i32>} : memref<408x66xf32, #tpu.memory_space<vmem>>, vector<8x66xf32>,
    %255 = vector.extract_strided_slice %230 {offsets = [0, 12], sizes = [8, 66], strides = [1, 1]} : vector<8x116xf32> to vector<8x66xf32>
    %c96_207 = arith.constant 96 : index
    %c0_208 = arith.constant 0 : index
    %256 = vector.load %arg15[%c96_207, %c0_208] : memref<408x66xf32, #tpu.memory_space<vmem>>, vector<8x66xf32>
    tpu.vector_store %arg15[%c96_207, %c0_208], %255 {strides = array<i32>} : memref<408x66xf32, #tpu.memory_space<vmem>>, vector<8x66xf32>,
    %257 = vector.extract_strided_slice %230 {offsets = [0, 13], sizes = [8, 66], strides = [1, 1]} : vector<8x116xf32> to vector<8x66xf32>
    %c104_209 = arith.constant 104 : index
    %c0_210 = arith.constant 0 : index
    %258 = vector.load %arg15[%c104_209, %c0_210] : memref<408x66xf32, #tpu.memory_space<vmem>>, vector<8x66xf32>
    tpu.vector_store %arg15[%c104_209, %c0_210], %257 {strides = array<i32>} : memref<408x66xf32, #tpu.memory_space<vmem>>, vector<8x66xf32>,
    %259 = vector.extract_strided_slice %230 {offsets = [0, 14], sizes = [8, 66], strides = [1, 1]} : vector<8x116xf32> to vector<8x66xf32>
    %c112_211 = arith.constant 112 : index
    %c0_212 = arith.constant 0 : index
    %260 = vector.load %arg15[%c112_211, %c0_212] : memref<408x66xf32, #tpu.memory_space<vmem>>, vector<8x66xf32>
    tpu.vector_store %arg15[%c112_211, %c0_212], %259 {strides = array<i32>} : memref<408x66xf32, #tpu.memory_space<vmem>>, vector<8x66xf32>,
    %261 = vector.extract_strided_slice %230 {offsets = [0, 15], sizes = [8, 66], strides = [1, 1]} : vector<8x116xf32> to vector<8x66xf32>
    %c120_213 = arith.constant 120 : index
    %c0_214 = arith.constant 0 : index
    %262 = vector.load %arg15[%c120_213, %c0_214] : memref<408x66xf32, #tpu.memory_space<vmem>>, vector<8x66xf32>
    tpu.vector_store %arg15[%c120_213, %c0_214], %261 {strides = array<i32>} : memref<408x66xf32, #tpu.memory_space<vmem>>, vector<8x66xf32>,
    %263 = vector.extract_strided_slice %230 {offsets = [0, 16], sizes = [8, 66], strides = [1, 1]} : vector<8x116xf32> to vector<8x66xf32>
    %c128_215 = arith.constant 128 : index
    %c0_216 = arith.constant 0 : index
    %264 = vector.load %arg15[%c128_215, %c0_216] : memref<408x66xf32, #tpu.memory_space<vmem>>, vector<8x66xf32>
    tpu.vector_store %arg15[%c128_215, %c0_216], %263 {strides = array<i32>} : memref<408x66xf32, #tpu.memory_space<vmem>>, vector<8x66xf32>,
    %265 = vector.extract_strided_slice %230 {offsets = [0, 17], sizes = [8, 66], strides = [1, 1]} : vector<8x116xf32> to vector<8x66xf32>
    %c136_217 = arith.constant 136 : index
    %c0_218 = arith.constant 0 : index
    %266 = vector.load %arg15[%c136_217, %c0_218] : memref<408x66xf32, #tpu.memory_space<vmem>>, vector<8x66xf32>
    tpu.vector_store %arg15[%c136_217, %c0_218], %265 {strides = array<i32>} : memref<408x66xf32, #tpu.memory_space<vmem>>, vector<8x66xf32>,
    %267 = vector.extract_strided_slice %230 {offsets = [0, 18], sizes = [8, 66], strides = [1, 1]} : vector<8x116xf32> to vector<8x66xf32>
    %c144_219 = arith.constant 144 : index
    %c0_220 = arith.constant 0 : index
    %268 = vector.load %arg15[%c144_219, %c0_220] : memref<408x66xf32, #tpu.memory_space<vmem>>, vector<8x66xf32>
    tpu.vector_store %arg15[%c144_219, %c0_220], %267 {strides = array<i32>} : memref<408x66xf32, #tpu.memory_space<vmem>>, vector<8x66xf32>,
    %269 = vector.extract_strided_slice %230 {offsets = [0, 19], sizes = [8, 66], strides = [1, 1]} : vector<8x116xf32> to vector<8x66xf32>
    %c152_221 = arith.constant 152 : index
    %c0_222 = arith.constant 0 : index
    %270 = vector.load %arg15[%c152_221, %c0_222] : memref<408x66xf32, #tpu.memory_space<vmem>>, vector<8x66xf32>
    tpu.vector_store %arg15[%c152_221, %c0_222], %269 {strides = array<i32>} : memref<408x66xf32, #tpu.memory_space<vmem>>, vector<8x66xf32>,
    %271 = vector.extract_strided_slice %230 {offsets = [0, 20], sizes = [8, 66], strides = [1, 1]} : vector<8x116xf32> to vector<8x66xf32>
    %c160_223 = arith.constant 160 : index
    %c0_224 = arith.constant 0 : index
    %272 = vector.load %arg15[%c160_223, %c0_224] : memref<408x66xf32, #tpu.memory_space<vmem>>, vector<8x66xf32>
    tpu.vector_store %arg15[%c160_223, %c0_224], %271 {strides = array<i32>} : memref<408x66xf32, #tpu.memory_space<vmem>>, vector<8x66xf32>,
    %273 = vector.extract_strided_slice %230 {offsets = [0, 21], sizes = [8, 66], strides = [1, 1]} : vector<8x116xf32> to vector<8x66xf32>
    %c168_225 = arith.constant 168 : index
    %c0_226 = arith.constant 0 : index
    %274 = vector.load %arg15[%c168_225, %c0_226] : memref<408x66xf32, #tpu.memory_space<vmem>>, vector<8x66xf32>
    tpu.vector_store %arg15[%c168_225, %c0_226], %273 {strides = array<i32>} : memref<408x66xf32, #tpu.memory_space<vmem>>, vector<8x66xf32>,
    %275 = vector.extract_strided_slice %230 {offsets = [0, 22], sizes = [8, 66], strides = [1, 1]} : vector<8x116xf32> to vector<8x66xf32>
    %c176_227 = arith.constant 176 : index
    %c0_228 = arith.constant 0 : index
    %276 = vector.load %arg15[%c176_227, %c0_228] : memref<408x66xf32, #tpu.memory_space<vmem>>, vector<8x66xf32>
    tpu.vector_store %arg15[%c176_227, %c0_228], %275 {strides = array<i32>} : memref<408x66xf32, #tpu.memory_space<vmem>>, vector<8x66xf32>,
    %277 = vector.extract_strided_slice %230 {offsets = [0, 23], sizes = [8, 66], strides = [1, 1]} : vector<8x116xf32> to vector<8x66xf32>
    %c184_229 = arith.constant 184 : index
    %c0_230 = arith.constant 0 : index
    %278 = vector.load %arg15[%c184_229, %c0_230] : memref<408x66xf32, #tpu.memory_space<vmem>>, vector<8x66xf32>
    tpu.vector_store %arg15[%c184_229, %c0_230], %277 {strides = array<i32>} : memref<408x66xf32, #tpu.memory_space<vmem>>, vector<8x66xf32>,
    %279 = vector.extract_strided_slice %230 {offsets = [0, 24], sizes = [8, 66], strides = [1, 1]} : vector<8x116xf32> to vector<8x66xf32>
    %c192_231 = arith.constant 192 : index
    %c0_232 = arith.constant 0 : index
    %280 = vector.load %arg15[%c192_231, %c0_232] : memref<408x66xf32, #tpu.memory_space<vmem>>, vector<8x66xf32>
    tpu.vector_store %arg15[%c192_231, %c0_232], %279 {strides = array<i32>} : memref<408x66xf32, #tpu.memory_space<vmem>>, vector<8x66xf32>,
    %281 = vector.extract_strided_slice %230 {offsets = [0, 25], sizes = [8, 66], strides = [1, 1]} : vector<8x116xf32> to vector<8x66xf32>
    %c200_233 = arith.constant 200 : index
    %c0_234 = arith.constant 0 : index
    %282 = vector.load %arg15[%c200_233, %c0_234] : memref<408x66xf32, #tpu.memory_space<vmem>>, vector<8x66xf32>
    tpu.vector_store %arg15[%c200_233, %c0_234], %281 {strides = array<i32>} : memref<408x66xf32, #tpu.memory_space<vmem>>, vector<8x66xf32>,
    %283 = vector.extract_strided_slice %230 {offsets = [0, 26], sizes = [8, 66], strides = [1, 1]} : vector<8x116xf32> to vector<8x66xf32>
    %c208_235 = arith.constant 208 : index
    %c0_236 = arith.constant 0 : index
    %284 = vector.load %arg15[%c208_235, %c0_236] : memref<408x66xf32, #tpu.memory_space<vmem>>, vector<8x66xf32>
    tpu.vector_store %arg15[%c208_235, %c0_236], %283 {strides = array<i32>} : memref<408x66xf32, #tpu.memory_space<vmem>>, vector<8x66xf32>,
    %285 = vector.extract_strided_slice %230 {offsets = [0, 27], sizes = [8, 66], strides = [1, 1]} : vector<8x116xf32> to vector<8x66xf32>
    %c216_237 = arith.constant 216 : index
    %c0_238 = arith.constant 0 : index
    %286 = vector.load %arg15[%c216_237, %c0_238] : memref<408x66xf32, #tpu.memory_space<vmem>>, vector<8x66xf32>
    tpu.vector_store %arg15[%c216_237, %c0_238], %285 {strides = array<i32>} : memref<408x66xf32, #tpu.memory_space<vmem>>, vector<8x66xf32>,
    %287 = vector.extract_strided_slice %230 {offsets = [0, 28], sizes = [8, 66], strides = [1, 1]} : vector<8x116xf32> to vector<8x66xf32>
    %c224_239 = arith.constant 224 : index
    %c0_240 = arith.constant 0 : index
    %288 = vector.load %arg15[%c224_239, %c0_240] : memref<408x66xf32, #tpu.memory_space<vmem>>, vector<8x66xf32>
    tpu.vector_store %arg15[%c224_239, %c0_240], %287 {strides = array<i32>} : memref<408x66xf32, #tpu.memory_space<vmem>>, vector<8x66xf32>,
    %289 = vector.extract_strided_slice %230 {offsets = [0, 29], sizes = [8, 66], strides = [1, 1]} : vector<8x116xf32> to vector<8x66xf32>
    %c232_241 = arith.constant 232 : index
    %c0_242 = arith.constant 0 : index
    %290 = vector.load %arg15[%c232_241, %c0_242] : memref<408x66xf32, #tpu.memory_space<vmem>>, vector<8x66xf32>
    tpu.vector_store %arg15[%c232_241, %c0_242], %289 {strides = array<i32>} : memref<408x66xf32, #tpu.memory_space<vmem>>, vector<8x66xf32>,
    %291 = vector.extract_strided_slice %230 {offsets = [0, 30], sizes = [8, 66], strides = [1, 1]} : vector<8x116xf32> to vector<8x66xf32>
    %c240_243 = arith.constant 240 : index
    %c0_244 = arith.constant 0 : index
    %292 = vector.load %arg15[%c240_243, %c0_244] : memref<408x66xf32, #tpu.memory_space<vmem>>, vector<8x66xf32>
    tpu.vector_store %arg15[%c240_243, %c0_244], %291 {strides = array<i32>} : memref<408x66xf32, #tpu.memory_space<vmem>>, vector<8x66xf32>,
    %293 = vector.extract_strided_slice %230 {offsets = [0, 31], sizes = [8, 66], strides = [1, 1]} : vector<8x116xf32> to vector<8x66xf32>
    %c248_245 = arith.constant 248 : index
    %c0_246 = arith.constant 0 : index
    %294 = vector.load %arg15[%c248_245, %c0_246] : memref<408x66xf32, #tpu.memory_space<vmem>>, vector<8x66xf32>
    tpu.vector_store %arg15[%c248_245, %c0_246], %293 {strides = array<i32>} : memref<408x66xf32, #tpu.memory_space<vmem>>, vector<8x66xf32>,
    %295 = vector.extract_strided_slice %230 {offsets = [0, 32], sizes = [8, 66], strides = [1, 1]} : vector<8x116xf32> to vector<8x66xf32>
    %c256_247 = arith.constant 256 : index
    %c0_248 = arith.constant 0 : index
    %296 = vector.load %arg15[%c256_247, %c0_248] : memref<408x66xf32, #tpu.memory_space<vmem>>, vector<8x66xf32>
    tpu.vector_store %arg15[%c256_247, %c0_248], %295 {strides = array<i32>} : memref<408x66xf32, #tpu.memory_space<vmem>>, vector<8x66xf32>,
    %297 = vector.extract_strided_slice %230 {offsets = [0, 33], sizes = [8, 66], strides = [1, 1]} : vector<8x116xf32> to vector<8x66xf32>
    %c264_249 = arith.constant 264 : index
    %c0_250 = arith.constant 0 : index
    %298 = vector.load %arg15[%c264_249, %c0_250] : memref<408x66xf32, #tpu.memory_space<vmem>>, vector<8x66xf32>
    tpu.vector_store %arg15[%c264_249, %c0_250], %297 {strides = array<i32>} : memref<408x66xf32, #tpu.memory_space<vmem>>, vector<8x66xf32>,
    %299 = vector.extract_strided_slice %230 {offsets = [0, 34], sizes = [8, 66], strides = [1, 1]} : vector<8x116xf32> to vector<8x66xf32>
    %c272_251 = arith.constant 272 : index
    %c0_252 = arith.constant 0 : index
    %300 = vector.load %arg15[%c272_251, %c0_252] : memref<408x66xf32, #tpu.memory_space<vmem>>, vector<8x66xf32>
    tpu.vector_store %arg15[%c272_251, %c0_252], %299 {strides = array<i32>} : memref<408x66xf32, #tpu.memory_space<vmem>>, vector<8x66xf32>,
    %301 = vector.extract_strided_slice %230 {offsets = [0, 35], sizes = [8, 66], strides = [1, 1]} : vector<8x116xf32> to vector<8x66xf32>
    %c280_253 = arith.constant 280 : index
    %c0_254 = arith.constant 0 : index
    %302 = vector.load %arg15[%c280_253, %c0_254] : memref<408x66xf32, #tpu.memory_space<vmem>>, vector<8x66xf32>
    tpu.vector_store %arg15[%c280_253, %c0_254], %301 {strides = array<i32>} : memref<408x66xf32, #tpu.memory_space<vmem>>, vector<8x66xf32>,
    %303 = vector.extract_strided_slice %230 {offsets = [0, 36], sizes = [8, 66], strides = [1, 1]} : vector<8x116xf32> to vector<8x66xf32>
    %c288_255 = arith.constant 288 : index
    %c0_256 = arith.constant 0 : index
    %304 = vector.load %arg15[%c288_255, %c0_256] : memref<408x66xf32, #tpu.memory_space<vmem>>, vector<8x66xf32>
    tpu.vector_store %arg15[%c288_255, %c0_256], %303 {strides = array<i32>} : memref<408x66xf32, #tpu.memory_space<vmem>>, vector<8x66xf32>,
    %305 = vector.extract_strided_slice %230 {offsets = [0, 37], sizes = [8, 66], strides = [1, 1]} : vector<8x116xf32> to vector<8x66xf32>
    %c296_257 = arith.constant 296 : index
    %c0_258 = arith.constant 0 : index
    %306 = vector.load %arg15[%c296_257, %c0_258] : memref<408x66xf32, #tpu.memory_space<vmem>>, vector<8x66xf32>
    tpu.vector_store %arg15[%c296_257, %c0_258], %305 {strides = array<i32>} : memref<408x66xf32, #tpu.memory_space<vmem>>, vector<8x66xf32>,
    %307 = vector.extract_strided_slice %230 {offsets = [0, 38], sizes = [8, 66], strides = [1, 1]} : vector<8x116xf32> to vector<8x66xf32>
    %c304_259 = arith.constant 304 : index
    %c0_260 = arith.constant 0 : index
    %308 = vector.load %arg15[%c304_259, %c0_260] : memref<408x66xf32, #tpu.memory_space<vmem>>, vector<8x66xf32>
    tpu.vector_store %arg15[%c304_259, %c0_260], %307 {strides = array<i32>} : memref<408x66xf32, #tpu.memory_space<vmem>>, vector<8x66xf32>,
    %309 = vector.extract_strided_slice %230 {offsets = [0, 39], sizes = [8, 66], strides = [1, 1]} : vector<8x116xf32> to vector<8x66xf32>
    %c312_261 = arith.constant 312 : index
    %c0_262 = arith.constant 0 : index
    %310 = vector.load %arg15[%c312_261, %c0_262] : memref<408x66xf32, #tpu.memory_space<vmem>>, vector<8x66xf32>
    tpu.vector_store %arg15[%c312_261, %c0_262], %309 {strides = array<i32>} : memref<408x66xf32, #tpu.memory_space<vmem>>, vector<8x66xf32>,
    %311 = vector.extract_strided_slice %230 {offsets = [0, 40], sizes = [8, 66], strides = [1, 1]} : vector<8x116xf32> to vector<8x66xf32>
    %c320_263 = arith.constant 320 : index
    %c0_264 = arith.constant 0 : index
    %312 = vector.load %arg15[%c320_263, %c0_264] : memref<408x66xf32, #tpu.memory_space<vmem>>, vector<8x66xf32>
    tpu.vector_store %arg15[%c320_263, %c0_264], %311 {strides = array<i32>} : memref<408x66xf32, #tpu.memory_space<vmem>>, vector<8x66xf32>,
    %313 = vector.extract_strided_slice %230 {offsets = [0, 41], sizes = [8, 66], strides = [1, 1]} : vector<8x116xf32> to vector<8x66xf32>
    %c328_265 = arith.constant 328 : index
    %c0_266 = arith.constant 0 : index
    %314 = vector.load %arg15[%c328_265, %c0_266] : memref<408x66xf32, #tpu.memory_space<vmem>>, vector<8x66xf32>
    tpu.vector_store %arg15[%c328_265, %c0_266], %313 {strides = array<i32>} : memref<408x66xf32, #tpu.memory_space<vmem>>, vector<8x66xf32>,
    %315 = vector.extract_strided_slice %230 {offsets = [0, 42], sizes = [8, 66], strides = [1, 1]} : vector<8x116xf32> to vector<8x66xf32>
    %c336_267 = arith.constant 336 : index
    %c0_268 = arith.constant 0 : index
    %316 = vector.load %arg15[%c336_267, %c0_268] : memref<408x66xf32, #tpu.memory_space<vmem>>, vector<8x66xf32>
    tpu.vector_store %arg15[%c336_267, %c0_268], %315 {strides = array<i32>} : memref<408x66xf32, #tpu.memory_space<vmem>>, vector<8x66xf32>,
    %317 = vector.extract_strided_slice %230 {offsets = [0, 43], sizes = [8, 66], strides = [1, 1]} : vector<8x116xf32> to vector<8x66xf32>
    %c344_269 = arith.constant 344 : index
    %c0_270 = arith.constant 0 : index
    %318 = vector.load %arg15[%c344_269, %c0_270] : memref<408x66xf32, #tpu.memory_space<vmem>>, vector<8x66xf32>
    tpu.vector_store %arg15[%c344_269, %c0_270], %317 {strides = array<i32>} : memref<408x66xf32, #tpu.memory_space<vmem>>, vector<8x66xf32>,
    %319 = vector.extract_strided_slice %230 {offsets = [0, 44], sizes = [8, 66], strides = [1, 1]} : vector<8x116xf32> to vector<8x66xf32>
    %c352_271 = arith.constant 352 : index
    %c0_272 = arith.constant 0 : index
    %320 = vector.load %arg15[%c352_271, %c0_272] : memref<408x66xf32, #tpu.memory_space<vmem>>, vector<8x66xf32>
    tpu.vector_store %arg15[%c352_271, %c0_272], %319 {strides = array<i32>} : memref<408x66xf32, #tpu.memory_space<vmem>>, vector<8x66xf32>,
    %321 = vector.extract_strided_slice %230 {offsets = [0, 45], sizes = [8, 66], strides = [1, 1]} : vector<8x116xf32> to vector<8x66xf32>
    %c360_273 = arith.constant 360 : index
    %c0_274 = arith.constant 0 : index
    %322 = vector.load %arg15[%c360_273, %c0_274] : memref<408x66xf32, #tpu.memory_space<vmem>>, vector<8x66xf32>
    tpu.vector_store %arg15[%c360_273, %c0_274], %321 {strides = array<i32>} : memref<408x66xf32, #tpu.memory_space<vmem>>, vector<8x66xf32>,
    %323 = vector.extract_strided_slice %230 {offsets = [0, 46], sizes = [8, 66], strides = [1, 1]} : vector<8x116xf32> to vector<8x66xf32>
    %c368_275 = arith.constant 368 : index
    %c0_276 = arith.constant 0 : index
    %324 = vector.load %arg15[%c368_275, %c0_276] : memref<408x66xf32, #tpu.memory_space<vmem>>, vector<8x66xf32>
    tpu.vector_store %arg15[%c368_275, %c0_276], %323 {strides = array<i32>} : memref<408x66xf32, #tpu.memory_space<vmem>>, vector<8x66xf32>,
    %325 = vector.extract_strided_slice %230 {offsets = [0, 47], sizes = [8, 66], strides = [1, 1]} : vector<8x116xf32> to vector<8x66xf32>
    %c376_277 = arith.constant 376 : index
    %c0_278 = arith.constant 0 : index
    %326 = vector.load %arg15[%c376_277, %c0_278] : memref<408x66xf32, #tpu.memory_space<vmem>>, vector<8x66xf32>
    tpu.vector_store %arg15[%c376_277, %c0_278], %325 {strides = array<i32>} : memref<408x66xf32, #tpu.memory_space<vmem>>, vector<8x66xf32>,
    %327 = vector.extract_strided_slice %230 {offsets = [0, 48], sizes = [8, 66], strides = [1, 1]} : vector<8x116xf32> to vector<8x66xf32>
    %c384_279 = arith.constant 384 : index
    %c0_280 = arith.constant 0 : index
    %328 = vector.load %arg15[%c384_279, %c0_280] : memref<408x66xf32, #tpu.memory_space<vmem>>, vector<8x66xf32>
    tpu.vector_store %arg15[%c384_279, %c0_280], %327 {strides = array<i32>} : memref<408x66xf32, #tpu.memory_space<vmem>>, vector<8x66xf32>,
    %329 = vector.extract_strided_slice %230 {offsets = [0, 49], sizes = [8, 66], strides = [1, 1]} : vector<8x116xf32> to vector<8x66xf32>
    %c392_281 = arith.constant 392 : index
    %c0_282 = arith.constant 0 : index
    %330 = vector.load %arg15[%c392_281, %c0_282] : memref<408x66xf32, #tpu.memory_space<vmem>>, vector<8x66xf32>
    tpu.vector_store %arg15[%c392_281, %c0_282], %329 {strides = array<i32>} : memref<408x66xf32, #tpu.memory_space<vmem>>, vector<8x66xf32>,
    %331 = vector.extract_strided_slice %230 {offsets = [0, 50], sizes = [8, 66], strides = [1, 1]} : vector<8x116xf32> to vector<8x66xf32>
    %c400_283 = arith.constant 400 : index
    %c0_284 = arith.constant 0 : index
    %332 = vector.load %arg15[%c400_283, %c0_284] : memref<408x66xf32, #tpu.memory_space<vmem>>, vector<8x66xf32>
    tpu.vector_store %arg15[%c400_283, %c0_284], %331 {strides = array<i32>} : memref<408x66xf32, #tpu.memory_space<vmem>>, vector<8x66xf32>,
    %c0_285 = arith.constant 0 : index
    %c0_286 = arith.constant 0 : index
    %333 = vector.load %arg6[%c0_285, %c0_286] : memref<6x408xf32, #tpu.memory_space<vmem>>, vector<6x408xf32>
    %c0_287 = arith.constant 0 : index
    %c0_288 = arith.constant 0 : index
    %334 = vector.load %arg15[%c0_287, %c0_288] : memref<408x66xf32, #tpu.memory_space<vmem>>, vector<408x66xf32>
    %cst_289 = arith.constant dense<0.000000e+00> : vector<6x66xf32>
    %335 = tpu.matmul %333, %334, %cst_289 {dimension_numbers = #tpu.dot_dimension_numbers<[1], [0], [0], [1], [0, 0, 1, 1], [], []>} : vector<6x408xf32>, vector<408x66xf32>, vector<6x66xf32> -> vector<6x66xf32>
    %c0_290 = arith.constant 0 : index
    %c0_291 = arith.constant 0 : index
    %336 = vector.load %arg7[%c0_290, %c0_291] : memref<6x1xf32, #tpu.memory_space<vmem>>, vector<6x1xf32>
    %337 = vector.broadcast %336 : vector<6x1xf32> to vector<6x66xf32>
    %338 = arith.addf %335, %337 : vector<6x66xf32>
    %cst_292 = arith.constant 0.000000e+00 : f32
    %339 = vector.broadcast %cst_292 : f32 to vector<8x416xf32>
    %c0_293 = arith.constant 0 : index
    %c0_294 = arith.constant 0 : index
    %340 = vector.load %arg16[%c0_293, %c0_294] : memref<8x416xf32, #tpu.memory_space<vmem>>, vector<8x416xf32>
    tpu.vector_store %arg16[%c0_293, %c0_294], %339 {strides = array<i32>} : memref<8x416xf32, #tpu.memory_space<vmem>>, vector<8x416xf32>,
    %c0_295 = arith.constant 0 : index
    %c175 = arith.constant 175 : index
    %341 = vector.load %arg16[%c0_295, %c175] : memref<8x416xf32, #tpu.memory_space<vmem>>, vector<6x66xf32>
    tpu.vector_store %arg16[%c0_295, %c175], %338 {strides = array<i32>} : memref<8x416xf32, #tpu.memory_space<vmem>>, vector<6x66xf32>,
    %c0_296 = arith.constant 0 : index
    %c0_297 = arith.constant 0 : index
    %342 = vector.load %arg16[%c0_296, %c0_297] : memref<8x416xf32, #tpu.memory_space<vmem>>, vector<8x416xf32>
    %343 = vector.extract_strided_slice %342 {offsets = [0, 0], sizes = [8, 216], strides = [1, 1]} : vector<8x416xf32> to vector<8x216xf32>
    %c0_298 = arith.constant 0 : index
    %c0_299 = arith.constant 0 : index
    %344 = vector.load %arg17[%c0_298, %c0_299] : memref<1608x216xf32, #tpu.memory_space<vmem>>, vector<8x216xf32>
    tpu.vector_store %arg17[%c0_298, %c0_299], %343 {strides = array<i32>} : memref<1608x216xf32, #tpu.memory_space<vmem>>, vector<8x216xf32>,
    %345 = vector.extract_strided_slice %342 {offsets = [0, 1], sizes = [8, 216], strides = [1, 1]} : vector<8x416xf32> to vector<8x216xf32>
    %c8_300 = arith.constant 8 : index
    %c0_301 = arith.constant 0 : index
    %346 = vector.load %arg17[%c8_300, %c0_301] : memref<1608x216xf32, #tpu.memory_space<vmem>>, vector<8x216xf32>
    tpu.vector_store %arg17[%c8_300, %c0_301], %345 {strides = array<i32>} : memref<1608x216xf32, #tpu.memory_space<vmem>>, vector<8x216xf32>,
    %347 = vector.extract_strided_slice %342 {offsets = [0, 2], sizes = [8, 216], strides = [1, 1]} : vector<8x416xf32> to vector<8x216xf32>
    %c16_302 = arith.constant 16 : index
    %c0_303 = arith.constant 0 : index
    %348 = vector.load %arg17[%c16_302, %c0_303] : memref<1608x216xf32, #tpu.memory_space<vmem>>, vector<8x216xf32>
    tpu.vector_store %arg17[%c16_302, %c0_303], %347 {strides = array<i32>} : memref<1608x216xf32, #tpu.memory_space<vmem>>, vector<8x216xf32>,
    %349 = vector.extract_strided_slice %342 {offsets = [0, 3], sizes = [8, 216], strides = [1, 1]} : vector<8x416xf32> to vector<8x216xf32>
    %c24_304 = arith.constant 24 : index
    %c0_305 = arith.constant 0 : index
    %350 = vector.load %arg17[%c24_304, %c0_305] : memref<1608x216xf32, #tpu.memory_space<vmem>>, vector<8x216xf32>
    tpu.vector_store %arg17[%c24_304, %c0_305], %349 {strides = array<i32>} : memref<1608x216xf32, #tpu.memory_space<vmem>>, vector<8x216xf32>,
    %351 = vector.extract_strided_slice %342 {offsets = [0, 4], sizes = [8, 216], strides = [1, 1]} : vector<8x416xf32> to vector<8x216xf32>
    %c32_306 = arith.constant 32 : index
    %c0_307 = arith.constant 0 : index
    %352 = vector.load %arg17[%c32_306, %c0_307] : memref<1608x216xf32, #tpu.memory_space<vmem>>, vector<8x216xf32>
    tpu.vector_store %arg17[%c32_306, %c0_307], %351 {strides = array<i32>} : memref<1608x216xf32, #tpu.memory_space<vmem>>, vector<8x216xf32>,
    %353 = vector.extract_strided_slice %342 {offsets = [0, 5], sizes = [8, 216], strides = [1, 1]} : vector<8x416xf32> to vector<8x216xf32>
    %c40_308 = arith.constant 40 : index
    %c0_309 = arith.constant 0 : index
    %354 = vector.load %arg17[%c40_308, %c0_309] : memref<1608x216xf32, #tpu.memory_space<vmem>>, vector<8x216xf32>
    tpu.vector_store %arg17[%c40_308, %c0_309], %353 {strides = array<i32>} : memref<1608x216xf32, #tpu.memory_space<vmem>>, vector<8x216xf32>,
    %355 = vector.extract_strided_slice %342 {offsets = [0, 6], sizes = [8, 216], strides = [1, 1]} : vector<8x416xf32> to vector<8x216xf32>
    %c48_310 = arith.constant 48 : index
    %c0_311 = arith.constant 0 : index
    %356 = vector.load %arg17[%c48_310, %c0_311] : memref<1608x216xf32, #tpu.memory_space<vmem>>, vector<8x216xf32>
    tpu.vector_store %arg17[%c48_310, %c0_311], %355 {strides = array<i32>} : memref<1608x216xf32, #tpu.memory_space<vmem>>, vector<8x216xf32>,
    %357 = vector.extract_strided_slice %342 {offsets = [0, 7], sizes = [8, 216], strides = [1, 1]} : vector<8x416xf32> to vector<8x216xf32>
    %c56_312 = arith.constant 56 : index
    %c0_313 = arith.constant 0 : index
    %358 = vector.load %arg17[%c56_312, %c0_313] : memref<1608x216xf32, #tpu.memory_space<vmem>>, vector<8x216xf32>
    tpu.vector_store %arg17[%c56_312, %c0_313], %357 {strides = array<i32>} : memref<1608x216xf32, #tpu.memory_space<vmem>>, vector<8x216xf32>,
    %359 = vector.extract_strided_slice %342 {offsets = [0, 8], sizes = [8, 216], strides = [1, 1]} : vector<8x416xf32> to vector<8x216xf32>
    %c64_314 = arith.constant 64 : index
    %c0_315 = arith.constant 0 : index
    %360 = vector.load %arg17[%c64_314, %c0_315] : memref<1608x216xf32, #tpu.memory_space<vmem>>, vector<8x216xf32>
    tpu.vector_store %arg17[%c64_314, %c0_315], %359 {strides = array<i32>} : memref<1608x216xf32, #tpu.memory_space<vmem>>, vector<8x216xf32>,
    %361 = vector.extract_strided_slice %342 {offsets = [0, 9], sizes = [8, 216], strides = [1, 1]} : vector<8x416xf32> to vector<8x216xf32>
    %c72_316 = arith.constant 72 : index
    %c0_317 = arith.constant 0 : index
    %362 = vector.load %arg17[%c72_316, %c0_317] : memref<1608x216xf32, #tpu.memory_space<vmem>>, vector<8x216xf32>
    tpu.vector_store %arg17[%c72_316, %c0_317], %361 {strides = array<i32>} : memref<1608x216xf32, #tpu.memory_space<vmem>>, vector<8x216xf32>,
    %363 = vector.extract_strided_slice %342 {offsets = [0, 10], sizes = [8, 216], strides = [1, 1]} : vector<8x416xf32> to vector<8x216xf32>
    %c80_318 = arith.constant 80 : index
    %c0_319 = arith.constant 0 : index
    %364 = vector.load %arg17[%c80_318, %c0_319] : memref<1608x216xf32, #tpu.memory_space<vmem>>, vector<8x216xf32>
    tpu.vector_store %arg17[%c80_318, %c0_319], %363 {strides = array<i32>} : memref<1608x216xf32, #tpu.memory_space<vmem>>, vector<8x216xf32>,
    %365 = vector.extract_strided_slice %342 {offsets = [0, 11], sizes = [8, 216], strides = [1, 1]} : vector<8x416xf32> to vector<8x216xf32>
    %c88_320 = arith.constant 88 : index
    %c0_321 = arith.constant 0 : index
    %366 = vector.load %arg17[%c88_320, %c0_321] : memref<1608x216xf32, #tpu.memory_space<vmem>>, vector<8x216xf32>
    tpu.vector_store %arg17[%c88_320, %c0_321], %365 {strides = array<i32>} : memref<1608x216xf32, #tpu.memory_space<vmem>>, vector<8x216xf32>,
    %367 = vector.extract_strided_slice %342 {offsets = [0, 12], sizes = [8, 216], strides = [1, 1]} : vector<8x416xf32> to vector<8x216xf32>
    %c96_322 = arith.constant 96 : index
    %c0_323 = arith.constant 0 : index
    %368 = vector.load %arg17[%c96_322, %c0_323] : memref<1608x216xf32, #tpu.memory_space<vmem>>, vector<8x216xf32>
    tpu.vector_store %arg17[%c96_322, %c0_323], %367 {strides = array<i32>} : memref<1608x216xf32, #tpu.memory_space<vmem>>, vector<8x216xf32>,
    %369 = vector.extract_strided_slice %342 {offsets = [0, 13], sizes = [8, 216], strides = [1, 1]} : vector<8x416xf32> to vector<8x216xf32>
    %c104_324 = arith.constant 104 : index
    %c0_325 = arith.constant 0 : index
    %370 = vector.load %arg17[%c104_324, %c0_325] : memref<1608x216xf32, #tpu.memory_space<vmem>>, vector<8x216xf32>
    tpu.vector_store %arg17[%c104_324, %c0_325], %369 {strides = array<i32>} : memref<1608x216xf32, #tpu.memory_space<vmem>>, vector<8x216xf32>,
    %371 = vector.extract_strided_slice %342 {offsets = [0, 14], sizes = [8, 216], strides = [1, 1]} : vector<8x416xf32> to vector<8x216xf32>
    %c112_326 = arith.constant 112 : index
    %c0_327 = arith.constant 0 : index
    %372 = vector.load %arg17[%c112_326, %c0_327] : memref<1608x216xf32, #tpu.memory_space<vmem>>, vector<8x216xf32>
    tpu.vector_store %arg17[%c112_326, %c0_327], %371 {strides = array<i32>} : memref<1608x216xf32, #tpu.memory_space<vmem>>, vector<8x216xf32>,
    %373 = vector.extract_strided_slice %342 {offsets = [0, 15], sizes = [8, 216], strides = [1, 1]} : vector<8x416xf32> to vector<8x216xf32>
    %c120_328 = arith.constant 120 : index
    %c0_329 = arith.constant 0 : index
    %374 = vector.load %arg17[%c120_328, %c0_329] : memref<1608x216xf32, #tpu.memory_space<vmem>>, vector<8x216xf32>
    tpu.vector_store %arg17[%c120_328, %c0_329], %373 {strides = array<i32>} : memref<1608x216xf32, #tpu.memory_space<vmem>>, vector<8x216xf32>,
    %375 = vector.extract_strided_slice %342 {offsets = [0, 16], sizes = [8, 216], strides = [1, 1]} : vector<8x416xf32> to vector<8x216xf32>
    %c128_330 = arith.constant 128 : index
    %c0_331 = arith.constant 0 : index
    %376 = vector.load %arg17[%c128_330, %c0_331] : memref<1608x216xf32, #tpu.memory_space<vmem>>, vector<8x216xf32>
    tpu.vector_store %arg17[%c128_330, %c0_331], %375 {strides = array<i32>} : memref<1608x216xf32, #tpu.memory_space<vmem>>, vector<8x216xf32>,
    %377 = vector.extract_strided_slice %342 {offsets = [0, 17], sizes = [8, 216], strides = [1, 1]} : vector<8x416xf32> to vector<8x216xf32>
    %c136_332 = arith.constant 136 : index
    %c0_333 = arith.constant 0 : index
    %378 = vector.load %arg17[%c136_332, %c0_333] : memref<1608x216xf32, #tpu.memory_space<vmem>>, vector<8x216xf32>
    tpu.vector_store %arg17[%c136_332, %c0_333], %377 {strides = array<i32>} : memref<1608x216xf32, #tpu.memory_space<vmem>>, vector<8x216xf32>,
    %379 = vector.extract_strided_slice %342 {offsets = [0, 18], sizes = [8, 216], strides = [1, 1]} : vector<8x416xf32> to vector<8x216xf32>
    %c144_334 = arith.constant 144 : index
    %c0_335 = arith.constant 0 : index
    %380 = vector.load %arg17[%c144_334, %c0_335] : memref<1608x216xf32, #tpu.memory_space<vmem>>, vector<8x216xf32>
    tpu.vector_store %arg17[%c144_334, %c0_335], %379 {strides = array<i32>} : memref<1608x216xf32, #tpu.memory_space<vmem>>, vector<8x216xf32>,
    %381 = vector.extract_strided_slice %342 {offsets = [0, 19], sizes = [8, 216], strides = [1, 1]} : vector<8x416xf32> to vector<8x216xf32>
    %c152_336 = arith.constant 152 : index
    %c0_337 = arith.constant 0 : index
    %382 = vector.load %arg17[%c152_336, %c0_337] : memref<1608x216xf32, #tpu.memory_space<vmem>>, vector<8x216xf32>
    tpu.vector_store %arg17[%c152_336, %c0_337], %381 {strides = array<i32>} : memref<1608x216xf32, #tpu.memory_space<vmem>>, vector<8x216xf32>,
    %383 = vector.extract_strided_slice %342 {offsets = [0, 20], sizes = [8, 216], strides = [1, 1]} : vector<8x416xf32> to vector<8x216xf32>
    %c160_338 = arith.constant 160 : index
    %c0_339 = arith.constant 0 : index
    %384 = vector.load %arg17[%c160_338, %c0_339] : memref<1608x216xf32, #tpu.memory_space<vmem>>, vector<8x216xf32>
    tpu.vector_store %arg17[%c160_338, %c0_339], %383 {strides = array<i32>} : memref<1608x216xf32, #tpu.memory_space<vmem>>, vector<8x216xf32>,
    %385 = vector.extract_strided_slice %342 {offsets = [0, 21], sizes = [8, 216], strides = [1, 1]} : vector<8x416xf32> to vector<8x216xf32>
    %c168_340 = arith.constant 168 : index
    %c0_341 = arith.constant 0 : index
    %386 = vector.load %arg17[%c168_340, %c0_341] : memref<1608x216xf32, #tpu.memory_space<vmem>>, vector<8x216xf32>
    tpu.vector_store %arg17[%c168_340, %c0_341], %385 {strides = array<i32>} : memref<1608x216xf32, #tpu.memory_space<vmem>>, vector<8x216xf32>,
    %387 = vector.extract_strided_slice %342 {offsets = [0, 22], sizes = [8, 216], strides = [1, 1]} : vector<8x416xf32> to vector<8x216xf32>
    %c176_342 = arith.constant 176 : index
    %c0_343 = arith.constant 0 : index
    %388 = vector.load %arg17[%c176_342, %c0_343] : memref<1608x216xf32, #tpu.memory_space<vmem>>, vector<8x216xf32>
    tpu.vector_store %arg17[%c176_342, %c0_343], %387 {strides = array<i32>} : memref<1608x216xf32, #tpu.memory_space<vmem>>, vector<8x216xf32>,
    %389 = vector.extract_strided_slice %342 {offsets = [0, 23], sizes = [8, 216], strides = [1, 1]} : vector<8x416xf32> to vector<8x216xf32>
    %c184_344 = arith.constant 184 : index
    %c0_345 = arith.constant 0 : index
    %390 = vector.load %arg17[%c184_344, %c0_345] : memref<1608x216xf32, #tpu.memory_space<vmem>>, vector<8x216xf32>
    tpu.vector_store %arg17[%c184_344, %c0_345], %389 {strides = array<i32>} : memref<1608x216xf32, #tpu.memory_space<vmem>>, vector<8x216xf32>,
    %391 = vector.extract_strided_slice %342 {offsets = [0, 24], sizes = [8, 216], strides = [1, 1]} : vector<8x416xf32> to vector<8x216xf32>
    %c192_346 = arith.constant 192 : index
    %c0_347 = arith.constant 0 : index
    %392 = vector.load %arg17[%c192_346, %c0_347] : memref<1608x216xf32, #tpu.memory_space<vmem>>, vector<8x216xf32>
    tpu.vector_store %arg17[%c192_346, %c0_347], %391 {strides = array<i32>} : memref<1608x216xf32, #tpu.memory_space<vmem>>, vector<8x216xf32>,
    %393 = vector.extract_strided_slice %342 {offsets = [0, 25], sizes = [8, 216], strides = [1, 1]} : vector<8x416xf32> to vector<8x216xf32>
    %c200_348 = arith.constant 200 : index
    %c0_349 = arith.constant 0 : index
    %394 = vector.load %arg17[%c200_348, %c0_349] : memref<1608x216xf32, #tpu.memory_space<vmem>>, vector<8x216xf32>
    tpu.vector_store %arg17[%c200_348, %c0_349], %393 {strides = array<i32>} : memref<1608x216xf32, #tpu.memory_space<vmem>>, vector<8x216xf32>,
    %395 = vector.extract_strided_slice %342 {offsets = [0, 26], sizes = [8, 216], strides = [1, 1]} : vector<8x416xf32> to vector<8x216xf32>
    %c208_350 = arith.constant 208 : index
    %c0_351 = arith.constant 0 : index
    %396 = vector.load %arg17[%c208_350, %c0_351] : memref<1608x216xf32, #tpu.memory_space<vmem>>, vector<8x216xf32>
    tpu.vector_store %arg17[%c208_350, %c0_351], %395 {strides = array<i32>} : memref<1608x216xf32, #tpu.memory_space<vmem>>, vector<8x216xf32>,
    %397 = vector.extract_strided_slice %342 {offsets = [0, 27], sizes = [8, 216], strides = [1, 1]} : vector<8x416xf32> to vector<8x216xf32>
    %c216_352 = arith.constant 216 : index
    %c0_353 = arith.constant 0 : index
    %398 = vector.load %arg17[%c216_352, %c0_353] : memref<1608x216xf32, #tpu.memory_space<vmem>>, vector<8x216xf32>
    tpu.vector_store %arg17[%c216_352, %c0_353], %397 {strides = array<i32>} : memref<1608x216xf32, #tpu.memory_space<vmem>>, vector<8x216xf32>,
    %399 = vector.extract_strided_slice %342 {offsets = [0, 28], sizes = [8, 216], strides = [1, 1]} : vector<8x416xf32> to vector<8x216xf32>
    %c224_354 = arith.constant 224 : index
    %c0_355 = arith.constant 0 : index
    %400 = vector.load %arg17[%c224_354, %c0_355] : memref<1608x216xf32, #tpu.memory_space<vmem>>, vector<8x216xf32>
    tpu.vector_store %arg17[%c224_354, %c0_355], %399 {strides = array<i32>} : memref<1608x216xf32, #tpu.memory_space<vmem>>, vector<8x216xf32>,
    %401 = vector.extract_strided_slice %342 {offsets = [0, 29], sizes = [8, 216], strides = [1, 1]} : vector<8x416xf32> to vector<8x216xf32>
    %c232_356 = arith.constant 232 : index
    %c0_357 = arith.constant 0 : index
    %402 = vector.load %arg17[%c232_356, %c0_357] : memref<1608x216xf32, #tpu.memory_space<vmem>>, vector<8x216xf32>
    tpu.vector_store %arg17[%c232_356, %c0_357], %401 {strides = array<i32>} : memref<1608x216xf32, #tpu.memory_space<vmem>>, vector<8x216xf32>,
    %403 = vector.extract_strided_slice %342 {offsets = [0, 30], sizes = [8, 216], strides = [1, 1]} : vector<8x416xf32> to vector<8x216xf32>
    %c240_358 = arith.constant 240 : index
    %c0_359 = arith.constant 0 : index
    %404 = vector.load %arg17[%c240_358, %c0_359] : memref<1608x216xf32, #tpu.memory_space<vmem>>, vector<8x216xf32>
    tpu.vector_store %arg17[%c240_358, %c0_359], %403 {strides = array<i32>} : memref<1608x216xf32, #tpu.memory_space<vmem>>, vector<8x216xf32>,
    %405 = vector.extract_strided_slice %342 {offsets = [0, 31], sizes = [8, 216], strides = [1, 1]} : vector<8x416xf32> to vector<8x216xf32>
    %c248_360 = arith.constant 248 : index
    %c0_361 = arith.constant 0 : index
    %406 = vector.load %arg17[%c248_360, %c0_361] : memref<1608x216xf32, #tpu.memory_space<vmem>>, vector<8x216xf32>
    tpu.vector_store %arg17[%c248_360, %c0_361], %405 {strides = array<i32>} : memref<1608x216xf32, #tpu.memory_space<vmem>>, vector<8x216xf32>,
    %407 = vector.extract_strided_slice %342 {offsets = [0, 32], sizes = [8, 216], strides = [1, 1]} : vector<8x416xf32> to vector<8x216xf32>
    %c256_362 = arith.constant 256 : index
    %c0_363 = arith.constant 0 : index
    %408 = vector.load %arg17[%c256_362, %c0_363] : memref<1608x216xf32, #tpu.memory_space<vmem>>, vector<8x216xf32>
    tpu.vector_store %arg17[%c256_362, %c0_363], %407 {strides = array<i32>} : memref<1608x216xf32, #tpu.memory_space<vmem>>, vector<8x216xf32>,
    %409 = vector.extract_strided_slice %342 {offsets = [0, 33], sizes = [8, 216], strides = [1, 1]} : vector<8x416xf32> to vector<8x216xf32>
    %c264_364 = arith.constant 264 : index
    %c0_365 = arith.constant 0 : index
    %410 = vector.load %arg17[%c264_364, %c0_365] : memref<1608x216xf32, #tpu.memory_space<vmem>>, vector<8x216xf32>
    tpu.vector_store %arg17[%c264_364, %c0_365], %409 {strides = array<i32>} : memref<1608x216xf32, #tpu.memory_space<vmem>>, vector<8x216xf32>,
    %411 = vector.extract_strided_slice %342 {offsets = [0, 34], sizes = [8, 216], strides = [1, 1]} : vector<8x416xf32> to vector<8x216xf32>
    %c272_366 = arith.constant 272 : index
    %c0_367 = arith.constant 0 : index
    %412 = vector.load %arg17[%c272_366, %c0_367] : memref<1608x216xf32, #tpu.memory_space<vmem>>, vector<8x216xf32>
    tpu.vector_store %arg17[%c272_366, %c0_367], %411 {strides = array<i32>} : memref<1608x216xf32, #tpu.memory_space<vmem>>, vector<8x216xf32>,
    %413 = vector.extract_strided_slice %342 {offsets = [0, 35], sizes = [8, 216], strides = [1, 1]} : vector<8x416xf32> to vector<8x216xf32>
    %c280_368 = arith.constant 280 : index
    %c0_369 = arith.constant 0 : index
    %414 = vector.load %arg17[%c280_368, %c0_369] : memref<1608x216xf32, #tpu.memory_space<vmem>>, vector<8x216xf32>
    tpu.vector_store %arg17[%c280_368, %c0_369], %413 {strides = array<i32>} : memref<1608x216xf32, #tpu.memory_space<vmem>>, vector<8x216xf32>,
    %415 = vector.extract_strided_slice %342 {offsets = [0, 36], sizes = [8, 216], strides = [1, 1]} : vector<8x416xf32> to vector<8x216xf32>
    %c288_370 = arith.constant 288 : index
    %c0_371 = arith.constant 0 : index
    %416 = vector.load %arg17[%c288_370, %c0_371] : memref<1608x216xf32, #tpu.memory_space<vmem>>, vector<8x216xf32>
    tpu.vector_store %arg17[%c288_370, %c0_371], %415 {strides = array<i32>} : memref<1608x216xf32, #tpu.memory_space<vmem>>, vector<8x216xf32>,
    %417 = vector.extract_strided_slice %342 {offsets = [0, 37], sizes = [8, 216], strides = [1, 1]} : vector<8x416xf32> to vector<8x216xf32>
    %c296_372 = arith.constant 296 : index
    %c0_373 = arith.constant 0 : index
    %418 = vector.load %arg17[%c296_372, %c0_373] : memref<1608x216xf32, #tpu.memory_space<vmem>>, vector<8x216xf32>
    tpu.vector_store %arg17[%c296_372, %c0_373], %417 {strides = array<i32>} : memref<1608x216xf32, #tpu.memory_space<vmem>>, vector<8x216xf32>,
    %419 = vector.extract_strided_slice %342 {offsets = [0, 38], sizes = [8, 216], strides = [1, 1]} : vector<8x416xf32> to vector<8x216xf32>
    %c304_374 = arith.constant 304 : index
    %c0_375 = arith.constant 0 : index
    %420 = vector.load %arg17[%c304_374, %c0_375] : memref<1608x216xf32, #tpu.memory_space<vmem>>, vector<8x216xf32>
    tpu.vector_store %arg17[%c304_374, %c0_375], %419 {strides = array<i32>} : memref<1608x216xf32, #tpu.memory_space<vmem>>, vector<8x216xf32>,
    %421 = vector.extract_strided_slice %342 {offsets = [0, 39], sizes = [8, 216], strides = [1, 1]} : vector<8x416xf32> to vector<8x216xf32>
    %c312_376 = arith.constant 312 : index
    %c0_377 = arith.constant 0 : index
    %422 = vector.load %arg17[%c312_376, %c0_377] : memref<1608x216xf32, #tpu.memory_space<vmem>>, vector<8x216xf32>
    tpu.vector_store %arg17[%c312_376, %c0_377], %421 {strides = array<i32>} : memref<1608x216xf32, #tpu.memory_space<vmem>>, vector<8x216xf32>,
    %423 = vector.extract_strided_slice %342 {offsets = [0, 40], sizes = [8, 216], strides = [1, 1]} : vector<8x416xf32> to vector<8x216xf32>
    %c320_378 = arith.constant 320 : index
    %c0_379 = arith.constant 0 : index
    %424 = vector.load %arg17[%c320_378, %c0_379] : memref<1608x216xf32, #tpu.memory_space<vmem>>, vector<8x216xf32>
    tpu.vector_store %arg17[%c320_378, %c0_379], %423 {strides = array<i32>} : memref<1608x216xf32, #tpu.memory_space<vmem>>, vector<8x216xf32>,
    %425 = vector.extract_strided_slice %342 {offsets = [0, 41], sizes = [8, 216], strides = [1, 1]} : vector<8x416xf32> to vector<8x216xf32>
    %c328_380 = arith.constant 328 : index
    %c0_381 = arith.constant 0 : index
    %426 = vector.load %arg17[%c328_380, %c0_381] : memref<1608x216xf32, #tpu.memory_space<vmem>>, vector<8x216xf32>
    tpu.vector_store %arg17[%c328_380, %c0_381], %425 {strides = array<i32>} : memref<1608x216xf32, #tpu.memory_space<vmem>>, vector<8x216xf32>,
    %427 = vector.extract_strided_slice %342 {offsets = [0, 42], sizes = [8, 216], strides = [1, 1]} : vector<8x416xf32> to vector<8x216xf32>
    %c336_382 = arith.constant 336 : index
    %c0_383 = arith.constant 0 : index
    %428 = vector.load %arg17[%c336_382, %c0_383] : memref<1608x216xf32, #tpu.memory_space<vmem>>, vector<8x216xf32>
    tpu.vector_store %arg17[%c336_382, %c0_383], %427 {strides = array<i32>} : memref<1608x216xf32, #tpu.memory_space<vmem>>, vector<8x216xf32>,
    %429 = vector.extract_strided_slice %342 {offsets = [0, 43], sizes = [8, 216], strides = [1, 1]} : vector<8x416xf32> to vector<8x216xf32>
    %c344_384 = arith.constant 344 : index
    %c0_385 = arith.constant 0 : index
    %430 = vector.load %arg17[%c344_384, %c0_385] : memref<1608x216xf32, #tpu.memory_space<vmem>>, vector<8x216xf32>
    tpu.vector_store %arg17[%c344_384, %c0_385], %429 {strides = array<i32>} : memref<1608x216xf32, #tpu.memory_space<vmem>>, vector<8x216xf32>,
    %431 = vector.extract_strided_slice %342 {offsets = [0, 44], sizes = [8, 216], strides = [1, 1]} : vector<8x416xf32> to vector<8x216xf32>
    %c352_386 = arith.constant 352 : index
    %c0_387 = arith.constant 0 : index
    %432 = vector.load %arg17[%c352_386, %c0_387] : memref<1608x216xf32, #tpu.memory_space<vmem>>, vector<8x216xf32>
    tpu.vector_store %arg17[%c352_386, %c0_387], %431 {strides = array<i32>} : memref<1608x216xf32, #tpu.memory_space<vmem>>, vector<8x216xf32>,
    %433 = vector.extract_strided_slice %342 {offsets = [0, 45], sizes = [8, 216], strides = [1, 1]} : vector<8x416xf32> to vector<8x216xf32>
    %c360_388 = arith.constant 360 : index
    %c0_389 = arith.constant 0 : index
    %434 = vector.load %arg17[%c360_388, %c0_389] : memref<1608x216xf32, #tpu.memory_space<vmem>>, vector<8x216xf32>
    tpu.vector_store %arg17[%c360_388, %c0_389], %433 {strides = array<i32>} : memref<1608x216xf32, #tpu.memory_space<vmem>>, vector<8x216xf32>,
    %435 = vector.extract_strided_slice %342 {offsets = [0, 46], sizes = [8, 216], strides = [1, 1]} : vector<8x416xf32> to vector<8x216xf32>
    %c368_390 = arith.constant 368 : index
    %c0_391 = arith.constant 0 : index
    %436 = vector.load %arg17[%c368_390, %c0_391] : memref<1608x216xf32, #tpu.memory_space<vmem>>, vector<8x216xf32>
    tpu.vector_store %arg17[%c368_390, %c0_391], %435 {strides = array<i32>} : memref<1608x216xf32, #tpu.memory_space<vmem>>, vector<8x216xf32>,
    %437 = vector.extract_strided_slice %342 {offsets = [0, 47], sizes = [8, 216], strides = [1, 1]} : vector<8x416xf32> to vector<8x216xf32>
    %c376_392 = arith.constant 376 : index
    %c0_393 = arith.constant 0 : index
    %438 = vector.load %arg17[%c376_392, %c0_393] : memref<1608x216xf32, #tpu.memory_space<vmem>>, vector<8x216xf32>
    tpu.vector_store %arg17[%c376_392, %c0_393], %437 {strides = array<i32>} : memref<1608x216xf32, #tpu.memory_space<vmem>>, vector<8x216xf32>,
    %439 = vector.extract_strided_slice %342 {offsets = [0, 48], sizes = [8, 216], strides = [1, 1]} : vector<8x416xf32> to vector<8x216xf32>
    %c384_394 = arith.constant 384 : index
    %c0_395 = arith.constant 0 : index
    %440 = vector.load %arg17[%c384_394, %c0_395] : memref<1608x216xf32, #tpu.memory_space<vmem>>, vector<8x216xf32>
    tpu.vector_store %arg17[%c384_394, %c0_395], %439 {strides = array<i32>} : memref<1608x216xf32, #tpu.memory_space<vmem>>, vector<8x216xf32>,
    %441 = vector.extract_strided_slice %342 {offsets = [0, 49], sizes = [8, 216], strides = [1, 1]} : vector<8x416xf32> to vector<8x216xf32>
    %c392_396 = arith.constant 392 : index
    %c0_397 = arith.constant 0 : index
    %442 = vector.load %arg17[%c392_396, %c0_397] : memref<1608x216xf32, #tpu.memory_space<vmem>>, vector<8x216xf32>
    tpu.vector_store %arg17[%c392_396, %c0_397], %441 {strides = array<i32>} : memref<1608x216xf32, #tpu.memory_space<vmem>>, vector<8x216xf32>,
    %443 = vector.extract_strided_slice %342 {offsets = [0, 50], sizes = [8, 216], strides = [1, 1]} : vector<8x416xf32> to vector<8x216xf32>
    %c400_398 = arith.constant 400 : index
    %c0_399 = arith.constant 0 : index
    %444 = vector.load %arg17[%c400_398, %c0_399] : memref<1608x216xf32, #tpu.memory_space<vmem>>, vector<8x216xf32>
    tpu.vector_store %arg17[%c400_398, %c0_399], %443 {strides = array<i32>} : memref<1608x216xf32, #tpu.memory_space<vmem>>, vector<8x216xf32>,
    %445 = vector.extract_strided_slice %342 {offsets = [0, 51], sizes = [8, 216], strides = [1, 1]} : vector<8x416xf32> to vector<8x216xf32>
    %c408 = arith.constant 408 : index
    %c0_400 = arith.constant 0 : index
    %446 = vector.load %arg17[%c408, %c0_400] : memref<1608x216xf32, #tpu.memory_space<vmem>>, vector<8x216xf32>
    tpu.vector_store %arg17[%c408, %c0_400], %445 {strides = array<i32>} : memref<1608x216xf32, #tpu.memory_space<vmem>>, vector<8x216xf32>,
    %447 = vector.extract_strided_slice %342 {offsets = [0, 52], sizes = [8, 216], strides = [1, 1]} : vector<8x416xf32> to vector<8x216xf32>
    %c416 = arith.constant 416 : index
    %c0_401 = arith.constant 0 : index
    %448 = vector.load %arg17[%c416, %c0_401] : memref<1608x216xf32, #tpu.memory_space<vmem>>, vector<8x216xf32>
    tpu.vector_store %arg17[%c416, %c0_401], %447 {strides = array<i32>} : memref<1608x216xf32, #tpu.memory_space<vmem>>, vector<8x216xf32>,
    %449 = vector.extract_strided_slice %342 {offsets = [0, 53], sizes = [8, 216], strides = [1, 1]} : vector<8x416xf32> to vector<8x216xf32>
    %c424 = arith.constant 424 : index
    %c0_402 = arith.constant 0 : index
    %450 = vector.load %arg17[%c424, %c0_402] : memref<1608x216xf32, #tpu.memory_space<vmem>>, vector<8x216xf32>
    tpu.vector_store %arg17[%c424, %c0_402], %449 {strides = array<i32>} : memref<1608x216xf32, #tpu.memory_space<vmem>>, vector<8x216xf32>,
    %451 = vector.extract_strided_slice %342 {offsets = [0, 54], sizes = [8, 216], strides = [1, 1]} : vector<8x416xf32> to vector<8x216xf32>
    %c432 = arith.constant 432 : index
    %c0_403 = arith.constant 0 : index
    %452 = vector.load %arg17[%c432, %c0_403] : memref<1608x216xf32, #tpu.memory_space<vmem>>, vector<8x216xf32>
    tpu.vector_store %arg17[%c432, %c0_403], %451 {strides = array<i32>} : memref<1608x216xf32, #tpu.memory_space<vmem>>, vector<8x216xf32>,
    %453 = vector.extract_strided_slice %342 {offsets = [0, 55], sizes = [8, 216], strides = [1, 1]} : vector<8x416xf32> to vector<8x216xf32>
    %c440 = arith.constant 440 : index
    %c0_404 = arith.constant 0 : index
    %454 = vector.load %arg17[%c440, %c0_404] : memref<1608x216xf32, #tpu.memory_space<vmem>>, vector<8x216xf32>
    tpu.vector_store %arg17[%c440, %c0_404], %453 {strides = array<i32>} : memref<1608x216xf32, #tpu.memory_space<vmem>>, vector<8x216xf32>,
    %455 = vector.extract_strided_slice %342 {offsets = [0, 56], sizes = [8, 216], strides = [1, 1]} : vector<8x416xf32> to vector<8x216xf32>
    %c448 = arith.constant 448 : index
    %c0_405 = arith.constant 0 : index
    %456 = vector.load %arg17[%c448, %c0_405] : memref<1608x216xf32, #tpu.memory_space<vmem>>, vector<8x216xf32>
    tpu.vector_store %arg17[%c448, %c0_405], %455 {strides = array<i32>} : memref<1608x216xf32, #tpu.memory_space<vmem>>, vector<8x216xf32>,
    %457 = vector.extract_strided_slice %342 {offsets = [0, 57], sizes = [8, 216], strides = [1, 1]} : vector<8x416xf32> to vector<8x216xf32>
    %c456 = arith.constant 456 : index
    %c0_406 = arith.constant 0 : index
    %458 = vector.load %arg17[%c456, %c0_406] : memref<1608x216xf32, #tpu.memory_space<vmem>>, vector<8x216xf32>
    tpu.vector_store %arg17[%c456, %c0_406], %457 {strides = array<i32>} : memref<1608x216xf32, #tpu.memory_space<vmem>>, vector<8x216xf32>,
    %459 = vector.extract_strided_slice %342 {offsets = [0, 58], sizes = [8, 216], strides = [1, 1]} : vector<8x416xf32> to vector<8x216xf32>
    %c464 = arith.constant 464 : index
    %c0_407 = arith.constant 0 : index
    %460 = vector.load %arg17[%c464, %c0_407] : memref<1608x216xf32, #tpu.memory_space<vmem>>, vector<8x216xf32>
    tpu.vector_store %arg17[%c464, %c0_407], %459 {strides = array<i32>} : memref<1608x216xf32, #tpu.memory_space<vmem>>, vector<8x216xf32>,
    %461 = vector.extract_strided_slice %342 {offsets = [0, 59], sizes = [8, 216], strides = [1, 1]} : vector<8x416xf32> to vector<8x216xf32>
    %c472 = arith.constant 472 : index
    %c0_408 = arith.constant 0 : index
    %462 = vector.load %arg17[%c472, %c0_408] : memref<1608x216xf32, #tpu.memory_space<vmem>>, vector<8x216xf32>
    tpu.vector_store %arg17[%c472, %c0_408], %461 {strides = array<i32>} : memref<1608x216xf32, #tpu.memory_space<vmem>>, vector<8x216xf32>,
    %463 = vector.extract_strided_slice %342 {offsets = [0, 60], sizes = [8, 216], strides = [1, 1]} : vector<8x416xf32> to vector<8x216xf32>
    %c480 = arith.constant 480 : index
    %c0_409 = arith.constant 0 : index
    %464 = vector.load %arg17[%c480, %c0_409] : memref<1608x216xf32, #tpu.memory_space<vmem>>, vector<8x216xf32>
    tpu.vector_store %arg17[%c480, %c0_409], %463 {strides = array<i32>} : memref<1608x216xf32, #tpu.memory_space<vmem>>, vector<8x216xf32>,
    %465 = vector.extract_strided_slice %342 {offsets = [0, 61], sizes = [8, 216], strides = [1, 1]} : vector<8x416xf32> to vector<8x216xf32>
    %c488 = arith.constant 488 : index
    %c0_410 = arith.constant 0 : index
    %466 = vector.load %arg17[%c488, %c0_410] : memref<1608x216xf32, #tpu.memory_space<vmem>>, vector<8x216xf32>
    tpu.vector_store %arg17[%c488, %c0_410], %465 {strides = array<i32>} : memref<1608x216xf32, #tpu.memory_space<vmem>>, vector<8x216xf32>,
    %467 = vector.extract_strided_slice %342 {offsets = [0, 62], sizes = [8, 216], strides = [1, 1]} : vector<8x416xf32> to vector<8x216xf32>
    %c496 = arith.constant 496 : index
    %c0_411 = arith.constant 0 : index
    %468 = vector.load %arg17[%c496, %c0_411] : memref<1608x216xf32, #tpu.memory_space<vmem>>, vector<8x216xf32>
    tpu.vector_store %arg17[%c496, %c0_411], %467 {strides = array<i32>} : memref<1608x216xf32, #tpu.memory_space<vmem>>, vector<8x216xf32>,
    %469 = vector.extract_strided_slice %342 {offsets = [0, 63], sizes = [8, 216], strides = [1, 1]} : vector<8x416xf32> to vector<8x216xf32>
    %c504 = arith.constant 504 : index
    %c0_412 = arith.constant 0 : index
    %470 = vector.load %arg17[%c504, %c0_412] : memref<1608x216xf32, #tpu.memory_space<vmem>>, vector<8x216xf32>
    tpu.vector_store %arg17[%c504, %c0_412], %469 {strides = array<i32>} : memref<1608x216xf32, #tpu.memory_space<vmem>>, vector<8x216xf32>,
    %471 = vector.extract_strided_slice %342 {offsets = [0, 64], sizes = [8, 216], strides = [1, 1]} : vector<8x416xf32> to vector<8x216xf32>
    %c512 = arith.constant 512 : index
    %c0_413 = arith.constant 0 : index
    %472 = vector.load %arg17[%c512, %c0_413] : memref<1608x216xf32, #tpu.memory_space<vmem>>, vector<8x216xf32>
    tpu.vector_store %arg17[%c512, %c0_413], %471 {strides = array<i32>} : memref<1608x216xf32, #tpu.memory_space<vmem>>, vector<8x216xf32>,
    %473 = vector.extract_strided_slice %342 {offsets = [0, 65], sizes = [8, 216], strides = [1, 1]} : vector<8x416xf32> to vector<8x216xf32>
    %c520 = arith.constant 520 : index
    %c0_414 = arith.constant 0 : index
    %474 = vector.load %arg17[%c520, %c0_414] : memref<1608x216xf32, #tpu.memory_space<vmem>>, vector<8x216xf32>
    tpu.vector_store %arg17[%c520, %c0_414], %473 {strides = array<i32>} : memref<1608x216xf32, #tpu.memory_space<vmem>>, vector<8x216xf32>,
    %475 = vector.extract_strided_slice %342 {offsets = [0, 66], sizes = [8, 216], strides = [1, 1]} : vector<8x416xf32> to vector<8x216xf32>
    %c528 = arith.constant 528 : index
    %c0_415 = arith.constant 0 : index
    %476 = vector.load %arg17[%c528, %c0_415] : memref<1608x216xf32, #tpu.memory_space<vmem>>, vector<8x216xf32>
    tpu.vector_store %arg17[%c528, %c0_415], %475 {strides = array<i32>} : memref<1608x216xf32, #tpu.memory_space<vmem>>, vector<8x216xf32>,
    %477 = vector.extract_strided_slice %342 {offsets = [0, 67], sizes = [8, 216], strides = [1, 1]} : vector<8x416xf32> to vector<8x216xf32>
    %c536 = arith.constant 536 : index
    %c0_416 = arith.constant 0 : index
    %478 = vector.load %arg17[%c536, %c0_416] : memref<1608x216xf32, #tpu.memory_space<vmem>>, vector<8x216xf32>
    tpu.vector_store %arg17[%c536, %c0_416], %477 {strides = array<i32>} : memref<1608x216xf32, #tpu.memory_space<vmem>>, vector<8x216xf32>,
    %479 = vector.extract_strided_slice %342 {offsets = [0, 68], sizes = [8, 216], strides = [1, 1]} : vector<8x416xf32> to vector<8x216xf32>
    %c544 = arith.constant 544 : index
    %c0_417 = arith.constant 0 : index
    %480 = vector.load %arg17[%c544, %c0_417] : memref<1608x216xf32, #tpu.memory_space<vmem>>, vector<8x216xf32>
    tpu.vector_store %arg17[%c544, %c0_417], %479 {strides = array<i32>} : memref<1608x216xf32, #tpu.memory_space<vmem>>, vector<8x216xf32>,
    %481 = vector.extract_strided_slice %342 {offsets = [0, 69], sizes = [8, 216], strides = [1, 1]} : vector<8x416xf32> to vector<8x216xf32>
    %c552 = arith.constant 552 : index
    %c0_418 = arith.constant 0 : index
    %482 = vector.load %arg17[%c552, %c0_418] : memref<1608x216xf32, #tpu.memory_space<vmem>>, vector<8x216xf32>
    tpu.vector_store %arg17[%c552, %c0_418], %481 {strides = array<i32>} : memref<1608x216xf32, #tpu.memory_space<vmem>>, vector<8x216xf32>,
    %483 = vector.extract_strided_slice %342 {offsets = [0, 70], sizes = [8, 216], strides = [1, 1]} : vector<8x416xf32> to vector<8x216xf32>
    %c560 = arith.constant 560 : index
    %c0_419 = arith.constant 0 : index
    %484 = vector.load %arg17[%c560, %c0_419] : memref<1608x216xf32, #tpu.memory_space<vmem>>, vector<8x216xf32>
    tpu.vector_store %arg17[%c560, %c0_419], %483 {strides = array<i32>} : memref<1608x216xf32, #tpu.memory_space<vmem>>, vector<8x216xf32>,
    %485 = vector.extract_strided_slice %342 {offsets = [0, 71], sizes = [8, 216], strides = [1, 1]} : vector<8x416xf32> to vector<8x216xf32>
    %c568 = arith.constant 568 : index
    %c0_420 = arith.constant 0 : index
    %486 = vector.load %arg17[%c568, %c0_420] : memref<1608x216xf32, #tpu.memory_space<vmem>>, vector<8x216xf32>
    tpu.vector_store %arg17[%c568, %c0_420], %485 {strides = array<i32>} : memref<1608x216xf32, #tpu.memory_space<vmem>>, vector<8x216xf32>,
    %487 = vector.extract_strided_slice %342 {offsets = [0, 72], sizes = [8, 216], strides = [1, 1]} : vector<8x416xf32> to vector<8x216xf32>
    %c576 = arith.constant 576 : index
    %c0_421 = arith.constant 0 : index
    %488 = vector.load %arg17[%c576, %c0_421] : memref<1608x216xf32, #tpu.memory_space<vmem>>, vector<8x216xf32>
    tpu.vector_store %arg17[%c576, %c0_421], %487 {strides = array<i32>} : memref<1608x216xf32, #tpu.memory_space<vmem>>, vector<8x216xf32>,
    %489 = vector.extract_strided_slice %342 {offsets = [0, 73], sizes = [8, 216], strides = [1, 1]} : vector<8x416xf32> to vector<8x216xf32>
    %c584 = arith.constant 584 : index
    %c0_422 = arith.constant 0 : index
    %490 = vector.load %arg17[%c584, %c0_422] : memref<1608x216xf32, #tpu.memory_space<vmem>>, vector<8x216xf32>
    tpu.vector_store %arg17[%c584, %c0_422], %489 {strides = array<i32>} : memref<1608x216xf32, #tpu.memory_space<vmem>>, vector<8x216xf32>,
    %491 = vector.extract_strided_slice %342 {offsets = [0, 74], sizes = [8, 216], strides = [1, 1]} : vector<8x416xf32> to vector<8x216xf32>
    %c592 = arith.constant 592 : index
    %c0_423 = arith.constant 0 : index
    %492 = vector.load %arg17[%c592, %c0_423] : memref<1608x216xf32, #tpu.memory_space<vmem>>, vector<8x216xf32>
    tpu.vector_store %arg17[%c592, %c0_423], %491 {strides = array<i32>} : memref<1608x216xf32, #tpu.memory_space<vmem>>, vector<8x216xf32>,
    %493 = vector.extract_strided_slice %342 {offsets = [0, 75], sizes = [8, 216], strides = [1, 1]} : vector<8x416xf32> to vector<8x216xf32>
    %c600 = arith.constant 600 : index
    %c0_424 = arith.constant 0 : index
    %494 = vector.load %arg17[%c600, %c0_424] : memref<1608x216xf32, #tpu.memory_space<vmem>>, vector<8x216xf32>
    tpu.vector_store %arg17[%c600, %c0_424], %493 {strides = array<i32>} : memref<1608x216xf32, #tpu.memory_space<vmem>>, vector<8x216xf32>,
    %495 = vector.extract_strided_slice %342 {offsets = [0, 76], sizes = [8, 216], strides = [1, 1]} : vector<8x416xf32> to vector<8x216xf32>
    %c608 = arith.constant 608 : index
    %c0_425 = arith.constant 0 : index
    %496 = vector.load %arg17[%c608, %c0_425] : memref<1608x216xf32, #tpu.memory_space<vmem>>, vector<8x216xf32>
    tpu.vector_store %arg17[%c608, %c0_425], %495 {strides = array<i32>} : memref<1608x216xf32, #tpu.memory_space<vmem>>, vector<8x216xf32>,
    %497 = vector.extract_strided_slice %342 {offsets = [0, 77], sizes = [8, 216], strides = [1, 1]} : vector<8x416xf32> to vector<8x216xf32>
    %c616 = arith.constant 616 : index
    %c0_426 = arith.constant 0 : index
    %498 = vector.load %arg17[%c616, %c0_426] : memref<1608x216xf32, #tpu.memory_space<vmem>>, vector<8x216xf32>
    tpu.vector_store %arg17[%c616, %c0_426], %497 {strides = array<i32>} : memref<1608x216xf32, #tpu.memory_space<vmem>>, vector<8x216xf32>,
    %499 = vector.extract_strided_slice %342 {offsets = [0, 78], sizes = [8, 216], strides = [1, 1]} : vector<8x416xf32> to vector<8x216xf32>
    %c624 = arith.constant 624 : index
    %c0_427 = arith.constant 0 : index
    %500 = vector.load %arg17[%c624, %c0_427] : memref<1608x216xf32, #tpu.memory_space<vmem>>, vector<8x216xf32>
    tpu.vector_store %arg17[%c624, %c0_427], %499 {strides = array<i32>} : memref<1608x216xf32, #tpu.memory_space<vmem>>, vector<8x216xf32>,
    %501 = vector.extract_strided_slice %342 {offsets = [0, 79], sizes = [8, 216], strides = [1, 1]} : vector<8x416xf32> to vector<8x216xf32>
    %c632 = arith.constant 632 : index
    %c0_428 = arith.constant 0 : index
    %502 = vector.load %arg17[%c632, %c0_428] : memref<1608x216xf32, #tpu.memory_space<vmem>>, vector<8x216xf32>
    tpu.vector_store %arg17[%c632, %c0_428], %501 {strides = array<i32>} : memref<1608x216xf32, #tpu.memory_space<vmem>>, vector<8x216xf32>,
    %503 = vector.extract_strided_slice %342 {offsets = [0, 80], sizes = [8, 216], strides = [1, 1]} : vector<8x416xf32> to vector<8x216xf32>
    %c640 = arith.constant 640 : index
    %c0_429 = arith.constant 0 : index
    %504 = vector.load %arg17[%c640, %c0_429] : memref<1608x216xf32, #tpu.memory_space<vmem>>, vector<8x216xf32>
    tpu.vector_store %arg17[%c640, %c0_429], %503 {strides = array<i32>} : memref<1608x216xf32, #tpu.memory_space<vmem>>, vector<8x216xf32>,
    %505 = vector.extract_strided_slice %342 {offsets = [0, 81], sizes = [8, 216], strides = [1, 1]} : vector<8x416xf32> to vector<8x216xf32>
    %c648 = arith.constant 648 : index
    %c0_430 = arith.constant 0 : index
    %506 = vector.load %arg17[%c648, %c0_430] : memref<1608x216xf32, #tpu.memory_space<vmem>>, vector<8x216xf32>
    tpu.vector_store %arg17[%c648, %c0_430], %505 {strides = array<i32>} : memref<1608x216xf32, #tpu.memory_space<vmem>>, vector<8x216xf32>,
    %507 = vector.extract_strided_slice %342 {offsets = [0, 82], sizes = [8, 216], strides = [1, 1]} : vector<8x416xf32> to vector<8x216xf32>
    %c656 = arith.constant 656 : index
    %c0_431 = arith.constant 0 : index
    %508 = vector.load %arg17[%c656, %c0_431] : memref<1608x216xf32, #tpu.memory_space<vmem>>, vector<8x216xf32>
    tpu.vector_store %arg17[%c656, %c0_431], %507 {strides = array<i32>} : memref<1608x216xf32, #tpu.memory_space<vmem>>, vector<8x216xf32>,
    %509 = vector.extract_strided_slice %342 {offsets = [0, 83], sizes = [8, 216], strides = [1, 1]} : vector<8x416xf32> to vector<8x216xf32>
    %c664 = arith.constant 664 : index
    %c0_432 = arith.constant 0 : index
    %510 = vector.load %arg17[%c664, %c0_432] : memref<1608x216xf32, #tpu.memory_space<vmem>>, vector<8x216xf32>
    tpu.vector_store %arg17[%c664, %c0_432], %509 {strides = array<i32>} : memref<1608x216xf32, #tpu.memory_space<vmem>>, vector<8x216xf32>,
    %511 = vector.extract_strided_slice %342 {offsets = [0, 84], sizes = [8, 216], strides = [1, 1]} : vector<8x416xf32> to vector<8x216xf32>
    %c672 = arith.constant 672 : index
    %c0_433 = arith.constant 0 : index
    %512 = vector.load %arg17[%c672, %c0_433] : memref<1608x216xf32, #tpu.memory_space<vmem>>, vector<8x216xf32>
    tpu.vector_store %arg17[%c672, %c0_433], %511 {strides = array<i32>} : memref<1608x216xf32, #tpu.memory_space<vmem>>, vector<8x216xf32>,
    %513 = vector.extract_strided_slice %342 {offsets = [0, 85], sizes = [8, 216], strides = [1, 1]} : vector<8x416xf32> to vector<8x216xf32>
    %c680 = arith.constant 680 : index
    %c0_434 = arith.constant 0 : index
    %514 = vector.load %arg17[%c680, %c0_434] : memref<1608x216xf32, #tpu.memory_space<vmem>>, vector<8x216xf32>
    tpu.vector_store %arg17[%c680, %c0_434], %513 {strides = array<i32>} : memref<1608x216xf32, #tpu.memory_space<vmem>>, vector<8x216xf32>,
    %515 = vector.extract_strided_slice %342 {offsets = [0, 86], sizes = [8, 216], strides = [1, 1]} : vector<8x416xf32> to vector<8x216xf32>
    %c688 = arith.constant 688 : index
    %c0_435 = arith.constant 0 : index
    %516 = vector.load %arg17[%c688, %c0_435] : memref<1608x216xf32, #tpu.memory_space<vmem>>, vector<8x216xf32>
    tpu.vector_store %arg17[%c688, %c0_435], %515 {strides = array<i32>} : memref<1608x216xf32, #tpu.memory_space<vmem>>, vector<8x216xf32>,
    %517 = vector.extract_strided_slice %342 {offsets = [0, 87], sizes = [8, 216], strides = [1, 1]} : vector<8x416xf32> to vector<8x216xf32>
    %c696 = arith.constant 696 : index
    %c0_436 = arith.constant 0 : index
    %518 = vector.load %arg17[%c696, %c0_436] : memref<1608x216xf32, #tpu.memory_space<vmem>>, vector<8x216xf32>
    tpu.vector_store %arg17[%c696, %c0_436], %517 {strides = array<i32>} : memref<1608x216xf32, #tpu.memory_space<vmem>>, vector<8x216xf32>,
    %519 = vector.extract_strided_slice %342 {offsets = [0, 88], sizes = [8, 216], strides = [1, 1]} : vector<8x416xf32> to vector<8x216xf32>
    %c704 = arith.constant 704 : index
    %c0_437 = arith.constant 0 : index
    %520 = vector.load %arg17[%c704, %c0_437] : memref<1608x216xf32, #tpu.memory_space<vmem>>, vector<8x216xf32>
    tpu.vector_store %arg17[%c704, %c0_437], %519 {strides = array<i32>} : memref<1608x216xf32, #tpu.memory_space<vmem>>, vector<8x216xf32>,
    %521 = vector.extract_strided_slice %342 {offsets = [0, 89], sizes = [8, 216], strides = [1, 1]} : vector<8x416xf32> to vector<8x216xf32>
    %c712 = arith.constant 712 : index
    %c0_438 = arith.constant 0 : index
    %522 = vector.load %arg17[%c712, %c0_438] : memref<1608x216xf32, #tpu.memory_space<vmem>>, vector<8x216xf32>
    tpu.vector_store %arg17[%c712, %c0_438], %521 {strides = array<i32>} : memref<1608x216xf32, #tpu.memory_space<vmem>>, vector<8x216xf32>,
    %523 = vector.extract_strided_slice %342 {offsets = [0, 90], sizes = [8, 216], strides = [1, 1]} : vector<8x416xf32> to vector<8x216xf32>
    %c720 = arith.constant 720 : index
    %c0_439 = arith.constant 0 : index
    %524 = vector.load %arg17[%c720, %c0_439] : memref<1608x216xf32, #tpu.memory_space<vmem>>, vector<8x216xf32>
    tpu.vector_store %arg17[%c720, %c0_439], %523 {strides = array<i32>} : memref<1608x216xf32, #tpu.memory_space<vmem>>, vector<8x216xf32>,
    %525 = vector.extract_strided_slice %342 {offsets = [0, 91], sizes = [8, 216], strides = [1, 1]} : vector<8x416xf32> to vector<8x216xf32>
    %c728 = arith.constant 728 : index
    %c0_440 = arith.constant 0 : index
    %526 = vector.load %arg17[%c728, %c0_440] : memref<1608x216xf32, #tpu.memory_space<vmem>>, vector<8x216xf32>
    tpu.vector_store %arg17[%c728, %c0_440], %525 {strides = array<i32>} : memref<1608x216xf32, #tpu.memory_space<vmem>>, vector<8x216xf32>,
    %527 = vector.extract_strided_slice %342 {offsets = [0, 92], sizes = [8, 216], strides = [1, 1]} : vector<8x416xf32> to vector<8x216xf32>
    %c736 = arith.constant 736 : index
    %c0_441 = arith.constant 0 : index
    %528 = vector.load %arg17[%c736, %c0_441] : memref<1608x216xf32, #tpu.memory_space<vmem>>, vector<8x216xf32>
    tpu.vector_store %arg17[%c736, %c0_441], %527 {strides = array<i32>} : memref<1608x216xf32, #tpu.memory_space<vmem>>, vector<8x216xf32>,
    %529 = vector.extract_strided_slice %342 {offsets = [0, 93], sizes = [8, 216], strides = [1, 1]} : vector<8x416xf32> to vector<8x216xf32>
    %c744 = arith.constant 744 : index
    %c0_442 = arith.constant 0 : index
    %530 = vector.load %arg17[%c744, %c0_442] : memref<1608x216xf32, #tpu.memory_space<vmem>>, vector<8x216xf32>
    tpu.vector_store %arg17[%c744, %c0_442], %529 {strides = array<i32>} : memref<1608x216xf32, #tpu.memory_space<vmem>>, vector<8x216xf32>,
    %531 = vector.extract_strided_slice %342 {offsets = [0, 94], sizes = [8, 216], strides = [1, 1]} : vector<8x416xf32> to vector<8x216xf32>
    %c752 = arith.constant 752 : index
    %c0_443 = arith.constant 0 : index
    %532 = vector.load %arg17[%c752, %c0_443] : memref<1608x216xf32, #tpu.memory_space<vmem>>, vector<8x216xf32>
    tpu.vector_store %arg17[%c752, %c0_443], %531 {strides = array<i32>} : memref<1608x216xf32, #tpu.memory_space<vmem>>, vector<8x216xf32>,
    %533 = vector.extract_strided_slice %342 {offsets = [0, 95], sizes = [8, 216], strides = [1, 1]} : vector<8x416xf32> to vector<8x216xf32>
    %c760 = arith.constant 760 : index
    %c0_444 = arith.constant 0 : index
    %534 = vector.load %arg17[%c760, %c0_444] : memref<1608x216xf32, #tpu.memory_space<vmem>>, vector<8x216xf32>
    tpu.vector_store %arg17[%c760, %c0_444], %533 {strides = array<i32>} : memref<1608x216xf32, #tpu.memory_space<vmem>>, vector<8x216xf32>,
    %535 = vector.extract_strided_slice %342 {offsets = [0, 96], sizes = [8, 216], strides = [1, 1]} : vector<8x416xf32> to vector<8x216xf32>
    %c768 = arith.constant 768 : index
    %c0_445 = arith.constant 0 : index
    %536 = vector.load %arg17[%c768, %c0_445] : memref<1608x216xf32, #tpu.memory_space<vmem>>, vector<8x216xf32>
    tpu.vector_store %arg17[%c768, %c0_445], %535 {strides = array<i32>} : memref<1608x216xf32, #tpu.memory_space<vmem>>, vector<8x216xf32>,
    %537 = vector.extract_strided_slice %342 {offsets = [0, 97], sizes = [8, 216], strides = [1, 1]} : vector<8x416xf32> to vector<8x216xf32>
    %c776 = arith.constant 776 : index
    %c0_446 = arith.constant 0 : index
    %538 = vector.load %arg17[%c776, %c0_446] : memref<1608x216xf32, #tpu.memory_space<vmem>>, vector<8x216xf32>
    tpu.vector_store %arg17[%c776, %c0_446], %537 {strides = array<i32>} : memref<1608x216xf32, #tpu.memory_space<vmem>>, vector<8x216xf32>,
    %539 = vector.extract_strided_slice %342 {offsets = [0, 98], sizes = [8, 216], strides = [1, 1]} : vector<8x416xf32> to vector<8x216xf32>
    %c784 = arith.constant 784 : index
    %c0_447 = arith.constant 0 : index
    %540 = vector.load %arg17[%c784, %c0_447] : memref<1608x216xf32, #tpu.memory_space<vmem>>, vector<8x216xf32>
    tpu.vector_store %arg17[%c784, %c0_447], %539 {strides = array<i32>} : memref<1608x216xf32, #tpu.memory_space<vmem>>, vector<8x216xf32>,
    %541 = vector.extract_strided_slice %342 {offsets = [0, 99], sizes = [8, 216], strides = [1, 1]} : vector<8x416xf32> to vector<8x216xf32>
    %c792 = arith.constant 792 : index
    %c0_448 = arith.constant 0 : index
    %542 = vector.load %arg17[%c792, %c0_448] : memref<1608x216xf32, #tpu.memory_space<vmem>>, vector<8x216xf32>
    tpu.vector_store %arg17[%c792, %c0_448], %541 {strides = array<i32>} : memref<1608x216xf32, #tpu.memory_space<vmem>>, vector<8x216xf32>,
    %543 = vector.extract_strided_slice %342 {offsets = [0, 100], sizes = [8, 216], strides = [1, 1]} : vector<8x416xf32> to vector<8x216xf32>
    %c800 = arith.constant 800 : index
    %c0_449 = arith.constant 0 : index
    %544 = vector.load %arg17[%c800, %c0_449] : memref<1608x216xf32, #tpu.memory_space<vmem>>, vector<8x216xf32>
    tpu.vector_store %arg17[%c800, %c0_449], %543 {strides = array<i32>} : memref<1608x216xf32, #tpu.memory_space<vmem>>, vector<8x216xf32>,
    %545 = vector.extract_strided_slice %342 {offsets = [0, 101], sizes = [8, 216], strides = [1, 1]} : vector<8x416xf32> to vector<8x216xf32>
    %c808 = arith.constant 808 : index
    %c0_450 = arith.constant 0 : index
    %546 = vector.load %arg17[%c808, %c0_450] : memref<1608x216xf32, #tpu.memory_space<vmem>>, vector<8x216xf32>
    tpu.vector_store %arg17[%c808, %c0_450], %545 {strides = array<i32>} : memref<1608x216xf32, #tpu.memory_space<vmem>>, vector<8x216xf32>,
    %547 = vector.extract_strided_slice %342 {offsets = [0, 102], sizes = [8, 216], strides = [1, 1]} : vector<8x416xf32> to vector<8x216xf32>
    %c816 = arith.constant 816 : index
    %c0_451 = arith.constant 0 : index
    %548 = vector.load %arg17[%c816, %c0_451] : memref<1608x216xf32, #tpu.memory_space<vmem>>, vector<8x216xf32>
    tpu.vector_store %arg17[%c816, %c0_451], %547 {strides = array<i32>} : memref<1608x216xf32, #tpu.memory_space<vmem>>, vector<8x216xf32>,
    %549 = vector.extract_strided_slice %342 {offsets = [0, 103], sizes = [8, 216], strides = [1, 1]} : vector<8x416xf32> to vector<8x216xf32>
    %c824 = arith.constant 824 : index
    %c0_452 = arith.constant 0 : index
    %550 = vector.load %arg17[%c824, %c0_452] : memref<1608x216xf32, #tpu.memory_space<vmem>>, vector<8x216xf32>
    tpu.vector_store %arg17[%c824, %c0_452], %549 {strides = array<i32>} : memref<1608x216xf32, #tpu.memory_space<vmem>>, vector<8x216xf32>,
    %551 = vector.extract_strided_slice %342 {offsets = [0, 104], sizes = [8, 216], strides = [1, 1]} : vector<8x416xf32> to vector<8x216xf32>
    %c832 = arith.constant 832 : index
    %c0_453 = arith.constant 0 : index
    %552 = vector.load %arg17[%c832, %c0_453] : memref<1608x216xf32, #tpu.memory_space<vmem>>, vector<8x216xf32>
    tpu.vector_store %arg17[%c832, %c0_453], %551 {strides = array<i32>} : memref<1608x216xf32, #tpu.memory_space<vmem>>, vector<8x216xf32>,
    %553 = vector.extract_strided_slice %342 {offsets = [0, 105], sizes = [8, 216], strides = [1, 1]} : vector<8x416xf32> to vector<8x216xf32>
    %c840 = arith.constant 840 : index
    %c0_454 = arith.constant 0 : index
    %554 = vector.load %arg17[%c840, %c0_454] : memref<1608x216xf32, #tpu.memory_space<vmem>>, vector<8x216xf32>
    tpu.vector_store %arg17[%c840, %c0_454], %553 {strides = array<i32>} : memref<1608x216xf32, #tpu.memory_space<vmem>>, vector<8x216xf32>,
    %555 = vector.extract_strided_slice %342 {offsets = [0, 106], sizes = [8, 216], strides = [1, 1]} : vector<8x416xf32> to vector<8x216xf32>
    %c848 = arith.constant 848 : index
    %c0_455 = arith.constant 0 : index
    %556 = vector.load %arg17[%c848, %c0_455] : memref<1608x216xf32, #tpu.memory_space<vmem>>, vector<8x216xf32>
    tpu.vector_store %arg17[%c848, %c0_455], %555 {strides = array<i32>} : memref<1608x216xf32, #tpu.memory_space<vmem>>, vector<8x216xf32>,
    %557 = vector.extract_strided_slice %342 {offsets = [0, 107], sizes = [8, 216], strides = [1, 1]} : vector<8x416xf32> to vector<8x216xf32>
    %c856 = arith.constant 856 : index
    %c0_456 = arith.constant 0 : index
    %558 = vector.load %arg17[%c856, %c0_456] : memref<1608x216xf32, #tpu.memory_space<vmem>>, vector<8x216xf32>
    tpu.vector_store %arg17[%c856, %c0_456], %557 {strides = array<i32>} : memref<1608x216xf32, #tpu.memory_space<vmem>>, vector<8x216xf32>,
    %559 = vector.extract_strided_slice %342 {offsets = [0, 108], sizes = [8, 216], strides = [1, 1]} : vector<8x416xf32> to vector<8x216xf32>
    %c864 = arith.constant 864 : index
    %c0_457 = arith.constant 0 : index
    %560 = vector.load %arg17[%c864, %c0_457] : memref<1608x216xf32, #tpu.memory_space<vmem>>, vector<8x216xf32>
    tpu.vector_store %arg17[%c864, %c0_457], %559 {strides = array<i32>} : memref<1608x216xf32, #tpu.memory_space<vmem>>, vector<8x216xf32>,
    %561 = vector.extract_strided_slice %342 {offsets = [0, 109], sizes = [8, 216], strides = [1, 1]} : vector<8x416xf32> to vector<8x216xf32>
    %c872 = arith.constant 872 : index
    %c0_458 = arith.constant 0 : index
    %562 = vector.load %arg17[%c872, %c0_458] : memref<1608x216xf32, #tpu.memory_space<vmem>>, vector<8x216xf32>
    tpu.vector_store %arg17[%c872, %c0_458], %561 {strides = array<i32>} : memref<1608x216xf32, #tpu.memory_space<vmem>>, vector<8x216xf32>,
    %563 = vector.extract_strided_slice %342 {offsets = [0, 110], sizes = [8, 216], strides = [1, 1]} : vector<8x416xf32> to vector<8x216xf32>
    %c880 = arith.constant 880 : index
    %c0_459 = arith.constant 0 : index
    %564 = vector.load %arg17[%c880, %c0_459] : memref<1608x216xf32, #tpu.memory_space<vmem>>, vector<8x216xf32>
    tpu.vector_store %arg17[%c880, %c0_459], %563 {strides = array<i32>} : memref<1608x216xf32, #tpu.memory_space<vmem>>, vector<8x216xf32>,
    %565 = vector.extract_strided_slice %342 {offsets = [0, 111], sizes = [8, 216], strides = [1, 1]} : vector<8x416xf32> to vector<8x216xf32>
    %c888 = arith.constant 888 : index
    %c0_460 = arith.constant 0 : index
    %566 = vector.load %arg17[%c888, %c0_460] : memref<1608x216xf32, #tpu.memory_space<vmem>>, vector<8x216xf32>
    tpu.vector_store %arg17[%c888, %c0_460], %565 {strides = array<i32>} : memref<1608x216xf32, #tpu.memory_space<vmem>>, vector<8x216xf32>,
    %567 = vector.extract_strided_slice %342 {offsets = [0, 112], sizes = [8, 216], strides = [1, 1]} : vector<8x416xf32> to vector<8x216xf32>
    %c896 = arith.constant 896 : index
    %c0_461 = arith.constant 0 : index
    %568 = vector.load %arg17[%c896, %c0_461] : memref<1608x216xf32, #tpu.memory_space<vmem>>, vector<8x216xf32>
    tpu.vector_store %arg17[%c896, %c0_461], %567 {strides = array<i32>} : memref<1608x216xf32, #tpu.memory_space<vmem>>, vector<8x216xf32>,
    %569 = vector.extract_strided_slice %342 {offsets = [0, 113], sizes = [8, 216], strides = [1, 1]} : vector<8x416xf32> to vector<8x216xf32>
    %c904 = arith.constant 904 : index
    %c0_462 = arith.constant 0 : index
    %570 = vector.load %arg17[%c904, %c0_462] : memref<1608x216xf32, #tpu.memory_space<vmem>>, vector<8x216xf32>
    tpu.vector_store %arg17[%c904, %c0_462], %569 {strides = array<i32>} : memref<1608x216xf32, #tpu.memory_space<vmem>>, vector<8x216xf32>,
    %571 = vector.extract_strided_slice %342 {offsets = [0, 114], sizes = [8, 216], strides = [1, 1]} : vector<8x416xf32> to vector<8x216xf32>
    %c912 = arith.constant 912 : index
    %c0_463 = arith.constant 0 : index
    %572 = vector.load %arg17[%c912, %c0_463] : memref<1608x216xf32, #tpu.memory_space<vmem>>, vector<8x216xf32>
    tpu.vector_store %arg17[%c912, %c0_463], %571 {strides = array<i32>} : memref<1608x216xf32, #tpu.memory_space<vmem>>, vector<8x216xf32>,
    %573 = vector.extract_strided_slice %342 {offsets = [0, 115], sizes = [8, 216], strides = [1, 1]} : vector<8x416xf32> to vector<8x216xf32>
    %c920 = arith.constant 920 : index
    %c0_464 = arith.constant 0 : index
    %574 = vector.load %arg17[%c920, %c0_464] : memref<1608x216xf32, #tpu.memory_space<vmem>>, vector<8x216xf32>
    tpu.vector_store %arg17[%c920, %c0_464], %573 {strides = array<i32>} : memref<1608x216xf32, #tpu.memory_space<vmem>>, vector<8x216xf32>,
    %575 = vector.extract_strided_slice %342 {offsets = [0, 116], sizes = [8, 216], strides = [1, 1]} : vector<8x416xf32> to vector<8x216xf32>
    %c928 = arith.constant 928 : index
    %c0_465 = arith.constant 0 : index
    %576 = vector.load %arg17[%c928, %c0_465] : memref<1608x216xf32, #tpu.memory_space<vmem>>, vector<8x216xf32>
    tpu.vector_store %arg17[%c928, %c0_465], %575 {strides = array<i32>} : memref<1608x216xf32, #tpu.memory_space<vmem>>, vector<8x216xf32>,
    %577 = vector.extract_strided_slice %342 {offsets = [0, 117], sizes = [8, 216], strides = [1, 1]} : vector<8x416xf32> to vector<8x216xf32>
    %c936 = arith.constant 936 : index
    %c0_466 = arith.constant 0 : index
    %578 = vector.load %arg17[%c936, %c0_466] : memref<1608x216xf32, #tpu.memory_space<vmem>>, vector<8x216xf32>
    tpu.vector_store %arg17[%c936, %c0_466], %577 {strides = array<i32>} : memref<1608x216xf32, #tpu.memory_space<vmem>>, vector<8x216xf32>,
    %579 = vector.extract_strided_slice %342 {offsets = [0, 118], sizes = [8, 216], strides = [1, 1]} : vector<8x416xf32> to vector<8x216xf32>
    %c944 = arith.constant 944 : index
    %c0_467 = arith.constant 0 : index
    %580 = vector.load %arg17[%c944, %c0_467] : memref<1608x216xf32, #tpu.memory_space<vmem>>, vector<8x216xf32>
    tpu.vector_store %arg17[%c944, %c0_467], %579 {strides = array<i32>} : memref<1608x216xf32, #tpu.memory_space<vmem>>, vector<8x216xf32>,
    %581 = vector.extract_strided_slice %342 {offsets = [0, 119], sizes = [8, 216], strides = [1, 1]} : vector<8x416xf32> to vector<8x216xf32>
    %c952 = arith.constant 952 : index
    %c0_468 = arith.constant 0 : index
    %582 = vector.load %arg17[%c952, %c0_468] : memref<1608x216xf32, #tpu.memory_space<vmem>>, vector<8x216xf32>
    tpu.vector_store %arg17[%c952, %c0_468], %581 {strides = array<i32>} : memref<1608x216xf32, #tpu.memory_space<vmem>>, vector<8x216xf32>,
    %583 = vector.extract_strided_slice %342 {offsets = [0, 120], sizes = [8, 216], strides = [1, 1]} : vector<8x416xf32> to vector<8x216xf32>
    %c960 = arith.constant 960 : index
    %c0_469 = arith.constant 0 : index
    %584 = vector.load %arg17[%c960, %c0_469] : memref<1608x216xf32, #tpu.memory_space<vmem>>, vector<8x216xf32>
    tpu.vector_store %arg17[%c960, %c0_469], %583 {strides = array<i32>} : memref<1608x216xf32, #tpu.memory_space<vmem>>, vector<8x216xf32>,
    %585 = vector.extract_strided_slice %342 {offsets = [0, 121], sizes = [8, 216], strides = [1, 1]} : vector<8x416xf32> to vector<8x216xf32>
    %c968 = arith.constant 968 : index
    %c0_470 = arith.constant 0 : index
    %586 = vector.load %arg17[%c968, %c0_470] : memref<1608x216xf32, #tpu.memory_space<vmem>>, vector<8x216xf32>
    tpu.vector_store %arg17[%c968, %c0_470], %585 {strides = array<i32>} : memref<1608x216xf32, #tpu.memory_space<vmem>>, vector<8x216xf32>,
    %587 = vector.extract_strided_slice %342 {offsets = [0, 122], sizes = [8, 216], strides = [1, 1]} : vector<8x416xf32> to vector<8x216xf32>
    %c976 = arith.constant 976 : index
    %c0_471 = arith.constant 0 : index
    %588 = vector.load %arg17[%c976, %c0_471] : memref<1608x216xf32, #tpu.memory_space<vmem>>, vector<8x216xf32>
    tpu.vector_store %arg17[%c976, %c0_471], %587 {strides = array<i32>} : memref<1608x216xf32, #tpu.memory_space<vmem>>, vector<8x216xf32>,
    %589 = vector.extract_strided_slice %342 {offsets = [0, 123], sizes = [8, 216], strides = [1, 1]} : vector<8x416xf32> to vector<8x216xf32>
    %c984 = arith.constant 984 : index
    %c0_472 = arith.constant 0 : index
    %590 = vector.load %arg17[%c984, %c0_472] : memref<1608x216xf32, #tpu.memory_space<vmem>>, vector<8x216xf32>
    tpu.vector_store %arg17[%c984, %c0_472], %589 {strides = array<i32>} : memref<1608x216xf32, #tpu.memory_space<vmem>>, vector<8x216xf32>,
    %591 = vector.extract_strided_slice %342 {offsets = [0, 124], sizes = [8, 216], strides = [1, 1]} : vector<8x416xf32> to vector<8x216xf32>
    %c992 = arith.constant 992 : index
    %c0_473 = arith.constant 0 : index
    %592 = vector.load %arg17[%c992, %c0_473] : memref<1608x216xf32, #tpu.memory_space<vmem>>, vector<8x216xf32>
    tpu.vector_store %arg17[%c992, %c0_473], %591 {strides = array<i32>} : memref<1608x216xf32, #tpu.memory_space<vmem>>, vector<8x216xf32>,
    %593 = vector.extract_strided_slice %342 {offsets = [0, 125], sizes = [8, 216], strides = [1, 1]} : vector<8x416xf32> to vector<8x216xf32>
    %c1000 = arith.constant 1000 : index
    %c0_474 = arith.constant 0 : index
    %594 = vector.load %arg17[%c1000, %c0_474] : memref<1608x216xf32, #tpu.memory_space<vmem>>, vector<8x216xf32>
    tpu.vector_store %arg17[%c1000, %c0_474], %593 {strides = array<i32>} : memref<1608x216xf32, #tpu.memory_space<vmem>>, vector<8x216xf32>,
    %595 = vector.extract_strided_slice %342 {offsets = [0, 126], sizes = [8, 216], strides = [1, 1]} : vector<8x416xf32> to vector<8x216xf32>
    %c1008 = arith.constant 1008 : index
    %c0_475 = arith.constant 0 : index
    %596 = vector.load %arg17[%c1008, %c0_475] : memref<1608x216xf32, #tpu.memory_space<vmem>>, vector<8x216xf32>
    tpu.vector_store %arg17[%c1008, %c0_475], %595 {strides = array<i32>} : memref<1608x216xf32, #tpu.memory_space<vmem>>, vector<8x216xf32>,
    %597 = vector.extract_strided_slice %342 {offsets = [0, 127], sizes = [8, 216], strides = [1, 1]} : vector<8x416xf32> to vector<8x216xf32>
    %c1016 = arith.constant 1016 : index
    %c0_476 = arith.constant 0 : index
    %598 = vector.load %arg17[%c1016, %c0_476] : memref<1608x216xf32, #tpu.memory_space<vmem>>, vector<8x216xf32>
    tpu.vector_store %arg17[%c1016, %c0_476], %597 {strides = array<i32>} : memref<1608x216xf32, #tpu.memory_space<vmem>>, vector<8x216xf32>,
    %599 = vector.extract_strided_slice %342 {offsets = [0, 128], sizes = [8, 216], strides = [1, 1]} : vector<8x416xf32> to vector<8x216xf32>
    %c1024 = arith.constant 1024 : index
    %c0_477 = arith.constant 0 : index
    %600 = vector.load %arg17[%c1024, %c0_477] : memref<1608x216xf32, #tpu.memory_space<vmem>>, vector<8x216xf32>
    tpu.vector_store %arg17[%c1024, %c0_477], %599 {strides = array<i32>} : memref<1608x216xf32, #tpu.memory_space<vmem>>, vector<8x216xf32>,
    %601 = vector.extract_strided_slice %342 {offsets = [0, 129], sizes = [8, 216], strides = [1, 1]} : vector<8x416xf32> to vector<8x216xf32>
    %c1032 = arith.constant 1032 : index
    %c0_478 = arith.constant 0 : index
    %602 = vector.load %arg17[%c1032, %c0_478] : memref<1608x216xf32, #tpu.memory_space<vmem>>, vector<8x216xf32>
    tpu.vector_store %arg17[%c1032, %c0_478], %601 {strides = array<i32>} : memref<1608x216xf32, #tpu.memory_space<vmem>>, vector<8x216xf32>,
    %603 = vector.extract_strided_slice %342 {offsets = [0, 130], sizes = [8, 216], strides = [1, 1]} : vector<8x416xf32> to vector<8x216xf32>
    %c1040 = arith.constant 1040 : index
    %c0_479 = arith.constant 0 : index
    %604 = vector.load %arg17[%c1040, %c0_479] : memref<1608x216xf32, #tpu.memory_space<vmem>>, vector<8x216xf32>
    tpu.vector_store %arg17[%c1040, %c0_479], %603 {strides = array<i32>} : memref<1608x216xf32, #tpu.memory_space<vmem>>, vector<8x216xf32>,
    %605 = vector.extract_strided_slice %342 {offsets = [0, 131], sizes = [8, 216], strides = [1, 1]} : vector<8x416xf32> to vector<8x216xf32>
    %c1048 = arith.constant 1048 : index
    %c0_480 = arith.constant 0 : index
    %606 = vector.load %arg17[%c1048, %c0_480] : memref<1608x216xf32, #tpu.memory_space<vmem>>, vector<8x216xf32>
    tpu.vector_store %arg17[%c1048, %c0_480], %605 {strides = array<i32>} : memref<1608x216xf32, #tpu.memory_space<vmem>>, vector<8x216xf32>,
    %607 = vector.extract_strided_slice %342 {offsets = [0, 132], sizes = [8, 216], strides = [1, 1]} : vector<8x416xf32> to vector<8x216xf32>
    %c1056 = arith.constant 1056 : index
    %c0_481 = arith.constant 0 : index
    %608 = vector.load %arg17[%c1056, %c0_481] : memref<1608x216xf32, #tpu.memory_space<vmem>>, vector<8x216xf32>
    tpu.vector_store %arg17[%c1056, %c0_481], %607 {strides = array<i32>} : memref<1608x216xf32, #tpu.memory_space<vmem>>, vector<8x216xf32>,
    %609 = vector.extract_strided_slice %342 {offsets = [0, 133], sizes = [8, 216], strides = [1, 1]} : vector<8x416xf32> to vector<8x216xf32>
    %c1064 = arith.constant 1064 : index
    %c0_482 = arith.constant 0 : index
    %610 = vector.load %arg17[%c1064, %c0_482] : memref<1608x216xf32, #tpu.memory_space<vmem>>, vector<8x216xf32>
    tpu.vector_store %arg17[%c1064, %c0_482], %609 {strides = array<i32>} : memref<1608x216xf32, #tpu.memory_space<vmem>>, vector<8x216xf32>,
    %611 = vector.extract_strided_slice %342 {offsets = [0, 134], sizes = [8, 216], strides = [1, 1]} : vector<8x416xf32> to vector<8x216xf32>
    %c1072 = arith.constant 1072 : index
    %c0_483 = arith.constant 0 : index
    %612 = vector.load %arg17[%c1072, %c0_483] : memref<1608x216xf32, #tpu.memory_space<vmem>>, vector<8x216xf32>
    tpu.vector_store %arg17[%c1072, %c0_483], %611 {strides = array<i32>} : memref<1608x216xf32, #tpu.memory_space<vmem>>, vector<8x216xf32>,
    %613 = vector.extract_strided_slice %342 {offsets = [0, 135], sizes = [8, 216], strides = [1, 1]} : vector<8x416xf32> to vector<8x216xf32>
    %c1080 = arith.constant 1080 : index
    %c0_484 = arith.constant 0 : index
    %614 = vector.load %arg17[%c1080, %c0_484] : memref<1608x216xf32, #tpu.memory_space<vmem>>, vector<8x216xf32>
    tpu.vector_store %arg17[%c1080, %c0_484], %613 {strides = array<i32>} : memref<1608x216xf32, #tpu.memory_space<vmem>>, vector<8x216xf32>,
    %615 = vector.extract_strided_slice %342 {offsets = [0, 136], sizes = [8, 216], strides = [1, 1]} : vector<8x416xf32> to vector<8x216xf32>
    %c1088 = arith.constant 1088 : index
    %c0_485 = arith.constant 0 : index
    %616 = vector.load %arg17[%c1088, %c0_485] : memref<1608x216xf32, #tpu.memory_space<vmem>>, vector<8x216xf32>
    tpu.vector_store %arg17[%c1088, %c0_485], %615 {strides = array<i32>} : memref<1608x216xf32, #tpu.memory_space<vmem>>, vector<8x216xf32>,
    %617 = vector.extract_strided_slice %342 {offsets = [0, 137], sizes = [8, 216], strides = [1, 1]} : vector<8x416xf32> to vector<8x216xf32>
    %c1096 = arith.constant 1096 : index
    %c0_486 = arith.constant 0 : index
    %618 = vector.load %arg17[%c1096, %c0_486] : memref<1608x216xf32, #tpu.memory_space<vmem>>, vector<8x216xf32>
    tpu.vector_store %arg17[%c1096, %c0_486], %617 {strides = array<i32>} : memref<1608x216xf32, #tpu.memory_space<vmem>>, vector<8x216xf32>,
    %619 = vector.extract_strided_slice %342 {offsets = [0, 138], sizes = [8, 216], strides = [1, 1]} : vector<8x416xf32> to vector<8x216xf32>
    %c1104 = arith.constant 1104 : index
    %c0_487 = arith.constant 0 : index
    %620 = vector.load %arg17[%c1104, %c0_487] : memref<1608x216xf32, #tpu.memory_space<vmem>>, vector<8x216xf32>
    tpu.vector_store %arg17[%c1104, %c0_487], %619 {strides = array<i32>} : memref<1608x216xf32, #tpu.memory_space<vmem>>, vector<8x216xf32>,
    %621 = vector.extract_strided_slice %342 {offsets = [0, 139], sizes = [8, 216], strides = [1, 1]} : vector<8x416xf32> to vector<8x216xf32>
    %c1112 = arith.constant 1112 : index
    %c0_488 = arith.constant 0 : index
    %622 = vector.load %arg17[%c1112, %c0_488] : memref<1608x216xf32, #tpu.memory_space<vmem>>, vector<8x216xf32>
    tpu.vector_store %arg17[%c1112, %c0_488], %621 {strides = array<i32>} : memref<1608x216xf32, #tpu.memory_space<vmem>>, vector<8x216xf32>,
    %623 = vector.extract_strided_slice %342 {offsets = [0, 140], sizes = [8, 216], strides = [1, 1]} : vector<8x416xf32> to vector<8x216xf32>
    %c1120 = arith.constant 1120 : index
    %c0_489 = arith.constant 0 : index
    %624 = vector.load %arg17[%c1120, %c0_489] : memref<1608x216xf32, #tpu.memory_space<vmem>>, vector<8x216xf32>
    tpu.vector_store %arg17[%c1120, %c0_489], %623 {strides = array<i32>} : memref<1608x216xf32, #tpu.memory_space<vmem>>, vector<8x216xf32>,
    %625 = vector.extract_strided_slice %342 {offsets = [0, 141], sizes = [8, 216], strides = [1, 1]} : vector<8x416xf32> to vector<8x216xf32>
    %c1128 = arith.constant 1128 : index
    %c0_490 = arith.constant 0 : index
    %626 = vector.load %arg17[%c1128, %c0_490] : memref<1608x216xf32, #tpu.memory_space<vmem>>, vector<8x216xf32>
    tpu.vector_store %arg17[%c1128, %c0_490], %625 {strides = array<i32>} : memref<1608x216xf32, #tpu.memory_space<vmem>>, vector<8x216xf32>,
    %627 = vector.extract_strided_slice %342 {offsets = [0, 142], sizes = [8, 216], strides = [1, 1]} : vector<8x416xf32> to vector<8x216xf32>
    %c1136 = arith.constant 1136 : index
    %c0_491 = arith.constant 0 : index
    %628 = vector.load %arg17[%c1136, %c0_491] : memref<1608x216xf32, #tpu.memory_space<vmem>>, vector<8x216xf32>
    tpu.vector_store %arg17[%c1136, %c0_491], %627 {strides = array<i32>} : memref<1608x216xf32, #tpu.memory_space<vmem>>, vector<8x216xf32>,
    %629 = vector.extract_strided_slice %342 {offsets = [0, 143], sizes = [8, 216], strides = [1, 1]} : vector<8x416xf32> to vector<8x216xf32>
    %c1144 = arith.constant 1144 : index
    %c0_492 = arith.constant 0 : index
    %630 = vector.load %arg17[%c1144, %c0_492] : memref<1608x216xf32, #tpu.memory_space<vmem>>, vector<8x216xf32>
    tpu.vector_store %arg17[%c1144, %c0_492], %629 {strides = array<i32>} : memref<1608x216xf32, #tpu.memory_space<vmem>>, vector<8x216xf32>,
    %631 = vector.extract_strided_slice %342 {offsets = [0, 144], sizes = [8, 216], strides = [1, 1]} : vector<8x416xf32> to vector<8x216xf32>
    %c1152 = arith.constant 1152 : index
    %c0_493 = arith.constant 0 : index
    %632 = vector.load %arg17[%c1152, %c0_493] : memref<1608x216xf32, #tpu.memory_space<vmem>>, vector<8x216xf32>
    tpu.vector_store %arg17[%c1152, %c0_493], %631 {strides = array<i32>} : memref<1608x216xf32, #tpu.memory_space<vmem>>, vector<8x216xf32>,
    %633 = vector.extract_strided_slice %342 {offsets = [0, 145], sizes = [8, 216], strides = [1, 1]} : vector<8x416xf32> to vector<8x216xf32>
    %c1160 = arith.constant 1160 : index
    %c0_494 = arith.constant 0 : index
    %634 = vector.load %arg17[%c1160, %c0_494] : memref<1608x216xf32, #tpu.memory_space<vmem>>, vector<8x216xf32>
    tpu.vector_store %arg17[%c1160, %c0_494], %633 {strides = array<i32>} : memref<1608x216xf32, #tpu.memory_space<vmem>>, vector<8x216xf32>,
    %635 = vector.extract_strided_slice %342 {offsets = [0, 146], sizes = [8, 216], strides = [1, 1]} : vector<8x416xf32> to vector<8x216xf32>
    %c1168 = arith.constant 1168 : index
    %c0_495 = arith.constant 0 : index
    %636 = vector.load %arg17[%c1168, %c0_495] : memref<1608x216xf32, #tpu.memory_space<vmem>>, vector<8x216xf32>
    tpu.vector_store %arg17[%c1168, %c0_495], %635 {strides = array<i32>} : memref<1608x216xf32, #tpu.memory_space<vmem>>, vector<8x216xf32>,
    %637 = vector.extract_strided_slice %342 {offsets = [0, 147], sizes = [8, 216], strides = [1, 1]} : vector<8x416xf32> to vector<8x216xf32>
    %c1176 = arith.constant 1176 : index
    %c0_496 = arith.constant 0 : index
    %638 = vector.load %arg17[%c1176, %c0_496] : memref<1608x216xf32, #tpu.memory_space<vmem>>, vector<8x216xf32>
    tpu.vector_store %arg17[%c1176, %c0_496], %637 {strides = array<i32>} : memref<1608x216xf32, #tpu.memory_space<vmem>>, vector<8x216xf32>,
    %639 = vector.extract_strided_slice %342 {offsets = [0, 148], sizes = [8, 216], strides = [1, 1]} : vector<8x416xf32> to vector<8x216xf32>
    %c1184 = arith.constant 1184 : index
    %c0_497 = arith.constant 0 : index
    %640 = vector.load %arg17[%c1184, %c0_497] : memref<1608x216xf32, #tpu.memory_space<vmem>>, vector<8x216xf32>
    tpu.vector_store %arg17[%c1184, %c0_497], %639 {strides = array<i32>} : memref<1608x216xf32, #tpu.memory_space<vmem>>, vector<8x216xf32>,
    %641 = vector.extract_strided_slice %342 {offsets = [0, 149], sizes = [8, 216], strides = [1, 1]} : vector<8x416xf32> to vector<8x216xf32>
    %c1192 = arith.constant 1192 : index
    %c0_498 = arith.constant 0 : index
    %642 = vector.load %arg17[%c1192, %c0_498] : memref<1608x216xf32, #tpu.memory_space<vmem>>, vector<8x216xf32>
    tpu.vector_store %arg17[%c1192, %c0_498], %641 {strides = array<i32>} : memref<1608x216xf32, #tpu.memory_space<vmem>>, vector<8x216xf32>,
    %643 = vector.extract_strided_slice %342 {offsets = [0, 150], sizes = [8, 216], strides = [1, 1]} : vector<8x416xf32> to vector<8x216xf32>
    %c1200 = arith.constant 1200 : index
    %c0_499 = arith.constant 0 : index
    %644 = vector.load %arg17[%c1200, %c0_499] : memref<1608x216xf32, #tpu.memory_space<vmem>>, vector<8x216xf32>
    tpu.vector_store %arg17[%c1200, %c0_499], %643 {strides = array<i32>} : memref<1608x216xf32, #tpu.memory_space<vmem>>, vector<8x216xf32>,
    %645 = vector.extract_strided_slice %342 {offsets = [0, 151], sizes = [8, 216], strides = [1, 1]} : vector<8x416xf32> to vector<8x216xf32>
    %c1208 = arith.constant 1208 : index
    %c0_500 = arith.constant 0 : index
    %646 = vector.load %arg17[%c1208, %c0_500] : memref<1608x216xf32, #tpu.memory_space<vmem>>, vector<8x216xf32>
    tpu.vector_store %arg17[%c1208, %c0_500], %645 {strides = array<i32>} : memref<1608x216xf32, #tpu.memory_space<vmem>>, vector<8x216xf32>,
    %647 = vector.extract_strided_slice %342 {offsets = [0, 152], sizes = [8, 216], strides = [1, 1]} : vector<8x416xf32> to vector<8x216xf32>
    %c1216 = arith.constant 1216 : index
    %c0_501 = arith.constant 0 : index
    %648 = vector.load %arg17[%c1216, %c0_501] : memref<1608x216xf32, #tpu.memory_space<vmem>>, vector<8x216xf32>
    tpu.vector_store %arg17[%c1216, %c0_501], %647 {strides = array<i32>} : memref<1608x216xf32, #tpu.memory_space<vmem>>, vector<8x216xf32>,
    %649 = vector.extract_strided_slice %342 {offsets = [0, 153], sizes = [8, 216], strides = [1, 1]} : vector<8x416xf32> to vector<8x216xf32>
    %c1224 = arith.constant 1224 : index
    %c0_502 = arith.constant 0 : index
    %650 = vector.load %arg17[%c1224, %c0_502] : memref<1608x216xf32, #tpu.memory_space<vmem>>, vector<8x216xf32>
    tpu.vector_store %arg17[%c1224, %c0_502], %649 {strides = array<i32>} : memref<1608x216xf32, #tpu.memory_space<vmem>>, vector<8x216xf32>,
    %651 = vector.extract_strided_slice %342 {offsets = [0, 154], sizes = [8, 216], strides = [1, 1]} : vector<8x416xf32> to vector<8x216xf32>
    %c1232 = arith.constant 1232 : index
    %c0_503 = arith.constant 0 : index
    %652 = vector.load %arg17[%c1232, %c0_503] : memref<1608x216xf32, #tpu.memory_space<vmem>>, vector<8x216xf32>
    tpu.vector_store %arg17[%c1232, %c0_503], %651 {strides = array<i32>} : memref<1608x216xf32, #tpu.memory_space<vmem>>, vector<8x216xf32>,
    %653 = vector.extract_strided_slice %342 {offsets = [0, 155], sizes = [8, 216], strides = [1, 1]} : vector<8x416xf32> to vector<8x216xf32>
    %c1240 = arith.constant 1240 : index
    %c0_504 = arith.constant 0 : index
    %654 = vector.load %arg17[%c1240, %c0_504] : memref<1608x216xf32, #tpu.memory_space<vmem>>, vector<8x216xf32>
    tpu.vector_store %arg17[%c1240, %c0_504], %653 {strides = array<i32>} : memref<1608x216xf32, #tpu.memory_space<vmem>>, vector<8x216xf32>,
    %655 = vector.extract_strided_slice %342 {offsets = [0, 156], sizes = [8, 216], strides = [1, 1]} : vector<8x416xf32> to vector<8x216xf32>
    %c1248 = arith.constant 1248 : index
    %c0_505 = arith.constant 0 : index
    %656 = vector.load %arg17[%c1248, %c0_505] : memref<1608x216xf32, #tpu.memory_space<vmem>>, vector<8x216xf32>
    tpu.vector_store %arg17[%c1248, %c0_505], %655 {strides = array<i32>} : memref<1608x216xf32, #tpu.memory_space<vmem>>, vector<8x216xf32>,
    %657 = vector.extract_strided_slice %342 {offsets = [0, 157], sizes = [8, 216], strides = [1, 1]} : vector<8x416xf32> to vector<8x216xf32>
    %c1256 = arith.constant 1256 : index
    %c0_506 = arith.constant 0 : index
    %658 = vector.load %arg17[%c1256, %c0_506] : memref<1608x216xf32, #tpu.memory_space<vmem>>, vector<8x216xf32>
    tpu.vector_store %arg17[%c1256, %c0_506], %657 {strides = array<i32>} : memref<1608x216xf32, #tpu.memory_space<vmem>>, vector<8x216xf32>,
    %659 = vector.extract_strided_slice %342 {offsets = [0, 158], sizes = [8, 216], strides = [1, 1]} : vector<8x416xf32> to vector<8x216xf32>
    %c1264 = arith.constant 1264 : index
    %c0_507 = arith.constant 0 : index
    %660 = vector.load %arg17[%c1264, %c0_507] : memref<1608x216xf32, #tpu.memory_space<vmem>>, vector<8x216xf32>
    tpu.vector_store %arg17[%c1264, %c0_507], %659 {strides = array<i32>} : memref<1608x216xf32, #tpu.memory_space<vmem>>, vector<8x216xf32>,
    %661 = vector.extract_strided_slice %342 {offsets = [0, 159], sizes = [8, 216], strides = [1, 1]} : vector<8x416xf32> to vector<8x216xf32>
    %c1272 = arith.constant 1272 : index
    %c0_508 = arith.constant 0 : index
    %662 = vector.load %arg17[%c1272, %c0_508] : memref<1608x216xf32, #tpu.memory_space<vmem>>, vector<8x216xf32>
    tpu.vector_store %arg17[%c1272, %c0_508], %661 {strides = array<i32>} : memref<1608x216xf32, #tpu.memory_space<vmem>>, vector<8x216xf32>,
    %663 = vector.extract_strided_slice %342 {offsets = [0, 160], sizes = [8, 216], strides = [1, 1]} : vector<8x416xf32> to vector<8x216xf32>
    %c1280 = arith.constant 1280 : index
    %c0_509 = arith.constant 0 : index
    %664 = vector.load %arg17[%c1280, %c0_509] : memref<1608x216xf32, #tpu.memory_space<vmem>>, vector<8x216xf32>
    tpu.vector_store %arg17[%c1280, %c0_509], %663 {strides = array<i32>} : memref<1608x216xf32, #tpu.memory_space<vmem>>, vector<8x216xf32>,
    %665 = vector.extract_strided_slice %342 {offsets = [0, 161], sizes = [8, 216], strides = [1, 1]} : vector<8x416xf32> to vector<8x216xf32>
    %c1288 = arith.constant 1288 : index
    %c0_510 = arith.constant 0 : index
    %666 = vector.load %arg17[%c1288, %c0_510] : memref<1608x216xf32, #tpu.memory_space<vmem>>, vector<8x216xf32>
    tpu.vector_store %arg17[%c1288, %c0_510], %665 {strides = array<i32>} : memref<1608x216xf32, #tpu.memory_space<vmem>>, vector<8x216xf32>,
    %667 = vector.extract_strided_slice %342 {offsets = [0, 162], sizes = [8, 216], strides = [1, 1]} : vector<8x416xf32> to vector<8x216xf32>
    %c1296 = arith.constant 1296 : index
    %c0_511 = arith.constant 0 : index
    %668 = vector.load %arg17[%c1296, %c0_511] : memref<1608x216xf32, #tpu.memory_space<vmem>>, vector<8x216xf32>
    tpu.vector_store %arg17[%c1296, %c0_511], %667 {strides = array<i32>} : memref<1608x216xf32, #tpu.memory_space<vmem>>, vector<8x216xf32>,
    %669 = vector.extract_strided_slice %342 {offsets = [0, 163], sizes = [8, 216], strides = [1, 1]} : vector<8x416xf32> to vector<8x216xf32>
    %c1304 = arith.constant 1304 : index
    %c0_512 = arith.constant 0 : index
    %670 = vector.load %arg17[%c1304, %c0_512] : memref<1608x216xf32, #tpu.memory_space<vmem>>, vector<8x216xf32>
    tpu.vector_store %arg17[%c1304, %c0_512], %669 {strides = array<i32>} : memref<1608x216xf32, #tpu.memory_space<vmem>>, vector<8x216xf32>,
    %671 = vector.extract_strided_slice %342 {offsets = [0, 164], sizes = [8, 216], strides = [1, 1]} : vector<8x416xf32> to vector<8x216xf32>
    %c1312 = arith.constant 1312 : index
    %c0_513 = arith.constant 0 : index
    %672 = vector.load %arg17[%c1312, %c0_513] : memref<1608x216xf32, #tpu.memory_space<vmem>>, vector<8x216xf32>
    tpu.vector_store %arg17[%c1312, %c0_513], %671 {strides = array<i32>} : memref<1608x216xf32, #tpu.memory_space<vmem>>, vector<8x216xf32>,
    %673 = vector.extract_strided_slice %342 {offsets = [0, 165], sizes = [8, 216], strides = [1, 1]} : vector<8x416xf32> to vector<8x216xf32>
    %c1320 = arith.constant 1320 : index
    %c0_514 = arith.constant 0 : index
    %674 = vector.load %arg17[%c1320, %c0_514] : memref<1608x216xf32, #tpu.memory_space<vmem>>, vector<8x216xf32>
    tpu.vector_store %arg17[%c1320, %c0_514], %673 {strides = array<i32>} : memref<1608x216xf32, #tpu.memory_space<vmem>>, vector<8x216xf32>,
    %675 = vector.extract_strided_slice %342 {offsets = [0, 166], sizes = [8, 216], strides = [1, 1]} : vector<8x416xf32> to vector<8x216xf32>
    %c1328 = arith.constant 1328 : index
    %c0_515 = arith.constant 0 : index
    %676 = vector.load %arg17[%c1328, %c0_515] : memref<1608x216xf32, #tpu.memory_space<vmem>>, vector<8x216xf32>
    tpu.vector_store %arg17[%c1328, %c0_515], %675 {strides = array<i32>} : memref<1608x216xf32, #tpu.memory_space<vmem>>, vector<8x216xf32>,
    %677 = vector.extract_strided_slice %342 {offsets = [0, 167], sizes = [8, 216], strides = [1, 1]} : vector<8x416xf32> to vector<8x216xf32>
    %c1336 = arith.constant 1336 : index
    %c0_516 = arith.constant 0 : index
    %678 = vector.load %arg17[%c1336, %c0_516] : memref<1608x216xf32, #tpu.memory_space<vmem>>, vector<8x216xf32>
    tpu.vector_store %arg17[%c1336, %c0_516], %677 {strides = array<i32>} : memref<1608x216xf32, #tpu.memory_space<vmem>>, vector<8x216xf32>,
    %679 = vector.extract_strided_slice %342 {offsets = [0, 168], sizes = [8, 216], strides = [1, 1]} : vector<8x416xf32> to vector<8x216xf32>
    %c1344 = arith.constant 1344 : index
    %c0_517 = arith.constant 0 : index
    %680 = vector.load %arg17[%c1344, %c0_517] : memref<1608x216xf32, #tpu.memory_space<vmem>>, vector<8x216xf32>
    tpu.vector_store %arg17[%c1344, %c0_517], %679 {strides = array<i32>} : memref<1608x216xf32, #tpu.memory_space<vmem>>, vector<8x216xf32>,
    %681 = vector.extract_strided_slice %342 {offsets = [0, 169], sizes = [8, 216], strides = [1, 1]} : vector<8x416xf32> to vector<8x216xf32>
    %c1352 = arith.constant 1352 : index
    %c0_518 = arith.constant 0 : index
    %682 = vector.load %arg17[%c1352, %c0_518] : memref<1608x216xf32, #tpu.memory_space<vmem>>, vector<8x216xf32>
    tpu.vector_store %arg17[%c1352, %c0_518], %681 {strides = array<i32>} : memref<1608x216xf32, #tpu.memory_space<vmem>>, vector<8x216xf32>,
    %683 = vector.extract_strided_slice %342 {offsets = [0, 170], sizes = [8, 216], strides = [1, 1]} : vector<8x416xf32> to vector<8x216xf32>
    %c1360 = arith.constant 1360 : index
    %c0_519 = arith.constant 0 : index
    %684 = vector.load %arg17[%c1360, %c0_519] : memref<1608x216xf32, #tpu.memory_space<vmem>>, vector<8x216xf32>
    tpu.vector_store %arg17[%c1360, %c0_519], %683 {strides = array<i32>} : memref<1608x216xf32, #tpu.memory_space<vmem>>, vector<8x216xf32>,
    %685 = vector.extract_strided_slice %342 {offsets = [0, 171], sizes = [8, 216], strides = [1, 1]} : vector<8x416xf32> to vector<8x216xf32>
    %c1368 = arith.constant 1368 : index
    %c0_520 = arith.constant 0 : index
    %686 = vector.load %arg17[%c1368, %c0_520] : memref<1608x216xf32, #tpu.memory_space<vmem>>, vector<8x216xf32>
    tpu.vector_store %arg17[%c1368, %c0_520], %685 {strides = array<i32>} : memref<1608x216xf32, #tpu.memory_space<vmem>>, vector<8x216xf32>,
    %687 = vector.extract_strided_slice %342 {offsets = [0, 172], sizes = [8, 216], strides = [1, 1]} : vector<8x416xf32> to vector<8x216xf32>
    %c1376 = arith.constant 1376 : index
    %c0_521 = arith.constant 0 : index
    %688 = vector.load %arg17[%c1376, %c0_521] : memref<1608x216xf32, #tpu.memory_space<vmem>>, vector<8x216xf32>
    tpu.vector_store %arg17[%c1376, %c0_521], %687 {strides = array<i32>} : memref<1608x216xf32, #tpu.memory_space<vmem>>, vector<8x216xf32>,
    %689 = vector.extract_strided_slice %342 {offsets = [0, 173], sizes = [8, 216], strides = [1, 1]} : vector<8x416xf32> to vector<8x216xf32>
    %c1384 = arith.constant 1384 : index
    %c0_522 = arith.constant 0 : index
    %690 = vector.load %arg17[%c1384, %c0_522] : memref<1608x216xf32, #tpu.memory_space<vmem>>, vector<8x216xf32>
    tpu.vector_store %arg17[%c1384, %c0_522], %689 {strides = array<i32>} : memref<1608x216xf32, #tpu.memory_space<vmem>>, vector<8x216xf32>,
    %691 = vector.extract_strided_slice %342 {offsets = [0, 174], sizes = [8, 216], strides = [1, 1]} : vector<8x416xf32> to vector<8x216xf32>
    %c1392 = arith.constant 1392 : index
    %c0_523 = arith.constant 0 : index
    %692 = vector.load %arg17[%c1392, %c0_523] : memref<1608x216xf32, #tpu.memory_space<vmem>>, vector<8x216xf32>
    tpu.vector_store %arg17[%c1392, %c0_523], %691 {strides = array<i32>} : memref<1608x216xf32, #tpu.memory_space<vmem>>, vector<8x216xf32>,
    %693 = vector.extract_strided_slice %342 {offsets = [0, 175], sizes = [8, 216], strides = [1, 1]} : vector<8x416xf32> to vector<8x216xf32>
    %c1400 = arith.constant 1400 : index
    %c0_524 = arith.constant 0 : index
    %694 = vector.load %arg17[%c1400, %c0_524] : memref<1608x216xf32, #tpu.memory_space<vmem>>, vector<8x216xf32>
    tpu.vector_store %arg17[%c1400, %c0_524], %693 {strides = array<i32>} : memref<1608x216xf32, #tpu.memory_space<vmem>>, vector<8x216xf32>,
    %695 = vector.extract_strided_slice %342 {offsets = [0, 176], sizes = [8, 216], strides = [1, 1]} : vector<8x416xf32> to vector<8x216xf32>
    %c1408 = arith.constant 1408 : index
    %c0_525 = arith.constant 0 : index
    %696 = vector.load %arg17[%c1408, %c0_525] : memref<1608x216xf32, #tpu.memory_space<vmem>>, vector<8x216xf32>
    tpu.vector_store %arg17[%c1408, %c0_525], %695 {strides = array<i32>} : memref<1608x216xf32, #tpu.memory_space<vmem>>, vector<8x216xf32>,
    %697 = vector.extract_strided_slice %342 {offsets = [0, 177], sizes = [8, 216], strides = [1, 1]} : vector<8x416xf32> to vector<8x216xf32>
    %c1416 = arith.constant 1416 : index
    %c0_526 = arith.constant 0 : index
    %698 = vector.load %arg17[%c1416, %c0_526] : memref<1608x216xf32, #tpu.memory_space<vmem>>, vector<8x216xf32>
    tpu.vector_store %arg17[%c1416, %c0_526], %697 {strides = array<i32>} : memref<1608x216xf32, #tpu.memory_space<vmem>>, vector<8x216xf32>,
    %699 = vector.extract_strided_slice %342 {offsets = [0, 178], sizes = [8, 216], strides = [1, 1]} : vector<8x416xf32> to vector<8x216xf32>
    %c1424 = arith.constant 1424 : index
    %c0_527 = arith.constant 0 : index
    %700 = vector.load %arg17[%c1424, %c0_527] : memref<1608x216xf32, #tpu.memory_space<vmem>>, vector<8x216xf32>
    tpu.vector_store %arg17[%c1424, %c0_527], %699 {strides = array<i32>} : memref<1608x216xf32, #tpu.memory_space<vmem>>, vector<8x216xf32>,
    %701 = vector.extract_strided_slice %342 {offsets = [0, 179], sizes = [8, 216], strides = [1, 1]} : vector<8x416xf32> to vector<8x216xf32>
    %c1432 = arith.constant 1432 : index
    %c0_528 = arith.constant 0 : index
    %702 = vector.load %arg17[%c1432, %c0_528] : memref<1608x216xf32, #tpu.memory_space<vmem>>, vector<8x216xf32>
    tpu.vector_store %arg17[%c1432, %c0_528], %701 {strides = array<i32>} : memref<1608x216xf32, #tpu.memory_space<vmem>>, vector<8x216xf32>,
    %703 = vector.extract_strided_slice %342 {offsets = [0, 180], sizes = [8, 216], strides = [1, 1]} : vector<8x416xf32> to vector<8x216xf32>
    %c1440 = arith.constant 1440 : index
    %c0_529 = arith.constant 0 : index
    %704 = vector.load %arg17[%c1440, %c0_529] : memref<1608x216xf32, #tpu.memory_space<vmem>>, vector<8x216xf32>
    tpu.vector_store %arg17[%c1440, %c0_529], %703 {strides = array<i32>} : memref<1608x216xf32, #tpu.memory_space<vmem>>, vector<8x216xf32>,
    %705 = vector.extract_strided_slice %342 {offsets = [0, 181], sizes = [8, 216], strides = [1, 1]} : vector<8x416xf32> to vector<8x216xf32>
    %c1448 = arith.constant 1448 : index
    %c0_530 = arith.constant 0 : index
    %706 = vector.load %arg17[%c1448, %c0_530] : memref<1608x216xf32, #tpu.memory_space<vmem>>, vector<8x216xf32>
    tpu.vector_store %arg17[%c1448, %c0_530], %705 {strides = array<i32>} : memref<1608x216xf32, #tpu.memory_space<vmem>>, vector<8x216xf32>,
    %707 = vector.extract_strided_slice %342 {offsets = [0, 182], sizes = [8, 216], strides = [1, 1]} : vector<8x416xf32> to vector<8x216xf32>
    %c1456 = arith.constant 1456 : index
    %c0_531 = arith.constant 0 : index
    %708 = vector.load %arg17[%c1456, %c0_531] : memref<1608x216xf32, #tpu.memory_space<vmem>>, vector<8x216xf32>
    tpu.vector_store %arg17[%c1456, %c0_531], %707 {strides = array<i32>} : memref<1608x216xf32, #tpu.memory_space<vmem>>, vector<8x216xf32>,
    %709 = vector.extract_strided_slice %342 {offsets = [0, 183], sizes = [8, 216], strides = [1, 1]} : vector<8x416xf32> to vector<8x216xf32>
    %c1464 = arith.constant 1464 : index
    %c0_532 = arith.constant 0 : index
    %710 = vector.load %arg17[%c1464, %c0_532] : memref<1608x216xf32, #tpu.memory_space<vmem>>, vector<8x216xf32>
    tpu.vector_store %arg17[%c1464, %c0_532], %709 {strides = array<i32>} : memref<1608x216xf32, #tpu.memory_space<vmem>>, vector<8x216xf32>,
    %711 = vector.extract_strided_slice %342 {offsets = [0, 184], sizes = [8, 216], strides = [1, 1]} : vector<8x416xf32> to vector<8x216xf32>
    %c1472 = arith.constant 1472 : index
    %c0_533 = arith.constant 0 : index
    %712 = vector.load %arg17[%c1472, %c0_533] : memref<1608x216xf32, #tpu.memory_space<vmem>>, vector<8x216xf32>
    tpu.vector_store %arg17[%c1472, %c0_533], %711 {strides = array<i32>} : memref<1608x216xf32, #tpu.memory_space<vmem>>, vector<8x216xf32>,
    %713 = vector.extract_strided_slice %342 {offsets = [0, 185], sizes = [8, 216], strides = [1, 1]} : vector<8x416xf32> to vector<8x216xf32>
    %c1480 = arith.constant 1480 : index
    %c0_534 = arith.constant 0 : index
    %714 = vector.load %arg17[%c1480, %c0_534] : memref<1608x216xf32, #tpu.memory_space<vmem>>, vector<8x216xf32>
    tpu.vector_store %arg17[%c1480, %c0_534], %713 {strides = array<i32>} : memref<1608x216xf32, #tpu.memory_space<vmem>>, vector<8x216xf32>,
    %715 = vector.extract_strided_slice %342 {offsets = [0, 186], sizes = [8, 216], strides = [1, 1]} : vector<8x416xf32> to vector<8x216xf32>
    %c1488 = arith.constant 1488 : index
    %c0_535 = arith.constant 0 : index
    %716 = vector.load %arg17[%c1488, %c0_535] : memref<1608x216xf32, #tpu.memory_space<vmem>>, vector<8x216xf32>
    tpu.vector_store %arg17[%c1488, %c0_535], %715 {strides = array<i32>} : memref<1608x216xf32, #tpu.memory_space<vmem>>, vector<8x216xf32>,
    %717 = vector.extract_strided_slice %342 {offsets = [0, 187], sizes = [8, 216], strides = [1, 1]} : vector<8x416xf32> to vector<8x216xf32>
    %c1496 = arith.constant 1496 : index
    %c0_536 = arith.constant 0 : index
    %718 = vector.load %arg17[%c1496, %c0_536] : memref<1608x216xf32, #tpu.memory_space<vmem>>, vector<8x216xf32>
    tpu.vector_store %arg17[%c1496, %c0_536], %717 {strides = array<i32>} : memref<1608x216xf32, #tpu.memory_space<vmem>>, vector<8x216xf32>,
    %719 = vector.extract_strided_slice %342 {offsets = [0, 188], sizes = [8, 216], strides = [1, 1]} : vector<8x416xf32> to vector<8x216xf32>
    %c1504 = arith.constant 1504 : index
    %c0_537 = arith.constant 0 : index
    %720 = vector.load %arg17[%c1504, %c0_537] : memref<1608x216xf32, #tpu.memory_space<vmem>>, vector<8x216xf32>
    tpu.vector_store %arg17[%c1504, %c0_537], %719 {strides = array<i32>} : memref<1608x216xf32, #tpu.memory_space<vmem>>, vector<8x216xf32>,
    %721 = vector.extract_strided_slice %342 {offsets = [0, 189], sizes = [8, 216], strides = [1, 1]} : vector<8x416xf32> to vector<8x216xf32>
    %c1512 = arith.constant 1512 : index
    %c0_538 = arith.constant 0 : index
    %722 = vector.load %arg17[%c1512, %c0_538] : memref<1608x216xf32, #tpu.memory_space<vmem>>, vector<8x216xf32>
    tpu.vector_store %arg17[%c1512, %c0_538], %721 {strides = array<i32>} : memref<1608x216xf32, #tpu.memory_space<vmem>>, vector<8x216xf32>,
    %723 = vector.extract_strided_slice %342 {offsets = [0, 190], sizes = [8, 216], strides = [1, 1]} : vector<8x416xf32> to vector<8x216xf32>
    %c1520 = arith.constant 1520 : index
    %c0_539 = arith.constant 0 : index
    %724 = vector.load %arg17[%c1520, %c0_539] : memref<1608x216xf32, #tpu.memory_space<vmem>>, vector<8x216xf32>
    tpu.vector_store %arg17[%c1520, %c0_539], %723 {strides = array<i32>} : memref<1608x216xf32, #tpu.memory_space<vmem>>, vector<8x216xf32>,
    %725 = vector.extract_strided_slice %342 {offsets = [0, 191], sizes = [8, 216], strides = [1, 1]} : vector<8x416xf32> to vector<8x216xf32>
    %c1528 = arith.constant 1528 : index
    %c0_540 = arith.constant 0 : index
    %726 = vector.load %arg17[%c1528, %c0_540] : memref<1608x216xf32, #tpu.memory_space<vmem>>, vector<8x216xf32>
    tpu.vector_store %arg17[%c1528, %c0_540], %725 {strides = array<i32>} : memref<1608x216xf32, #tpu.memory_space<vmem>>, vector<8x216xf32>,
    %727 = vector.extract_strided_slice %342 {offsets = [0, 192], sizes = [8, 216], strides = [1, 1]} : vector<8x416xf32> to vector<8x216xf32>
    %c1536 = arith.constant 1536 : index
    %c0_541 = arith.constant 0 : index
    %728 = vector.load %arg17[%c1536, %c0_541] : memref<1608x216xf32, #tpu.memory_space<vmem>>, vector<8x216xf32>
    tpu.vector_store %arg17[%c1536, %c0_541], %727 {strides = array<i32>} : memref<1608x216xf32, #tpu.memory_space<vmem>>, vector<8x216xf32>,
    %729 = vector.extract_strided_slice %342 {offsets = [0, 193], sizes = [8, 216], strides = [1, 1]} : vector<8x416xf32> to vector<8x216xf32>
    %c1544 = arith.constant 1544 : index
    %c0_542 = arith.constant 0 : index
    %730 = vector.load %arg17[%c1544, %c0_542] : memref<1608x216xf32, #tpu.memory_space<vmem>>, vector<8x216xf32>
    tpu.vector_store %arg17[%c1544, %c0_542], %729 {strides = array<i32>} : memref<1608x216xf32, #tpu.memory_space<vmem>>, vector<8x216xf32>,
    %731 = vector.extract_strided_slice %342 {offsets = [0, 194], sizes = [8, 216], strides = [1, 1]} : vector<8x416xf32> to vector<8x216xf32>
    %c1552 = arith.constant 1552 : index
    %c0_543 = arith.constant 0 : index
    %732 = vector.load %arg17[%c1552, %c0_543] : memref<1608x216xf32, #tpu.memory_space<vmem>>, vector<8x216xf32>
    tpu.vector_store %arg17[%c1552, %c0_543], %731 {strides = array<i32>} : memref<1608x216xf32, #tpu.memory_space<vmem>>, vector<8x216xf32>,
    %733 = vector.extract_strided_slice %342 {offsets = [0, 195], sizes = [8, 216], strides = [1, 1]} : vector<8x416xf32> to vector<8x216xf32>
    %c1560 = arith.constant 1560 : index
    %c0_544 = arith.constant 0 : index
    %734 = vector.load %arg17[%c1560, %c0_544] : memref<1608x216xf32, #tpu.memory_space<vmem>>, vector<8x216xf32>
    tpu.vector_store %arg17[%c1560, %c0_544], %733 {strides = array<i32>} : memref<1608x216xf32, #tpu.memory_space<vmem>>, vector<8x216xf32>,
    %735 = vector.extract_strided_slice %342 {offsets = [0, 196], sizes = [8, 216], strides = [1, 1]} : vector<8x416xf32> to vector<8x216xf32>
    %c1568 = arith.constant 1568 : index
    %c0_545 = arith.constant 0 : index
    %736 = vector.load %arg17[%c1568, %c0_545] : memref<1608x216xf32, #tpu.memory_space<vmem>>, vector<8x216xf32>
    tpu.vector_store %arg17[%c1568, %c0_545], %735 {strides = array<i32>} : memref<1608x216xf32, #tpu.memory_space<vmem>>, vector<8x216xf32>,
    %737 = vector.extract_strided_slice %342 {offsets = [0, 197], sizes = [8, 216], strides = [1, 1]} : vector<8x416xf32> to vector<8x216xf32>
    %c1576 = arith.constant 1576 : index
    %c0_546 = arith.constant 0 : index
    %738 = vector.load %arg17[%c1576, %c0_546] : memref<1608x216xf32, #tpu.memory_space<vmem>>, vector<8x216xf32>
    tpu.vector_store %arg17[%c1576, %c0_546], %737 {strides = array<i32>} : memref<1608x216xf32, #tpu.memory_space<vmem>>, vector<8x216xf32>,
    %739 = vector.extract_strided_slice %342 {offsets = [0, 198], sizes = [8, 216], strides = [1, 1]} : vector<8x416xf32> to vector<8x216xf32>
    %c1584 = arith.constant 1584 : index
    %c0_547 = arith.constant 0 : index
    %740 = vector.load %arg17[%c1584, %c0_547] : memref<1608x216xf32, #tpu.memory_space<vmem>>, vector<8x216xf32>
    tpu.vector_store %arg17[%c1584, %c0_547], %739 {strides = array<i32>} : memref<1608x216xf32, #tpu.memory_space<vmem>>, vector<8x216xf32>,
    %741 = vector.extract_strided_slice %342 {offsets = [0, 199], sizes = [8, 216], strides = [1, 1]} : vector<8x416xf32> to vector<8x216xf32>
    %c1592 = arith.constant 1592 : index
    %c0_548 = arith.constant 0 : index
    %742 = vector.load %arg17[%c1592, %c0_548] : memref<1608x216xf32, #tpu.memory_space<vmem>>, vector<8x216xf32>
    tpu.vector_store %arg17[%c1592, %c0_548], %741 {strides = array<i32>} : memref<1608x216xf32, #tpu.memory_space<vmem>>, vector<8x216xf32>,
    %743 = vector.extract_strided_slice %342 {offsets = [0, 200], sizes = [8, 216], strides = [1, 1]} : vector<8x416xf32> to vector<8x216xf32>
    %c1600 = arith.constant 1600 : index
    %c0_549 = arith.constant 0 : index
    %744 = vector.load %arg17[%c1600, %c0_549] : memref<1608x216xf32, #tpu.memory_space<vmem>>, vector<8x216xf32>
    tpu.vector_store %arg17[%c1600, %c0_549], %743 {strides = array<i32>} : memref<1608x216xf32, #tpu.memory_space<vmem>>, vector<8x216xf32>,
    %c0_550 = arith.constant 0 : index
    %c0_551 = arith.constant 0 : index
    %745 = vector.load %arg8[%c0_550, %c0_551] : memref<1x1608xf32, #tpu.memory_space<vmem>>, vector<1x1608xf32>
    %c0_552 = arith.constant 0 : index
    %c0_553 = arith.constant 0 : index
    %746 = vector.load %arg17[%c0_552, %c0_553] : memref<1608x216xf32, #tpu.memory_space<vmem>>, vector<1608x216xf32>
    %cst_554 = arith.constant dense<0.000000e+00> : vector<1x216xf32>
    %747 = tpu.matmul %745, %746, %cst_554 {dimension_numbers = #tpu.dot_dimension_numbers<[1], [0], [0], [1], [0, 0, 1, 1], [], []>} : vector<1x1608xf32>, vector<1608x216xf32>, vector<1x216xf32> -> vector<1x216xf32>
    %c0_555 = arith.constant 0 : index
    %c0_556 = arith.constant 0 : index
    %748 = vector.load %arg9[%c0_555, %c0_556] : memref<1x1xf32, #tpu.memory_space<vmem>>, vector<1x1xf32>
    %749 = vector.broadcast %748 : vector<1x1xf32> to vector<1x216xf32>
    %750 = arith.addf %747, %749 : vector<1x216xf32>
    %c0_557 = arith.constant 0 : index
    %c0_558 = arith.constant 0 : index
    %c0_559 = arith.constant 0 : index
    %751 = vector.load %arg10[%c0_557, %c0_558, %c0_559] : memref<1x1x216xf32, #tpu.memory_space<vmem>>, vector<1x1x216xf32>
    %752 = vector.shape_cast %751 : vector<1x1x216xf32> to vector<1x216xf32>
    %753 = vector.shape_cast %750 : vector<1x216xf32> to vector<1x1x216xf32>
    tpu.vector_store %arg10[%c0_557, %c0_558, %c0_559], %753 {strides = array<i32>} : memref<1x1x216xf32, #tpu.memory_space<vmem>>, vector<1x1x216xf32>,
    return
  }
  func.func @transform_0(%arg0: i32) -> (i32, i32, i32) {
    %c0_i32 = arith.constant 0 : i32
    %c0_i32_0 = arith.constant 0 : i32
    %c0_i32_1 = arith.constant 0 : i32
    return %arg0, %c0_i32, %c0_i32_0 : i32, i32, i32
  }
  func.func @transform_1(%arg0: i32) -> (i32, i32) {
    %c0_i32 = arith.constant 0 : i32
    %c0_i32_0 = arith.constant 0 : i32
    %c0_i32_1 = arith.constant 0 : i32
    return %c0_i32, %c0_i32_0 : i32, i32
  }
  func.func @transform_2(%arg0: i32) -> (i32, i32) {
    %c0_i32 = arith.constant 0 : i32
    %c0_i32_0 = arith.constant 0 : i32
    %c0_i32_1 = arith.constant 0 : i32
    return %c0_i32, %c0_i32_0 : i32, i32
  }
  func.func @transform_3(%arg0: i32) -> (i32, i32) {
    %c0_i32 = arith.constant 0 : i32
    %c0_i32_0 = arith.constant 0 : i32
    %c0_i32_1 = arith.constant 0 : i32
    return %c0_i32, %c0_i32_0 : i32, i32
  }
  func.func @transform_4(%arg0: i32) -> (i32, i32) {
    %c0_i32 = arith.constant 0 : i32
    %c0_i32_0 = arith.constant 0 : i32
    %c0_i32_1 = arith.constant 0 : i32
    return %c0_i32, %c0_i32_0 : i32, i32
  }
  func.func @transform_5(%arg0: i32) -> (i32, i32) {
    %c0_i32 = arith.constant 0 : i32
    %c0_i32_0 = arith.constant 0 : i32
    %c0_i32_1 = arith.constant 0 : i32
    return %c0_i32, %c0_i32_0 : i32, i32
  }
  func.func @transform_6(%arg0: i32) -> (i32, i32) {
    %c0_i32 = arith.constant 0 : i32
    %c0_i32_0 = arith.constant 0 : i32
    %c0_i32_1 = arith.constant 0 : i32
    return %c0_i32, %c0_i32_0 : i32, i32
  }
  func.func @transform_7(%arg0: i32) -> (i32, i32) {
    %c0_i32 = arith.constant 0 : i32
    %c0_i32_0 = arith.constant 0 : i32
    %c0_i32_1 = arith.constant 0 : i32
    return %c0_i32, %c0_i32_0 : i32, i32
  }
  func.func @transform_8(%arg0: i32) -> (i32, i32) {
    %c0_i32 = arith.constant 0 : i32
    %c0_i32_0 = arith.constant 0 : i32
    %c0_i32_1 = arith.constant 0 : i32
    return %c0_i32, %c0_i32_0 : i32, i32
  }
  func.func @transform_9(%arg0: i32) -> (i32, i32, i32) {
    %c0_i32 = arith.constant 0 : i32
    %c0_i32_0 = arith.constant 0 : i32
    %c0_i32_1 = arith.constant 0 : i32
    return %arg0, %c0_i32, %c0_i32_0 : i32, i32, i32
  }
}

</mosaic_0001>

<bundles_post_ra>
// kernel: reverse
= control target key start
LH: loop header
LB: loop body
LE: loop exit
PB: predicated region body
PF: predicated region fallthrough
CT: control target
= control target key end

     0   :  { %v2_v0 = vlaneseq  ;;  %s491_s0 = inlined_call_operand.vmem [shape: f32[6,1,256], index: 0, kind: input, shape index: {}]   ;;  %s492_s1 = inlined_call_operand.vmem [shape: f32[6,1,256], index: 1, kind: output, shape index: {}]  }
   0x2   :  { %v421_v1 = vsub.s32 127, %v2_v0 }
   0x4   :  { %4 = vset.pattern.permute.xlu0 %v421_v1 }
   0x5   :  { %s424_s6 = smov 0   ;;  %s426_s7 = smov 0  }
   0x6   :  { %s428_s8 = smov 0  }
   0x7 LB: > { %s343_s9 = sadd.s32 4294967295, %s409_s8   ;;  %s22_s10 = sadd.s32 1, %s405_s7  ;;  %s409_s8 = sphi %s428_s8, %s10_s8   ;;  %s405_s7 = sphi %s426_s7, %s494_s7   ;;  %s401_s6 = sphi %s424_s6, %s493_s6  }
   0x8   : > { %p23_p0 = scmp.ge.s32.totalorder %s22_s10, 2  ;;  %p345_p1 = scmp.ge.s32.totalorder %s409_s8, 2 }
   0x9   : > { %s45_s11 = sand.u32 (!%p345_p1), 1, %s409_s8   ;;  %s48_s12 = ssub.s32 (!%p345_p1), 1, %s405_s7 }
   0xa   : > { %s496_s10 = smov (%p23_p0, %s22_s10), 0  ;;  %43 = sbr.rel (%p345_p1) target bundleno = 22 (0x16), region = 16 }
   0xb   : > { %s359_s13 = smul.u32 (!%p345_p1), 6, %s45_s11  ;;  %s54_s16 = scalar_lea.vmem (!%p345_p1), %s491_s0, %s48_s12 }
   0xd   : > { %s47_s17 = scalar_lea.vmem (!%p345_p1), [#allocation1], %s359_s13 }
   0xf   : > { %v71_v2 = vld [vmem:[%s54_s16] sm:$0x1]  ;;  %v73_v3 = vld [vmem:[%s54_s16 + $0x2] sm:$0x1]  ;;  %v75_v4 = vld [vmem:[%s54_s16 + $0x4] sm:$0x1] }
  0x10   : > { %72 = vst [vmem:[%s47_s17] sm:$0x1] %v71_v2  ;;  %v77_v5 = vld [vmem:[%s54_s16 + $0x6] sm:$0x1]  ;;  %v79_v6 = vld [vmem:[%s54_s16 + $0x8] sm:$0x1] }
  0x11   : > { %74 = vst [vmem:[%s47_s17 + $0x1] sm:$0x1] %v73_v3  ;;  %v81_v7 = vld [vmem:[%s54_s16 + $0xa] sm:$0x1] }
  0x12   : > { %76 = vst [vmem:[%s47_s17 + $0x2] sm:$0x1] %v75_v4 }
  0x13   : > { %78 = vst [vmem:[%s47_s17 + $0x3] sm:$0x1] %v77_v5 }
  0x14   : > { %80 = vst [vmem:[%s47_s17 + $0x4] sm:$0x1] %v79_v6 }
  0x15   : > { %82 = vst [vmem:[%s47_s17 + $0x5] sm:$0x1] %v81_v7 }
  0x16 PF: > { %p346_p2 = scmp.ge.s32.totalorder %s409_s8, 1  ;;  %p109_p3 = scmp.lt.s32.totalorder %s409_s8, 3 }
  0x18   : > { %p110_p4 = pnand %p346_p2, %p109_p3 }
  0x19   : > { %s452_s18 = sand.u32 (!%p110_p4), 1, %s343_s9   ;;  %s463_s24 = scalar_lea.vmem (!%p110_p4), %s492_s1, %s401_s6 }
  0x1a   : > { %113 = sbr.rel (%p110_p4) target bundleno = 183 (0xb7), region = 50 }
  0x1b   : > { %s360_s19 = smul.u32 (!%p110_p4), 6, %s452_s18 }
  0x1d   : > { %s122_s20 = scalar_lea.vmem (!%p110_p4), [#allocation1], %s360_s19  ;;  %s456_s21 = scalar_lea.vmem (!%p110_p4), [#allocation3], %s360_s19 }
  0x1f   : > { %385 = vset.pattern.permute.xlu1 %v421_v1  ;;  %386 = vset.pattern.permute.xlu2 %v421_v1  ;;  %v149_v8 = vld [vmem:[%s122_s20] sm:$0x1]  ;;  %v350_v9 = vld [vmem:[%s122_s20 + $0x2] sm:$0x1]  ;;  %v351_v10 = vld [vmem:[%s122_s20 + $0x1] sm:$0x1] }
  0x20   : > { %150 = vst [vmem:[#allocation0 + $0x8] sm:$0x1] %v149_v8  ;;  %v349_v11 = vld [vmem:[%s122_s20 + $0x3] sm:$0x1]  ;;  %v348_v12 = vld [vmem:[%s122_s20 + $0x4] sm:$0x1] }
  0x21   : > { %144 = vst [vmem:[#allocation0 + $0x28] sm:$0x1] %v350_v9  ;;  %v347_v13 = vld [vmem:[%s122_s20 + $0x5] sm:$0x1] }
  0x22   : > { %148 = vst [vmem:[#allocation0 + $0x10] sm:$0x1] %v351_v10 }
  0x23   : > { %140 = vst [vmem:[#allocation0 + $0x20] sm:$0x1] %v349_v11 }
  0x24   : > { %136 = vst [vmem:[#allocation0 + $0x18] sm:$0x1] %v348_v12 }
  0x25   : > { %132 = vst [vmem:[#allocation0] sm:$0x1] %v347_v13 }
  0x27   : > { %v154_v14 = vld [vmem:[#allocation0 + $0x8] sm:$0xff] }
  0x28   : > { %155 = vperm.xlu0 %4, %v154_v14   ;;  %v166_v15 = vld [vmem:[#allocation0 + $0x28] sm:$0xff] }
  0x29   : > { %167 = vperm.xlu1 %385, %v166_v15   ;;  %v160_v17 = vld [vmem:[#allocation0 + $0x10] sm:$0xff] }
  0x2a   : > { %v172_v18 = vld [vmem:[#allocation0 + $0x20] sm:$0xff] }
  0x2b   : > { %v178_v16 = vld [vmem:[#allocation0 + $0x18] sm:$0xff] }
  0x2c   : > { %179 = vperm.xlu2 %386, %v178_v16   ;;  %v184_v19 = vld [vmem:[#allocation0] sm:$0xff] }
  0x30   : > { %161 = vperm.xlu0 %4, %v160_v17  }
  0x31   : > { %173 = vperm.xlu1 %385, %v172_v18  }
  0x34   : > { %185 = vperm.xlu2 %386, %v184_v19  }
  0x86   : > { %v180_v20 = vpop.permute.xlu2 %179 }
  0x87   : > { %181 = vst [vmem:[#allocation2 + $0x28] sm:$0xff] %v180_v20 }
  0x8e   : > { %v213_v21 = vld [vmem:[#allocation2 + $0x28] sm:$0x1]  ;;  %v186_v22 = vpop.permute.xlu2 %185 }
  0x8f   : > { %355 = vst [vmem:[%s456_s21 + $0x4] sm:$0x1] %v213_v21 }
  0x90   : > { %187 = vst [vmem:[#allocation2 + $0x10] sm:$0xff] %v186_v22 }
  0x96   : > { %v258_v23 = vld [vmem:[%s456_s21 + $0x4] sm:$0x1] }
  0x97   : > { %259 = vst [vmem:[%s463_s24 + $0x8] sm:$0x1] %v258_v23  ;;  %v219_v24 = vld [vmem:[#allocation2 + $0x10] sm:$0x1] }
  0x98   : > { %356 = vst [vmem:[%s456_s21 + $0x5] sm:$0x1] %v219_v24 }
  0x9a   : > { %v156_v25 = vpop.permute.xlu0 %155 }
  0x9b   : > { %157 = vst [vmem:[#allocation2] sm:$0xff] %v156_v25  ;;  %v168_v26 = vpop.permute.xlu1 %167 }
  0x9c   : > { %169 = vst [vmem:[#allocation2 + $0x20] sm:$0xff] %v168_v26 }
  0x9f   : > { %v260_v27 = vld [vmem:[%s456_s21 + $0x5] sm:$0x1] }
  0xa0   : > { %261 = vst [vmem:[%s463_s24 + $0xa] sm:$0x1] %v260_v27 }
  0xa2   : > { %v190_v28 = vld [vmem:[#allocation2] sm:$0x1]  ;;  %v162_v29 = vpop.permute.xlu0 %161 }
  0xa3   : > { %193 = vst [vmem:[%s456_s21] sm:$0x1] %v190_v28  ;;  %v201_v30 = vld [vmem:[#allocation2 + $0x20] sm:$0x1]  ;;  %v174_v31 = vpop.permute.xlu1 %173 }
  0xa4   : > { %353 = vst [vmem:[%s456_s21 + $0x2] sm:$0x1] %v201_v30 }
  0xa5   : > { %163 = vst [vmem:[#allocation2 + $0x8] sm:$0xff] %v162_v29 }
  0xa6   : > { %175 = vst [vmem:[#allocation2 + $0x18] sm:$0xff] %v174_v31 }
  0xaa   : > { %v250_v32 = vld [vmem:[%s456_s21] sm:$0x1] }
  0xab   : > { %251 = vst [vmem:[%s463_s24] sm:$0x1] %v250_v32  ;;  %v254_v33 = vld [vmem:[%s456_s21 + $0x2] sm:$0x1] }
  0xac   : > { %255 = vst [vmem:[%s463_s24 + $0x4] sm:$0x1] %v254_v33  ;;  %v195_v34 = vld [vmem:[#allocation2 + $0x8] sm:$0x1] }
  0xad   : > { %352 = vst [vmem:[%s456_s21 + $0x1] sm:$0x1] %v195_v34  ;;  %v207_v35 = vld [vmem:[#allocation2 + $0x18] sm:$0x1] }
  0xae   : > { %354 = vst [vmem:[%s456_s21 + $0x3] sm:$0x1] %v207_v35 }
  0xb4   : > { %v252_v36 = vld [vmem:[%s456_s21 + $0x1] sm:$0x1] }
  0xb5   : > { %253 = vst [vmem:[%s463_s24 + $0x2] sm:$0x1] %v252_v36  ;;  %v256_v37 = vld [vmem:[%s456_s21 + $0x3] sm:$0x1] }
  0xb6   : > { %257 = vst [vmem:[%s463_s24 + $0x6] sm:$0x1] %v256_v37 }
  0xb7 PF: > { %s10_s8 = sadd.s32 1, %s409_s8   ;;  %s493_s6 = smov %s405_s7 }
  0xb8   : > { %p7_p5 = scmp.ge.s32.totalorder %s10_s8, 4   ;;  %s494_s7 = smov %s496_s10 }
  0xba   :  { %9 = sbr.rel (!%p7_p5) target bundleno = 7 (0x7), region = 140 }

// kernel: decoder_forward.1
= control target key start
LH: loop header
LB: loop body
LE: loop exit
PB: predicated region body
PF: predicated region fallthrough
CT: control target
= control target key end

     0   :  { %s8476_s0 = inlined_call_operand.vmem [shape: f32[2,8,116], index: 0, kind: input, shape index: {}]   ;;  %s8477_s1 = inlined_call_operand.vmem [shape: f32[6,408], index: 1, kind: input, shape index: {}]   ;;  %s8478_s2 = inlined_call_operand.vmem [shape: f32[6,1], index: 2, kind: input, shape index: {}]   ;;  %s8479_s3 = inlined_call_operand.vmem [shape: f32[6,408], index: 3, kind: input, shape index: {}]   ;;  %s8480_s4 = inlined_call_operand.vmem [shape: f32[6,1], index: 4, kind: input, shape index: {}]   ;;  %s8481_s5 = inlined_call_operand.vmem [shape: f32[6,408], index: 5, kind: input, shape index: {}]   ;;  %s8482_s6 = inlined_call_operand.vmem [shape: f32[6,1], index: 6, kind: input, shape index: {}]   ;;  %s8483_s7 = inlined_call_operand.vmem [shape: f32[1,1608], index: 7, kind: input, shape index: {}]   ;;  %s8484_s8 = inlined_call_operand.<no memory space> [shape: f32[1,1], index: 8, kind: input, shape index: {}]   ;;  %s8485_s9 = inlined_call_operand.hbm [shape: f32[2,1,216], index: 9, kind: output, shape index: {}]  }
   0x1   :  { %8910 = sst [smem:[#allocation103_spill]] %s8476_s0  ;;  %v14_v0 = vstv %s8484_s8 }
   0x2   :  { %8911 = sst [smem:[#allocation104_spill]] %s8477_s1  ;;  %15 = vst [vmem:[#allocation9] sm:$0x1] %v14_v0 }
   0x3   :  { %8912 = sst [smem:[#allocation105_spill]] %s8478_s2 }
   0x4   :  { %8913 = sst [smem:[#allocation106_spill]] %s8479_s3 }
   0x5   :  { %8914 = sst [smem:[#allocation107_spill]] %s8480_s4 }
   0x6   :  { %8915 = sst [smem:[#allocation108_spill]] %s8481_s5 }
   0x7   :  { %8916 = sst [smem:[#allocation109_spill]] %s8482_s6 }
   0x8   :  { %8917 = sst [smem:[#allocation110_spill]] %s8483_s7 }
   0x9   :  { %8918 = sst [smem:[#allocation111_spill]] %s8485_s9 }
   0xa   :  { %16 = vsyncpa [#allocation11], 0 }
   0xb   :  { %18 = vsyncpa [#allocation11 + $0x1], 0  ;;  %s5543_s11 = smov 0   ;;  %s5545_s12 = smov 0  }
   0xc   :  { %s5547_s13 = smov 0   ;;  %s5549_s14 = smov 0  }
   0xd LB: > { %8919 = sst [smem:[#allocation13_spill]] %s5347_s11  ;;  %s5564_s8 = sadd.s32 4294967295, %s5359_s14   ;;  %s5359_s14 = sphi %s5549_s14, %s9416_s14   ;;  %s5355_s13 = sphi %s5547_s13, %s9419_s13   ;;  %s5351_s12 = sphi %s5545_s12, %s9418_s12   ;;  %s5347_s11 = sphi %s5543_s11, %s9417_s11  }
   0xe   : > { %8920 = sst [smem:[#allocation14_spill]] %s5351_s12  ;;  %s4474_s15 = sadd.s32 4294967294, %s5359_s14  }
   0xf   : > { %8921 = sst [smem:[#allocation15_spill]] %s5355_s13  ;;  %s5568_s16 = sadd.s32 1, %s5359_s14  }
  0x10   : > { %8922 = sst [smem:[#allocation16_spill]] %s5359_s14  ;;  %s225_s17 = sadd.s32 1, %s5355_s13 }
  0x11   : > { %8923 = sst [smem:[#allocation17_spill]] %s5564_s8  ;;  %s222_s18 = ssub.s32 %s5359_s14, %s5568_s16 }
  0x12   : > { %8924 = sst [smem:[#allocation18_spill]] %s5568_s16  ;;  %p235_p0 = scmp.ne.s32.totalorder %s5355_s13, %s5351_s12 }
  0x13   : > { %p223_p1 = scmp.eq.s32.totalorder %s222_s18, 0  ;;  %p236_p2 = scmp.eq.s32.totalorder %s5564_s8, 1 }
  0x14   : > { %p241_p3 = scmp.ne.s32.totalorder %s5351_s12, %s5347_s11  ;;  %p242_p4 = scmp.eq.s32.totalorder %s4474_s15, 1 }
  0x15   : > { %s5579_s19 = scalar_select %p223_p1, %s5355_s13, %s225_s17  }
  0x16   : > { %p5581_p5 = por %p236_p2, %p235_p0  ;;  %p5585_p6 = por %p242_p4, %p241_p3 }
  0x17   : > { %8925 = sst [smem:[#allocation19_spill]] %s5579_s19  ;;  %p4477_p7 = scmp.ge.s32.totalorder %s5359_s14, 1 }
  0x18   : > { %s8926_s20 = scalar_select %p5581_p5, 1, 0 }
  0x19   : > { %s8928_s21 = scalar_select %p5585_p6, 1, 0 }
  0x1a   : > { %8927 = sst [smem:[#allocation20_spill]] %s8926_s20  ;;  %p291_p8 = scmp.lt.s32.totalorder %s5359_s14, 3 }
  0x1b   : > { %8929 = sst [smem:[#allocation21_spill]] %s8928_s21 }
  0x1c   : > { %p292_p9 = pnand %p4477_p7, %p291_p8 }
  0x1e   : > { %295 = sbr.rel (%p292_p9) target bundleno = 2398 (0x95e), region = 56 }
  0x23   : > { %p326_p10 = scmp.lt.s32.totalorder %s5564_s8, 1  ;;  %s8930_s0 = sld [smem:[#allocation103_spill]]  ;;  %vm331_vm0 = vcmask 539648   ;;  %vm595_vm1 = vcmask 195584   ;;  %vm1422_vm2 = vcmask 719872   ;;  %vm698_vm7 = vcmask 949248  }
  0x24   : > { %s8580_s27 = smov 125   ;;  %s8568_s28 = smov 127   ;;  %vm704_vm8 = vcmask 742600   ;;  %vm1409_vm9 = vcmask 261120   ;;  %vm1909_vm10 = vcmask 662528   ;;  %vm1415_vm11 = vcmask 923000  }
  0x25   : > { %s327_s22 = scalar_select %p326_p10, %s5564_s8, 1  ;;  %vm1430_vm12 = vcmask 1039360   ;;  %vm1460_vm13 = vcmask 1014784   ;;  %vm1490_vm14 = vcmask 990208   ;;  %vm1450_vm15 = vcmask 1022976  }
  0x26   : > { %s8578_s29 = smov 123   ;;  %s8576_s30 = smov 124  }
  0x27   : > { %s4479_s23 = sshll.u32 %s327_s22, 3  ;;  %s8564_s10 = smov 126  }
  0x28   : > { %s8486_s15 = smov 122   ;;  %s8574_s17 = smov 120  }
  0x29   : > { %s329_s26 = scalar_lea.vmem %s8930_s0, %s4479_s23  ;;  %s8572_s18 = smov 121  }
  0x2a   : > { %v5596_v1 = vld [vmem:[%s329_s26] sm:$0xff]  ;;  %s8488_s22 = smov 119   ;;  %s8490_s23 = smov 117  }
  0x2b   : > { %342 = vrot.lane.b32.xlu1 %v5596_v1, %s8580_s27  ;;  %334 = vrot.lane.b32.xlu0 %v5596_v1, %s8568_s28  ;;  %s8492_s24 = smov 118   ;;  %s8494_s25 = smov 116   ;;  %332 = vst.msk [vmem:[#allocation2] sm:$0xff] %vm331_vm0, %v5596_v1 }
  0x2c   : > { %350 = vrot.lane.b32.xlu2 %v5596_v1, %s8578_s29  ;;  %s8496_s26 = smov 114   ;;  %s8931_s4 = sld [smem:[#allocation107_spill]] }
  0x2d   : > { %s8932_s1 = sld [smem:[#allocation104_spill]]  ;;  %s8948_s0 = smov 106  }
  0x2e   : > { %s8933_s2 = sld [smem:[#allocation105_spill]]  ;;  %s8953_s19 = smov 99  }
  0x2f   : > { %s8934_s6 = sld [smem:[#allocation109_spill]]  ;;  %s8954_s13 = smov 100  }
  0x30   : > { %s8955_s16 = smov 104   ;;  %s8956_s21 = smov 96  }
  0x31   : > { %s8957_s11 = smov 97   ;;  %s8958_s14 = smov 101  }
  0x32   : > { %s8959_s20 = smov 93   ;;  %s8960_s9 = smov 94  }
  0x33   : > { %346 = vrot.lane.b32.xlu1 %v5596_v1, %s8576_s30  ;;  %338 = vrot.lane.b32.xlu0 %v5596_v1, %s8564_s10  ;;  %s8961_s8 = smov 98   ;;  %s8962_s12 = smov 90  }
  0x34   : > { %354 = vrot.lane.b32.xlu2 %v5596_v1, %s8486_s15  ;;  %s8498_s15 = smov 115   ;;  %s8963_s7 = smov 91  }
  0x35   : > { %s8964_s5 = smov 95   ;;  %s8965_s3 = smov 87  }
  0x3b   : > { %362 = vrot.lane.b32.xlu1 %v5596_v1, %s8574_s17  ;;  %358 = vrot.lane.b32.xlu0 %v5596_v1, %s8572_s18 }
  0x3c   : > { %366 = vrot.lane.b32.xlu2 %v5596_v1, %s8488_s22  ;;  %s8500_s22 = smov 113  }
  0x43   : > { %374 = vrot.lane.b32.xlu1 %v5596_v1, %s8490_s23  ;;  %370 = vrot.lane.b32.xlu0 %v5596_v1, %s8492_s24  ;;  %s8502_s23 = smov 111   ;;  %s8504_s24 = smov 112  }
  0x44   : > { %378 = vrot.lane.b32.xlu2 %v5596_v1, %s8494_s25  ;;  %s8506_s25 = smov 110  }
  0x4b   : > { %386 = vrot.lane.b32.xlu1 %v5596_v1, %s8496_s26  ;;  %382 = vrot.lane.b32.xlu0 %v5596_v1, %s8498_s15  ;;  %s8508_s26 = smov 108   ;;  %s8510_s15 = smov 109  }
  0x4c   : > { %390 = vrot.lane.b32.xlu2 %v5596_v1, %s8500_s22  ;;  %s8512_s22 = smov 107  }
  0x53   : > { %398 = vrot.lane.b32.xlu1 %v5596_v1, %s8502_s23  ;;  %394 = vrot.lane.b32.xlu0 %v5596_v1, %s8504_s24  ;;  %s8514_s23 = smov 105   ;;  %s8516_s24 = smov 106  }
  0x54   : > { %402 = vrot.lane.b32.xlu2 %v5596_v1, %s8506_s25  ;;  %s8518_s25 = smov 104  }
  0x5b   : > { %410 = vrot.lane.b32.xlu1 %v5596_v1, %s8508_s26  ;;  %406 = vrot.lane.b32.xlu0 %v5596_v1, %s8510_s15  ;;  %s8530_s26 = smov 102   ;;  %s8520_s15 = smov 103  }
  0x5c   : > { %414 = vrot.lane.b32.xlu2 %v5596_v1, %s8512_s22  ;;  %s8522_s22 = smov 101  }
  0x63   : > { %422 = vrot.lane.b32.xlu1 %v5596_v1, %s8514_s23  ;;  %418 = vrot.lane.b32.xlu0 %v5596_v1, %s8516_s24  ;;  %s8524_s23 = smov 99   ;;  %s8526_s24 = smov 100  }
  0x64   : > { %426 = vrot.lane.b32.xlu2 %v5596_v1, %s8518_s25  ;;  %s8528_s25 = smov 98  }
  0x6b   : > { %434 = vrot.lane.b32.xlu1 %v5596_v1, %s8530_s26  ;;  %430 = vrot.lane.b32.xlu0 %v5596_v1, %s8520_s15  ;;  %s8584_s15 = smov 96   ;;  %s8540_s26 = smov 92  }
  0x6c   : > { %438 = vrot.lane.b32.xlu2 %v5596_v1, %s8522_s22  ;;  %s8532_s22 = smov 97  }
  0x73   : > { %446 = vrot.lane.b32.xlu1 %v5596_v1, %s8524_s23  ;;  %442 = vrot.lane.b32.xlu0 %v5596_v1, %s8526_s24  ;;  %s8534_s23 = smov 95   ;;  %s8536_s24 = smov 93  }
  0x74   : > { %450 = vrot.lane.b32.xlu2 %v5596_v1, %s8528_s25  ;;  %s8538_s25 = smov 94  }
  0x7b   : > { %458 = vrot.lane.b32.xlu1 %v5596_v1, %s8584_s15  ;;  %454 = vrot.lane.b32.xlu0 %v5596_v1, %s8532_s22  ;;  %s8542_s22 = smov 90   ;;  %s8947_s15 = smov 105  }
  0x7c   : > { %462 = vrot.lane.b32.xlu2 %v5596_v1, %s8534_s23  ;;  %s8544_s23 = smov 91  }
  0x83   : > { %470 = vrot.lane.b32.xlu1 %v5596_v1, %s8536_s24  ;;  %466 = vrot.lane.b32.xlu0 %v5596_v1, %s8538_s25  ;;  %s8546_s24 = smov 89   ;;  %s8548_s25 = smov 87  }
  0x84   : > { %474 = vrot.lane.b32.xlu2 %v5596_v1, %s8540_s26  ;;  %s8582_s26 = smov 88  }
  0x86   : > { %v351_v2 = vpop.permute.xlu2 %350 }
  0x87   : > { %353 = vst.msk [vmem:[#allocation2 + $0x28] sm:$0xff] %vm331_vm0, %v351_v2 }
  0x8b   : > { %482 = vrot.lane.b32.xlu1 %v5596_v1, %s8542_s22  ;;  %478 = vrot.lane.b32.xlu0 %v5596_v1, %s8544_s23  ;;  %s8550_s22 = smov 86   ;;  %s8552_s23 = smov 84  }
  0x8c   : > { %486 = vrot.lane.b32.xlu2 %v5596_v1, %s8546_s24  ;;  %s8554_s24 = smov 85  }
  0x8e   : > { %v355_v3 = vpop.permute.xlu2 %354  ;;  %v543_v38 = vld [vmem:[#allocation2 + $0x28] sm:$0xff] }
  0x8f   : > { %357 = vst.msk [vmem:[#allocation2 + $0x30] sm:$0xff] %vm331_vm0, %v355_v3 }
  0x93   : > { %494 = vrot.lane.b32.xlu1 %v5596_v1, %s8548_s25  ;;  %490 = vrot.lane.b32.xlu0 %v5596_v1, %s8582_s26  ;;  %s8556_s25 = smov 83   ;;  %s8946_s26 = smov 113  }
  0x94   : > { %498 = vrot.lane.b32.xlu2 %v5596_v1, %s8550_s22  ;;  %s8558_s22 = smov 81  }
  0x96   : > { %v367_v4 = vpop.permute.xlu2 %366  ;;  %v544_v37 = vld [vmem:[#allocation2 + $0x30] sm:$0xff] }
  0x97   : > { %369 = vst.msk [vmem:[#allocation2 + $0x48] sm:$0xff] %vm331_vm0, %v367_v4 }
  0x9b   : > { %506 = vrot.lane.b32.xlu1 %v5596_v1, %s8552_s23  ;;  %502 = vrot.lane.b32.xlu0 %v5596_v1, %s8554_s24  ;;  %s8570_s23 = smov 82   ;;  %s8560_s24 = smov 80  }
  0x9c   : > { %510 = vrot.lane.b32.xlu2 %v5596_v1, %s8556_s25  ;;  %s8566_s25 = smov 78  }
  0x9d   : > { %v343_v5 = vpop.permute.xlu1 %342  ;;  %v335_v6 = vpop.permute.xlu0 %334 }
  0x9e   : > { %345 = vst.msk [vmem:[#allocation2 + $0x18] sm:$0xff] %vm331_vm0, %v343_v5  ;;  %v379_v7 = vpop.permute.xlu2 %378  ;;  %v547_v31 = vld [vmem:[#allocation2 + $0x48] sm:$0xff] }
  0x9f   : > { %337 = vst.msk [vmem:[#allocation2 + $0x8] sm:$0xff] %vm331_vm0, %v335_v6 }
  0xa0   : > { %381 = vst.msk [vmem:[#allocation2 + $0x60] sm:$0xff] %vm331_vm0, %v379_v7 }
  0xa3   : > { %518 = vrot.lane.b32.xlu1 %v5596_v1, %s8558_s22  ;;  %514 = vrot.lane.b32.xlu0 %v5596_v1, %s8570_s23  ;;  %s8562_s22 = smov 79   ;;  %s8944_s23 = smov 108  }
  0xa4   : > { %522 = vrot.lane.b32.xlu2 %v5596_v1, %s8560_s24  ;;  %s8936_s24 = smov 118  }
  0xa5   : > { %v347_v8 = vpop.permute.xlu1 %346  ;;  %v339_v9 = vpop.permute.xlu0 %338  ;;  %v541_v41 = vld [vmem:[#allocation2 + $0x18] sm:$0xff] }
  0xa6   : > { %349 = vst.msk [vmem:[#allocation2 + $0x20] sm:$0xff] %vm331_vm0, %v347_v8  ;;  %v391_v10 = vpop.permute.xlu2 %390  ;;  %v539_v45 = vld [vmem:[#allocation2 + $0x8] sm:$0xff] }
  0xa7   : > { %341 = vst.msk [vmem:[#allocation2 + $0x10] sm:$0xff] %vm331_vm0, %v339_v9  ;;  %v550_v25 = vld [vmem:[#allocation2 + $0x60] sm:$0xff] }
  0xa8   : > { %393 = vst.msk [vmem:[#allocation2 + $0x78] sm:$0xff] %vm331_vm0, %v391_v10 }
  0xab   : > { %530 = vrot.lane.b32.xlu1 %v5596_v1, %s8566_s25  ;;  %526 = vrot.lane.b32.xlu0 %v5596_v1, %s8562_s22  ;;  %s8935_s22 = smov 117   ;;  %s8938_s25 = smov 114  }
  0xad   : > { %v363_v11 = vpop.permute.xlu1 %362  ;;  %v359_v12 = vpop.permute.xlu0 %358  ;;  %v542_v39 = vld [vmem:[#allocation2 + $0x20] sm:$0xff] }
  0xae   : > { %365 = vst.msk [vmem:[#allocation2 + $0x40] sm:$0xff] %vm331_vm0, %v363_v11  ;;  %v403_v14 = vpop.permute.xlu2 %402  ;;  %v540_v44 = vld [vmem:[#allocation2 + $0x10] sm:$0xff]  ;;  %v5411_v11 = vmov 0  }
  0xaf   : > { %361 = vst.msk [vmem:[#allocation2 + $0x38] sm:$0xff] %vm331_vm0, %v359_v12  ;;  %v553_v13 = vld [vmem:[#allocation2 + $0x78] sm:$0xff]  ;;  %4659 = vset.pattern.permute.xlu0 %v5411_v11  ;;  %4658 = vset.pattern.permute.xlu2 %v5411_v11 }
  0xb0   : > { %599 = vmatpush.msra.mxu0 %v553_v13  ;;  %405 = vst.msk [vmem:[#allocation2 + $0x90] sm:$0xff] %vm331_vm0, %v403_v14  ;;  %v964_v13 = vld [vmem:[%s8931_s4] sm:$0x3f]  ;;  %5285 = vset.pattern.permute.xlu1 %v5411_v11  ;;  %s8951_s4 = smov 103  }
  0xb3   : > { %967 = vperm.xlu0 %4659, %v964_v13  }
  0xb5   : > { %v375_v15 = vpop.permute.xlu1 %374  ;;  %v371_v16 = vpop.permute.xlu0 %370  ;;  %v546_v33 = vld [vmem:[#allocation2 + $0x40] sm:$0xff] }
  0xb6   : > { %377 = vst.msk [vmem:[#allocation2 + $0x58] sm:$0xff] %vm331_vm0, %v375_v15  ;;  %v415_v17 = vpop.permute.xlu2 %414  ;;  %v545_v34 = vld [vmem:[#allocation2 + $0x38] sm:$0xff] }
  0xb7   : > { %373 = vst.msk [vmem:[#allocation2 + $0x50] sm:$0xff] %vm331_vm0, %v371_v16  ;;  %v556_v12 = vld [vmem:[#allocation2 + $0x90] sm:$0xff] }
  0xb8   : > { %417 = vst.msk [vmem:[#allocation2 + $0xa8] sm:$0xff] %vm331_vm0, %v415_v17 }
  0xbd   : > { %v387_v18 = vpop.permute.xlu1 %386  ;;  %v383_v19 = vpop.permute.xlu0 %382  ;;  %v549_v27 = vld [vmem:[#allocation2 + $0x58] sm:$0xff] }
  0xbe   : > { %389 = vst.msk [vmem:[#allocation2 + $0x70] sm:$0xff] %vm331_vm0, %v387_v18  ;;  %v427_v20 = vpop.permute.xlu2 %426  ;;  %v548_v30 = vld [vmem:[#allocation2 + $0x50] sm:$0xff] }
  0xbf   : > { %385 = vst.msk [vmem:[#allocation2 + $0x68] sm:$0xff] %vm331_vm0, %v383_v19  ;;  %v559_v6 = vld [vmem:[#allocation2 + $0xa8] sm:$0xff]  ;;  %v8671_v19 = vmov 0.0  }
  0xc0   : > { %429 = vst.msk [vmem:[#allocation2 + $0xc0] sm:$0xff] %vm331_vm0, %v427_v20  ;;  %4666 = vrot.lane.b32.xlu0 %v8671_v19, %s8564_s10  ;;  %4661 = vrot.lane.b32.xlu1 %v8671_v19, %s8568_s28  ;;  %s8937_s10 = smov 122   ;;  %s8943_s28 = smov 116  }
  0xc1   : > { %1406 = vst [vmem:[#allocation7] sm:$0xff] %v8671_v19 }
  0xc2   : > { %1407 = vst [vmem:[#allocation7 + $0x8] sm:$0xff] %v8671_v19 }
  0xc3   : > { %2954 = vst.msk [vmem:[#allocation8 + $0x808] sm:$0xff] %vm1422_vm2, %v8671_v19 }
  0xc4   : > { %699 = vst.msk [vmem:[#allocation3] sm:$0xff] %vm698_vm7, %v8671_v19 }
  0xc5   : > { %v399_v21 = vpop.permute.xlu1 %398  ;;  %v395_v22 = vpop.permute.xlu0 %394  ;;  %v552_v23 = vld [vmem:[#allocation2 + $0x70] sm:$0xff]  ;;  %1053 = vst.msk [vmem:[#allocation5] sm:$0xff] %vm698_vm7, %v8671_v19 }
  0xc6   : > { %401 = vst.msk [vmem:[#allocation2 + $0x88] sm:$0xff] %vm331_vm0, %v399_v21  ;;  %600 = vmatpush.msra.mxu0 %v552_v23  ;;  %v551_v24 = vld [vmem:[#allocation2 + $0x68] sm:$0xff]  ;;  %v439_v26 = vpop.permute.xlu2 %438  ;;  %v538_v23 = vld [vmem:[#allocation2] sm:$0xff] }
  0xc7   : > { %397 = vst.msk [vmem:[#allocation2 + $0x80] sm:$0xff] %vm331_vm0, %v395_v22  ;;  %v562_v1 = vld [vmem:[#allocation2 + $0xc0] sm:$0xff] }
  0xc8   : > { %601 = vmatpush.msra.mxu0 %v551_v24  ;;  %441 = vst.msk [vmem:[#allocation2 + $0xd8] sm:$0xff] %vm331_vm0, %v439_v26  ;;  %4681 = vrot.lane.b32.xlu0 %v8671_v19, %s8578_s29  ;;  %s8942_s29 = smov 112  }
  0xc9   : > { %4676 = vrot.lane.b32.xlu1 %v8671_v19, %s8576_s30  ;;  %s8941_s30 = smov 111  }
  0xca   : > { %602 = vmatpush.msra.mxu0 %v550_v25  ;;  %v534_v25 = vld [vmem:[%s8932_s1] sm:$0x3f] }
  0xcc   : > { %603 = vmatpush.msra.mxu0 %v549_v27  ;;  %v535_v27 = vld [vmem:[%s8932_s1 + $0x8] sm:$0x3f] }
  0xcd   : > { %v411_v28 = vpop.permute.xlu1 %410  ;;  %v407_v29 = vpop.permute.xlu0 %406  ;;  %v555_v14 = vld [vmem:[#allocation2 + $0x88] sm:$0xff] }
  0xce   : > { %413 = vst.msk [vmem:[#allocation2 + $0xa0] sm:$0xff] %vm331_vm0, %v411_v28  ;;  %604 = vmatpush.msra.mxu0 %v548_v30  ;;  %v451_v32 = vpop.permute.xlu2 %450  ;;  %v554_v15 = vld [vmem:[#allocation2 + $0x80] sm:$0xff] }
  0xcf   : > { %409 = vst.msk [vmem:[#allocation2 + $0x98] sm:$0xff] %vm331_vm0, %v407_v29  ;;  %v565_v62 = vld [vmem:[#allocation2 + $0xd8] sm:$0xff]  ;;  %v589_v28 = vld [vmem:[%s8933_s2] sm:$0x3f]  ;;  %s8950_s2 = smov 102  }
  0xd0   : > { %605 = vmatpush.msra.mxu0 %v547_v31  ;;  %453 = vst.msk [vmem:[#allocation2 + $0xf0] sm:$0xff] %vm331_vm0, %v451_v32  ;;  %592 = vperm.xlu2 %4658, %v589_v28  }
  0xd1   : > { %4696 = vrot.lane.b32.xlu0 %v8671_v19, %s8574_s17  ;;  %4691 = vrot.lane.b32.xlu1 %v8671_v19, %s8572_s18  ;;  %s8939_s18 = smov 115   ;;  %s8940_s17 = smov 119  }
  0xd2   : > { %606 = vmatpush.msra.mxu0 %v546_v33  ;;  %v1317_v33 = vld [vmem:[%s8934_s6] sm:$0x3f]  ;;  %s8952_s6 = smov 107  }
  0xd4   : > { %607 = vmatpush.msra.mxu0 %v545_v34 }
  0xd5   : > { %v423_v35 = vpop.permute.xlu1 %422  ;;  %v419_v36 = vpop.permute.xlu0 %418  ;;  %v558_v7 = vld [vmem:[#allocation2 + $0xa0] sm:$0xff] }
  0xd6   : > { %425 = vst.msk [vmem:[#allocation2 + $0xb8] sm:$0xff] %vm331_vm0, %v423_v35  ;;  %608 = vmatpush.msra.mxu0 %v544_v37  ;;  %v463_v40 = vpop.permute.xlu2 %462  ;;  %v557_v10 = vld [vmem:[#allocation2 + $0x98] sm:$0xff] }
  0xd7   : > { %421 = vst.msk [vmem:[#allocation2 + $0xb0] sm:$0xff] %vm331_vm0, %v419_v36  ;;  %v568_v56 = vld [vmem:[#allocation2 + $0xf0] sm:$0xff]  ;;  %v537_v36 = vld [vmem:[%s8932_s1 + $0x18] sm:$0x3f] }
  0xd8   : > { %609 = vmatpush.msra.mxu0 %v543_v38  ;;  %465 = vst.msk [vmem:[#allocation2 + $0x108] sm:$0xff] %vm331_vm0, %v463_v40  ;;  %1320 = vperm.xlu2 %4658, %v1317_v33  }
  0xd9   : > { %4711 = vrot.lane.b32.xlu0 %v8671_v19, %s8935_s22  ;;  %4706 = vrot.lane.b32.xlu1 %v8671_v19, %s8936_s24 }
  0xda   : > { %610 = vmatpush.msra.mxu0 %v542_v39 }
  0xdc   : > { %611 = vmatpush.msra.mxu0 %v541_v41 }
  0xdd   : > { %v435_v42 = vpop.permute.xlu1 %434  ;;  %v431_v43 = vpop.permute.xlu0 %430  ;;  %v561_v4 = vld [vmem:[#allocation2 + $0xb8] sm:$0xff] }
  0xde   : > { %437 = vst.msk [vmem:[#allocation2 + $0xd0] sm:$0xff] %vm331_vm0, %v435_v42  ;;  %612 = vmatpush.msra.mxu0 %v540_v44  ;;  %v475_v46 = vpop.permute.xlu2 %474  ;;  %v560_v5 = vld [vmem:[#allocation2 + $0xb0] sm:$0xff] }
  0xdf   : > { %433 = vst.msk [vmem:[#allocation2 + $0xc8] sm:$0xff] %vm331_vm0, %v431_v43 }
  0xe0   : > { %613 = vmatpush.msra.mxu0 %v539_v45  ;;  %477 = vst.msk [vmem:[#allocation2 + $0x120] sm:$0xff] %vm331_vm0, %v475_v46  ;;  %4671 = vrot.lane.b32.xlu2 %v8671_v19, %s8580_s27  ;;  %v571_v45 = vld [vmem:[#allocation2 + $0x108] sm:$0xff]  ;;  %v536_v46 = vld [vmem:[%s8932_s1 + $0x10] sm:$0x3f]  ;;  %s8945_s27 = smov 109   ;;  %s8949_s1 = smov 110  }
  0xe1   : > { %4726 = vrot.lane.b32.xlu0 %v8671_v19, %s8938_s25  ;;  %4721 = vrot.lane.b32.xlu1 %v8671_v19, %s8939_s18 }
  0xe2   : > { %614 = vmatpush.msra.mxu0 %v538_v23 }
  0xe3   : > { %615 = vmatmul.f32.vlgmr.msra.gmra.mxu0 %v534_v25 }
  0xe5   : > { %v447_v47 = vpop.permute.xlu1 %446  ;;  %v443_v48 = vpop.permute.xlu0 %442  ;;  %v564_v63 = vld [vmem:[#allocation2 + $0xd0] sm:$0xff] }
  0xe6   : > { %449 = vst.msk [vmem:[#allocation2 + $0xe8] sm:$0xff] %vm331_vm0, %v447_v47  ;;  %v487_v49 = vpop.permute.xlu2 %486  ;;  %v563_v0 = vld [vmem:[#allocation2 + $0xc8] sm:$0xff] }
  0xe7   : > { %445 = vst.msk [vmem:[#allocation2 + $0xe0] sm:$0xff] %vm331_vm0, %v443_v48  ;;  %v574_v42 = vld [vmem:[#allocation2 + $0x120] sm:$0xff] }
  0xe8   : > { %489 = vst.msk [vmem:[#allocation2 + $0x138] sm:$0xff] %vm331_vm0, %v487_v49  ;;  %4686 = vrot.lane.b32.xlu2 %v8671_v19, %s8937_s10 }
  0xe9   : > { %4741 = vrot.lane.b32.xlu0 %v8671_v19, %s8941_s30  ;;  %4736 = vrot.lane.b32.xlu1 %v8671_v19, %s8942_s29 }
  0xed   : > { %v459_v50 = vpop.permute.xlu1 %458  ;;  %v455_v51 = vpop.permute.xlu0 %454  ;;  %v567_v58 = vld [vmem:[#allocation2 + $0xe8] sm:$0xff] }
  0xee   : > { %461 = vst.msk [vmem:[#allocation2 + $0x100] sm:$0xff] %vm331_vm0, %v459_v50  ;;  %v499_v52 = vpop.permute.xlu2 %498  ;;  %v566_v59 = vld [vmem:[#allocation2 + $0xe0] sm:$0xff] }
  0xef   : > { %457 = vst.msk [vmem:[#allocation2 + $0xf8] sm:$0xff] %vm331_vm0, %v455_v51  ;;  %v577_v39 = vld [vmem:[#allocation2 + $0x138] sm:$0xff] }
  0xf0   : > { %501 = vst.msk [vmem:[#allocation2 + $0x150] sm:$0xff] %vm331_vm0, %v499_v52  ;;  %4701 = vrot.lane.b32.xlu2 %v8671_v19, %s8940_s17 }
  0xf1   : > { %4756 = vrot.lane.b32.xlu0 %v8671_v19, %s8944_s23  ;;  %4751 = vrot.lane.b32.xlu1 %v8671_v19, %s8945_s27 }
  0xf5   : > { %v471_v53 = vpop.permute.xlu1 %470  ;;  %v467_v54 = vpop.permute.xlu0 %466  ;;  %v570_v47 = vld [vmem:[#allocation2 + $0x100] sm:$0xff] }
  0xf6   : > { %473 = vst.msk [vmem:[#allocation2 + $0x118] sm:$0xff] %vm331_vm0, %v471_v53  ;;  %v569_v55 = vld [vmem:[#allocation2 + $0xf8] sm:$0xff]  ;;  %v511_v57 = vpop.permute.xlu2 %510 }
  0xf7   : > { %619 = vmatpush.msra.mxu1 %v569_v55  ;;  %469 = vst.msk [vmem:[#allocation2 + $0x110] sm:$0xff] %vm331_vm0, %v467_v54  ;;  %v580_v34 = vld [vmem:[#allocation2 + $0x150] sm:$0xff] }
  0xf8   : > { %513 = vst.msk [vmem:[#allocation2 + $0x168] sm:$0xff] %vm331_vm0, %v511_v57  ;;  %4716 = vrot.lane.b32.xlu2 %v8671_v19, %s8943_s28 }
  0xf9   : > { %620 = vmatpush.msra.mxu1 %v568_v56  ;;  %4771 = vrot.lane.b32.xlu0 %v8671_v19, %s8947_s15 }
  0xfa   : > { %4766 = vrot.lane.b32.xlu1 %v8671_v19, %s8948_s0 }
  0xfb   : > { %621 = vmatpush.msra.mxu1 %v567_v58 }
  0xfd   : > { %622 = vmatpush.msra.mxu1 %v566_v59  ;;  %v483_v60 = vpop.permute.xlu1 %482  ;;  %v479_v61 = vpop.permute.xlu0 %478  ;;  %v573_v43 = vld [vmem:[#allocation2 + $0x118] sm:$0xff] }
  0xfe   : > { %485 = vst.msk [vmem:[#allocation2 + $0x130] sm:$0xff] %vm331_vm0, %v483_v60  ;;  %v523_v16 = vpop.permute.xlu2 %522  ;;  %v572_v44 = vld [vmem:[#allocation2 + $0x110] sm:$0xff] }
  0xff   : > { %623 = vmatpush.msra.mxu1 %v565_v62  ;;  %481 = vst.msk [vmem:[#allocation2 + $0x128] sm:$0xff] %vm331_vm0, %v479_v61  ;;  %v583_v26 = vld [vmem:[#allocation2 + $0x168] sm:$0xff] }
 0x100   : > { %525 = vst.msk [vmem:[#allocation2 + $0x180] sm:$0xff] %vm331_vm0, %v523_v16  ;;  %4731 = vrot.lane.b32.xlu2 %v8671_v19, %s8946_s26 }
 0x101   : > { %624 = vmatpush.msra.mxu1 %v564_v63  ;;  %4786 = vrot.lane.b32.xlu0 %v8671_v19, %s8950_s2 }
 0x102   : > { %4781 = vrot.lane.b32.xlu1 %v8671_v19, %s8951_s4 }
 0x103   : > { %625 = vmatpush.msra.mxu1 %v563_v0 }
 0x105   : > { %626 = vmatpush.msra.mxu1 %v562_v1  ;;  %v495_v2 = vpop.permute.xlu1 %494  ;;  %v491_v3 = vpop.permute.xlu0 %490  ;;  %v576_v40 = vld [vmem:[#allocation2 + $0x130] sm:$0xff] }
 0x106   : > { %497 = vst.msk [vmem:[#allocation2 + $0x148] sm:$0xff] %vm331_vm0, %v495_v2  ;;  %v575_v41 = vld [vmem:[#allocation2 + $0x128] sm:$0xff] }
 0x107   : > { %627 = vmatpush.msra.mxu1 %v561_v4  ;;  %493 = vst.msk [vmem:[#allocation2 + $0x140] sm:$0xff] %vm331_vm0, %v491_v3  ;;  %v586_v35 = vld [vmem:[#allocation2 + $0x180] sm:$0xff] }
 0x108   : > { %4746 = vrot.lane.b32.xlu2 %v8671_v19, %s8949_s1 }
 0x109   : > { %628 = vmatpush.msra.mxu1 %v560_v5  ;;  %4801 = vrot.lane.b32.xlu0 %v8671_v19, %s8953_s19 }
 0x10a   : > { %4796 = vrot.lane.b32.xlu1 %v8671_v19, %s8954_s13 }
 0x10b   : > { %629 = vmatpush.msra.mxu1 %v559_v6 }
 0x10d   : > { %630 = vmatpush.msra.mxu1 %v558_v7  ;;  %v507_v8 = vpop.permute.xlu1 %506  ;;  %v503_v9 = vpop.permute.xlu0 %502  ;;  %v579_v37 = vld [vmem:[#allocation2 + $0x148] sm:$0xff] }
 0x10e   : > { %509 = vst.msk [vmem:[#allocation2 + $0x160] sm:$0xff] %vm331_vm0, %v507_v8  ;;  %v578_v38 = vld [vmem:[#allocation2 + $0x140] sm:$0xff] }
 0x10f   : > { %631 = vmatpush.msra.mxu1 %v557_v10  ;;  %505 = vst.msk [vmem:[#allocation2 + $0x158] sm:$0xff] %vm331_vm0, %v503_v9 }
 0x110   : > { %4761 = vrot.lane.b32.xlu2 %v8671_v19, %s8952_s6 }
 0x111   : > { %632 = vmatpush.msra.mxu1 %v556_v12  ;;  %4816 = vrot.lane.b32.xlu0 %v8671_v19, %s8956_s21 }
 0x112   : > { %4811 = vrot.lane.b32.xlu1 %v8671_v19, %s8957_s11  ;;  %s8968_s11 = smov 84  }
 0x113   : > { %633 = vmatpush.msra.mxu1 %v555_v14 }
 0x115   : > { %634 = vmatpush.msra.mxu1 %v554_v15  ;;  %v519_v17 = vpop.permute.xlu1 %518  ;;  %v515_v18 = vpop.permute.xlu0 %514  ;;  %v582_v29 = vld [vmem:[#allocation2 + $0x160] sm:$0xff] }
 0x116   : > { %521 = vst.msk [vmem:[#allocation2 + $0x178] sm:$0xff] %vm331_vm0, %v519_v17  ;;  %635 = vmatmul.f32.vlgmr.msra.gmra.mxu1 %v535_v27  ;;  %v581_v30 = vld [vmem:[#allocation2 + $0x158] sm:$0xff] }
 0x117   : > { %517 = vst.msk [vmem:[#allocation2 + $0x170] sm:$0xff] %vm331_vm0, %v515_v18 }
 0x118   : > { %4776 = vrot.lane.b32.xlu2 %v8671_v19, %s8955_s16 }
 0x119   : > { %4831 = vrot.lane.b32.xlu0 %v8671_v19, %s8959_s20  ;;  %s8966_s20 = smov 88  }
 0x11a   : > { %4826 = vrot.lane.b32.xlu1 %v8671_v19, %s8960_s9  ;;  %s8967_s9 = smov 92  }
 0x11d   : > { %v585_v20 = vld [vmem:[#allocation2 + $0x178] sm:$0xff]  ;;  %v531_v21 = vpop.permute.xlu1 %530  ;;  %v527_v22 = vpop.permute.xlu0 %526 }
 0x11e   : > { %639 = vmatpush.msra.mxu2 %v585_v20  ;;  %v584_v24 = vld [vmem:[#allocation2 + $0x170] sm:$0xff]  ;;  %533 = vst.msk [vmem:[#allocation2 + $0x190] sm:$0xff] %vm331_vm0, %v531_v21 }
 0x11f   : > { %529 = vst.msk [vmem:[#allocation2 + $0x188] sm:$0xff] %vm331_vm0, %v527_v22 }
 0x120   : > { %640 = vmatpush.msra.mxu2 %v584_v24  ;;  %4791 = vrot.lane.b32.xlu2 %v8671_v19, %s8958_s14 }
 0x121   : > { %4846 = vrot.lane.b32.xlu0 %v8671_v19, %s8962_s12  ;;  %s8974_s12 = smov 78  }
 0x122   : > { %641 = vmatpush.msra.mxu2 %v583_v26  ;;  %4841 = vrot.lane.b32.xlu1 %v8671_v19, %s8963_s7  ;;  %s8969_s7 = smov 85  }
 0x124   : > { %642 = vmatpush.msra.mxu2 %v582_v29 }
 0x125   : > { %v588_v31 = vld [vmem:[#allocation2 + $0x190] sm:$0xff]  ;;  %v5852_v48 = vpop.permute.xlu0 %967 }
 0x126   : > { %643 = vmatpush.msra.mxu2 %v581_v30  ;;  %672 = vmatpush.msra.mxu3 %v588_v31  ;;  %v587_v32 = vld [vmem:[#allocation2 + $0x188] sm:$0xff] }
 0x128   : > { %644 = vmatpush.msra.mxu2 %v580_v34  ;;  %673 = vmatpush.msra.mxu3 %v587_v32 }
 0x129   : > { %4806 = vrot.lane.b32.xlu2 %v8671_v19, %s8961_s8  ;;  %4861 = vrot.lane.b32.xlu0 %v8671_v19, %s8965_s3  ;;  %s8970_s3 = smov 89  }
 0x12a   : > { %645 = vmatpush.msra.mxu2 %v579_v37  ;;  %674 = vmatpush.msra.mxu3 %v586_v35  ;;  %v593_v62 = vpop.permute.xlu2 %592 }
 0x12b   : > { %4480 = vmatmul.msk.f32.vlgmr.msra.gmra.mxu3 %vm595_vm1, %v537_v36  ;;  %4856 = vrot.lane.b32.xlu1 %v8671_v19, %s8966_s20  ;;  %s8971_s20 = smov 81  }
 0x12c   : > { %646 = vmatpush.msra.mxu2 %v578_v38 }
 0x12e   : > { %647 = vmatpush.msra.mxu2 %v577_v39 }
 0x130   : > { %648 = vmatpush.msra.mxu2 %v576_v40 }
 0x131   : > { %4821 = vrot.lane.b32.xlu2 %v8671_v19, %s8964_s5  ;;  %4876 = vrot.lane.b32.xlu0 %v8671_v19, %s8968_s11  ;;  %s8972_s11 = smov 82  }
 0x132   : > { %649 = vmatpush.msra.mxu2 %v575_v41  ;;  %v5860_v49 = vpop.permute.xlu0 %4666  ;;  %v5945_v11 = vpop.permute.xlu2 %1320 }
 0x133   : > { %4871 = vrot.lane.b32.xlu1 %v8671_v19, %s8969_s7  ;;  %v8666_v50 = vunpack.i.h.bf16 %v5860_v49  ;;  %s8973_s7 = smov 86   ;;  %v5983_v33 = vpop.permute.xlu1 %4661 }
 0x134   : > { %650 = vmatpush.msra.mxu2 %v574_v42  ;;  %v8670_v35 = vunpack.i.h.bf16 %v5983_v33 }
 0x135   : > { %2968 = vst.msk [vmem:[#allocation8 + $0x828] sm:$0xff] %vm1422_vm2, %v8666_v50 }
 0x136   : > { %651 = vmatpush.msra.mxu2 %v573_v43  ;;  %2961 = vst.msk [vmem:[#allocation8 + $0x818] sm:$0xff] %vm1422_vm2, %v8670_v35 }
 0x138   : > { %652 = vmatpush.msra.mxu2 %v572_v44 }
 0x139   : > { %4836 = vrot.lane.b32.xlu2 %v8671_v19, %s8967_s9  ;;  %4891 = vrot.lane.b32.xlu0 %v8671_v19, %s8971_s20  ;;  %s8600_s20 = smov 75  }
 0x13a   : > { %653 = vmatpush.msra.mxu2 %v571_v45  ;;  %v5872_v51 = vpop.permute.xlu0 %4681  ;;  %v5958_v16 = vpop.permute.xlu2 %4671 }
 0x13b   : > { %4886 = vrot.lane.b32.xlu1 %v8671_v19, %s8972_s11  ;;  %v8663_v52 = vunpack.i.h.bf16 %v5872_v51  ;;  %s8976_s11 = smov 83   ;;  %v8667_v17 = vunpack.i.h.bf16 %v5958_v16  ;;  %v6002_v41 = vpop.permute.xlu1 %4676 }
 0x13c   : > { %654 = vmatpush.msra.mxu2 %v570_v47  ;;  %v8669_v42 = vunpack.i.h.bf16 %v6002_v41 }
 0x13d   : > { %655 = vmatmul.f32.vlgmr.msra.gmra.mxu2 %v536_v46  ;;  %2989 = vst.msk [vmem:[#allocation8 + $0x858] sm:$0xff] %vm1422_vm2, %v8663_v52 }
 0x13e   : > { %2975 = vst.msk [vmem:[#allocation8 + $0x838] sm:$0xff] %vm1422_vm2, %v8667_v17 }
 0x13f   : > { %2982 = vst.msk [vmem:[#allocation8 + $0x848] sm:$0xff] %vm1422_vm2, %v8669_v42 }
 0x141   : > { %4851 = vrot.lane.b32.xlu2 %v8671_v19, %s8970_s3  ;;  %4906 = vrot.lane.b32.xlu0 %v8671_v19, %s8974_s12  ;;  %s8975_s3 = smov 79   ;;  %s8604_s12 = smov 72  }
 0x142   : > { %v5974_v23 = vpop.permute.xlu2 %4686 }
 0x143   : > { %4901 = vrot.lane.b32.xlu1 %v8671_v19, %s8975_s3  ;;  %v5886_v53 = vpop.permute.xlu0 %4696  ;;  %s8977_s3 = smov 80   ;;  %v8664_v25 = vunpack.i.h.bf16 %v5974_v23  ;;  %v6020_v47 = vpop.permute.xlu1 %4691 }
 0x144   : > { %v8646_v54 = vunpack.i.h.bf16 %v5886_v53 }
 0x145   : > { %2996 = vst.msk [vmem:[#allocation8 + $0x868] sm:$0xff] %vm1422_vm2, %v8664_v25 }
 0x146   : > { %3010 = vst.msk [vmem:[#allocation8 + $0x888] sm:$0xff] %vm1422_vm2, %v8646_v54 }
 0x149   : > { %4866 = vrot.lane.b32.xlu2 %v8671_v19, %s8973_s7  ;;  %4921 = vrot.lane.b32.xlu0 %v8671_v19, %s8600_s20  ;;  %s8602_s7 = smov 76   ;;  %s8606_s20 = smov 73  }
 0x14a   : > { %v5989_v37 = vpop.permute.xlu2 %4701 }
 0x14b   : > { %4916 = vrot.lane.b32.xlu1 %v8671_v19, %s8602_s7  ;;  %v5898_v55 = vpop.permute.xlu0 %4711  ;;  %s8651_s7 = smov 77   ;;  %v8658_v38 = vunpack.i.h.bf16 %v5989_v37 }
 0x14c   : > { %v8641_v56 = vunpack.i.h.bf16 %v5898_v55 }
 0x14d   : > { %3017 = vst.msk [vmem:[#allocation8 + $0x898] sm:$0xff] %vm1422_vm2, %v8658_v38 }
 0x14e   : > { %3031 = vst.msk [vmem:[#allocation8 + $0x8b8] sm:$0xff] %vm1422_vm2, %v8641_v56 }
 0x151   : > { %4881 = vrot.lane.b32.xlu2 %v8671_v19, %s8976_s11  ;;  %4936 = vrot.lane.b32.xlu0 %v8671_v19, %s8604_s12  ;;  %s8610_s12 = smov 70  }
 0x152   : > { %v6008_v43 = vpop.permute.xlu2 %4716 }
 0x153   : > { %4931 = vrot.lane.b32.xlu1 %v8671_v19, %s8606_s20  ;;  %v5910_v57 = vpop.permute.xlu0 %4726  ;;  %s8612_s20 = smov 74   ;;  %v8642_v44 = vunpack.i.h.bf16 %v6008_v43 }
 0x154   : > { %v8635_v58 = vunpack.i.h.bf16 %v5910_v57 }
 0x155   : > { %3038 = vst.msk [vmem:[#allocation8 + $0x8c8] sm:$0xff] %vm1422_vm2, %v8642_v44 }
 0x156   : > { %3052 = vst.msk [vmem:[#allocation8 + $0x8e8] sm:$0xff] %vm1422_vm2, %v8635_v58 }
 0x159   : > { %4896 = vrot.lane.b32.xlu2 %v8671_v19, %s8977_s3  ;;  %s8608_s3 = smov 69  }
 0x15a   : > { %4951 = vrot.lane.b32.xlu0 %v8671_v19, %s8608_s3  ;;  %s8616_s3 = smov 66  }
 0x15b   : > { %4946 = vrot.lane.b32.xlu1 %v8671_v19, %s8610_s12  ;;  %v5922_v59 = vpop.permute.xlu0 %4741  ;;  %s8614_s12 = smov 67  }
 0x15c   : > { %v8632_v61 = vunpack.i.h.bf16 %v5922_v59 }
 0x15e   : > { %3073 = vst.msk [vmem:[#allocation8 + $0x918] sm:$0xff] %vm1422_vm2, %v8632_v61 }
 0x160   : > { %v616_v60 = vpop.f32.mrf.mxu0 }
 0x161   : > { %4911 = vrot.lane.b32.xlu2 %v8671_v19, %s8651_s7  ;;  %v617_v63 = vadd.f32 %v616_v60, %v593_v62  ;;  %v8668_v60 = vunpack.i.h.bf16 %v6020_v47  ;;  %v6026_v62 = vpop.permute.xlu2 %4731  ;;  %s8986_s7 = smov 127  }
 0x162   : > { %4966 = vrot.lane.b32.xlu0 %v8671_v19, %s8616_s3  ;;  %s8647_s3 = smov 65  }
 0x163   : > { %4961 = vrot.lane.b32.xlu1 %v8671_v19, %s8614_s12  ;;  %v5934_v2 = vpop.permute.xlu0 %4756  ;;  %s8618_s12 = smov 68   ;;  %3003 = vst.msk [vmem:[#allocation8 + $0x878] sm:$0xff] %vm1422_vm2, %v8668_v60 }
 0x164   : > { %v8630_v3 = vunpack.i.h.bf16 %v5934_v2 }
 0x166   : > { %3094 = vst.msk [vmem:[#allocation8 + $0x948] sm:$0xff] %vm1422_vm2, %v8630_v3 }
 0x169   : > { %4926 = vrot.lane.b32.xlu2 %v8671_v19, %s8612_s20  ;;  %s8649_s20 = smov 71  }
 0x16b   : > { %v5942_v9 = vpop.permute.xlu0 %4771 }
 0x16c   : > { %v8627_v10 = vunpack.i.h.bf16 %v5942_v9 }
 0x16e   : > { %3115 = vst.msk [vmem:[#allocation8 + $0x978] sm:$0xff] %vm1422_vm2, %v8627_v10 }
 0x171   : > { %4941 = vrot.lane.b32.xlu2 %v8671_v19, %s8649_s20  ;;  %s8985_s20 = smov 126  }
 0x173   : > { %v5952_v13 = vpop.permute.xlu0 %4786 }
 0x174   : > { %v8626_v15 = vunpack.i.h.bf16 %v5952_v13 }
 0x176   : > { %3136 = vst.msk [vmem:[#allocation8 + $0x9a8] sm:$0xff] %vm1422_vm2, %v8626_v15 }
 0x179   : > { %4956 = vrot.lane.b32.xlu2 %v8671_v19, %s8618_s12  ;;  %s8620_s12 = smov 64  }
 0x17a   : > { %4976 = vrot.lane.b32.xlu1 %v8671_v19, %s8620_s12  ;;  %s8654_s12 = smov 25  }
 0x17b   : > { %v5964_v18 = vpop.permute.xlu0 %4801 }
 0x17c   : > { %v8625_v21 = vunpack.i.h.bf16 %v5964_v18 }
 0x17e   : > { %3157 = vst.msk [vmem:[#allocation8 + $0x9d8] sm:$0xff] %vm1422_vm2, %v8625_v21 }
 0x181   : > { %4971 = vrot.lane.b32.xlu2 %v8671_v19, %s8647_s3  ;;  %s8984_s3 = smov 125  }
 0x183   : > { %v5980_v30 = vpop.permute.xlu0 %4816 }
 0x184   : > { %v8624_v32 = vunpack.i.h.bf16 %v5980_v30 }
 0x186   : > { %3178 = vst.msk [vmem:[#allocation8 + $0xa08] sm:$0xff] %vm1422_vm2, %v8624_v32 }
 0x18b   : > { %v5999_v39 = vpop.permute.xlu0 %4831 }
 0x18c   : > { %v8623_v40 = vunpack.i.h.bf16 %v5999_v39 }
 0x18e   : > { %3199 = vst.msk [vmem:[#allocation8 + $0xa38] sm:$0xff] %vm1422_vm2, %v8623_v40 }
 0x193   : > { %v636_v0 = vpop.f32.mrf.mxu1  ;;  %v6017_v45 = vpop.permute.xlu0 %4846 }
 0x194   : > { %v637_v1 = vadd.f32 %v636_v0, %v617_v63  ;;  %v8622_v46 = vunpack.i.h.bf16 %v6017_v45  ;;  %v8637_v63 = vunpack.i.h.bf16 %v6026_v62  ;;  %v6035_v0 = vpop.permute.xlu1 %4706 }
 0x196   : > { %3220 = vst.msk [vmem:[#allocation8 + $0xa68] sm:$0xff] %vm1422_vm2, %v8622_v46 }
 0x197   : > { %3059 = vst.msk [vmem:[#allocation8 + $0x8f8] sm:$0xff] %vm1422_vm2, %v8637_v63 }
 0x1ae   : > { %v676_v5 = vpop.f32.mrf.mxu3 }
 0x1c0   : > { %v656_v4 = vpop.f32.mrf.mxu2 }
 0x1c1   : > { %v657_v6 = vadd.f32 %v656_v4, %v637_v1  ;;  %v8665_v1 = vunpack.i.h.bf16 %v6035_v0  ;;  %v6038_v4 = vpop.permute.xlu2 %4746 }
 0x1c3   : > { %v677_v7 = vadd.f32 %v676_v5, %v657_v6  ;;  %v8633_v5 = vunpack.i.h.bf16 %v6038_v4  ;;  %3024 = vst.msk [vmem:[#allocation8 + $0x8a8] sm:$0xff] %vm1422_vm2, %v8665_v1  ;;  %v6047_v6 = vpop.permute.xlu1 %4721 }
 0x1c5   : > { %v4481_v8 = vmul.f32 -1.442695, %v677_v7  ;;  %3080 = vst.msk [vmem:[#allocation8 + $0x928] sm:$0xff] %vm1422_vm2, %v8633_v5  ;;  %v8662_v7 = vunpack.i.h.bf16 %v6047_v6 }
 0x1c7   : > { %5286 = vpow2.f32 %v4481_v8  ;;  %3045 = vst.msk [vmem:[#allocation8 + $0x8d8] sm:$0xff] %vm1422_vm2, %v8662_v7 }
 0x1c9   : > { %v6050_v8 = vpop.permute.xlu2 %4761 }
 0x1cd   : > { %v5287_v12 = vpop.eup %5286 }
 0x1ce   : > { %v682_v14 = vadd.f32 1.0, %v5287_v12  ;;  %v8631_v12 = vunpack.i.h.bf16 %v6050_v8 }
 0x1d0   : > { %5288 = vrcp.f32 %v682_v14  ;;  %v694_v26 = vand.u32 2147483648, %v682_v14  ;;  %v692_v28 = vand.u32 2147483647, %v682_v14  ;;  %vm688_vm4 = vweird.f32 %v682_v14  ;;  %3101 = vst.msk [vmem:[#allocation8 + $0x958] sm:$0xff] %vm1422_vm2, %v8631_v12 }
 0x1d2   : > { %v695_v31 = vor.u32 1.1754944e-38, %v694_v26  ;;  %vm693_vm6 = vcmp.eq.f32.partialorder %v692_v28, 8.507059e+37 }
 0x1d6   : > { %v5289_v20 = vpop.eup %5288 }
 0x1d7   : > { %v684_v22 = vmul.f32 %v5289_v20, %v682_v14  ;;  %vm689_vm3 = vweird.f32 %v5289_v20  ;;  %v6056_v14 = vpop.permute.xlu0 %4861 }
 0x1d8   : > { %vm690_vm5 = vmor %vm688_vm4, %vm689_vm3  ;;  %vm1440_vm3 = vcmask 1031168   ;;  %vm1520_vm4 = vcmask 965632  }
 0x1d9   : > { %v685_v24 = vsub.f32 1.0, %v684_v22 }
 0x1db   : > { %v686_v27 = vmul.f32 %v5289_v20, %v685_v24  ;;  %v6064_v24 = vpop.permute.xlu2 %4776 }
 0x1dc   : > { %v8629_v26 = vunpack.i.h.bf16 %v6064_v24 }
 0x1dd   : > { %v687_v29 = vadd.f32 %v5289_v20, %v686_v27 }
 0x1de   : > { %3122 = vst.msk [vmem:[#allocation8 + $0x988] sm:$0xff] %vm1422_vm2, %v8629_v26 }
 0x1df   : > { %v691_v34 = vsel %vm690_vm5, %v5289_v20, %v687_v29  ;;  %v6061_v20 = vpop.permute.xlu1 %4736  ;;  %v6073_v27 = vpop.permute.xlu0 %4876  ;;  %vm1480_vm5 = vcmask 998400  }
 0x1e0   : > { %v696_v36 = vsel %vm693_vm6, %v695_v31, %v691_v34  ;;  %v8643_v22 = vunpack.i.h.bf16 %v6061_v20  ;;  %8978 = vst [vmem:[#allocation22_spill] sm:$0xff] %v6073_v27  ;;  %vm1470_vm6 = vcmask 1006592  }
 0x1e1   : > { %701 = vrot.lane.b32.xlu0 %v696_v36, %s8654_s12  ;;  %s8987_s12 = smov 123  }
 0x1e2   : > { %3066 = vst.msk [vmem:[#allocation8 + $0x908] sm:$0xff] %vm1422_vm2, %v8643_v22 }
 0x1e3   : > { %v6080_v31 = vpop.permute.xlu2 %4791 }
 0x1e4   : > { %v8628_v34 = vunpack.i.h.bf16 %v6080_v31 }
 0x1e6   : > { %3143 = vst.msk [vmem:[#allocation8 + $0x9b8] sm:$0xff] %vm1422_vm2, %v8628_v34 }
 0x1e7   : > { %v6075_v28 = vpop.permute.xlu1 %4751  ;;  %v6091_v36 = vpop.permute.xlu0 %4891 }
 0x1e8   : > { %v8638_v29 = vunpack.i.h.bf16 %v6075_v28 }
 0x1ea   : > { %3087 = vst.msk [vmem:[#allocation8 + $0x938] sm:$0xff] %vm1422_vm2, %v8638_v29 }
 0x1eb   : > { %v6099_v21 = vpop.permute.xlu2 %4806 }
 0x1ec   : > { %v8636_v34 = vunpack.i.h.bf16 %v6099_v21 }
 0x1ee   : > { %3164 = vst.msk [vmem:[#allocation8 + $0x9e8] sm:$0xff] %vm1422_vm2, %v8636_v34 }
 0x1ef   : > { %v6093_v46 = vpop.permute.xlu0 %4906  ;;  %v6101_v15 = vpop.permute.xlu1 %4766 }
 0x1f0   : > { %8979 = vst [vmem:[#allocation23_spill] sm:$0xff] %v6093_v46  ;;  %v8634_v10 = vunpack.i.h.bf16 %v6101_v15 }
 0x1f2   : > { %3108 = vst.msk [vmem:[#allocation8 + $0x968] sm:$0xff] %vm1422_vm2, %v8634_v10 }
 0x1f3   : > { %v6113_v3 = vpop.permute.xlu2 %4821 }
 0x1f4   : > { %v8639_v61 = vunpack.i.h.bf16 %v6113_v3 }
 0x1f6   : > { %3185 = vst.msk [vmem:[#allocation8 + $0xa18] sm:$0xff] %vm1422_vm2, %v8639_v61 }
 0x1f7   : > { %v6095_v40 = vpop.permute.xlu0 %4921  ;;  %v6115_v12 = vpop.permute.xlu1 %4781 }
 0x1f8   : > { %8980 = vst [vmem:[#allocation24_spill] sm:$0xff] %v6095_v40  ;;  %v8640_v5 = vunpack.i.h.bf16 %v6115_v12 }
 0x1fa   : > { %3129 = vst.msk [vmem:[#allocation8 + $0x998] sm:$0xff] %vm1422_vm2, %v8640_v5 }
 0x1fb   : > { %v6125_v10 = vpop.permute.xlu2 %4836 }
 0x1fc   : > { %v8644_v34 = vunpack.i.h.bf16 %v6125_v10 }
 0x1fe   : > { %3206 = vst.msk [vmem:[#allocation8 + $0xa48] sm:$0xff] %vm1422_vm2, %v8644_v34 }
 0x1ff   : > { %v6097_v32 = vpop.permute.xlu0 %4936  ;;  %v6127_v58 = vpop.permute.xlu1 %4796 }
 0x200   : > { %8981 = vst [vmem:[#allocation25_spill] sm:$0xff] %v6097_v32  ;;  %v8645_v63 = vunpack.i.h.bf16 %v6127_v58 }
 0x202   : > { %3150 = vst.msk [vmem:[#allocation8 + $0x9c8] sm:$0xff] %vm1422_vm2, %v8645_v63 }
 0x203   : > { %v6139_v61 = vpop.permute.xlu2 %4851 }
 0x204   : > { %v8653_v56 = vunpack.i.h.bf16 %v6139_v61 }
 0x206   : > { %3227 = vst.msk [vmem:[#allocation8 + $0xa78] sm:$0xff] %vm1422_vm2, %v8653_v56 }
 0x207   : > { %v6108_v26 = vpop.permute.xlu0 %4951  ;;  %v6141_v5 = vpop.permute.xlu1 %4811 }
 0x208   : > { %8982 = vst [vmem:[#allocation26_spill] sm:$0xff] %v6108_v26  ;;  %v8657_v44 = vunpack.i.h.bf16 %v6141_v5 }
 0x20a   : > { %3171 = vst.msk [vmem:[#allocation8 + $0x9f8] sm:$0xff] %vm1422_vm2, %v8657_v44 }
 0x20f   : > { %v6131_v29 = vpop.permute.xlu0 %4966  ;;  %v6152_v34 = vpop.permute.xlu1 %4826 }
 0x210   : > { %8983 = vst [vmem:[#allocation27_spill] sm:$0xff] %v6131_v29  ;;  %v8656_v63 = vunpack.i.h.bf16 %v6152_v34 }
 0x212   : > { %3192 = vst.msk [vmem:[#allocation8 + $0xa28] sm:$0xff] %vm1422_vm2, %v8656_v63  ;;  %v6180_v63 = vpop.permute.xlu2 %4866 }
 0x253   : > { %v702_v22 = vpop.permute.xlu0 %701 }
 0x254   : > { %705 = vst.msk [vmem:[#allocation3] sm:$0x3f] %vm704_vm8, %v702_v22  ;;  %v6168_v22 = vpop.permute.xlu1 %4841 }
 0x255   : > { %v8660_v56 = vunpack.i.h.bf16 %v6168_v22 }
 0x257   : > { %3213 = vst.msk [vmem:[#allocation8 + $0xa58] sm:$0xff] %vm1422_vm2, %v8660_v56  ;;  %v6194_v56 = vpop.permute.xlu2 %4881 }
 0x25b   : > { %v6158_v54 = vld [vmem:[#allocation3] sm:$0xff] }
 0x25c   : > { %707 = vst.msk [vmem:[#allocation4] sm:$0xff] %vm331_vm0, %v6158_v54  ;;  %717 = vrot.lane.b32.xlu0 %v6158_v54, %s8984_s3  ;;  %713 = vrot.lane.b32.xlu2 %v6158_v54, %s8985_s20  ;;  %s8988_s3 = smov 124   ;;  %v6182_v44 = vpop.permute.xlu1 %4856 }
 0x25d   : > { %709 = vrot.lane.b32.xlu1 %v6158_v54, %s8986_s7  ;;  %v8661_v38 = vunpack.i.h.bf16 %v6182_v44 }
 0x25f   : > { %3234 = vst.msk [vmem:[#allocation8 + $0xa88] sm:$0xff] %vm1422_vm2, %v8661_v38  ;;  %v6202_v38 = vpop.permute.xlu2 %4896 }
 0x260   : > { %8991 = vst [vmem:[#allocation28_spill] sm:$0xff] %v6202_v38 }
 0x264   : > { %729 = vrot.lane.b32.xlu0 %v6158_v54, %s8937_s10  ;;  %725 = vrot.lane.b32.xlu2 %v6158_v54, %s8987_s12  ;;  %s8989_s10 = smov 120   ;;  %s8990_s12 = smov 121   ;;  %v6210_v7 = vpop.permute.xlu1 %4871 }
 0x265   : > { %721 = vrot.lane.b32.xlu1 %v6158_v54, %s8988_s3 }
 0x267   : > { %v6216_v52 = vpop.permute.xlu2 %4911 }
 0x268   : > { %8992 = vst [vmem:[#allocation29_spill] sm:$0xff] %v6216_v52 }
 0x26c   : > { %741 = vrot.lane.b32.xlu0 %v6158_v54, %s8940_s17  ;;  %737 = vrot.lane.b32.xlu2 %v6158_v54, %s8989_s10  ;;  %v6220_v25 = vpop.permute.xlu1 %4886 }
 0x26d   : > { %733 = vrot.lane.b32.xlu1 %v6158_v54, %s8990_s12 }
 0x26f   : > { %v6228_v1 = vpop.permute.xlu2 %4926 }
 0x270   : > { %8993 = vst [vmem:[#allocation30_spill] sm:$0xff] %v6228_v1 }
 0x274   : > { %753 = vrot.lane.b32.xlu0 %v6158_v54, %s8943_s28  ;;  %749 = vrot.lane.b32.xlu2 %v6158_v54, %s8935_s22  ;;  %v6230_v50 = vpop.permute.xlu1 %4901 }
 0x275   : > { %745 = vrot.lane.b32.xlu1 %v6158_v54, %s8936_s24  ;;  %8994 = vst [vmem:[#allocation31_spill] sm:$0xff] %v6230_v50 }
 0x277   : > { %v6238_v17 = vpop.permute.xlu2 %4941 }
 0x278   : > { %8995 = vst [vmem:[#allocation32_spill] sm:$0xff] %v6238_v17 }
 0x27c   : > { %765 = vrot.lane.b32.xlu0 %v6158_v54, %s8946_s26  ;;  %761 = vrot.lane.b32.xlu2 %v6158_v54, %s8938_s25  ;;  %v6246_v60 = vpop.permute.xlu1 %4916 }
 0x27d   : > { %757 = vrot.lane.b32.xlu1 %v6158_v54, %s8939_s18  ;;  %8996 = vst [vmem:[#allocation33_spill] sm:$0xff] %v6246_v60 }
 0x27f   : > { %v6248_v42 = vpop.permute.xlu2 %4956 }
 0x280   : > { %8997 = vst [vmem:[#allocation34_spill] sm:$0xff] %v6248_v42 }
 0x284   : > { %777 = vrot.lane.b32.xlu0 %v6158_v54, %s8949_s1  ;;  %773 = vrot.lane.b32.xlu2 %v6158_v54, %s8941_s30  ;;  %v6256_v35 = vpop.permute.xlu1 %4931 }
 0x285   : > { %769 = vrot.lane.b32.xlu1 %v6158_v54, %s8942_s29  ;;  %8998 = vst [vmem:[#allocation35_spill] sm:$0xff] %v6256_v35 }
 0x287   : > { %v6262_v19 = vpop.permute.xlu2 %4971 }
 0x288   : > { %8999 = vst [vmem:[#allocation36_spill] sm:$0xff] %v6262_v19 }
 0x28c   : > { %789 = vrot.lane.b32.xlu0 %v6158_v54, %s8952_s6  ;;  %785 = vrot.lane.b32.xlu2 %v6158_v54, %s8944_s23  ;;  %v6266_v26 = vpop.permute.xlu1 %4946 }
 0x28d   : > { %781 = vrot.lane.b32.xlu1 %v6158_v54, %s8945_s27  ;;  %9001 = vst [vmem:[#allocation37_spill] sm:$0xff] %v6266_v26 }
 0x294   : > { %801 = vrot.lane.b32.xlu0 %v6158_v54, %s8955_s16  ;;  %797 = vrot.lane.b32.xlu2 %v6158_v54, %s8947_s15  ;;  %v6275_v29 = vpop.permute.xlu1 %4961  ;;  %s8743_s16 = smov 13  }
 0x295   : > { %793 = vrot.lane.b32.xlu1 %v6158_v54, %s8948_s0  ;;  %9004 = vst [vmem:[#allocation38_spill] sm:$0xff] %v6275_v29 }
 0x29c   : > { %813 = vrot.lane.b32.xlu0 %v6158_v54, %s8958_s14  ;;  %809 = vrot.lane.b32.xlu2 %v6158_v54, %s8950_s2  ;;  %s9000_s14 = smov 97   ;;  %s8818_s2 = smov 44  }
 0x29d   : > { %805 = vrot.lane.b32.xlu1 %v6158_v54, %s8951_s4 }
 0x2a4   : > { %825 = vrot.lane.b32.xlu0 %v6158_v54, %s8961_s8  ;;  %821 = vrot.lane.b32.xlu2 %v6158_v54, %s8953_s19  ;;  %s9002_s8 = smov 93   ;;  %s9003_s19 = smov 94  }
 0x2a5   : > { %817 = vrot.lane.b32.xlu1 %v6158_v54, %s8954_s13 }
 0x2ac   : > { %837 = vrot.lane.b32.xlu0 %v6158_v54, %s8964_s5  ;;  %833 = vrot.lane.b32.xlu2 %v6158_v54, %s8956_s21  ;;  %s9005_s5 = smov 89   ;;  %s9006_s21 = smov 90  }
 0x2ad   : > { %829 = vrot.lane.b32.xlu1 %v6158_v54, %s9000_s14  ;;  %s9007_s14 = smov 91  }
 0x2b4   : > { %849 = vrot.lane.b32.xlu0 %v6158_v54, %s8967_s9  ;;  %845 = vrot.lane.b32.xlu2 %v6158_v54, %s9002_s8  ;;  %s9008_s9 = smov 86   ;;  %s9009_s8 = smov 87  }
 0x2b5   : > { %841 = vrot.lane.b32.xlu1 %v6158_v54, %s9003_s19  ;;  %s9010_s19 = smov 88  }
 0x2b6   : > { %v714_v42 = vpop.permute.xlu2 %713 }
 0x2b7   : > { %716 = vst.msk [vmem:[#allocation4 + $0x10] sm:$0xff] %vm331_vm0, %v714_v42  ;;  %v6290_v42 = vpop.permute.xlu1 %4976 }
 0x2b8   : > { %9011 = vst [vmem:[#allocation39_spill] sm:$0xff] %v6290_v42 }
 0x2bc   : > { %861 = vrot.lane.b32.xlu0 %v6158_v54, %s9005_s5  ;;  %857 = vrot.lane.b32.xlu2 %v6158_v54, %s9006_s21  ;;  %s9012_s5 = smov 84   ;;  %s9013_s21 = smov 85  }
 0x2bd   : > { %853 = vrot.lane.b32.xlu1 %v6158_v54, %s9007_s14  ;;  %s8736_s14 = smov 56  }
 0x2be   : > { %v726_v32 = vpop.permute.xlu2 %725 }
 0x2bf   : > { %728 = vst.msk [vmem:[#allocation4 + $0x28] sm:$0xff] %vm331_vm0, %v726_v32 }
 0x2c4   : > { %873 = vrot.lane.b32.xlu0 %v6158_v54, %s9008_s9  ;;  %869 = vrot.lane.b32.xlu2 %v6158_v54, %s9009_s8  ;;  %s9014_s9 = smov 80   ;;  %s9015_s8 = smov 81  }
 0x2c5   : > { %865 = vrot.lane.b32.xlu1 %v6158_v54, %s9010_s19  ;;  %s8711_s19 = smov 43  }
 0x2c6   : > { %v738_v19 = vpop.permute.xlu2 %737 }
 0x2c7   : > { %740 = vst.msk [vmem:[#allocation4 + $0x40] sm:$0xff] %vm331_vm0, %v738_v19 }
 0x2cc   : > { %885 = vrot.lane.b32.xlu0 %v6158_v54, %s8976_s11  ;;  %881 = vrot.lane.b32.xlu2 %v6158_v54, %s9012_s5  ;;  %s9016_s11 = smov 82   ;;  %s8689_s5 = smov 63  }
 0x2cd   : > { %877 = vrot.lane.b32.xlu1 %v6158_v54, %s9013_s21  ;;  %s8693_s21 = smov 61  }
 0x2ce   : > { %v718_v32 = vpop.permute.xlu0 %717  ;;  %v750_v17 = vpop.permute.xlu2 %749 }
 0x2cf   : > { %720 = vst.msk [vmem:[#allocation4 + $0x18] sm:$0xff] %vm331_vm0, %v718_v32  ;;  %v710_v29 = vpop.permute.xlu1 %709 }
 0x2d0   : > { %752 = vst.msk [vmem:[#allocation4 + $0x58] sm:$0xff] %vm331_vm0, %v750_v17  ;;  %v9017_v17 = vmov 0.0  }
 0x2d1   : > { %712 = vst.msk [vmem:[#allocation4 + $0x8] sm:$0xff] %vm331_vm0, %v710_v29 }
 0x2d4   : > { %897 = vrot.lane.b32.xlu0 %v6158_v54, %s9014_s9  ;;  %893 = vrot.lane.b32.xlu2 %v6158_v54, %s9015_s8  ;;  %s8691_s9 = smov 62  }
 0x2d5   : > { %889 = vrot.lane.b32.xlu1 %v6158_v54, %s9016_s11  ;;  %s8695_s11 = smov 60  }
 0x2d6   : > { %v730_v19 = vpop.permute.xlu0 %729  ;;  %v762_v42 = vpop.permute.xlu2 %761 }
 0x2d7   : > { %732 = vst.msk [vmem:[#allocation4 + $0x30] sm:$0xff] %vm331_vm0, %v730_v19  ;;  %v722_v40 = vpop.permute.xlu1 %721  ;;  %v924_v26 = vld [vmem:[#allocation4 + $0x58] sm:$0xff] }
 0x2d8   : > { %764 = vst.msk [vmem:[#allocation4 + $0x70] sm:$0xff] %vm331_vm0, %v762_v42 }
 0x2d9   : > { %724 = vst.msk [vmem:[#allocation4 + $0x20] sm:$0xff] %vm331_vm0, %v722_v40 }
 0x2dc   : > { %4981 = vrot.lane.b32.xlu0 %v9017_v17, %s8689_s5  ;;  %4986 = vrot.lane.b32.xlu2 %v9017_v17, %s8691_s9  ;;  %s9018_s5 = smov 78   ;;  %s9019_s9 = smov 79  }
 0x2dd   : > { %4991 = vrot.lane.b32.xlu1 %v9017_v17, %s8693_s21  ;;  %s8708_s21 = smov 57  }
 0x2de   : > { %v742_v29 = vpop.permute.xlu0 %741  ;;  %v774_v32 = vpop.permute.xlu2 %773 }
 0x2df   : > { %744 = vst.msk [vmem:[#allocation4 + $0x48] sm:$0xff] %vm331_vm0, %v742_v29  ;;  %v734_v19 = vpop.permute.xlu1 %733 }
 0x2e0   : > { %776 = vst.msk [vmem:[#allocation4 + $0x88] sm:$0xff] %vm331_vm0, %v774_v32 }
 0x2e1   : > { %736 = vst.msk [vmem:[#allocation4 + $0x38] sm:$0xff] %vm331_vm0, %v734_v19 }
 0x2e4   : > { %4996 = vrot.lane.b32.xlu0 %v9017_v17, %s8695_s11  ;;  %905 = vrot.lane.b32.xlu2 %v6158_v54, %s9018_s5  ;;  %s8706_s11 = smov 58   ;;  %s8698_s5 = smov 54  }
 0x2e5   : > { %901 = vrot.lane.b32.xlu1 %v6158_v54, %s9019_s9  ;;  %s8699_s9 = smov 55  }
 0x2e6   : > { %v754_v40 = vpop.permute.xlu0 %753  ;;  %v786_v42 = vpop.permute.xlu2 %785 }
 0x2e7   : > { %756 = vst.msk [vmem:[#allocation4 + $0x60] sm:$0xff] %vm331_vm0, %v754_v40  ;;  %v746_v29 = vpop.permute.xlu1 %745 }
 0x2e8   : > { %788 = vst.msk [vmem:[#allocation4 + $0xa0] sm:$0xff] %vm331_vm0, %v786_v42 }
 0x2e9   : > { %748 = vst.msk [vmem:[#allocation4 + $0x50] sm:$0xff] %vm331_vm0, %v746_v29 }
 0x2ec   : > { %5011 = vrot.lane.b32.xlu0 %v9017_v17, %s8708_s21  ;;  %s9020_s21 = sld [smem:[#allocation106_spill]] }
 0x2ed   : > { %5006 = vrot.lane.b32.xlu1 %v9017_v17, %s8706_s11  ;;  %s8713_s11 = smov 40  }
 0x2ee   : > { %v766_v32 = vpop.permute.xlu0 %765  ;;  %v798_v19 = vpop.permute.xlu2 %797 }
 0x2ef   : > { %768 = vst.msk [vmem:[#allocation4 + $0x78] sm:$0xff] %vm331_vm0, %v766_v32  ;;  %v758_v54 = vpop.permute.xlu1 %757  ;;  %v927_v32 = vld [vmem:[#allocation4 + $0x70] sm:$0xff] }
 0x2f0   : > { %800 = vst.msk [vmem:[#allocation4 + $0xb8] sm:$0xff] %vm331_vm0, %v798_v19 }
 0x2f1   : > { %760 = vst.msk [vmem:[#allocation4 + $0x68] sm:$0xff] %vm331_vm0, %v758_v54  ;;  %v925_v54 = vld [vmem:[#allocation4 + $0x60] sm:$0xff] }
 0x2f4   : > { %5026 = vrot.lane.b32.xlu0 %v9017_v17, %s8698_s5  ;;  %s8701_s5 = smov 51  }
 0x2f5   : > { %5021 = vrot.lane.b32.xlu1 %v9017_v17, %s8699_s9  ;;  %s8702_s9 = smov 52  }
 0x2f6   : > { %v778_v40 = vpop.permute.xlu0 %777  ;;  %v810_v42 = vpop.permute.xlu2 %809  ;;  %v928_v29 = vld [vmem:[#allocation4 + $0x78] sm:$0xff] }
 0x2f7   : > { %780 = vst.msk [vmem:[#allocation4 + $0x90] sm:$0xff] %vm331_vm0, %v778_v40  ;;  %v770_v1 = vpop.permute.xlu1 %769  ;;  %973 = vmatpush.msrb.mxu3 %v928_v29 }
 0x2f8   : > { %812 = vst.msk [vmem:[#allocation4 + $0xd0] sm:$0xff] %vm331_vm0, %v810_v42  ;;  %v926_v19 = vld [vmem:[#allocation4 + $0x68] sm:$0xff] }
 0x2f9   : > { %772 = vst.msk [vmem:[#allocation4 + $0x80] sm:$0xff] %vm331_vm0, %v770_v1  ;;  %974 = vmatpush.msrb.mxu3 %v927_v32  ;;  %v923_v1 = vld [vmem:[#allocation4 + $0x50] sm:$0xff]  ;;  %v922_v32 = vld [vmem:[#allocation4 + $0x48] sm:$0xff] }
 0x2fb   : > { %975 = vmatpush.msrb.mxu3 %v926_v19  ;;  %v921_v19 = vld [vmem:[#allocation4 + $0x40] sm:$0xff] }
 0x2fc   : > { %5041 = vrot.lane.b32.xlu0 %v9017_v17, %s8701_s5  ;;  %s8703_s5 = smov 48  }
 0x2fd   : > { %976 = vmatpush.msrb.mxu3 %v925_v54  ;;  %5036 = vrot.lane.b32.xlu1 %v9017_v17, %s8702_s9  ;;  %s8704_s9 = smov 49  }
 0x2fe   : > { %v790_v40 = vpop.permute.xlu0 %789  ;;  %v822_v29 = vpop.permute.xlu2 %821 }
 0x2ff   : > { %792 = vst.msk [vmem:[#allocation4 + $0xa8] sm:$0xff] %vm331_vm0, %v790_v40  ;;  %v782_v42 = vpop.permute.xlu1 %781  ;;  %977 = vmatpush.msrb.mxu3 %v924_v26  ;;  %v920_v40 = vld [vmem:[#allocation4 + $0x38] sm:$0xff] }
 0x300   : > { %824 = vst.msk [vmem:[#allocation4 + $0xe8] sm:$0xff] %vm331_vm0, %v822_v29 }
 0x301   : > { %784 = vst.msk [vmem:[#allocation4 + $0x98] sm:$0xff] %vm331_vm0, %v782_v42  ;;  %978 = vmatpush.msrb.mxu3 %v923_v1  ;;  %v919_v42 = vld [vmem:[#allocation4 + $0x30] sm:$0xff]  ;;  %v918_v1 = vld [vmem:[#allocation4 + $0x28] sm:$0xff] }
 0x303   : > { %979 = vmatpush.msrb.mxu3 %v922_v32  ;;  %v917_v32 = vld [vmem:[#allocation4 + $0x20] sm:$0xff] }
 0x304   : > { %5056 = vrot.lane.b32.xlu0 %v9017_v17, %s8703_s5  ;;  %s8705_s5 = smov 45  }
 0x305   : > { %980 = vmatpush.msrb.mxu3 %v921_v19  ;;  %5051 = vrot.lane.b32.xlu1 %v9017_v17, %s8704_s9  ;;  %s8710_s9 = smov 46  }
 0x306   : > { %v802_v54 = vpop.permute.xlu0 %801  ;;  %v834_v26 = vpop.permute.xlu2 %833 }
 0x307   : > { %804 = vst.msk [vmem:[#allocation4 + $0xc0] sm:$0xff] %vm331_vm0, %v802_v54  ;;  %v794_v29 = vpop.permute.xlu1 %793  ;;  %981 = vmatpush.msrb.mxu3 %v920_v40  ;;  %v916_v40 = vld [vmem:[#allocation4 + $0x18] sm:$0xff] }
 0x308   : > { %836 = vst.msk [vmem:[#allocation4 + $0x100] sm:$0xff] %vm331_vm0, %v834_v26 }
 0x309   : > { %796 = vst.msk [vmem:[#allocation4 + $0xb0] sm:$0xff] %vm331_vm0, %v794_v29  ;;  %982 = vmatpush.msrb.mxu3 %v919_v42  ;;  %v915_v29 = vld [vmem:[#allocation4 + $0x10] sm:$0xff]  ;;  %v914_v42 = vld [vmem:[#allocation4 + $0x8] sm:$0xff] }
 0x30b   : > { %983 = vmatpush.msrb.mxu3 %v918_v1  ;;  %v909_v1 = vld [vmem:[%s9020_s21] sm:$0x3f] }
 0x30c   : > { %5071 = vrot.lane.b32.xlu0 %v9017_v17, %s8705_s5  ;;  %s8723_s5 = smov 39  }
 0x30d   : > { %984 = vmatpush.msrb.mxu3 %v917_v32  ;;  %5066 = vrot.lane.b32.xlu1 %v9017_v17, %s8710_s9  ;;  %s8712_s9 = smov 42   ;;  %v913_v32 = vld [vmem:[#allocation4] sm:$0xff] }
 0x30e   : > { %v814_v19 = vpop.permute.xlu0 %813  ;;  %v846_v54 = vpop.permute.xlu2 %845 }
 0x30f   : > { %816 = vst.msk [vmem:[#allocation4 + $0xd8] sm:$0xff] %vm331_vm0, %v814_v19  ;;  %v806_v26 = vpop.permute.xlu1 %805  ;;  %985 = vmatpush.msrb.mxu3 %v916_v40 }
 0x310   : > { %848 = vst.msk [vmem:[#allocation4 + $0x118] sm:$0xff] %vm331_vm0, %v846_v54 }
 0x311   : > { %808 = vst.msk [vmem:[#allocation4 + $0xc8] sm:$0xff] %vm331_vm0, %v806_v26  ;;  %986 = vmatpush.msrb.mxu3 %v915_v29 }
 0x313   : > { %987 = vmatpush.msrb.mxu3 %v914_v42 }
 0x314   : > { %5086 = vrot.lane.b32.xlu0 %v9017_v17, %s8712_s9  ;;  %s8714_s9 = smov 37  }
 0x315   : > { %988 = vmatpush.msrb.mxu3 %v913_v32  ;;  %5081 = vrot.lane.b32.xlu1 %v9017_v17, %s8711_s19  ;;  %s8722_s19 = smov 36  }
 0x316   : > { %v826_v19 = vpop.permute.xlu0 %825  ;;  %v858_v54 = vpop.permute.xlu2 %857  ;;  %989 = vmatmul.f32.vlgmr.msrb.gmra.mxu3 %v909_v1 }
 0x317   : > { %828 = vst.msk [vmem:[#allocation4 + $0xf0] sm:$0xff] %vm331_vm0, %v826_v19  ;;  %v818_v40 = vpop.permute.xlu1 %817 }
 0x318   : > { %860 = vst.msk [vmem:[#allocation4 + $0x130] sm:$0xff] %vm331_vm0, %v858_v54 }
 0x319   : > { %820 = vst.msk [vmem:[#allocation4 + $0xe0] sm:$0xff] %vm331_vm0, %v818_v40 }
 0x31c   : > { %5101 = vrot.lane.b32.xlu0 %v9017_v17, %s8723_s5  ;;  %s9022_s5 = smov 25  }
 0x31d   : > { %5096 = vrot.lane.b32.xlu1 %v9017_v17, %s8713_s11  ;;  %s8715_s11 = smov 33  }
 0x31e   : > { %v838_v26 = vpop.permute.xlu0 %837  ;;  %v870_v29 = vpop.permute.xlu2 %869  ;;  %v943_v40 = vld [vmem:[#allocation4 + $0xf0] sm:$0xff] }
 0x31f   : > { %840 = vst.msk [vmem:[#allocation4 + $0x108] sm:$0xff] %vm331_vm0, %v838_v26  ;;  %v830_v42 = vpop.permute.xlu1 %829  ;;  %v942_v26 = vld [vmem:[#allocation4 + $0xe8] sm:$0xff] }
 0x320   : > { %872 = vst.msk [vmem:[#allocation4 + $0x148] sm:$0xff] %vm331_vm0, %v870_v29  ;;  %v941_v29 = vld [vmem:[#allocation4 + $0xe0] sm:$0xff] }
 0x321   : > { %832 = vst.msk [vmem:[#allocation4 + $0xf8] sm:$0xff] %vm331_vm0, %v830_v42 }
 0x324   : > { %5116 = vrot.lane.b32.xlu0 %v9017_v17, %s8722_s19  ;;  %s8727_s19 = smov 22  }
 0x325   : > { %5111 = vrot.lane.b32.xlu1 %v9017_v17, %s8714_s9  ;;  %s8716_s9 = smov 34  }
 0x326   : > { %v850_v1 = vpop.permute.xlu0 %849  ;;  %v882_v32 = vpop.permute.xlu2 %881 }
 0x327   : > { %852 = vst.msk [vmem:[#allocation4 + $0x120] sm:$0xff] %vm331_vm0, %v850_v1  ;;  %v842_v19 = vpop.permute.xlu1 %841 }
 0x328   : > { %884 = vst.msk [vmem:[#allocation4 + $0x160] sm:$0xff] %vm331_vm0, %v882_v32  ;;  %v944_v54 = vld [vmem:[#allocation4 + $0xf8] sm:$0xff] }
 0x329   : > { %844 = vst.msk [vmem:[#allocation4 + $0x110] sm:$0xff] %vm331_vm0, %v842_v19  ;;  %993 = vmatpush.msrb.mxu0 %v944_v54  ;;  %v940_v19 = vld [vmem:[#allocation4 + $0xd8] sm:$0xff]  ;;  %v939_v54 = vld [vmem:[#allocation4 + $0xd0] sm:$0xff] }
 0x32b   : > { %994 = vmatpush.msrb.mxu0 %v943_v40  ;;  %v938_v40 = vld [vmem:[#allocation4 + $0xc8] sm:$0xff] }
 0x32c   : > { %5131 = vrot.lane.b32.xlu0 %v9017_v17, %s8715_s11  ;;  %s8717_s11 = smov 30  }
 0x32d   : > { %995 = vmatpush.msrb.mxu0 %v942_v26  ;;  %5126 = vrot.lane.b32.xlu1 %v9017_v17, %s8716_s9  ;;  %s8718_s9 = smov 31   ;;  %v937_v26 = vld [vmem:[#allocation4 + $0xc0] sm:$0xff] }
 0x32e   : > { %v862_v42 = vpop.permute.xlu0 %861  ;;  %v894_v1 = vpop.permute.xlu2 %893 }
 0x32f   : > { %996 = vmatpush.msrb.mxu0 %v941_v29  ;;  %864 = vst.msk [vmem:[#allocation4 + $0x138] sm:$0xff] %vm331_vm0, %v862_v42  ;;  %v854_v32 = vpop.permute.xlu1 %853 }
 0x330   : > { %896 = vst.msk [vmem:[#allocation4 + $0x178] sm:$0xff] %vm331_vm0, %v894_v1 }
 0x331   : > { %856 = vst.msk [vmem:[#allocation4 + $0x128] sm:$0xff] %vm331_vm0, %v854_v32  ;;  %997 = vmatpush.msrb.mxu0 %v940_v19  ;;  %v936_v19 = vld [vmem:[#allocation4 + $0xb8] sm:$0xff] }
 0x333   : > { %998 = vmatpush.msrb.mxu0 %v939_v54  ;;  %v935_v54 = vld [vmem:[#allocation4 + $0xb0] sm:$0xff] }
 0x334   : > { %5146 = vrot.lane.b32.xlu0 %v9017_v17, %s8717_s11  ;;  %s8720_s11 = smov 27  }
 0x335   : > { %999 = vmatpush.msrb.mxu0 %v938_v40  ;;  %5141 = vrot.lane.b32.xlu1 %v9017_v17, %s8718_s9  ;;  %v934_v40 = vld [vmem:[#allocation4 + $0xa8] sm:$0xff]  ;;  %s8721_s9 = smov 28  }
 0x336   : > { %v874_v29 = vpop.permute.xlu0 %873  ;;  %v6399_v42 = vpop.permute.xlu2 %4986 }
 0x337   : > { %9021 = vst [vmem:[#allocation40_spill] sm:$0xff] %v6399_v42  ;;  %1000 = vmatpush.msrb.mxu0 %v937_v26  ;;  %v866_v1 = vpop.permute.xlu1 %865  ;;  %v960_v32 = vld [vmem:[#allocation4 + $0x178] sm:$0xff]  ;;  %v933_v26 = vld [vmem:[#allocation4 + $0xa0] sm:$0xff] }
 0x338   : > { %876 = vst.msk [vmem:[#allocation4 + $0x150] sm:$0xff] %vm331_vm0, %v874_v29  ;;  %1013 = vmatpush.msrb.mxu1 %v960_v32  ;;  %v932_v32 = vld [vmem:[#allocation4 + $0x98] sm:$0xff] }
 0x339   : > { %868 = vst.msk [vmem:[#allocation4 + $0x140] sm:$0xff] %vm331_vm0, %v866_v1  ;;  %1001 = vmatpush.msrb.mxu0 %v936_v19  ;;  %v931_v19 = vld [vmem:[#allocation4 + $0x90] sm:$0xff] }
 0x33b   : > { %1002 = vmatpush.msrb.mxu0 %v935_v54  ;;  %v930_v54 = vld [vmem:[#allocation4 + $0x88] sm:$0xff] }
 0x33c   : > { %5161 = vrot.lane.b32.xlu0 %v9017_v17, %s8720_s11  ;;  %s8724_s11 = smov 24  }
 0x33d   : > { %1003 = vmatpush.msrb.mxu0 %v934_v40  ;;  %5156 = vrot.lane.b32.xlu1 %v9017_v17, %s8721_s9  ;;  %v910_v40 = vld [vmem:[%s9020_s21 + $0x8] sm:$0x3f]  ;;  %s8728_s9 = smov 21  }
 0x33e   : > { %v886_v29 = vpop.permute.xlu0 %885  ;;  %v906_v42 = vpop.permute.xlu2 %905 }
 0x33f   : > { %1004 = vmatpush.msrb.mxu0 %v933_v26  ;;  %888 = vst.msk [vmem:[#allocation4 + $0x168] sm:$0xff] %vm331_vm0, %v886_v29  ;;  %v878_v1 = vpop.permute.xlu1 %877 }
 0x340   : > { %908 = vst.msk [vmem:[#allocation4 + $0x190] sm:$0xff] %vm331_vm0, %v906_v42  ;;  %v929_v42 = vld [vmem:[#allocation4 + $0x80] sm:$0xff] }
 0x341   : > { %880 = vst.msk [vmem:[#allocation4 + $0x158] sm:$0xff] %vm331_vm0, %v878_v1  ;;  %1005 = vmatpush.msrb.mxu0 %v932_v32 }
 0x343   : > { %1006 = vmatpush.msrb.mxu0 %v931_v19 }
 0x344   : > { %5176 = vrot.lane.b32.xlu0 %v9017_v17, %s8724_s11  ;;  %s8725_s11 = smov 59  }
 0x345   : > { %1007 = vmatpush.msrb.mxu0 %v930_v54  ;;  %5171 = vrot.lane.b32.xlu1 %v9017_v17, %s9022_s5 }
 0x346   : > { %v898_v26 = vpop.permute.xlu0 %897  ;;  %5001 = vrot.lane.b32.xlu2 %v9017_v17, %s8725_s11  ;;  %s8729_s11 = smov 18  }
 0x347   : > { %1008 = vmatpush.msrb.mxu0 %v929_v42  ;;  %900 = vst.msk [vmem:[#allocation4 + $0x180] sm:$0xff] %vm331_vm0, %v898_v26  ;;  %v890_v29 = vpop.permute.xlu1 %889  ;;  %v963_v1 = vld [vmem:[#allocation4 + $0x190] sm:$0xff]  ;;  %v957_v42 = vld [vmem:[#allocation4 + $0x160] sm:$0xff] }
 0x348   : > { %1009 = vmatmul.f32.vlgmr.msrb.gmra.mxu0 %v910_v40  ;;  %892 = vst.msk [vmem:[#allocation4 + $0x170] sm:$0xff] %vm331_vm0, %v890_v29  ;;  %1046 = vmatpush.msrb.mxu2 %v963_v1  ;;  %v958_v40 = vld [vmem:[#allocation4 + $0x168] sm:$0xff]  ;;  %v956_v26 = vld [vmem:[#allocation4 + $0x158] sm:$0xff] }
 0x34c   : > { %5191 = vrot.lane.b32.xlu0 %v9017_v17, %s8728_s9  ;;  %s8731_s9 = smov 53  }
 0x34d   : > { %5186 = vrot.lane.b32.xlu1 %v9017_v17, %s8727_s19  ;;  %s8730_s19 = smov 19  }
 0x34e   : > { %v6425_v32 = vpop.permute.xlu0 %4981  ;;  %5016 = vrot.lane.b32.xlu2 %v9017_v17, %s8736_s14  ;;  %s8741_s14 = smov 50  }
 0x34f   : > { %9023 = vst [vmem:[#allocation41_spill] sm:$0xff] %v6425_v32  ;;  %v6427_v19 = vpop.permute.xlu1 %4991  ;;  %v959_v54 = vld [vmem:[#allocation4 + $0x170] sm:$0xff]  ;;  %v950_v32 = vld [vmem:[#allocation4 + $0x128] sm:$0xff] }
 0x350   : > { %9024 = vst [vmem:[#allocation42_spill] sm:$0xff] %v6427_v19  ;;  %1014 = vmatpush.msrb.mxu1 %v959_v54  ;;  %v955_v54 = vld [vmem:[#allocation4 + $0x150] sm:$0xff]  ;;  %v961_v19 = vld [vmem:[#allocation4 + $0x180] sm:$0xff] }
 0x352   : > { %1015 = vmatpush.msrb.mxu1 %v958_v40  ;;  %v954_v40 = vld [vmem:[#allocation4 + $0x148] sm:$0xff] }
 0x354   : > { %1016 = vmatpush.msrb.mxu1 %v957_v42  ;;  %5206 = vrot.lane.b32.xlu0 %v9017_v17, %s8729_s11  ;;  %v953_v42 = vld [vmem:[#allocation4 + $0x140] sm:$0xff]  ;;  %s8732_s11 = smov 15  }
 0x355   : > { %5201 = vrot.lane.b32.xlu1 %v9017_v17, %s8730_s19  ;;  %s8738_s19 = smov 16  }
 0x356   : > { %1017 = vmatpush.msrb.mxu1 %v956_v26  ;;  %v6435_v29 = vpop.permute.xlu0 %4996  ;;  %5031 = vrot.lane.b32.xlu2 %v9017_v17, %s8731_s9  ;;  %v952_v26 = vld [vmem:[#allocation4 + $0x138] sm:$0xff]  ;;  %s8816_s9 = smov 41  }
 0x357   : > { %9025 = vst [vmem:[#allocation43_spill] sm:$0xff] %v6435_v29  ;;  %v902_v1 = vpop.permute.xlu1 %901  ;;  %v912_v29 = vld [vmem:[%s9020_s21 + $0x18] sm:$0x3f] }
 0x358   : > { %904 = vst.msk [vmem:[#allocation4 + $0x188] sm:$0xff] %vm331_vm0, %v902_v1  ;;  %1018 = vmatpush.msrb.mxu1 %v955_v54  ;;  %v6446_v54 = vld [vmem:[#allocation7] sm:$0xff] }
 0x359   : > { %1410 = vst.msk [vmem:[#allocation7 + $0x18] sm:$0xff] %vm1409_vm9, %v6446_v54 }
 0x35a   : > { %1019 = vmatpush.msrb.mxu1 %v954_v40  ;;  %v951_v40 = vld [vmem:[#allocation4 + $0x130] sm:$0xff] }
 0x35c   : > { %1020 = vmatpush.msrb.mxu1 %v953_v42  ;;  %5221 = vrot.lane.b32.xlu0 %v9017_v17, %s8732_s11  ;;  %s8745_s11 = smov 47  }
 0x35d   : > { %5216 = vrot.lane.b32.xlu1 %v9017_v17, %s8738_s19  ;;  %s8742_s19 = smov 12  }
 0x35e   : > { %1021 = vmatpush.msrb.mxu1 %v952_v26  ;;  %v6444_v1 = vpop.permute.xlu0 %5011  ;;  %5046 = vrot.lane.b32.xlu2 %v9017_v17, %s8741_s14  ;;  %v949_v26 = vld [vmem:[#allocation4 + $0x120] sm:$0xff]  ;;  %s8750_s14 = smov 1  }
 0x35f   : > { %9026 = vst [vmem:[#allocation44_spill] sm:$0xff] %v6444_v1  ;;  %v962_v42 = vld [vmem:[#allocation4 + $0x188] sm:$0xff]  ;;  %v947_v1 = vld [vmem:[#allocation4 + $0x110] sm:$0xff] }
 0x360   : > { %1022 = vmatpush.msrb.mxu1 %v951_v40  ;;  %1047 = vmatpush.msrb.mxu2 %v962_v42  ;;  %v948_v40 = vld [vmem:[#allocation4 + $0x118] sm:$0xff] }
 0x362   : > { %1023 = vmatpush.msrb.mxu1 %v950_v32  ;;  %1048 = vmatpush.msrb.mxu2 %v961_v19  ;;  %v946_v32 = vld [vmem:[#allocation4 + $0x108] sm:$0xff]  ;;  %v911_v19 = vld [vmem:[%s9020_s21 + $0x10] sm:$0x3f]  ;;  %s9090_s21 = smov 99  }
 0x363   : > { %4482 = vmatmul.msk.f32.vlgmr.msrb.gmra.mxu2 %vm595_vm1, %v912_v29  ;;  %v945_v29 = vld [vmem:[#allocation4 + $0x100] sm:$0xff] }
 0x364   : > { %1024 = vmatpush.msrb.mxu1 %v949_v26  ;;  %5236 = vrot.lane.b32.xlu0 %v9017_v17, %s8742_s19  ;;  %s8748_s19 = smov 9  }
 0x365   : > { %5231 = vrot.lane.b32.xlu1 %v9017_v17, %s8743_s16  ;;  %s8747_s16 = smov 10  }
 0x366   : > { %1025 = vmatpush.msrb.mxu1 %v948_v40  ;;  %v6460_v42 = vpop.permute.xlu0 %5026  ;;  %5061 = vrot.lane.b32.xlu2 %v9017_v17, %s8745_s11  ;;  %s8749_s11 = smov 2  }
 0x367   : > { %9027 = vst [vmem:[#allocation45_spill] sm:$0xff] %v6460_v42 }
 0x368   : > { %1026 = vmatpush.msrb.mxu1 %v947_v1 }
 0x36a   : > { %1027 = vmatpush.msrb.mxu1 %v946_v32  ;;  %v1420_v32 = vld [vmem:[#allocation7 + $0x18] sm:$0xff] }
 0x36c   : > { %1028 = vmatpush.msrb.mxu1 %v945_v29  ;;  %5251 = vrot.lane.b32.xlu0 %v9017_v17, %s8748_s19  ;;  %s8752_s19 = smov 4  }
 0x36d   : > { %1029 = vmatmul.f32.vlgmr.msrb.gmra.mxu1 %v911_v19  ;;  %5246 = vrot.lane.b32.xlu1 %v9017_v17, %s8747_s16  ;;  %s8751_s16 = smov 5  }
 0x36e   : > { %v6471_v1 = vpop.permute.xlu0 %5041  ;;  %5076 = vrot.lane.b32.xlu2 %v9017_v17, %s8818_s2  ;;  %s9089_s2 = smov 97  }
 0x36f   : > { %9028 = vst [vmem:[#allocation46_spill] sm:$0xff] %v6471_v1 }
 0x374   : > { %5266 = vrot.lane.b32.xlu0 %v9017_v17, %s8749_s11  ;;  %s8754_s11 = smov 38  }
 0x375   : > { %5261 = vrot.lane.b32.xlu1 %v9017_v17, %s8750_s14  ;;  %s8756_s14 = smov 7  }
 0x376   : > { %v6479_v26 = vpop.permute.xlu0 %5056  ;;  %5091 = vrot.lane.b32.xlu2 %v9017_v17, %s8816_s9  ;;  %s9087_s9 = smov 104  }
 0x377   : > { %9029 = vst [vmem:[#allocation47_spill] sm:$0xff] %v6479_v26  ;;  %v6508_v26 = vpop.permute.xlu1 %5006 }
 0x378   : > { %9035 = vst [vmem:[#allocation53_spill] sm:$0xff] %v6508_v26 }
 0x37c   : > { %5281 = vrot.lane.b32.xlu0 %v9017_v17, %s8751_s16  ;;  %s8760_s16 = smov 35  }
 0x37d   : > { %5276 = vrot.lane.b32.xlu1 %v9017_v17, %s8752_s19  ;;  %s8793_s19 = smov 32  }
 0x37e   : > { %v6487_v40 = vpop.permute.xlu0 %5071  ;;  %5106 = vrot.lane.b32.xlu2 %v9017_v17, %s8754_s11  ;;  %s8763_s11 = smov 29  }
 0x37f   : > { %9030 = vst [vmem:[#allocation48_spill] sm:$0xff] %v6487_v40 }
 0x384   : > { %3272 = vrot.lane.b32.xlu0 %v1420_v32, %s9015_s8 }
 0x385   : > { %2862 = vrot.lane.b32.xlu1 %v6446_v54, %s8756_s14  ;;  %s8766_s14 = smov 26  }
 0x386   : > { %v6494_v19 = vpop.permute.xlu0 %5086  ;;  %5121 = vrot.lane.b32.xlu2 %v9017_v17, %s8760_s16  ;;  %s8769_s16 = smov 23  }
 0x387   : > { %9031 = vst [vmem:[#allocation49_spill] sm:$0xff] %v6494_v19 }
 0x38e   : > { %v6498_v29 = vpop.permute.xlu0 %5101  ;;  %5136 = vrot.lane.b32.xlu2 %v9017_v17, %s8793_s19  ;;  %s8806_s19 = smov 6  }
 0x38f   : > { %9032 = vst [vmem:[#allocation50_spill] sm:$0xff] %v6498_v29  ;;  %v6514_v29 = vpop.permute.xlu1 %5021 }
 0x390   : > { %9037 = vst [vmem:[#allocation55_spill] sm:$0xff] %v6514_v29 }
 0x396   : > { %v6502_v40 = vpop.permute.xlu0 %5116  ;;  %5151 = vrot.lane.b32.xlu2 %v9017_v17, %s8763_s11  ;;  %s8792_s11 = smov 20  }
 0x397   : > { %9033 = vst [vmem:[#allocation51_spill] sm:$0xff] %v6502_v40  ;;  %v6520_v42 = vpop.permute.xlu1 %5036 }
 0x398   : > { %9039 = vst [vmem:[#allocation57_spill] sm:$0xff] %v6520_v42 }
 0x39e   : > { %v6506_v32 = vpop.permute.xlu0 %5131  ;;  %5166 = vrot.lane.b32.xlu2 %v9017_v17, %s8766_s14  ;;  %s8791_s14 = smov 17  }
 0x39f   : > { %9034 = vst [vmem:[#allocation52_spill] sm:$0xff] %v6506_v32  ;;  %v6526_v1 = vpop.permute.xlu1 %5051 }
 0x3a0   : > { %9041 = vst [vmem:[#allocation59_spill] sm:$0xff] %v6526_v1 }
 0x3a6   : > { %v6512_v19 = vpop.permute.xlu0 %5146  ;;  %5181 = vrot.lane.b32.xlu2 %v9017_v17, %s8769_s16  ;;  %s8790_s16 = smov 14  }
 0x3a7   : > { %9036 = vst [vmem:[#allocation54_spill] sm:$0xff] %v6512_v19  ;;  %v6532_v29 = vpop.permute.xlu1 %5066 }
 0x3a8   : > { %9043 = vst [vmem:[#allocation61_spill] sm:$0xff] %v6532_v29 }
 0x3ae   : > { %v6518_v40 = vpop.permute.xlu0 %5161  ;;  %5196 = vrot.lane.b32.xlu2 %v9017_v17, %s8792_s11  ;;  %s8808_s11 = smov 3  }
 0x3af   : > { %9038 = vst [vmem:[#allocation56_spill] sm:$0xff] %v6518_v40  ;;  %v6538_v42 = vpop.permute.xlu1 %5081 }
 0x3b0   : > { %9045 = vst [vmem:[#allocation63_spill] sm:$0xff] %v6538_v42 }
 0x3b6   : > { %v6524_v32 = vpop.permute.xlu0 %5176  ;;  %5211 = vrot.lane.b32.xlu2 %v9017_v17, %s8791_s14  ;;  %s8809_s14 = smov 8  }
 0x3b7   : > { %9040 = vst [vmem:[#allocation58_spill] sm:$0xff] %v6524_v32  ;;  %v6542_v32 = vpop.permute.xlu1 %5096 }
 0x3b8   : > { %9047 = vst [vmem:[#allocation65_spill] sm:$0xff] %v6542_v32 }
 0x3be   : > { %v6530_v19 = vpop.permute.xlu0 %5191  ;;  %5226 = vrot.lane.b32.xlu2 %v9017_v17, %s8790_s16  ;;  %s8815_s16 = smov 11  }
 0x3bf   : > { %9042 = vst [vmem:[#allocation60_spill] sm:$0xff] %v6530_v19  ;;  %v6548_v52 = vpop.permute.xlu1 %5111  ;;  %v990_v19 = vpop.f32.mrf.mxu3 }
 0x3c0   : > { %9050 = vst [vmem:[#allocation68_spill] sm:$0xff] %v6548_v52  ;;  %v991_v17 = vadd.f32 %v990_v19, %v5852_v48 }
 0x3c5   : > { %v1010_v29 = vpop.f32.mrf.mxu0 }
 0x3c6   : > { %v6536_v40 = vpop.permute.xlu0 %5206  ;;  %v1011_v38 = vadd.f32 %v1010_v29, %v991_v17 }
 0x3c7   : > { %9044 = vst [vmem:[#allocation62_spill] sm:$0xff] %v6536_v40  ;;  %v6553_v40 = vpop.permute.xlu1 %5126 }
 0x3c8   : > { %9052 = vst [vmem:[#allocation70_spill] sm:$0xff] %v6553_v40 }
 0x3ce   : > { %v6540_v26 = vpop.permute.xlu0 %5221 }
 0x3cf   : > { %9046 = vst [vmem:[#allocation64_spill] sm:$0xff] %v6540_v26 }
 0x3d6   : > { %v6544_v1 = vpop.permute.xlu0 %5236 }
 0x3d7   : > { %9048 = vst [vmem:[#allocation66_spill] sm:$0xff] %v6544_v1  ;;  %v8794_v1 = vunpack.i.h.bf16 %v6091_v36 }
 0x3de   : > { %v6546_v46 = vpop.permute.xlu0 %5251 }
 0x3df   : > { %9049 = vst [vmem:[#allocation67_spill] sm:$0xff] %v6546_v46  ;;  %v6558_v46 = vpop.permute.xlu1 %5141 }
 0x3e0   : > { %9054 = vst [vmem:[#allocation72_spill] sm:$0xff] %v6558_v46 }
 0x3e6   : > { %v6550_v35 = vpop.permute.xlu0 %5266  ;;  %v1050_v60 = vpop.f32.mrf.mxu2 }
 0x3e7   : > { %9051 = vst [vmem:[#allocation69_spill] sm:$0xff] %v6550_v35  ;;  %v6565_v19 = vpop.permute.xlu1 %5156 }
 0x3e8   : > { %9055 = vst [vmem:[#allocation73_spill] sm:$0xff] %v6565_v19 }
 0x3ea   : > { %v1030_v42 = vpop.f32.mrf.mxu1 }
 0x3eb   : > { %v1031_v26 = vadd.f32 %v1030_v42, %v1011_v38  ;;  %v6567_v38 = vpop.permute.xlu2 %5001 }
 0x3ec   : > { %9056 = vst [vmem:[#allocation74_spill] sm:$0xff] %v6567_v38 }
 0x3ed   : > { %v1051_v27 = vadd.f32 %v1050_v60, %v1031_v26 }
 0x3ee   : > { %v6555_v32 = vpop.permute.xlu0 %5281 }
 0x3ef   : > { %9053 = vst [vmem:[#allocation71_spill] sm:$0xff] %v6555_v32  ;;  %1055 = vrot.lane.b32.xlu1 %v1051_v27, %s9022_s5  ;;  %v6569_v60 = vpop.permute.xlu1 %5171  ;;  %v5240_v27 = vpack.i.bf16 %v6446_v54, %v6446_v54  ;;  %s9091_s5 = smov 101  }
 0x3f0   : > { %9057 = vst [vmem:[#allocation75_spill] sm:$0xff] %v6569_v60 }
 0x3f1   : > { %5241 = vrot.lane.b32.xlu2 %v5240_v27, %s8815_s16  ;;  %s9086_s16 = smov 102  }
 0x3f3   : > { %v6571_v42 = vpop.permute.xlu2 %5016 }
 0x3f4   : > { %9058 = vst [vmem:[#allocation76_spill] sm:$0xff] %v6571_v42 }
 0x3f6   : > { %v3273_v52 = vpop.permute.xlu0 %3272 }
 0x3f7   : > { %v3274_v48 = vsel %vm1909_vm10, %v8794_v1, %v3273_v52  ;;  %v6576_v26 = vpop.permute.xlu1 %5186 }
 0x3f8   : > { %3277 = vst.msk [vmem:[#allocation8 + $0xaf8] sm:$0xff] %vm1422_vm2, %v3274_v48 }
 0x3f9   : > { %9059 = vst [vmem:[#allocation77_spill] sm:$0xff] %v6576_v26  ;;  %5256 = vrot.lane.b32.xlu2 %v5240_v27, %s8809_s14  ;;  %s9080_s14 = smov 122  }
 0x3fb   : > { %v6578_v29 = vpop.permute.xlu2 %5031 }
 0x3fc   : > { %9060 = vst [vmem:[#allocation78_spill] sm:$0xff] %v6578_v29 }
 0x3ff   : > { %v6581_v52 = vpop.permute.xlu1 %5201 }
 0x400   : > { %9061 = vst [vmem:[#allocation79_spill] sm:$0xff] %v6581_v52 }
 0x401   : > { %5271 = vrot.lane.b32.xlu2 %v5240_v27, %s8808_s11  ;;  %s9078_s11 = smov 125  }
 0x403   : > { %v6583_v17 = vpop.permute.xlu2 %5046 }
 0x404   : > { %9062 = vst [vmem:[#allocation80_spill] sm:$0xff] %v6583_v17 }
 0x407   : > { %v6588_v48 = vpop.permute.xlu1 %5216 }
 0x408   : > { %9063 = vst [vmem:[#allocation81_spill] sm:$0xff] %v6588_v48 }
 0x409   : > { %2875 = vrot.lane.b32.xlu2 %v6446_v54, %s8806_s19  ;;  %s9077_s19 = smov 123  }
 0x40b   : > { %v6590_v1 = vpop.permute.xlu2 %5061 }
 0x40c   : > { %9064 = vst [vmem:[#allocation82_spill] sm:$0xff] %v6590_v1 }
 0x40f   : > { %v6592_v32 = vpop.permute.xlu1 %5231 }
 0x410   : > { %9065 = vst [vmem:[#allocation83_spill] sm:$0xff] %v6592_v32 }
 0x413   : > { %v6594_v35 = vpop.permute.xlu2 %5076 }
 0x414   : > { %9066 = vst [vmem:[#allocation84_spill] sm:$0xff] %v6594_v35 }
 0x417   : > { %v6596_v26 = vpop.permute.xlu1 %5246 }
 0x418   : > { %9067 = vst [vmem:[#allocation85_spill] sm:$0xff] %v6596_v26 }
 0x41b   : > { %v6598_v52 = vpop.permute.xlu2 %5091 }
 0x41c   : > { %9068 = vst [vmem:[#allocation86_spill] sm:$0xff] %v6598_v52 }
 0x41f   : > { %v6600_v60 = vpop.permute.xlu1 %5261 }
 0x420   : > { %9069 = vst [vmem:[#allocation87_spill] sm:$0xff] %v6600_v60 }
 0x423   : > { %v6602_v19 = vpop.permute.xlu2 %5106 }
 0x424   : > { %9070 = vst [vmem:[#allocation88_spill] sm:$0xff] %v6602_v19 }
 0x427   : > { %v6604_v27 = vpop.permute.xlu1 %5276 }
 0x428   : > { %9071 = vst [vmem:[#allocation89_spill] sm:$0xff] %v6604_v27 }
 0x42b   : > { %v6606_v46 = vpop.permute.xlu2 %5121 }
 0x42c   : > { %9072 = vst [vmem:[#allocation90_spill] sm:$0xff] %v6606_v46 }
 0x42f   : > { %v6608_v54 = vpop.permute.xlu1 %2862 }
 0x430   : > { %9073 = vst [vmem:[#allocation91_spill] sm:$0xff] %v6608_v54 }
 0x433   : > { %v6610_v48 = vpop.permute.xlu2 %5136 }
 0x434   : > { %9074 = vst [vmem:[#allocation92_spill] sm:$0xff] %v6610_v48 }
 0x43b   : > { %v6612_v32 = vpop.permute.xlu2 %5151 }
 0x43c   : > { %9075 = vst [vmem:[#allocation93_spill] sm:$0xff] %v6612_v32 }
 0x443   : > { %v6625_v54 = vpop.permute.xlu2 %5166 }
 0x444   : > { %9076 = vst [vmem:[#allocation94_spill] sm:$0xff] %v6625_v54 }
 0x461   : > { %v1056_v40 = vpop.permute.xlu1 %1055 }
 0x462   : > { %1058 = vst.msk [vmem:[#allocation5] sm:$0x3f] %vm704_vm8, %v1056_v40  ;;  %v6633_v40 = vpop.permute.xlu2 %5181  ;;  %vm1549_vm8 = vcmask 941056  }
 0x463   : > { %9079 = vst [vmem:[#allocation95_spill] sm:$0xff] %v6633_v40 }
 0x469   : > { %v6615_v26 = vld [vmem:[#allocation5] sm:$0xff] }
 0x46a   : > { %1060 = vst.msk [vmem:[#allocation6] sm:$0xff] %vm331_vm0, %v6615_v26  ;;  %1074 = vrot.lane.b32.xlu0 %v6615_v26, %s8988_s3  ;;  %1066 = vrot.lane.b32.xlu1 %v6615_v26, %s8985_s20  ;;  %v6641_v27 = vpop.permute.xlu2 %5196 }
 0x46b   : > { %1062 = vrot.lane.b32.xlu2 %v6615_v26, %s8986_s7  ;;  %9081 = vst [vmem:[#allocation96_spill] sm:$0xff] %v6641_v27 }
 0x472   : > { %1086 = vrot.lane.b32.xlu0 %v6615_v26, %s8990_s12  ;;  %1078 = vrot.lane.b32.xlu1 %v6615_v26, %s9077_s19  ;;  %v6649_v60 = vpop.permute.xlu2 %5211 }
 0x473   : > { %1070 = vrot.lane.b32.xlu2 %v6615_v26, %s9078_s11  ;;  %9082 = vst [vmem:[#allocation97_spill] sm:$0xff] %v6649_v60 }
 0x47a   : > { %1098 = vrot.lane.b32.xlu0 %v6615_v26, %s8936_s24  ;;  %1090 = vrot.lane.b32.xlu1 %v6615_v26, %s8989_s10  ;;  %v6663_v27 = vpop.permute.xlu2 %5226 }
 0x47b   : > { %1082 = vrot.lane.b32.xlu2 %v6615_v26, %s9080_s14  ;;  %9083 = vst [vmem:[#allocation98_spill] sm:$0xff] %v6663_v27 }
 0x482   : > { %1110 = vrot.lane.b32.xlu0 %v6615_v26, %s8939_s18  ;;  %1102 = vrot.lane.b32.xlu1 %v6615_v26, %s8935_s22  ;;  %v6671_v60 = vpop.permute.xlu2 %5241 }
 0x483   : > { %1094 = vrot.lane.b32.xlu2 %v6615_v26, %s8940_s17  ;;  %9084 = vst [vmem:[#allocation99_spill] sm:$0xff] %v6671_v60 }
 0x48a   : > { %1122 = vrot.lane.b32.xlu0 %v6615_v26, %s8942_s29  ;;  %1114 = vrot.lane.b32.xlu1 %v6615_v26, %s8938_s25  ;;  %v6679_v27 = vpop.permute.xlu2 %5256 }
 0x48b   : > { %1106 = vrot.lane.b32.xlu2 %v6615_v26, %s8943_s28  ;;  %9085 = vst [vmem:[#allocation100_spill] sm:$0xff] %v6679_v27 }
 0x492   : > { %1134 = vrot.lane.b32.xlu0 %v6615_v26, %s8945_s27  ;;  %1126 = vrot.lane.b32.xlu1 %v6615_v26, %s8941_s30  ;;  %v6687_v60 = vpop.permute.xlu2 %5271 }
 0x493   : > { %1118 = vrot.lane.b32.xlu2 %v6615_v26, %s8946_s26  ;;  %9088 = vst [vmem:[#allocation101_spill] sm:$0xff] %v6687_v60 }
 0x49a   : > { %1146 = vrot.lane.b32.xlu0 %v6615_v26, %s8948_s0  ;;  %1138 = vrot.lane.b32.xlu1 %v6615_v26, %s8944_s23  ;;  %v6701_v27 = vpop.permute.xlu2 %2875  ;;  %s9096_s0 = smov 91  }
 0x49b   : > { %1130 = vrot.lane.b32.xlu2 %v6615_v26, %s8949_s1  ;;  %9095 = vst [vmem:[#allocation102_spill] sm:$0xff] %v6701_v27 }
 0x4a2   : > { %1158 = vrot.lane.b32.xlu0 %v6615_v26, %s8951_s4  ;;  %1150 = vrot.lane.b32.xlu1 %v6615_v26, %s8947_s15  ;;  %s9092_s4 = smov 94  }
 0x4a3   : > { %1142 = vrot.lane.b32.xlu2 %v6615_v26, %s8952_s6 }
 0x4aa   : > { %1170 = vrot.lane.b32.xlu0 %v6615_v26, %s8954_s13  ;;  %1162 = vrot.lane.b32.xlu1 %v6615_v26, %s9086_s16  ;;  %s9093_s13 = smov 96   ;;  %s9094_s16 = smov 98  }
 0x4ab   : > { %1154 = vrot.lane.b32.xlu2 %v6615_v26, %s9087_s9 }
 0x4b2   : > { %1182 = vrot.lane.b32.xlu0 %v6615_v26, %s9089_s2  ;;  %1174 = vrot.lane.b32.xlu1 %v6615_v26, %s9090_s21  ;;  %s9097_s2 = smov 93   ;;  %s9098_s21 = smov 95  }
 0x4b3   : > { %1166 = vrot.lane.b32.xlu2 %v6615_v26, %s9091_s5 }
 0x4ba   : > { %1194 = vrot.lane.b32.xlu0 %v6615_v26, %s9092_s4  ;;  %1186 = vrot.lane.b32.xlu1 %v6615_v26, %s9093_s13  ;;  %s9099_s4 = smov 88   ;;  %s9100_s13 = smov 90  }
 0x4bb   : > { %1178 = vrot.lane.b32.xlu2 %v6615_v26, %s9094_s16  ;;  %s9101_s16 = smov 92  }
 0x4c2   : > { %1206 = vrot.lane.b32.xlu0 %v6615_v26, %s9096_s0  ;;  %1198 = vrot.lane.b32.xlu1 %v6615_v26, %s9097_s2  ;;  %s9102_s0 = smov 85   ;;  %s9103_s2 = smov 87  }
 0x4c3   : > { %1190 = vrot.lane.b32.xlu2 %v6615_v26, %s9098_s21  ;;  %s9104_s21 = smov 89  }
 0x4c5   : > { %v1063_v60 = vpop.permute.xlu2 %1062 }
 0x4c6   : > { %1065 = vst.msk [vmem:[#allocation6 + $0x8] sm:$0xff] %vm331_vm0, %v1063_v60 }
 0x4ca   : > { %1218 = vrot.lane.b32.xlu0 %v6615_v26, %s9099_s4  ;;  %1210 = vrot.lane.b32.xlu1 %v6615_v26, %s9100_s13  ;;  %s9105_s4 = smov 82   ;;  %s9106_s13 = smov 84  }
 0x4cb   : > { %1202 = vrot.lane.b32.xlu2 %v6615_v26, %s9101_s16  ;;  %s9107_s16 = smov 86  }
 0x4cd   : > { %v1071_v27 = vpop.permute.xlu2 %1070 }
 0x4ce   : > { %1073 = vst.msk [vmem:[#allocation6 + $0x18] sm:$0xff] %vm331_vm0, %v1071_v27 }
 0x4d2   : > { %1230 = vrot.lane.b32.xlu0 %v6615_v26, %s9102_s0  ;;  %1222 = vrot.lane.b32.xlu1 %v6615_v26, %s9103_s2  ;;  %s9108_s0 = smov 79   ;;  %s9111_s2 = smov 80  }
 0x4d3   : > { %1214 = vrot.lane.b32.xlu2 %v6615_v26, %s9104_s21 }
 0x4d5   : > { %v1083_v60 = vpop.permute.xlu2 %1082 }
 0x4d6   : > { %1085 = vst.msk [vmem:[#allocation6 + $0x30] sm:$0xff] %vm331_vm0, %v1083_v60 }
 0x4da   : > { %1242 = vrot.lane.b32.xlu0 %v6615_v26, %s9105_s4  ;;  %1234 = vrot.lane.b32.xlu1 %v6615_v26, %s9106_s13  ;;  %s9109_s4 = smov 83   ;;  %s9110_s13 = smov 78  }
 0x4db   : > { %1226 = vrot.lane.b32.xlu2 %v6615_v26, %s9107_s16 }
 0x4dc   : > { %v1075_v27 = vpop.permute.xlu0 %1074  ;;  %v1067_v40 = vpop.permute.xlu1 %1066 }
 0x4dd   : > { %1077 = vst.msk [vmem:[#allocation6 + $0x20] sm:$0xff] %vm331_vm0, %v1075_v27  ;;  %v1095_v54 = vpop.permute.xlu2 %1094 }
 0x4de   : > { %1069 = vst.msk [vmem:[#allocation6 + $0x10] sm:$0xff] %vm331_vm0, %v1067_v40 }
 0x4df   : > { %1097 = vst.msk [vmem:[#allocation6 + $0x48] sm:$0xff] %vm331_vm0, %v1095_v54 }
 0x4e2   : > { %1254 = vrot.lane.b32.xlu0 %v6615_v26, %s9108_s0  ;;  %1246 = vrot.lane.b32.xlu1 %v6615_v26, %s9015_s8  ;;  %s9112_s8 = sld [smem:[#allocation108_spill]]  ;;  %s9150_s0 = smov 75  }
 0x4e3   : > { %1238 = vrot.lane.b32.xlu2 %v6615_v26, %s9109_s4 }
 0x4e4   : > { %v1087_v60 = vpop.permute.xlu0 %1086  ;;  %v1079_v32 = vpop.permute.xlu1 %1078 }
 0x4e5   : > { %1089 = vst.msk [vmem:[#allocation6 + $0x38] sm:$0xff] %vm331_vm0, %v1087_v60  ;;  %v1107_v48 = vpop.permute.xlu2 %1106 }
 0x4e6   : > { %1081 = vst.msk [vmem:[#allocation6 + $0x28] sm:$0xff] %vm331_vm0, %v1079_v32 }
 0x4e7   : > { %1109 = vst.msk [vmem:[#allocation6 + $0x60] sm:$0xff] %vm331_vm0, %v1107_v48 }
 0x4ea   : > { %1258 = vrot.lane.b32.xlu1 %v6615_v26, %s9110_s13  ;;  %s9151_s13 = smov 76  }
 0x4eb   : > { %1250 = vrot.lane.b32.xlu2 %v6615_v26, %s9111_s2  ;;  %s9113_s2 = smov 47  }
 0x4ec   : > { %v1099_v54 = vpop.permute.xlu0 %1098  ;;  %v1091_v40 = vpop.permute.xlu1 %1090 }
 0x4ed   : > { %1101 = vst.msk [vmem:[#allocation6 + $0x50] sm:$0xff] %vm331_vm0, %v1099_v54  ;;  %v1119_v27 = vpop.permute.xlu2 %1118 }
 0x4ee   : > { %1093 = vst.msk [vmem:[#allocation6 + $0x40] sm:$0xff] %vm331_vm0, %v1091_v40 }
 0x4ef   : > { %1121 = vst.msk [vmem:[#allocation6 + $0x78] sm:$0xff] %vm331_vm0, %v1119_v27 }
 0x4f4   : > { %v1111_v60 = vpop.permute.xlu0 %1110  ;;  %v1103_v46 = vpop.permute.xlu1 %1102  ;;  %v1276_v35 = vld [vmem:[#allocation6 + $0x50] sm:$0xff] }
 0x4f5   : > { %1113 = vst.msk [vmem:[#allocation6 + $0x68] sm:$0xff] %vm331_vm0, %v1111_v60  ;;  %v1131_v32 = vpop.permute.xlu2 %1130 }
 0x4f6   : > { %1105 = vst.msk [vmem:[#allocation6 + $0x58] sm:$0xff] %vm331_vm0, %v1103_v46  ;;  %v1281_v48 = vld [vmem:[#allocation6 + $0x78] sm:$0xff] }
 0x4f7   : > { %1133 = vst.msk [vmem:[#allocation6 + $0x90] sm:$0xff] %vm331_vm0, %v1131_v32  ;;  %1326 = vmatpush.msra.mxu3 %v1281_v48  ;;  %v1278_v32 = vld [vmem:[#allocation6 + $0x60] sm:$0xff] }
 0x4fc   : > { %v1123_v26 = vpop.permute.xlu0 %1122  ;;  %v1115_v19 = vpop.permute.xlu1 %1114  ;;  %v1279_v46 = vld [vmem:[#allocation6 + $0x68] sm:$0xff] }
 0x4fd   : > { %1125 = vst.msk [vmem:[#allocation6 + $0x80] sm:$0xff] %vm331_vm0, %v1123_v26  ;;  %v1143_v54 = vpop.permute.xlu2 %1142  ;;  %v1277_v48 = vld [vmem:[#allocation6 + $0x58] sm:$0xff] }
 0x4fe   : > { %1117 = vst.msk [vmem:[#allocation6 + $0x70] sm:$0xff] %vm331_vm0, %v1115_v19 }
 0x4ff   : > { %1145 = vst.msk [vmem:[#allocation6 + $0xa8] sm:$0xff] %vm331_vm0, %v1143_v54 }
 0x504   : > { %v1135_v40 = vpop.permute.xlu0 %1134  ;;  %v1127_v27 = vpop.permute.xlu1 %1126 }
 0x505   : > { %1137 = vst.msk [vmem:[#allocation6 + $0x98] sm:$0xff] %vm331_vm0, %v1135_v40  ;;  %v1155_v60 = vpop.permute.xlu2 %1154  ;;  %v1280_v52 = vld [vmem:[#allocation6 + $0x70] sm:$0xff]  ;;  %v1274_v40 = vld [vmem:[#allocation6 + $0x40] sm:$0xff] }
 0x506   : > { %1129 = vst.msk [vmem:[#allocation6 + $0x88] sm:$0xff] %vm331_vm0, %v1127_v27  ;;  %1327 = vmatpush.msra.mxu3 %v1280_v52  ;;  %v1275_v52 = vld [vmem:[#allocation6 + $0x48] sm:$0xff]  ;;  %v1273_v27 = vld [vmem:[#allocation6 + $0x38] sm:$0xff] }
 0x507   : > { %1157 = vst.msk [vmem:[#allocation6 + $0xc0] sm:$0xff] %vm331_vm0, %v1155_v60 }
 0x508   : > { %1328 = vmatpush.msra.mxu3 %v1279_v46 }
 0x50a   : > { %1329 = vmatpush.msra.mxu3 %v1278_v32 }
 0x50c   : > { %1330 = vmatpush.msra.mxu3 %v1277_v48  ;;  %v1147_v19 = vpop.permute.xlu0 %1146  ;;  %v1139_v26 = vpop.permute.xlu1 %1138  ;;  %v1272_v48 = vld [vmem:[#allocation6 + $0x30] sm:$0xff] }
 0x50d   : > { %1149 = vst.msk [vmem:[#allocation6 + $0xb0] sm:$0xff] %vm331_vm0, %v1147_v19  ;;  %v1167_v54 = vpop.permute.xlu2 %1166  ;;  %v1270_v19 = vld [vmem:[#allocation6 + $0x20] sm:$0xff] }
 0x50e   : > { %1141 = vst.msk [vmem:[#allocation6 + $0xa0] sm:$0xff] %vm331_vm0, %v1139_v26  ;;  %1331 = vmatpush.msra.mxu3 %v1276_v35  ;;  %v1271_v35 = vld [vmem:[#allocation6 + $0x28] sm:$0xff]  ;;  %v1269_v26 = vld [vmem:[#allocation6 + $0x18] sm:$0xff] }
 0x50f   : > { %1169 = vst.msk [vmem:[#allocation6 + $0xd8] sm:$0xff] %vm331_vm0, %v1167_v54 }
 0x510   : > { %1332 = vmatpush.msra.mxu3 %v1275_v52 }
 0x512   : > { %1333 = vmatpush.msra.mxu3 %v1274_v40 }
 0x514   : > { %1334 = vmatpush.msra.mxu3 %v1273_v27  ;;  %v1159_v60 = vpop.permute.xlu0 %1158  ;;  %v1151_v46 = vpop.permute.xlu1 %1150  ;;  %v1268_v27 = vld [vmem:[#allocation6 + $0x10] sm:$0xff] }
 0x515   : > { %1161 = vst.msk [vmem:[#allocation6 + $0xc8] sm:$0xff] %vm331_vm0, %v1159_v60  ;;  %v1179_v32 = vpop.permute.xlu2 %1178  ;;  %v1267_v60 = vld [vmem:[#allocation6 + $0x8] sm:$0xff] }
 0x516   : > { %1153 = vst.msk [vmem:[#allocation6 + $0xb8] sm:$0xff] %vm331_vm0, %v1151_v46  ;;  %1335 = vmatpush.msra.mxu3 %v1272_v48  ;;  %v1262_v46 = vld [vmem:[%s9112_s8] sm:$0x3f] }
 0x517   : > { %1181 = vst.msk [vmem:[#allocation6 + $0xf0] sm:$0xff] %vm331_vm0, %v1179_v32  ;;  %v1266_v32 = vld [vmem:[#allocation6] sm:$0xff] }
 0x518   : > { %1336 = vmatpush.msra.mxu3 %v1271_v35 }
 0x51a   : > { %1337 = vmatpush.msra.mxu3 %v1270_v19 }
 0x51c   : > { %1338 = vmatpush.msra.mxu3 %v1269_v26  ;;  %v1171_v54 = vpop.permute.xlu0 %1170  ;;  %v1163_v52 = vpop.permute.xlu1 %1162 }
 0x51d   : > { %1173 = vst.msk [vmem:[#allocation6 + $0xe0] sm:$0xff] %vm331_vm0, %v1171_v54  ;;  %v1191_v40 = vpop.permute.xlu2 %1190 }
 0x51e   : > { %1165 = vst.msk [vmem:[#allocation6 + $0xd0] sm:$0xff] %vm331_vm0, %v1163_v52  ;;  %1339 = vmatpush.msra.mxu3 %v1268_v27  ;;  %v1296_v27 = vld [vmem:[#allocation6 + $0xf0] sm:$0xff] }
 0x51f   : > { %1193 = vst.msk [vmem:[#allocation6 + $0x108] sm:$0xff] %vm331_vm0, %v1191_v40 }
 0x520   : > { %1340 = vmatpush.msra.mxu3 %v1267_v60 }
 0x522   : > { %1341 = vmatpush.msra.mxu3 %v1266_v32 }
 0x523   : > { %1342 = vmatmul.f32.vlgmr.msra.gmra.mxu3 %v1262_v46 }
 0x524   : > { %v1183_v48 = vpop.permute.xlu0 %1182  ;;  %v1175_v35 = vpop.permute.xlu1 %1174  ;;  %v1294_v46 = vld [vmem:[#allocation6 + $0xe0] sm:$0xff] }
 0x525   : > { %1185 = vst.msk [vmem:[#allocation6 + $0xf8] sm:$0xff] %vm331_vm0, %v1183_v48  ;;  %v1203_v19 = vpop.permute.xlu2 %1202 }
 0x526   : > { %1177 = vst.msk [vmem:[#allocation6 + $0xe8] sm:$0xff] %vm331_vm0, %v1175_v35  ;;  %v1293_v35 = vld [vmem:[#allocation6 + $0xd8] sm:$0xff] }
 0x527   : > { %1205 = vst.msk [vmem:[#allocation6 + $0x120] sm:$0xff] %vm331_vm0, %v1203_v19 }
 0x52c   : > { %v1195_v26 = vpop.permute.xlu0 %1194  ;;  %v1187_v54 = vpop.permute.xlu1 %1186  ;;  %v1297_v52 = vld [vmem:[#allocation6 + $0xf8] sm:$0xff] }
 0x52d   : > { %1197 = vst.msk [vmem:[#allocation6 + $0x110] sm:$0xff] %vm331_vm0, %v1195_v26  ;;  %v1215_v40 = vpop.permute.xlu2 %1214  ;;  %1346 = vmatpush.msra.mxu2 %v1297_v52  ;;  %v1295_v60 = vld [vmem:[#allocation6 + $0xe8] sm:$0xff]  ;;  %v1292_v26 = vld [vmem:[#allocation6 + $0xd0] sm:$0xff]  ;;  %v1290_v52 = vld [vmem:[#allocation6 + $0xc0] sm:$0xff] }
 0x52e   : > { %1189 = vst.msk [vmem:[#allocation6 + $0x100] sm:$0xff] %vm331_vm0, %v1187_v54  ;;  %v1291_v54 = vld [vmem:[#allocation6 + $0xc8] sm:$0xff] }
 0x52f   : > { %1217 = vst.msk [vmem:[#allocation6 + $0x138] sm:$0xff] %vm331_vm0, %v1215_v40  ;;  %1347 = vmatpush.msra.mxu2 %v1296_v27 }
 0x531   : > { %1348 = vmatpush.msra.mxu2 %v1295_v60  ;;  %v1289_v60 = vld [vmem:[#allocation6 + $0xb8] sm:$0xff] }
 0x533   : > { %1349 = vmatpush.msra.mxu2 %v1294_v46 }
 0x534   : > { %v1207_v32 = vpop.permute.xlu0 %1206  ;;  %v1199_v48 = vpop.permute.xlu1 %1198 }
 0x535   : > { %1209 = vst.msk [vmem:[#allocation6 + $0x128] sm:$0xff] %vm331_vm0, %v1207_v32  ;;  %v1227_v19 = vpop.permute.xlu2 %1226  ;;  %1350 = vmatpush.msra.mxu2 %v1293_v35  ;;  %v1288_v32 = vld [vmem:[#allocation6 + $0xb0] sm:$0xff]  ;;  %v1286_v35 = vld [vmem:[#allocation6 + $0xa0] sm:$0xff] }
 0x536   : > { %1201 = vst.msk [vmem:[#allocation6 + $0x118] sm:$0xff] %vm331_vm0, %v1199_v48  ;;  %v1287_v48 = vld [vmem:[#allocation6 + $0xa8] sm:$0xff] }
 0x537   : > { %1229 = vst.msk [vmem:[#allocation6 + $0x150] sm:$0xff] %vm331_vm0, %v1227_v19  ;;  %1351 = vmatpush.msra.mxu2 %v1292_v26 }
 0x539   : > { %1352 = vmatpush.msra.mxu2 %v1291_v54  ;;  %v1285_v54 = vld [vmem:[#allocation6 + $0x98] sm:$0xff] }
 0x53b   : > { %1353 = vmatpush.msra.mxu2 %v1290_v52 }
 0x53c   : > { %v1219_v40 = vpop.permute.xlu0 %1218  ;;  %v1211_v27 = vpop.permute.xlu1 %1210 }
 0x53d   : > { %1221 = vst.msk [vmem:[#allocation6 + $0x140] sm:$0xff] %vm331_vm0, %v1219_v40  ;;  %v1239_v46 = vpop.permute.xlu2 %1238  ;;  %1354 = vmatpush.msra.mxu2 %v1289_v60  ;;  %v1284_v40 = vld [vmem:[#allocation6 + $0x90] sm:$0xff]  ;;  %v1263_v60 = vld [vmem:[%s9112_s8 + $0x8] sm:$0x3f] }
 0x53e   : > { %1213 = vst.msk [vmem:[#allocation6 + $0x130] sm:$0xff] %vm331_vm0, %v1211_v27  ;;  %v1283_v27 = vld [vmem:[#allocation6 + $0x88] sm:$0xff] }
 0x53f   : > { %1241 = vst.msk [vmem:[#allocation6 + $0x168] sm:$0xff] %vm331_vm0, %v1239_v46  ;;  %1355 = vmatpush.msra.mxu2 %v1288_v32  ;;  %v1282_v46 = vld [vmem:[#allocation6 + $0x80] sm:$0xff] }
 0x541   : > { %1356 = vmatpush.msra.mxu2 %v1287_v48 }
 0x543   : > { %1357 = vmatpush.msra.mxu2 %v1286_v35 }
 0x544   : > { %v1231_v19 = vpop.permute.xlu0 %1230  ;;  %v1223_v26 = vpop.permute.xlu1 %1222 }
 0x545   : > { %1233 = vst.msk [vmem:[#allocation6 + $0x158] sm:$0xff] %vm331_vm0, %v1231_v19  ;;  %v1251_v52 = vpop.permute.xlu2 %1250  ;;  %1358 = vmatpush.msra.mxu2 %v1285_v54 }
 0x546   : > { %1225 = vst.msk [vmem:[#allocation6 + $0x148] sm:$0xff] %vm331_vm0, %v1223_v26 }
 0x547   : > { %1253 = vst.msk [vmem:[#allocation6 + $0x180] sm:$0xff] %vm331_vm0, %v1251_v52  ;;  %1359 = vmatpush.msra.mxu2 %v1284_v40  ;;  %v1311_v40 = vld [vmem:[#allocation6 + $0x168] sm:$0xff] }
 0x549   : > { %1360 = vmatpush.msra.mxu2 %v1283_v27 }
 0x54b   : > { %1361 = vmatpush.msra.mxu2 %v1282_v46 }
 0x54c   : > { %v1243_v32 = vpop.permute.xlu0 %1242  ;;  %v1235_v48 = vpop.permute.xlu1 %1234  ;;  %1362 = vmatmul.f32.vlgmr.msra.gmra.mxu2 %v1263_v60  ;;  %v1309_v46 = vld [vmem:[#allocation6 + $0x158] sm:$0xff] }
 0x54d   : > { %1245 = vst.msk [vmem:[#allocation6 + $0x170] sm:$0xff] %vm331_vm0, %v1243_v32 }
 0x54e   : > { %1237 = vst.msk [vmem:[#allocation6 + $0x160] sm:$0xff] %vm331_vm0, %v1235_v48  ;;  %v1308_v48 = vld [vmem:[#allocation6 + $0x150] sm:$0xff] }
 0x554   : > { %v1255_v35 = vpop.permute.xlu0 %1254  ;;  %v1247_v19 = vpop.permute.xlu1 %1246  ;;  %v1312_v52 = vld [vmem:[#allocation6 + $0x170] sm:$0xff] }
 0x555   : > { %1257 = vst.msk [vmem:[#allocation6 + $0x188] sm:$0xff] %vm331_vm0, %v1255_v35  ;;  %v1310_v27 = vld [vmem:[#allocation6 + $0x160] sm:$0xff]  ;;  %v1265_v35 = vld [vmem:[%s9112_s8 + $0x18] sm:$0x3f] }
 0x556   : > { %1249 = vst.msk [vmem:[#allocation6 + $0x178] sm:$0xff] %vm331_vm0, %v1247_v19  ;;  %v1314_v19 = vld [vmem:[#allocation6 + $0x180] sm:$0xff] }
 0x55c   : > { %v1259_v26 = vpop.permute.xlu1 %1258  ;;  %v1315_v32 = vld [vmem:[#allocation6 + $0x188] sm:$0xff] }
 0x55d   : > { %1261 = vst.msk [vmem:[#allocation6 + $0x190] sm:$0xff] %vm331_vm0, %v1259_v26  ;;  %v1313_v54 = vld [vmem:[#allocation6 + $0x178] sm:$0xff]  ;;  %v1307_v26 = vld [vmem:[#allocation6 + $0x148] sm:$0xff] }
 0x55e   : > { %1366 = vmatpush.msra.mxu0 %v1313_v54  ;;  %v1306_v54 = vld [vmem:[#allocation6 + $0x140] sm:$0xff] }
 0x560   : > { %1367 = vmatpush.msra.mxu0 %v1312_v52  ;;  %v1305_v52 = vld [vmem:[#allocation6 + $0x138] sm:$0xff] }
 0x562   : > { %1368 = vmatpush.msra.mxu0 %v1311_v40  ;;  %v1304_v40 = vld [vmem:[#allocation6 + $0x130] sm:$0xff] }
 0x564   : > { %1369 = vmatpush.msra.mxu0 %v1310_v27  ;;  %v1316_v60 = vld [vmem:[#allocation6 + $0x190] sm:$0xff]  ;;  %v1303_v27 = vld [vmem:[#allocation6 + $0x128] sm:$0xff] }
 0x565   : > { %1399 = vmatpush.msra.mxu1 %v1316_v60  ;;  %v1302_v60 = vld [vmem:[#allocation6 + $0x120] sm:$0xff] }
 0x566   : > { %1370 = vmatpush.msra.mxu0 %v1309_v46  ;;  %v1301_v46 = vld [vmem:[#allocation6 + $0x118] sm:$0xff] }
 0x567   : > { %1400 = vmatpush.msra.mxu1 %v1315_v32  ;;  %v1300_v32 = vld [vmem:[#allocation6 + $0x110] sm:$0xff] }
 0x568   : > { %1371 = vmatpush.msra.mxu0 %v1308_v48  ;;  %v1299_v48 = vld [vmem:[#allocation6 + $0x108] sm:$0xff] }
 0x569   : > { %1401 = vmatpush.msra.mxu1 %v1314_v19  ;;  %v1298_v19 = vld [vmem:[#allocation6 + $0x100] sm:$0xff] }
 0x56a   : > { %1372 = vmatpush.msra.mxu0 %v1307_v26  ;;  %4483 = vmatmul.msk.f32.vlgmr.msra.gmra.mxu1 %vm595_vm1, %v1265_v35  ;;  %v1264_v35 = vld [vmem:[%s9112_s8 + $0x10] sm:$0x3f]  ;;  %s9184_s8 = smov 57  }
 0x56c   : > { %1373 = vmatpush.msra.mxu0 %v1306_v54 }
 0x56e   : > { %1374 = vmatpush.msra.mxu0 %v1305_v52 }
 0x570   : > { %1375 = vmatpush.msra.mxu0 %v1304_v40 }
 0x572   : > { %1376 = vmatpush.msra.mxu0 %v1303_v27 }
 0x574   : > { %1377 = vmatpush.msra.mxu0 %v1302_v60 }
 0x576   : > { %1378 = vmatpush.msra.mxu0 %v1301_v46 }
 0x578   : > { %1379 = vmatpush.msra.mxu0 %v1300_v32 }
 0x57a   : > { %1380 = vmatpush.msra.mxu0 %v1299_v48 }
 0x57c   : > { %1381 = vmatpush.msra.mxu0 %v1298_v19  ;;  %v9126_v19 = vunpack.i.h.bf16 %v5983_v33 }
 0x57d   : > { %1382 = vmatmul.f32.vlgmr.msra.gmra.mxu0 %v1264_v35 }
 0x5a6   : > { %v1343_v26 = vpop.f32.mrf.mxu3 }
 0x5a7   : > { %v1344_v52 = vadd.f32 %v1343_v26, %v5945_v11  ;;  %v4663_v11 = vunpack.i.l.bf16 %v5983_v33  ;;  %v9129_v33 = vunpack.i.h.bf16 %v6002_v41 }
 0x5cf   : > { %v1363_v54 = vpop.f32.mrf.mxu2 }
 0x5d0   : > { %v1364_v40 = vadd.f32 %v1363_v54, %v1344_v52  ;;  %v4678_v54 = vunpack.i.l.bf16 %v6002_v41  ;;  %v9132_v41 = vunpack.i.h.bf16 %v6020_v47 }
 0x5e7   : > { %v1403_v60 = vpop.f32.mrf.mxu1 }
 0x5fa   : > { %v1383_v27 = vpop.f32.mrf.mxu0 }
 0x5fb   : > { %v1384_v1 = vadd.f32 %v1383_v27, %v1364_v40 }
 0x5fd   : > { %v1404_v46 = vadd.f32 %v1403_v60, %v1384_v1  ;;  %v4693_v60 = vunpack.i.l.bf16 %v6020_v47 }
 0x5ff   : > { %1412 = vrot.lane.b32.xlu0 %v1404_v46, %s9113_s2 }
 0x671   : > { %v1413_v32 = vpop.permute.xlu0 %1412 }
 0x672   : > { %1416 = vst.msk [vmem:[#allocation7 + $0x8] sm:$0x3f] %vm1415_vm11, %v1413_v32  ;;  %vm1510_vm11 = vcmask 973824  }
 0x679   : > { %v6802_v48 = vld [vmem:[#allocation7 + $0x8] sm:$0xff] }
 0x67a   : > { %1423 = vst.msk [vmem:[#allocation8 + $0x8] sm:$0xff] %vm1422_vm2, %v6802_v48  ;;  %1448 = vrot.lane.b32.xlu0 %v6802_v48, %s9078_s11  ;;  %1438 = vrot.lane.b32.xlu1 %v6802_v48, %s8985_s20  ;;  %s9119_s20 = smov 100   ;;  %s9144_s11 = smov 78  }
 0x67b   : > { %2953 = vst [vmem:[#allocation8 + $0x800] sm:$0xff] %v6802_v48  ;;  %1428 = vrot.lane.b32.xlu2 %v6802_v48, %s8986_s7  ;;  %s9117_s7 = smov 98  }
 0x682   : > { %1478 = vrot.lane.b32.xlu0 %v6802_v48, %s9080_s14  ;;  %1468 = vrot.lane.b32.xlu1 %v6802_v48, %s9077_s19  ;;  %s9143_s19 = smov 77   ;;  %s9146_s14 = smov 79  }
 0x683   : > { %1458 = vrot.lane.b32.xlu2 %v6802_v48, %s8988_s3  ;;  %s9115_s3 = smov 102  }
 0x68a   : > { %1508 = vrot.lane.b32.xlu0 %v6802_v48, %s8940_s17  ;;  %1498 = vrot.lane.b32.xlu1 %v6802_v48, %s8989_s10  ;;  %s9124_s17 = smov 93   ;;  %s9133_s10 = smov 84  }
 0x68b   : > { %1488 = vrot.lane.b32.xlu2 %v6802_v48, %s8990_s12  ;;  %s9118_s12 = smov 99  }
 0x692   : > { %1538 = vrot.lane.b32.xlu0 %v6802_v48, %s8943_s28  ;;  %1528 = vrot.lane.b32.xlu1 %v6802_v48, %s8935_s22  ;;  %s9128_s22 = smov 91   ;;  %s9138_s28 = smov 80  }
 0x693   : > { %1518 = vrot.lane.b32.xlu2 %v6802_v48, %s8936_s24  ;;  %s9131_s24 = smov 88  }
 0x69a   : > { %1567 = vrot.lane.b32.xlu0 %v6802_v48, %s8946_s26  ;;  %1557 = vrot.lane.b32.xlu1 %v6802_v48, %s8938_s25  ;;  %s9127_s26 = smov 90   ;;  %s9134_s25 = smov 85  }
 0x69b   : > { %1547 = vrot.lane.b32.xlu2 %v6802_v48, %s8939_s18  ;;  %s9125_s18 = smov 94  }
 0x6a2   : > { %1597 = vrot.lane.b32.xlu0 %v6802_v48, %s8949_s1  ;;  %1587 = vrot.lane.b32.xlu1 %v6802_v48, %s8941_s30  ;;  %s9114_s1 = smov 106   ;;  %s9122_s30 = smov 97  }
 0x6a3   : > { %1577 = vrot.lane.b32.xlu2 %v6802_v48, %s8942_s29  ;;  %s9121_s29 = smov 96  }
 0x6aa   : > { %1627 = vrot.lane.b32.xlu0 %v6802_v48, %s8952_s6  ;;  %1617 = vrot.lane.b32.xlu1 %v6802_v48, %s8944_s23  ;;  %s9116_s6 = smov 103   ;;  %s9139_s23 = smov 81  }
 0x6ab   : > { %1607 = vrot.lane.b32.xlu2 %v6802_v48, %s8945_s27  ;;  %s9120_s27 = smov 95  }
 0x6b2   : > { %1657 = vrot.lane.b32.xlu0 %v6802_v48, %s9087_s9  ;;  %1647 = vrot.lane.b32.xlu1 %v6802_v48, %s8947_s15  ;;  %s9123_s15 = smov 92   ;;  %s9149_s9 = smov 74  }
 0x6b3   : > { %1637 = vrot.lane.b32.xlu2 %v6802_v48, %s9114_s1  ;;  %s9155_s1 = smov 71  }
 0x6ba   : > { %1687 = vrot.lane.b32.xlu0 %v6802_v48, %s9091_s5  ;;  %1677 = vrot.lane.b32.xlu1 %v6802_v48, %s9115_s3  ;;  %s9140_s5 = smov 82   ;;  %s9156_s3 = smov 72  }
 0x6bb   : > { %1667 = vrot.lane.b32.xlu2 %v6802_v48, %s9116_s6  ;;  %s9157_s6 = smov 73  }
 0x6c2   : > { %1717 = vrot.lane.b32.xlu0 %v6802_v48, %s9117_s7  ;;  %1707 = vrot.lane.b32.xlu1 %v6802_v48, %s9118_s12  ;;  %s9160_s7 = smov 68   ;;  %s9161_s12 = smov 69  }
 0x6c3   : > { %1697 = vrot.lane.b32.xlu2 %v6802_v48, %s9119_s20  ;;  %s9163_s20 = smov 70  }
 0x6ca   : > { %1747 = vrot.lane.b32.xlu0 %v6802_v48, %s9120_s27  ;;  %1737 = vrot.lane.b32.xlu1 %v6802_v48, %s9121_s29  ;;  %s9166_s27 = smov 65   ;;  %s9167_s29 = smov 66  }
 0x6cb   : > { %1727 = vrot.lane.b32.xlu2 %v6802_v48, %s9122_s30  ;;  %s9168_s30 = smov 67  }
 0x6d2   : > { %1777 = vrot.lane.b32.xlu0 %v6802_v48, %s9123_s15  ;;  %1767 = vrot.lane.b32.xlu1 %v6802_v48, %s9124_s17  ;;  %s9172_s15 = smov 62   ;;  %s9173_s17 = smov 63  }
 0x6d3   : > { %1757 = vrot.lane.b32.xlu2 %v6802_v48, %s9125_s18  ;;  %s9174_s18 = smov 64  }
 0x6d5   : > { %v1429_v1 = vpop.permute.xlu2 %1428 }
 0x6d6   : > { %v6880_v35 = vsel %vm1430_vm12, %v4663_v11, %v1429_v1  ;;  %1435 = vst.msk [vmem:[#allocation8 + $0x18] sm:$0xff] %vm1422_vm2, %v1429_v1  ;;  %v2957_v26 = vsel %vm1430_vm12, %v1429_v1, %v9126_v19  ;;  %v4668_v1 = vunpack.i.l.bf16 %v5860_v49  ;;  %v4673_v19 = vunpack.i.l.bf16 %v5958_v16 }
 0x6d7   : > { %2960 = vst [vmem:[#allocation8 + $0x810] sm:$0xff] %v2957_v26  ;;  %vm1500_vm12 = vcmask 982016  }
 0x6da   : > { %1807 = vrot.lane.b32.xlu0 %v6802_v48, %s9104_s21  ;;  %1797 = vrot.lane.b32.xlu1 %v6802_v48, %s9127_s26  ;;  %s9130_s21 = smov 87   ;;  %s9177_s26 = smov 59  }
 0x6db   : > { %1787 = vrot.lane.b32.xlu2 %v6802_v48, %s9128_s22  ;;  %s9178_s22 = smov 60  }
 0x6dd   : > { %v1459_v52 = vpop.permute.xlu2 %1458 }
 0x6de   : > { %v6892_v40 = vsel %vm1460_vm13, %v4678_v54, %v1459_v52  ;;  %1465 = vst.msk [vmem:[#allocation8 + $0x48] sm:$0xff] %vm1422_vm2, %v1459_v52  ;;  %v2978_v27 = vsel %vm1460_vm13, %v1459_v52, %v9129_v33  ;;  %v9135_v52 = vunpack.i.h.bf16 %v5958_v16  ;;  %v4688_v16 = vunpack.i.l.bf16 %v5974_v23 }
 0x6df   : > { %2981 = vst [vmem:[#allocation8 + $0x840] sm:$0xff] %v2978_v27  ;;  %vm1579_vm13 = vcmask 916480  }
 0x6e2   : > { %1840 = vrot.lane.b32.xlu0 %v6802_v48, %s9107_s16  ;;  %1827 = vrot.lane.b32.xlu1 %v6802_v48, %s9130_s21 }
 0x6e3   : > { %1817 = vrot.lane.b32.xlu2 %v6802_v48, %s9131_s24  ;;  %s9180_s24 = smov 61  }
 0x6e5   : > { %v1489_v46 = vpop.permute.xlu2 %1488 }
 0x6e6   : > { %v6904_v32 = vsel %vm1490_vm14, %v4693_v60, %v1489_v46  ;;  %1495 = vst.msk [vmem:[#allocation8 + $0x78] sm:$0xff] %vm1422_vm2, %v1489_v46  ;;  %v2999_v11 = vsel %vm1490_vm14, %v1489_v46, %v9132_v41  ;;  %v4708_v46 = vunpack.i.l.bf16 %v6035_v0  ;;  %v9136_v41 = vunpack.i.h.bf16 %v5860_v49 }
 0x6e7   : > { %3002 = vst [vmem:[#allocation8 + $0x870] sm:$0xff] %v2999_v11  ;;  %v4683_v49 = vunpack.i.l.bf16 %v5872_v51  ;;  %vm1530_vm14 = vcmask 957440  }
 0x6ea   : > { %1879 = vrot.lane.b32.xlu0 %v6802_v48, %s9109_s4  ;;  %1866 = vrot.lane.b32.xlu1 %v6802_v48, %s9133_s10 }
 0x6eb   : > { %1853 = vrot.lane.b32.xlu2 %v6802_v48, %s9134_s25 }
 0x6ec   : > { %v1449_v26 = vpop.permute.xlu0 %1448  ;;  %v1439_v54 = vpop.permute.xlu1 %1438 }
 0x6ed   : > { %v6917_v47 = vsel %vm1450_vm15, %v4673_v19, %v1449_v26  ;;  %1455 = vst.msk [vmem:[#allocation8 + $0x38] sm:$0xff] %vm1422_vm2, %v1449_v26  ;;  %v2971_v33 = vsel %vm1450_vm15, %v1449_v26, %v9135_v52  ;;  %v6922_v27 = vsel %vm1440_vm3, %v4668_v1, %v1439_v54  ;;  %v1519_v60 = vpop.permute.xlu2 %1518  ;;  %v2964_v11 = vsel %vm1440_vm3, %v1439_v54, %v9136_v41 }
 0x6ee   : > { %2974 = vst [vmem:[#allocation8 + $0x830] sm:$0xff] %v2971_v33  ;;  %v6927_v29 = vsel %vm1520_vm4, %v4708_v46, %v1519_v60  ;;  %v9137_v19 = vunpack.i.h.bf16 %v6035_v0  ;;  %v4723_v41 = vunpack.i.l.bf16 %v6047_v6  ;;  %vm1609_vm15 = vcmask 891904  }
 0x6ef   : > { %1445 = vst.msk [vmem:[#allocation8 + $0x28] sm:$0xff] %vm1422_vm2, %v1439_v54  ;;  %v9141_v54 = vunpack.i.h.bf16 %v5974_v23  ;;  %v4703_v23 = vunpack.i.l.bf16 %v5989_v37  ;;  %vm1569_vm3 = vcmask 924672  }
 0x6f0   : > { %2967 = vst [vmem:[#allocation8 + $0x820] sm:$0xff] %v2964_v11  ;;  %v3020_v42 = vsel %vm1520_vm4, %v1519_v60, %v9137_v19  ;;  %v9142_v11 = vunpack.i.h.bf16 %v5872_v51  ;;  %vm1639_vm4 = vcmask 867328  }
 0x6f1   : > { %1525 = vst.msk [vmem:[#allocation8 + $0xa8] sm:$0xff] %vm1422_vm2, %v1519_v60 }
 0x6f2   : > { %1918 = vrot.lane.b32.xlu0 %v6802_v48, %s9138_s28  ;;  %1905 = vrot.lane.b32.xlu1 %v6802_v48, %s9139_s23  ;;  %3023 = vst [vmem:[#allocation8 + $0x8a0] sm:$0xff] %v3020_v42  ;;  %v9145_v42 = vunpack.i.h.bf16 %v6047_v6  ;;  %v4738_v6 = vunpack.i.l.bf16 %v6061_v20  ;;  %s9183_s23 = smov 56   ;;  %s9190_s28 = smov 54  }
 0x6f3   : > { %1892 = vrot.lane.b32.xlu2 %v6802_v48, %s9140_s5 }
 0x6f4   : > { %v1479_v1 = vpop.permute.xlu0 %1478  ;;  %v1469_v0 = vpop.permute.xlu1 %1468 }
 0x6f5   : > { %v6941_v26 = vsel %vm1480_vm5, %v4688_v16, %v1479_v1  ;;  %v2992_v52 = vsel %vm1480_vm5, %v1479_v1, %v9141_v54  ;;  %v1548_v33 = vpop.permute.xlu2 %1547  ;;  %v6945_v46 = vsel %vm1470_vm6, %v4683_v49, %v1469_v0  ;;  %1485 = vst.msk [vmem:[#allocation8 + $0x68] sm:$0xff] %vm1422_vm2, %v1479_v1  ;;  %v2985_v60 = vsel %vm1470_vm6, %v1469_v0, %v9142_v11 }
 0x6f6   : > { %2995 = vst [vmem:[#allocation8 + $0x860] sm:$0xff] %v2992_v52  ;;  %v6951_v19 = vsel %vm1549_vm8, %v4723_v41, %v1548_v33  ;;  %v3041_v16 = vsel %vm1549_vm8, %v1548_v33, %v9145_v42  ;;  %v4698_v1 = vunpack.i.l.bf16 %v5886_v53  ;;  %v9147_v52 = vunpack.i.h.bf16 %v5989_v37 }
 0x6f7   : > { %1475 = vst.msk [vmem:[#allocation8 + $0x58] sm:$0xff] %vm1422_vm2, %v1469_v0  ;;  %v4718_v37 = vunpack.i.l.bf16 %v6008_v43  ;;  %vm1599_vm5 = vcmask 900096   ;;  %vm1589_vm6 = vcmask 908288   ;;  %vm1669_vm8 = vcmask 842752  }
 0x6f8   : > { %2988 = vst [vmem:[#allocation8 + $0x850] sm:$0xff] %v2985_v60  ;;  %v9148_v60 = vunpack.i.h.bf16 %v5886_v53 }
 0x6f9   : > { %1554 = vst.msk [vmem:[#allocation8 + $0xd8] sm:$0xff] %vm1422_vm2, %v1548_v33  ;;  %v9152_v33 = vunpack.i.h.bf16 %v6061_v20  ;;  %v4753_v20 = vunpack.i.l.bf16 %v6075_v28 }
 0x6fa   : > { %1957 = vrot.lane.b32.xlu0 %v6802_v48, %s9143_s19  ;;  %1944 = vrot.lane.b32.xlu1 %v6802_v48, %s9144_s11  ;;  %3044 = vst [vmem:[#allocation8 + $0x8d0] sm:$0xff] %v3041_v16 }
 0x6fb   : > { %1931 = vrot.lane.b32.xlu2 %v6802_v48, %s9146_s14  ;;  %s9189_s14 = smov 53  }
 0x6fc   : > { %v1509_v51 = vpop.permute.xlu0 %1508  ;;  %v1499_v49 = vpop.permute.xlu1 %1498 }
 0x6fd   : > { %v6965_v0 = vsel %vm1510_vm11, %v4703_v23, %v1509_v51  ;;  %v1578_v54 = vpop.permute.xlu2 %1577  ;;  %v3013_v41 = vsel %vm1510_vm11, %v1509_v51, %v9147_v52  ;;  %v6969_v11 = vsel %vm1500_vm12, %v4698_v1, %v1499_v49  ;;  %1515 = vst.msk [vmem:[#allocation8 + $0x98] sm:$0xff] %vm1422_vm2, %v1509_v51  ;;  %v3006_v42 = vsel %vm1500_vm12, %v1499_v49, %v9148_v60 }
 0x6fe   : > { %3016 = vst [vmem:[#allocation8 + $0x890] sm:$0xff] %v3013_v41  ;;  %v6975_v17 = vsel %vm1579_vm13, %v4738_v6, %v1578_v54  ;;  %v3062_v53 = vsel %vm1579_vm13, %v1578_v54, %v9152_v33  ;;  %v4713_v52 = vunpack.i.l.bf16 %v5898_v55  ;;  %v9154_v60 = vunpack.i.h.bf16 %v5898_v55 }
 0x6ff   : > { %1505 = vst.msk [vmem:[#allocation8 + $0x88] sm:$0xff] %vm1422_vm2, %v1499_v49  ;;  %v9153_v49 = vunpack.i.h.bf16 %v6008_v43  ;;  %v4733_v43 = vunpack.i.l.bf16 %v6026_v62  ;;  %v4728_v33 = vunpack.i.l.bf16 %v5910_v57  ;;  %vm1629_vm11 = vcmask 875520  }
 0x700   : > { %3009 = vst [vmem:[#allocation8 + $0x880] sm:$0xff] %v3006_v42  ;;  %vm1619_vm12 = vcmask 883712   ;;  %vm1699_vm13 = vcmask 818176  }
 0x701   : > { %1584 = vst.msk [vmem:[#allocation8 + $0x108] sm:$0xff] %vm1422_vm2, %v1578_v54 }
 0x702   : > { %1996 = vrot.lane.b32.xlu0 %v6802_v48, %s9149_s9  ;;  %1983 = vrot.lane.b32.xlu1 %v6802_v48, %s9150_s0  ;;  %3065 = vst [vmem:[#allocation8 + $0x900] sm:$0xff] %v3062_v53  ;;  %v9158_v53 = vunpack.i.h.bf16 %v6075_v28  ;;  %v9162_v28 = vunpack.i.h.bf16 %v5910_v57  ;;  %v9164_v57 = vunpack.i.h.bf16 %v6101_v15 }
 0x703   : > { %1970 = vrot.lane.b32.xlu2 %v6802_v48, %s9151_s13 }
 0x704   : > { %v1539_v23 = vpop.permute.xlu0 %1538  ;;  %v1529_v16 = vpop.permute.xlu1 %1528 }
 0x705   : > { %v1540_v51 = vsel %vm698_vm7, %v4718_v37, %v1539_v23  ;;  %v1608_v1 = vpop.permute.xlu2 %1607  ;;  %v3034_v41 = vsel %vm698_vm7, %v1539_v23, %v9153_v49  ;;  %v1531_v6 = vsel %vm1530_vm14, %v4713_v52, %v1529_v16  ;;  %1544 = vst.msk [vmem:[#allocation8 + $0xc8] sm:$0xff] %vm1422_vm2, %v1539_v23  ;;  %v3027_v42 = vsel %vm1530_vm14, %v1529_v16, %v9154_v60 }
 0x706   : > { %3037 = vst [vmem:[#allocation8 + $0x8c0] sm:$0xff] %v3034_v41  ;;  %v7003_v54 = vsel %vm1609_vm15, %v4753_v20, %v1608_v1  ;;  %vm1559_vm7 = vcmask 932864   ;;  %v3083_v23 = vsel %vm1609_vm15, %v1608_v1, %v9158_v53  ;;  %v4768_v60 = vunpack.i.l.bf16 %v6101_v15 }
 0x707   : > { %1535 = vst.msk [vmem:[#allocation8 + $0xb8] sm:$0xff] %vm1422_vm2, %v1529_v16  ;;  %v9159_v16 = vunpack.i.h.bf16 %v6026_v62  ;;  %v4783_v15 = vunpack.i.l.bf16 %v6115_v12  ;;  %vm1729_vm14 = vcmask 793600   ;;  %vm1659_vm15 = vcmask 850944  }
 0x708   : > { %3030 = vst [vmem:[#allocation8 + $0x8b0] sm:$0xff] %v3027_v42 }
 0x709   : > { %1614 = vst.msk [vmem:[#allocation8 + $0x138] sm:$0xff] %vm1422_vm2, %v1608_v1 }
 0x70a   : > { %2035 = vrot.lane.b32.xlu0 %v6802_v48, %s9155_s1  ;;  %2022 = vrot.lane.b32.xlu1 %v6802_v48, %s9156_s3  ;;  %3086 = vst [vmem:[#allocation8 + $0x930] sm:$0xff] %v3083_v23 }
 0x70b   : > { %2009 = vrot.lane.b32.xlu2 %v6802_v48, %s9157_s6 }
 0x70c   : > { %v1568_v37 = vpop.permute.xlu0 %1567  ;;  %v1558_v55 = vpop.permute.xlu1 %1557 }
 0x70d   : > { %v1570_v52 = vsel %vm1569_vm3, %v4733_v43, %v1568_v37  ;;  %v1638_v49 = vpop.permute.xlu2 %1637  ;;  %v1560_v41 = vsel %vm1559_vm7, %v4728_v33, %v1558_v55  ;;  %v3055_v20 = vsel %vm1569_vm3, %v1568_v37, %v9159_v16  ;;  %1574 = vst.msk [vmem:[#allocation8 + $0xf8] sm:$0xff] %vm1422_vm2, %v1568_v37  ;;  %v3048_v1 = vsel %vm1559_vm7, %v1558_v55, %v9162_v28 }
 0x70e   : > { %3868 = vmatpush.msrb.mxu3 %v1570_v52  ;;  %3058 = vst [vmem:[#allocation8 + $0x8f0] sm:$0xff] %v3055_v20  ;;  %v7031_v62 = vsel %vm1639_vm4, %v4768_v60, %v1638_v49  ;;  %v4748_v37 = vunpack.i.l.bf16 %v6038_v4  ;;  %v3104_v53 = vsel %vm1639_vm4, %v1638_v49, %v9164_v57  ;;  %v9165_v52 = vunpack.i.h.bf16 %v6038_v4 }
 0x70f   : > { %1564 = vst.msk [vmem:[#allocation8 + $0xe8] sm:$0xff] %vm1422_vm2, %v1558_v55  ;;  %v9169_v4 = vunpack.i.h.bf16 %v5922_v59  ;;  %v4763_v60 = vunpack.i.l.bf16 %v6050_v8  ;;  %vm1649_vm3 = vcmask 859136   ;;  %vm1689_vm7 = vcmask 826368  }
 0x710   : > { %3869 = vmatpush.msrb.mxu3 %v1560_v41  ;;  %3051 = vst [vmem:[#allocation8 + $0x8e0] sm:$0xff] %v3048_v1  ;;  %v4758_v1 = vunpack.i.l.bf16 %v5934_v2  ;;  %vm1679_vm4 = vcmask 834560  }
 0x711   : > { %1644 = vst.msk [vmem:[#allocation8 + $0x168] sm:$0xff] %vm1422_vm2, %v1638_v49 }
 0x712   : > { %2074 = vrot.lane.b32.xlu0 %v6802_v48, %s9160_s7  ;;  %2061 = vrot.lane.b32.xlu1 %v6802_v48, %s9161_s12  ;;  %3107 = vst [vmem:[#allocation8 + $0x960] sm:$0xff] %v3104_v53 }
 0x713   : > { %2048 = vrot.lane.b32.xlu2 %v6802_v48, %s9163_s20  ;;  %3870 = vmatpush.msrb.mxu3 %v6951_v19  ;;  %v4743_v19 = vunpack.i.l.bf16 %v5922_v59 }
 0x714   : > { %v1598_v42 = vpop.permute.xlu0 %1597  ;;  %v1588_v43 = vpop.permute.xlu1 %1587 }
 0x715   : > { %v1668_v33 = vpop.permute.xlu2 %1667  ;;  %3871 = vmatpush.msrb.mxu3 %v1540_v51  ;;  %v7038_v23 = vsel %vm1599_vm5, %v4748_v37, %v1598_v42  ;;  %v3076_v41 = vsel %vm1599_vm5, %v1598_v42, %v9165_v52  ;;  %v7044_v55 = vsel %vm1589_vm6, %v4743_v19, %v1588_v43  ;;  %1604 = vst.msk [vmem:[#allocation8 + $0x128] sm:$0xff] %vm1422_vm2, %v1598_v42  ;;  %v9171_v42 = vunpack.i.h.bf16 %v6050_v8 }
 0x716   : > { %3079 = vst [vmem:[#allocation8 + $0x920] sm:$0xff] %v3076_v41  ;;  %v3069_v51 = vsel %vm1589_vm6, %v1588_v43, %v9169_v4  ;;  %v7058_v16 = vsel %vm1669_vm8, %v4783_v15, %v1668_v33  ;;  %v4813_v8 = vunpack.i.l.bf16 %v6141_v5  ;;  %v4778_v52 = vunpack.i.l.bf16 %v6064_v24 }
 0x717   : > { %3872 = vmatpush.msrb.mxu3 %v1531_v6  ;;  %1594 = vst.msk [vmem:[#allocation8 + $0x118] sm:$0xff] %vm1422_vm2, %v1588_v43  ;;  %v9176_v41 = vunpack.i.h.bf16 %v6127_v58  ;;  %v4773_v4 = vunpack.i.l.bf16 %v5942_v9  ;;  %vm1719_vm5 = vcmask 801792   ;;  %vm1709_vm6 = vcmask 809984  }
 0x718   : > { %3072 = vst [vmem:[#allocation8 + $0x910] sm:$0xff] %v3069_v51 }
 0x719   : > { %3873 = vmatpush.msrb.mxu3 %v6927_v29  ;;  %v9170_v29 = vunpack.i.h.bf16 %v6115_v12  ;;  %1674 = vst.msk [vmem:[#allocation8 + $0x198] sm:$0xff] %vm1422_vm2, %v1668_v33 }
 0x71a   : > { %2112 = vrot.lane.b32.xlu0 %v6802_v48, %s9166_s27  ;;  %2100 = vrot.lane.b32.xlu1 %v6802_v48, %s9167_s29 }
 0x71b   : > { %2087 = vrot.lane.b32.xlu2 %v6802_v48, %s9168_s30  ;;  %3874 = vmatpush.msrb.mxu3 %v6965_v0  ;;  %v3125_v28 = vsel %vm1669_vm8, %v1668_v33, %v9170_v29  ;;  %v4798_v0 = vunpack.i.l.bf16 %v6127_v58  ;;  %v9175_v33 = vunpack.i.h.bf16 %v5934_v2  ;;  %v9179_v58 = vunpack.i.h.bf16 %v6064_v24 }
 0x71c   : > { %v1628_v6 = vpop.permute.xlu0 %1627  ;;  %v1618_v49 = vpop.permute.xlu1 %1617  ;;  %3128 = vst [vmem:[#allocation8 + $0x990] sm:$0xff] %v3125_v28  ;;  %v4793_v24 = vunpack.i.l.bf16 %v6080_v31  ;;  %vm1759_vm8 = vcmask 769024  }
 0x71d   : > { %v1698_v20 = vpop.permute.xlu2 %1697  ;;  %v7066_v59 = vsel %vm1629_vm11, %v4763_v60, %v1628_v6  ;;  %3875 = vmatpush.msrb.mxu3 %v6969_v11  ;;  %v3097_v43 = vsel %vm1629_vm11, %v1628_v6, %v9171_v42  ;;  %v7078_v12 = vsel %vm1619_vm12, %v4758_v1, %v1618_v49  ;;  %1634 = vst.msk [vmem:[#allocation8 + $0x158] sm:$0xff] %vm1422_vm2, %v1628_v6  ;;  %vm1789_vm11 = vcmask 744448  }
 0x71e   : > { %3100 = vst [vmem:[#allocation8 + $0x950] sm:$0xff] %v3097_v43  ;;  %v3090_v57 = vsel %vm1619_vm12, %v1618_v49, %v9175_v33  ;;  %v7090_v19 = vsel %vm1699_vm13, %v4798_v0, %v1698_v20  ;;  %v3146_v2 = vsel %vm1699_vm13, %v1698_v20, %v9176_v41  ;;  %v4803_v43 = vunpack.i.l.bf16 %v5964_v18 }
 0x71f   : > { %3876 = vmatpush.msrb.mxu3 %v6904_v32  ;;  %1624 = vst.msk [vmem:[#allocation8 + $0x148] sm:$0xff] %vm1422_vm2, %v1618_v49  ;;  %vm1749_vm12 = vcmask 777216   ;;  %vm1739_vm13 = vcmask 785408  }
 0x720   : > { %3093 = vst [vmem:[#allocation8 + $0x940] sm:$0xff] %v3090_v57 }
 0x721   : > { %3877 = vmatpush.msrb.mxu3 %v6941_v26  ;;  %1704 = vst.msk [vmem:[#allocation8 + $0x1c8] sm:$0xff] %vm1422_vm2, %v1698_v20  ;;  %v9181_v20 = vunpack.i.h.bf16 %v5942_v9  ;;  %v4788_v9 = vunpack.i.l.bf16 %v5952_v13 }
 0x722   : > { %2151 = vrot.lane.b32.xlu0 %v6802_v48, %s9172_s15  ;;  %2138 = vrot.lane.b32.xlu1 %v6802_v48, %s9173_s17  ;;  %3149 = vst [vmem:[#allocation8 + $0x9c0] sm:$0xff] %v3146_v2  ;;  %s9185_s17 = smov 58   ;;  %v9192_v2 = vunpack.i.h.bf16 %v6099_v21 }
 0x723   : > { %2125 = vrot.lane.b32.xlu2 %v6802_v48, %s9174_s18  ;;  %3878 = vmatpush.msrb.mxu3 %v6945_v46  ;;  %s9191_s18 = smov 55  }
 0x724   : > { %v1658_v11 = vpop.permute.xlu0 %1657  ;;  %v1648_v37 = vpop.permute.xlu1 %1647 }
 0x725   : > { %v1728_v53 = vpop.permute.xlu2 %1727  ;;  %v7101_v15 = vsel %vm1659_vm15, %v4778_v52, %v1658_v11  ;;  %v3118_v26 = vsel %vm1659_vm15, %v1658_v11, %v9179_v58  ;;  %3879 = vmatpush.msrb.mxu3 %v6892_v40  ;;  %v7115_v46 = vsel %vm1649_vm3, %v4773_v4, %v1648_v37  ;;  %1664 = vst.msk [vmem:[#allocation8 + $0x188] sm:$0xff] %vm1422_vm2, %v1658_v11  ;;  %v9182_v40 = vunpack.i.h.bf16 %v6141_v5 }
 0x726   : > { %v1730_v32 = vsel %vm1729_vm14, %v4813_v8, %v1728_v53  ;;  %3121 = vst [vmem:[#allocation8 + $0x980] sm:$0xff] %v3118_v26  ;;  %v3111_v60 = vsel %vm1649_vm3, %v1648_v37, %v9181_v20  ;;  %v9186_v5 = vunpack.i.h.bf16 %v6080_v31  ;;  %v9187_v31 = vunpack.i.h.bf16 %v5952_v13 }
 0x727   : > { %3888 = vmatpush.msrb.mxu1 %v1730_v32  ;;  %3880 = vmatpush.msrb.mxu3 %v6917_v47  ;;  %1654 = vst.msk [vmem:[#allocation8 + $0x178] sm:$0xff] %vm1422_vm2, %v1648_v37  ;;  %v3167_v29 = vsel %vm1729_vm14, %v1728_v53, %v9182_v40  ;;  %v4808_v47 = vunpack.i.l.bf16 %v6099_v21  ;;  %v4828_v37 = vunpack.i.l.bf16 %v6152_v34  ;;  %v9188_v32 = vunpack.i.h.bf16 %v6152_v34 }
 0x728   : > { %3114 = vst [vmem:[#allocation8 + $0x970] sm:$0xff] %v3111_v60  ;;  %v4843_v58 = vunpack.i.l.bf16 %v6168_v22  ;;  %v9193_v26 = vunpack.i.h.bf16 %v5964_v18  ;;  %v4823_v21 = vunpack.i.l.bf16 %v6113_v3  ;;  %vm1779_vm14 = vcmask 752640  }
 0x729   : > { %3881 = vmatpush.msrb.mxu3 %v6922_v27  ;;  %1734 = vst.msk [vmem:[#allocation8 + $0x1f8] sm:$0xff] %vm1422_vm2, %v1728_v53  ;;  %vm1769_vm15 = vcmask 760832   ;;  %vm1857_vm3 = vcmask 695296  }
 0x72a   : > { %2190 = vrot.lane.b32.xlu0 %v6802_v48, %s9177_s26  ;;  %2177 = vrot.lane.b32.xlu1 %v6802_v48, %s9178_s22  ;;  %3170 = vst [vmem:[#allocation8 + $0x9f0] sm:$0xff] %v3167_v29  ;;  %s9285_s22 = sld [smem:[#allocation110_spill]] }
 0x72b   : > { %2164 = vrot.lane.b32.xlu2 %v6802_v48, %s9180_s24  ;;  %3882 = vmatpush.msrb.mxu3 %v6880_v35  ;;  %v5291_v35 = vld [vmem:[#allocation7] sm:$0xff] }
 0x72c   : > { %v1688_v51 = vpop.permute.xlu0 %1687  ;;  %v1678_v6 = vpop.permute.xlu1 %1677 }
 0x72d   : > { %v1758_v49 = vpop.permute.xlu2 %1757  ;;  %v1690_v28 = vsel %vm1689_vm7, %v4793_v24, %v1688_v51  ;;  %v3139_v27 = vsel %vm1689_vm7, %v1688_v51, %v9186_v5  ;;  %v1680_v0 = vsel %vm1679_vm4, %v4788_v9, %v1678_v6  ;;  %1694 = vst.msk [vmem:[#allocation8 + $0x1b8] sm:$0xff] %vm1422_vm2, %v1688_v51  ;;  %3883 = vmatpush.msrb.mxu3 %v5291_v35  ;;  %v4818_v24 = vunpack.i.l.bf16 %v5980_v30 }
 0x72e   : > { %3142 = vst [vmem:[#allocation8 + $0x9b0] sm:$0xff] %v3139_v27  ;;  %v3132_v33 = vsel %vm1679_vm4, %v1678_v6, %v9187_v31  ;;  %v7150_v53 = vsel %vm1759_vm8, %v4828_v37, %v1758_v49  ;;  %v3188_v52 = vsel %vm1759_vm8, %v1758_v49, %v9188_v32  ;;  %v9199_v9 = vunpack.i.h.bf16 %v5980_v30 }
 0x72f   : > { %1684 = vst.msk [vmem:[#allocation8 + $0x1a8] sm:$0xff] %vm1422_vm2, %v1678_v6  ;;  %v9196_v6 = vunpack.i.h.bf16 %v6168_v22  ;;  %v9198_v22 = vunpack.i.h.bf16 %v6113_v3  ;;  %v4838_v3 = vunpack.i.l.bf16 %v6125_v10  ;;  %v9202_v30 = vunpack.i.h.bf16 %v6182_v44 }
 0x730   : > { %3135 = vst [vmem:[#allocation8 + $0x9a0] sm:$0xff] %v3132_v33  ;;  %v9204_v37 = vunpack.i.h.bf16 %v5999_v39  ;;  %vm1809_vm7 = vcmask 728064   ;;  %vm1799_vm4 = vcmask 736256   ;;  %v9208_v32 = vunpack.i.h.bf16 %v6139_v61 }
 0x731   : > { %1764 = vst.msk [vmem:[#allocation8 + $0x228] sm:$0xff] %vm1422_vm2, %v1758_v49  ;;  %vm8855_vm8 = vcmask 711680  }
 0x732   : > { %2229 = vrot.lane.b32.xlu0 %v6802_v48, %s9183_s23  ;;  %2216 = vrot.lane.b32.xlu1 %v6802_v48, %s9184_s8  ;;  %3191 = vst [vmem:[#allocation8 + $0xa20] sm:$0xff] %v3188_v52 }
 0x733   : > { %2203 = vrot.lane.b32.xlu2 %v6802_v48, %s9185_s17 }
 0x734   : > { %v1718_v1 = vpop.permute.xlu0 %1717  ;;  %v1708_v42 = vpop.permute.xlu1 %1707 }
 0x735   : > { %v1720_v8 = vsel %vm1719_vm5, %v4808_v47, %v1718_v1  ;;  %v1788_v11 = vpop.permute.xlu2 %1787  ;;  %v1710_v57 = vsel %vm1709_vm6, %v4803_v43, %v1708_v42  ;;  %v3160_v34 = vsel %vm1719_vm5, %v1718_v1, %v9192_v2  ;;  %1724 = vst.msk [vmem:[#allocation8 + $0x1e8] sm:$0xff] %vm1422_vm2, %v1718_v1  ;;  %v4833_v43 = vunpack.i.l.bf16 %v5999_v39 }
 0x736   : > { %3889 = vmatpush.msrb.mxu1 %v1720_v8  ;;  %3163 = vst [vmem:[#allocation8 + $0x9e0] sm:$0xff] %v3160_v34  ;;  %v7171_v51 = vsel %vm1789_vm11, %v4843_v58, %v1788_v11  ;;  %v3209_v18 = vsel %vm1789_vm11, %v1788_v11, %v9196_v6  ;;  %v4873_v8 = vunpack.i.l.bf16 %v6210_v7  ;;  %vm1896_vm5 = vcmask 670720  }
 0x737   : > { %1714 = vst.msk [vmem:[#allocation8 + $0x1d8] sm:$0xff] %vm1422_vm2, %v1708_v42  ;;  %v4868_v58 = vunpack.i.l.bf16 %v6180_v63  ;;  %vm8843_vm11 = vcmask 646144  }
 0x738   : > { %3890 = vmatpush.msrb.mxu1 %v1710_v57  ;;  %1794 = vst.msk [vmem:[#allocation8 + $0x258] sm:$0xff] %vm1422_vm2, %v1788_v11  ;;  %v8873_v11 = vunpack.i.h.bf16 %v6210_v7 }
 0x739   : > { %3212 = vst [vmem:[#allocation8 + $0xa50] sm:$0xff] %v3209_v18  ;;  %v8867_v18 = vunpack.i.h.bf16 %v6056_v14 }
 0x73a   : > { %2268 = vrot.lane.b32.xlu0 %v6802_v48, %s9189_s14  ;;  %2255 = vrot.lane.b32.xlu1 %v6802_v48, %s9190_s28  ;;  %s9194_s28 = smov 50   ;;  %s9195_s14 = smov 51  }
 0x73b   : > { %2242 = vrot.lane.b32.xlu2 %v6802_v48, %s9191_s18  ;;  %3891 = vmatpush.msrb.mxu1 %v7090_v19  ;;  %v3153_v19 = vsel %vm1709_vm6, %v1708_v42, %v9193_v26  ;;  %s9197_s18 = smov 52   ;;  %vm8884_vm6 = vcmask 703488  }
 0x73c   : > { %v1748_v13 = vpop.permute.xlu0 %1747  ;;  %v1738_v41 = vpop.permute.xlu1 %1737  ;;  %3156 = vst [vmem:[#allocation8 + $0x9d0] sm:$0xff] %v3153_v19  ;;  %v8870_v19 = vunpack.i.h.bf16 %v6180_v63 }
 0x73d   : > { %v1818_v4 = vpop.permute.xlu2 %1817  ;;  %3892 = vmatpush.msrb.mxu1 %v1690_v28  ;;  %v7185_v49 = vsel %vm1749_vm12, %v4823_v21, %v1748_v13  ;;  %v3181_v29 = vsel %vm1749_vm12, %v1748_v13, %v9198_v22  ;;  %v7193_v28 = vsel %vm1739_vm13, %v4818_v24, %v1738_v41  ;;  %1754 = vst.msk [vmem:[#allocation8 + $0x218] sm:$0xff] %vm1422_vm2, %v1748_v13  ;;  %v4903_v24 = vunpack.i.l.bf16 %v6230_v50 }
 0x73e   : > { %3184 = vst [vmem:[#allocation8 + $0xa10] sm:$0xff] %v3181_v29  ;;  %v3174_v47 = vsel %vm1739_vm13, %v1738_v41, %v9199_v9  ;;  %v8850_v22 = vunpack.i.h.bf16 %v6230_v50  ;;  %vm1883_vm12 = vcmask 678912   ;;  %vm1870_vm13 = vcmask 687104  }
 0x73f   : > { %3893 = vmatpush.msrb.mxu1 %v1680_v0  ;;  %1744 = vst.msk [vmem:[#allocation8 + $0x208] sm:$0xff] %vm1422_vm2, %v1738_v41  ;;  %v4888_v41 = vunpack.i.l.bf16 %v6220_v25 }
 0x740   : > { %3177 = vst [vmem:[#allocation8 + $0xa00] sm:$0xff] %v3174_v47 }
 0x741   : > { %3894 = vmatpush.msrb.mxu1 %v7058_v16  ;;  %v4858_v16 = vunpack.i.l.bf16 %v6182_v44  ;;  %1823 = vst.msk [vmem:[#allocation8 + $0x288] sm:$0xff] %vm1422_vm2, %v1818_v4 }
 0x742   : > { %2307 = vrot.lane.b32.xlu0 %v6802_v48, %s9194_s28  ;;  %2294 = vrot.lane.b32.xlu1 %v6802_v48, %s9195_s14  ;;  %s9200_s28 = smov 48   ;;  %s9201_s14 = smov 49  }
 0x743   : > { %2281 = vrot.lane.b32.xlu2 %v6802_v48, %s9197_s18  ;;  %3895 = vmatpush.msrb.mxu1 %v7101_v15  ;;  %v7201_v5 = vsel %vm1422_vm2, %v4858_v16, %v1818_v4  ;;  %v3230_v15 = vsel %vm1422_vm2, %v1818_v4, %v9202_v30  ;;  %s9206_s18 = smov 45   ;;  %v4883_v30 = vunpack.i.l.bf16 %v6194_v56 }
 0x744   : > { %v1778_v20 = vpop.permute.xlu0 %1777  ;;  %v1768_v60 = vpop.permute.xlu1 %1767  ;;  %3233 = vst [vmem:[#allocation8 + $0xa80] sm:$0xff] %v3230_v15 }
 0x745   : > { %v1854_v40 = vpop.permute.xlu2 %1853  ;;  %3896 = vmatpush.msrb.mxu1 %v7115_v46  ;;  %v7216_v1 = vsel %vm1779_vm14, %v4838_v3, %v1778_v20  ;;  %v7224_v0 = vsel %vm1769_vm15, %v4833_v43, %v1768_v60  ;;  %1784 = vst.msk [vmem:[#allocation8 + $0x248] sm:$0xff] %vm1422_vm2, %v1778_v20 }
 0x746   : > { %1774 = vst.msk [vmem:[#allocation8 + $0x238] sm:$0xff] %vm1422_vm2, %v1768_v60  ;;  %v1859_v39 = vsel %vm1857_vm3, %v1854_v40, %v8873_v11  ;;  %v9262_v11 = vld [vmem:[#allocation41_spill] sm:$0xff] }
 0x747   : > { %3897 = vmatpush.msrb.mxu1 %v7031_v62  ;;  %v9203_v62 = vunpack.i.h.bf16 %v6125_v10  ;;  %v7237_v10 = vsel %vm1857_vm3, %v4873_v8, %v1854_v40  ;;  %1863 = vst.msk [vmem:[#allocation8 + $0x2b8] sm:$0xff] %vm1422_vm2, %v1859_v39 }
 0x748   : > { %3252 = vst [vmem:[#allocation8 + $0xab0] sm:$0xff] %v1859_v39 }
 0x749   : > { %3898 = vmatpush.msrb.mxu1 %v7066_v59  ;;  %v3202_v44 = vsel %vm1779_vm14, %v1778_v20, %v9203_v62  ;;  %v3195_v59 = vsel %vm1769_vm15, %v1768_v60, %v9204_v37  ;;  %v4893_v60 = vunpack.i.l.bf16 %v6091_v36  ;;  %vm8846_vm14 = vcmask 621568   ;;  %v9220_v37 = vld [vmem:[#allocation33_spill] sm:$0xff] }
 0x74a   : > { %2346 = vrot.lane.b32.xlu0 %v6802_v48, %s9113_s2  ;;  %2333 = vrot.lane.b32.xlu1 %v6802_v48, %s9200_s28  ;;  %3205 = vst [vmem:[#allocation8 + $0xa40] sm:$0xff] %v3202_v44  ;;  %s9205_s2 = smov 44   ;;  %s9207_s28 = smov 46   ;;  %vm8840_vm15 = vcmask 654336  }
 0x74b   : > { %2320 = vrot.lane.b32.xlu2 %v6802_v48, %s9201_s14  ;;  %3899 = vmatpush.msrb.mxu1 %v7078_v12  ;;  %v4853_v12 = vunpack.i.l.bf16 %v6139_v61  ;;  %3198 = vst [vmem:[#allocation8 + $0xa30] sm:$0xff] %v3195_v59  ;;  %s9209_s14 = smov 41   ;;  %v9211_v61 = vunpack.i.h.bf16 %v6017_v45  ;;  %v4918_v59 = vunpack.i.l.bf16 %v9220_v37 }
 0x74c   : > { %v1808_v46 = vpop.permute.xlu0 %1807  ;;  %v1798_v27 = vpop.permute.xlu1 %1797 }
 0x74d   : > { %v1893_v42 = vpop.permute.xlu2 %1892  ;;  %3900 = vmatpush.msrb.mxu1 %v7003_v54  ;;  %v7248_v57 = vsel %vm1809_vm7, %v4853_v12, %v1808_v46  ;;  %v4848_v54 = vunpack.i.l.bf16 %v6017_v45  ;;  %v3223_v52 = vsel %vm1809_vm7, %v1808_v46, %v9208_v32  ;;  %1814 = vst.msk [vmem:[#allocation8 + $0x278] sm:$0xff] %vm1422_vm2, %v1808_v46  ;;  %v3216_v2 = vsel %vm1799_vm4, %v1798_v27, %v9211_v61 }
 0x74e   : > { %3226 = vst [vmem:[#allocation8 + $0xa70] sm:$0xff] %v3223_v52  ;;  %v8888_v46 = vunpack.i.h.bf16 %v6194_v56  ;;  %vm8851_vm7 = vcmask 596992  }
 0x74f   : > { %3901 = vmatpush.msrb.mxu1 %v7038_v23  ;;  %v7257_v13 = vsel %vm1799_vm4, %v4848_v54, %v1798_v27  ;;  %v8881_v23 = vunpack.i.h.bf16 %v6220_v25  ;;  %1804 = vst.msk [vmem:[#allocation8 + $0x268] sm:$0xff] %vm1422_vm2, %v1798_v27  ;;  %vm8841_vm4 = vcmask 629760  }
 0x750   : > { %3219 = vst [vmem:[#allocation8 + $0xa60] sm:$0xff] %v3216_v2 }
 0x751   : > { %3902 = vmatpush.msrb.mxu1 %v7044_v55  ;;  %v1897_v55 = vsel %vm1896_vm5, %v4888_v41, %v1893_v42  ;;  %v1898_v26 = vsel %vm1896_vm5, %v1893_v42, %v8881_v23  ;;  %v9216_v42 = vld [vmem:[#allocation22_spill] sm:$0xff]  ;;  %v9267_v23 = vld [vmem:[#allocation43_spill] sm:$0xff] }
 0x752   : > { %2385 = vrot.lane.b32.xlu0 %v6802_v48, %s9205_s2  ;;  %2372 = vrot.lane.b32.xlu1 %v6802_v48, %s9206_s18  ;;  %s9210_s2 = smov 42   ;;  %s9212_s18 = smov 43   ;;  %1902 = vst.msk [vmem:[#allocation8 + $0x2e8] sm:$0xff] %vm1422_vm2, %v1898_v26  ;;  %v4878_v43 = vunpack.i.l.bf16 %v9216_v42  ;;  %v8882_v44 = vunpack.i.h.bf16 %v9216_v42 }
 0x753   : > { %2359 = vrot.lane.b32.xlu2 %v6802_v48, %s9207_s28  ;;  %3903 = vmatpush.msrb.mxu1 %v6975_v17  ;;  %v4863_v17 = vunpack.i.l.bf16 %v6056_v14  ;;  %3270 = vst [vmem:[#allocation8 + $0xae0] sm:$0xff] %v1898_v26  ;;  %s9213_s28 = smov 38   ;;  %v9226_v26 = vunpack.i.h.bf16 %v6091_v36 }
 0x754   : > { %v1841_v35 = vpop.permute.xlu0 %1840  ;;  %v1828_v31 = vpop.permute.xlu1 %1827 }
 0x755   : > { %v1932_v33 = vpop.permute.xlu2 %1931  ;;  %v7279_v21 = vsel %vm8884_vm6, %v4868_v58, %v1841_v35  ;;  %v1846_v6 = vsel %vm8884_vm6, %v1841_v35, %v8870_v19  ;;  %v7288_v20 = vsel %vm8855_vm8, %v4863_v17, %v1828_v31  ;;  %v1833_v40 = vsel %vm8855_vm8, %v1828_v31, %v8867_v18 }
 0x756   : > { %1850 = vst.msk [vmem:[#allocation8 + $0x2a8] sm:$0xff] %vm1422_vm2, %v1846_v6  ;;  %v7304_v9 = vsel %vm8843_vm11, %v4903_v24, %v1932_v33  ;;  %v1937_v15 = vsel %vm8843_vm11, %v1932_v33, %v8850_v22  ;;  %v8856_v31 = vunpack.i.h.bf16 %v9220_v37  ;;  %vm8886_vm11 = vcmask 547840  }
 0x757   : > { %3246 = vst [vmem:[#allocation8 + $0xaa0] sm:$0xff] %v1846_v6  ;;  %vm8864_vm8 = vcmask 564224   ;;  %vm2311_vm6 = vcmask 408576  }
 0x758   : > { %1837 = vst.msk [vmem:[#allocation8 + $0x298] sm:$0xff] %vm1422_vm2, %v1833_v40 }
 0x759   : > { %3240 = vst [vmem:[#allocation8 + $0xa90] sm:$0xff] %v1833_v40 }
 0x75a   : > { %2424 = vrot.lane.b32.xlu0 %v6802_v48, %s9209_s14  ;;  %2411 = vrot.lane.b32.xlu1 %v6802_v48, %s9210_s2  ;;  %s9214_s14 = smov 39   ;;  %s9215_s2 = smov 40   ;;  %1941 = vst.msk [vmem:[#allocation8 + $0x318] sm:$0xff] %vm1422_vm2, %v1937_v15 }
 0x75b   : > { %2398 = vrot.lane.b32.xlu2 %v6802_v48, %s9212_s18  ;;  %3288 = vst [vmem:[#allocation8 + $0xb10] sm:$0xff] %v1937_v15  ;;  %s9217_s18 = smov 35  }
 0x75c   : > { %v1880_v34 = vpop.permute.xlu0 %1879  ;;  %v1867_v4 = vpop.permute.xlu1 %1866 }
 0x75d   : > { %v1971_v45 = vpop.permute.xlu2 %1970  ;;  %v1884_v27 = vsel %vm1883_vm12, %v4883_v30, %v1880_v34  ;;  %v1885_v62 = vsel %vm1883_vm12, %v1880_v34, %v8888_v46  ;;  %v1871_v8 = vsel %vm1870_vm13, %v4878_v43, %v1867_v4  ;;  %v1872_v12 = vsel %vm1870_vm13, %v1867_v4, %v8882_v44  ;;  %v9225_v4 = vld [vmem:[#allocation35_spill] sm:$0xff]  ;;  %v9232_v43 = vld [vmem:[#allocation37_spill] sm:$0xff]  ;;  %v9273_v46 = vld [vmem:[#allocation46_spill] sm:$0xff] }
 0x75e   : > { %1889 = vst.msk [vmem:[#allocation8 + $0x2d8] sm:$0xff] %vm1422_vm2, %v1885_v62  ;;  %v7336_v54 = vsel %vm8846_vm14, %v4918_v59, %v1971_v45  ;;  %v1976_v52 = vsel %vm8846_vm14, %v1971_v45, %v8856_v31  ;;  %v4933_v58 = vunpack.i.l.bf16 %v9225_v4  ;;  %v8861_v6 = vunpack.i.h.bf16 %v9225_v4 }
 0x75f   : > { %3264 = vst [vmem:[#allocation8 + $0xad0] sm:$0xff] %v1885_v62  ;;  %v4948_v62 = vunpack.i.l.bf16 %v9232_v43  ;;  %vm2026_vm14 = vcmask 588800  }
 0x760   : > { %1876 = vst.msk [vmem:[#allocation8 + $0x2c8] sm:$0xff] %vm1422_vm2, %v1872_v12 }
 0x761   : > { %3258 = vst [vmem:[#allocation8 + $0xac0] sm:$0xff] %v1872_v12  ;;  %v9233_v12 = vld [vmem:[#allocation30_spill] sm:$0xff] }
 0x762   : > { %2463 = vrot.lane.b32.xlu0 %v6802_v48, %s9213_s28  ;;  %2450 = vrot.lane.b32.xlu1 %v6802_v48, %s9214_s14  ;;  %s9218_s28 = smov 36   ;;  %s9219_s14 = smov 37   ;;  %1980 = vst.msk [vmem:[#allocation8 + $0x348] sm:$0xff] %vm1422_vm2, %v1976_v52 }
 0x763   : > { %2437 = vrot.lane.b32.xlu2 %v6802_v48, %s9215_s2  ;;  %s9222_s2 = smov 32   ;;  %3306 = vst [vmem:[#allocation8 + $0xb40] sm:$0xff] %v1976_v52 }
 0x764   : > { %v1919_v29 = vpop.permute.xlu0 %1918  ;;  %v1906_v16 = vpop.permute.xlu1 %1905 }
 0x765   : > { %v1910_v47 = vsel %vm1909_vm10, %v4893_v60, %v1906_v16  ;;  %v2010_v3 = vpop.permute.xlu2 %2009  ;;  %v1911_v45 = vsel %vm1909_vm10, %v1906_v16, %v9226_v26  ;;  %v9227_v60 = vld [vmem:[#allocation29_spill] sm:$0xff]  ;;  %vm8842_vm10 = vcmask 637952  }
 0x766   : > { %3908 = vmatpush.msrb.mxu2 %v1910_v47  ;;  %v4913_v24 = vunpack.i.l.bf16 %v9227_v60  ;;  %1915 = vst.msk [vmem:[#allocation8 + $0x2f8] sm:$0xff] %vm1422_vm2, %v1911_v45  ;;  %v2015_v36 = vsel %vm8851_vm7, %v2010_v3, %v8861_v6  ;;  %v8848_v40 = vunpack.i.h.bf16 %v9227_v60 }
 0x767   : > { %3276 = vst [vmem:[#allocation8 + $0xaf0] sm:$0xff] %v1911_v45 }
 0x768   : > { %3909 = vmatpush.msrb.mxu2 %v1897_v55  ;;  %v7352_v55 = vld [vmem:[#allocation8 + $0x800] sm:$0xff]  ;;  %2019 = vst.msk [vmem:[#allocation8 + $0x378] sm:$0xff] %vm1422_vm2, %v2015_v36 }
 0x769   : > { %3324 = vst [vmem:[#allocation8 + $0xb70] sm:$0xff] %v2015_v36 }
 0x76a   : > { %2502 = vrot.lane.b32.xlu0 %v6802_v48, %s9217_s18  ;;  %2489 = vrot.lane.b32.xlu1 %v6802_v48, %s9218_s28  ;;  %s9223_s18 = smov 33   ;;  %s9224_s28 = smov 34  }
 0x76b   : > { %2476 = vrot.lane.b32.xlu2 %v6802_v48, %s9219_s14  ;;  %3910 = vmatpush.msrb.mxu2 %v1884_v27  ;;  %v9221_v48 = vld [vmem:[#allocation28_spill] sm:$0xff]  ;;  %s9228_s14 = smov 29  }
 0x76c   : > { %v1958_v39 = vpop.permute.xlu0 %1957  ;;  %v1945_v35 = vpop.permute.xlu1 %1944  ;;  %v4898_v32 = vunpack.i.l.bf16 %v9221_v48  ;;  %v8847_v41 = vunpack.i.h.bf16 %v9221_v48  ;;  %v5043_v48 = vunpack.i.l.bf16 %v9273_v46 }
 0x76d   : > { %v7333_v33 = vpop.permute.xlu2 %2048  ;;  %3911 = vmatpush.msrb.mxu2 %v1871_v8  ;;  %v8869_v8 = vunpack.i.h.bf16 %v9232_v43 }
 0x76e   : > { %v7346_v61 = vsel %vm8840_vm15, %v4898_v32, %v1919_v29  ;;  %v1924_v2 = vsel %vm8840_vm15, %v1919_v29, %v8847_v41  ;;  %v7383_v29 = vsel %vm8841_vm4, %v4913_v24, %v1958_v39  ;;  %vm8872_vm15 = vcmask 572416   ;;  %v9237_v32 = vld [vmem:[#allocation24_spill] sm:$0xff]  ;;  %v9238_v24 = vld [vmem:[#allocation38_spill] sm:$0xff]  ;;  %v9245_v41 = vld [vmem:[#allocation27_spill] sm:$0xff] }
 0x76f   : > { %3912 = vmatpush.msrb.mxu2 %v7237_v10  ;;  %1928 = vst.msk [vmem:[#allocation8 + $0x308] sm:$0xff] %vm1422_vm2, %v1924_v2  ;;  %v7416_v59 = vsel %vm8872_vm15, %v4948_v62, %v7333_v33  ;;  %v8853_v26 = vunpack.i.h.bf16 %v9237_v32  ;;  %v4963_v36 = vunpack.i.l.bf16 %v9238_v24  ;;  %v9239_v62 = vld [vmem:[#allocation32_spill] sm:$0xff] }
 0x770   : > { %3282 = vst [vmem:[#allocation8 + $0xb00] sm:$0xff] %v1924_v2 }
 0x771   : > { %3913 = vmatpush.msrb.mxu2 %v7279_v21  ;;  %v7373_v21 = vsel %vm8851_vm7, %v4933_v58, %v2010_v3  ;;  %vm8859_vm7 = vcmask 523264  }
 0x772   : > { %2541 = vrot.lane.b32.xlu0 %v7352_v55, %s9222_s2  ;;  %2528 = vrot.lane.b32.xlu1 %v7352_v55, %s9223_s18  ;;  %s9229_s2 = smov 30   ;;  %s9231_s18 = smov 31  }
 0x773   : > { %2515 = vrot.lane.b32.xlu2 %v7352_v55, %s9224_s28  ;;  %3914 = vmatpush.msrb.mxu2 %v7288_v20  ;;  %v9230_v20 = vld [vmem:[#allocation23_spill] sm:$0xff]  ;;  %s9234_s28 = smov 26  }
 0x774   : > { %v1997_v10 = vpop.permute.xlu0 %1996  ;;  %v7361_v34 = vpop.permute.xlu1 %1983  ;;  %v4908_v16 = vunpack.i.l.bf16 %v9230_v20  ;;  %v8849_v47 = vunpack.i.h.bf16 %v9230_v20 }
 0x775   : > { %v7368_v17 = vpop.permute.xlu2 %2087  ;;  %3915 = vmatpush.msrb.mxu2 %v7201_v5  ;;  %v1963_v5 = vsel %vm8841_vm4, %v1958_v39, %v8848_v40  ;;  %vm8844_vm4 = vcmask 605184   ;;  %v4928_v39 = vunpack.i.l.bf16 %v9233_v12  ;;  %v4968_v40 = vunpack.i.l.bf16 %v9245_v41 }
 0x776   : > { %v7403_v15 = vsel %vm8842_vm10, %v4908_v16, %v1945_v35  ;;  %1967 = vst.msk [vmem:[#allocation8 + $0x338] sm:$0xff] %vm1422_vm2, %v1963_v5  ;;  %v8871_v16 = vunpack.i.h.bf16 %v9238_v24 }
 0x777   : > { %3916 = vmatpush.msrb.mxu2 %v7248_v57  ;;  %v1950_v57 = vsel %vm8842_vm10, %v1945_v35, %v8849_v47  ;;  %3300 = vst [vmem:[#allocation8 + $0xb30] sm:$0xff] %v1963_v5  ;;  %v2054_v35 = vsel %vm8872_vm15, %v7333_v33, %v8869_v8  ;;  %vm8845_vm10 = vcmask 613376   ;;  %v4923_v33 = vunpack.i.l.bf16 %v9237_v32 }
 0x778   : > { %1954 = vst.msk [vmem:[#allocation8 + $0x328] sm:$0xff] %vm1422_vm2, %v1950_v57  ;;  %v2092_v5 = vsel %vm8886_vm11, %v4963_v36, %v7368_v17  ;;  %vm8880_vm15 = vcmask 515072  }
 0x779   : > { %3917 = vmatpush.msrb.mxu2 %v7257_v13  ;;  %v8852_v13 = vunpack.i.h.bf16 %v9233_v12  ;;  %3294 = vst [vmem:[#allocation8 + $0xb20] sm:$0xff] %v1950_v57  ;;  %v2093_v57 = vsel %vm8886_vm11, %v7368_v17, %v8871_v16  ;;  %vm2298_vm11 = vcmask 416768   ;;  %v3706_v12 = vld [vmem:[#allocation8 + $0x8a0] sm:$0xff] }
 0x77a   : > { %2579 = vrot.lane.b32.xlu0 %v7352_v55, %s9228_s14  ;;  %2566 = vrot.lane.b32.xlu1 %v7352_v55, %s9229_s2  ;;  %s9235_s14 = smov 27   ;;  %s9236_s2 = smov 28   ;;  %2058 = vst.msk [vmem:[#allocation8 + $0x3a8] sm:$0xff] %vm1422_vm2, %v2054_v35 }
 0x77b   : > { %2553 = vrot.lane.b32.xlu2 %v7352_v55, %s9231_s18  ;;  %3918 = vmatpush.msrb.mxu2 %v7171_v51  ;;  %v7431_v51 = vsel %vm8844_vm4, %v4928_v39, %v1997_v10  ;;  %v2002_v52 = vsel %vm8844_vm4, %v1997_v10, %v8852_v13  ;;  %3342 = vst [vmem:[#allocation8 + $0xba0] sm:$0xff] %v2054_v35  ;;  %vm8854_vm4 = vcmask 580608   ;;  %s9240_s18 = smov 23  }
 0x77c   : > { %v7398_v3 = vpop.permute.xlu0 %2035  ;;  %v7400_v30 = vpop.permute.xlu1 %2022  ;;  %2006 = vst.msk [vmem:[#allocation8 + $0x368] sm:$0xff] %vm1422_vm2, %v2002_v52  ;;  %v1989_v10 = vsel %vm8845_vm10, %v7361_v34, %v8853_v26  ;;  %v9246_v26 = vld [vmem:[#allocation39_spill] sm:$0xff] }
 0x77d   : > { %v7405_v27 = vpop.permute.xlu2 %2125  ;;  %3919 = vmatpush.msrb.mxu2 %v7216_v1  ;;  %v7450_v1 = vsel %vm8845_vm10, %v4923_v33, %v7361_v34  ;;  %3318 = vst [vmem:[#allocation8 + $0xb60] sm:$0xff] %v2002_v52  ;;  %vm2116_vm10 = vcmask 531456   ;;  %v9242_v34 = vld [vmem:[#allocation36_spill] sm:$0xff]  ;;  %v9244_v52 = vld [vmem:[#allocation25_spill] sm:$0xff] }
 0x77e   : > { %1993 = vst.msk [vmem:[#allocation8 + $0x358] sm:$0xff] %vm1422_vm2, %v1989_v10  ;;  %v4973_v39 = vunpack.i.l.bf16 %v9242_v34  ;;  %v4938_v36 = vunpack.i.l.bf16 %v9244_v52  ;;  %v8857_v47 = vunpack.i.h.bf16 %v9244_v52 }
 0x77f   : > { %3920 = vmatpush.msrb.mxu2 %v7224_v0  ;;  %v4943_v0 = vunpack.i.l.bf16 %v9239_v62  ;;  %3312 = vst [vmem:[#allocation8 + $0xb50] sm:$0xff] %v1989_v10 }
 0x780   : > { %2097 = vst.msk [vmem:[#allocation8 + $0x3d8] sm:$0xff] %vm1422_vm2, %v2093_v57  ;;  %v2027_v22 = vsel %vm2026_vm14, %v4938_v36, %v7400_v30 }
 0x781   : > { %3921 = vmatpush.msrb.mxu2 %v7150_v53  ;;  %v8858_v53 = vunpack.i.h.bf16 %v9239_v62  ;;  %v7480_v17 = vsel %vm8854_vm4, %v4943_v0, %v7398_v3  ;;  %3360 = vst [vmem:[#allocation8 + $0xbd0] sm:$0xff] %v2093_v57 }
 0x782   : > { %2618 = vrot.lane.b32.xlu0 %v7352_v55, %s9234_s28  ;;  %2605 = vrot.lane.b32.xlu1 %v7352_v55, %s9235_s14  ;;  %s9241_s28 = smov 24   ;;  %s9243_s14 = smov 25  }
 0x783   : > { %2592 = vrot.lane.b32.xlu2 %v7352_v55, %s9236_s2  ;;  %3922 = vmatpush.msrb.mxu2 %v7185_v49  ;;  %v2041_v49 = vsel %vm8854_vm4, %v7398_v3, %v8858_v53  ;;  %v4978_v3 = vunpack.i.l.bf16 %v9246_v26  ;;  %vm8865_vm4 = vcmask 556032   ;;  %s9247_s2 = smov 20  }
 0x784   : > { %v7441_v2 = vpop.permute.xlu0 %2074  ;;  %v7443_v58 = vpop.permute.xlu1 %2061  ;;  %2045 = vst.msk [vmem:[#allocation8 + $0x398] sm:$0xff] %vm1422_vm2, %v2041_v49 }
 0x785   : > { %v7446_v45 = vpop.permute.xlu2 %2164  ;;  %3923 = vmatpush.msrb.mxu2 %v7193_v28  ;;  %v8860_v28 = vunpack.i.h.bf16 %v9246_v26  ;;  %3336 = vst [vmem:[#allocation8 + $0xb90] sm:$0xff] %v2041_v49  ;;  %v7512_v57 = vsel %vm8859_vm7, %v4978_v3, %v7405_v27  ;;  %v9251_v3 = vld [vmem:[#allocation26_spill] sm:$0xff]  ;;  %v9274_v26 = vld [vmem:[#allocation76_spill] sm:$0xff] }
 0x786   : > { %v4953_v31 = vunpack.i.l.bf16 %v9251_v3 }
 0x78a   : > { %2656 = vrot.lane.b32.xlu0 %v7352_v55, %s9240_s18  ;;  %2644 = vrot.lane.b32.xlu1 %v7352_v55, %s9241_s28  ;;  %s9248_s18 = smov 21   ;;  %s9250_s28 = smov 22  }
 0x78b   : > { %2631 = vrot.lane.b32.xlu2 %v7352_v55, %s9243_s14  ;;  %s9253_s14 = smov 17  }
 0x78c   : > { %v7482_v35 = vpop.permute.xlu0 %2112  ;;  %v7484_v33 = vpop.permute.xlu1 %2100 }
 0x78d   : > { %v2117_v10 = vsel %vm2116_vm10, %v4973_v39, %v7482_v35  ;;  %v7495_v0 = vpop.permute.xlu2 %2203  ;;  %v2104_v13 = vsel %vm331_vm0, %v4968_v40, %v7484_v33  ;;  %v2028_v39 = vsel %vm2026_vm14, %v7400_v30, %v8857_v47  ;;  %v9249_v40 = vld [vmem:[#allocation34_spill] sm:$0xff]  ;;  %v2131_v30 = vsel %vm8859_vm7, %v7405_v27, %v8860_v28 }
 0x78e   : > { %3928 = vmatpush.msrb.mxu0 %v2117_v10  ;;  %v4958_v36 = vunpack.i.l.bf16 %v9249_v40  ;;  %2032 = vst.msk [vmem:[#allocation8 + $0x388] sm:$0xff] %vm1422_vm2, %v2028_v39  ;;  %vm8862_vm7 = vcmask 498688   ;;  %v9252_v28 = vld [vmem:[#allocation42_spill] sm:$0xff] }
 0x78f   : > { %3330 = vst [vmem:[#allocation8 + $0xb80] sm:$0xff] %v2028_v39  ;;  %v2066_v39 = vsel %vm8864_vm8, %v4953_v31, %v7443_v58 }
 0x790   : > { %3929 = vmatpush.msrb.mxu0 %v2104_v13  ;;  %v8868_v13 = vunpack.i.h.bf16 %v9249_v40  ;;  %v2079_v47 = vsel %vm8865_vm4, %v4958_v36, %v7441_v2  ;;  %2135 = vst.msk [vmem:[#allocation8 + $0x408] sm:$0xff] %vm1422_vm2, %v2131_v30  ;;  %v4993_v36 = vunpack.i.l.bf16 %v9252_v28 }
 0x791   : > { %3378 = vst [vmem:[#allocation8 + $0xc00] sm:$0xff] %v2131_v30 }
 0x792   : > { %2695 = vrot.lane.b32.xlu0 %v7352_v55, %s9247_s2  ;;  %2682 = vrot.lane.b32.xlu1 %v7352_v55, %s9248_s18  ;;  %v2080_v27 = vsel %vm8865_vm4, %v7441_v2, %v8868_v13  ;;  %v8863_v2 = vunpack.i.h.bf16 %v9252_v28  ;;  %s9254_s2 = smov 18   ;;  %v7557_v31 = vsel %vm8862_vm7, %v4993_v36, %v7446_v45  ;;  %s9255_s18 = smov 19   ;;  %v9256_v36 = vld [vmem:[#allocation53_spill] sm:$0xff]  ;;  %vm8876_vm4 = vcmask 506880   ;;  %v9261_v13 = vld [vmem:[#allocation40_spill] sm:$0xff] }
 0x793   : > { %2669 = vrot.lane.b32.xlu2 %v7352_v55, %s9250_s28  ;;  %3930 = vmatpush.msrb.mxu0 %v2092_v5  ;;  %v8866_v5 = vunpack.i.h.bf16 %v9251_v3  ;;  %2084 = vst.msk [vmem:[#allocation8 + $0x3c8] sm:$0xff] %vm1422_vm2, %v2080_v27  ;;  %s9257_s28 = smov 14   ;;  %v4988_v8 = vunpack.i.l.bf16 %v9261_v13  ;;  %v5018_v28 = vunpack.i.l.bf16 %v9274_v26 }
 0x794   : > { %v7527_v49 = vpop.permute.xlu0 %2151  ;;  %v7529_v10 = vpop.permute.xlu1 %2138  ;;  %3354 = vst [vmem:[#allocation8 + $0xbc0] sm:$0xff] %v2080_v27  ;;  %v8883_v27 = vunpack.i.h.bf16 %v9242_v34 }
 0x795   : > { %v7534_v53 = vpop.permute.xlu2 %2242  ;;  %3931 = vmatpush.msrb.mxu0 %v2079_v47  ;;  %v2067_v6 = vsel %vm8864_vm8, %v7443_v58, %v8866_v5  ;;  %v7567_v47 = vsel %vm8862_vm7, %v7446_v45, %v8863_v2  ;;  %v8874_v45 = vunpack.i.h.bf16 %v9245_v41  ;;  %vm8875_vm7 = vcmask 474112  }
 0x796   : > { %2071 = vst.msk [vmem:[#allocation8 + $0x3b8] sm:$0xff] %vm1422_vm2, %v2067_v6  ;;  %v5008_v2 = vunpack.i.l.bf16 %v9256_v36  ;;  %vm2324_vm8 = vcmask 400384   ;;  %v7623_v16 = vsel %vm8876_vm4, %v4988_v8, %v7527_v49 }
 0x797   : > { %3932 = vmatpush.msrb.mxu0 %v2066_v39  ;;  %3348 = vst [vmem:[#allocation8 + $0xbb0] sm:$0xff] %v2067_v6  ;;  %v2105_v6 = vsel %vm331_vm0, %v7484_v33, %v8874_v45  ;;  %v4983_v45 = vunpack.i.l.bf16 %v9262_v11 }
 0x798   : > { %2174 = vst.msk [vmem:[#allocation8 + $0x438] sm:$0xff] %vm1422_vm2, %v7567_v47  ;;  %v7601_v33 = vsel %vm8875_vm7, %v5008_v2, %v7495_v0  ;;  %v8877_v2 = vunpack.i.h.bf16 %v9261_v13 }
 0x799   : > { %3933 = vmatpush.msrb.mxu0 %v7416_v59  ;;  %v2118_v59 = vsel %vm2116_vm10, %v7482_v35, %v8883_v27  ;;  %2109 = vst.msk [vmem:[#allocation8 + $0x3e8] sm:$0xff] %vm1422_vm2, %v2105_v6  ;;  %v7638_v8 = vsel %vm8880_vm15, %v4983_v45, %v7529_v10  ;;  %v8892_v27 = vunpack.i.h.bf16 %v9267_v23 }
 0x79a   : > { %2734 = vrot.lane.b32.xlu0 %v7352_v55, %s9253_s14  ;;  %2721 = vrot.lane.b32.xlu1 %v7352_v55, %s9254_s2  ;;  %2122 = vst.msk [vmem:[#allocation8 + $0x3f8] sm:$0xff] %vm1422_vm2, %v2118_v59  ;;  %s9258_s14 = smov 15   ;;  %s9259_s2 = smov 16  }
 0x79b   : > { %2708 = vrot.lane.b32.xlu2 %v7352_v55, %s9255_s18  ;;  %3934 = vmatpush.msrb.mxu0 %v7480_v17  ;;  %v8878_v17 = vunpack.i.h.bf16 %v9256_v36  ;;  %3372 = vst [vmem:[#allocation8 + $0xbf0] sm:$0xff] %v2118_v59  ;;  %s9263_s18 = smov 11  }
 0x79c   : > { %v7569_v58 = vpop.permute.xlu0 %2190  ;;  %v7571_v30 = vpop.permute.xlu1 %2177  ;;  %3366 = vst [vmem:[#allocation8 + $0xbe0] sm:$0xff] %v2105_v6 }
 0x79d   : > { %v7574_v39 = vpop.permute.xlu2 %2281  ;;  %3935 = vmatpush.msrb.mxu0 %v2027_v22  ;;  %v9260_v22 = vld [vmem:[#allocation59_spill] sm:$0xff] }
 0x79e   : > { %v5053_v35 = vunpack.i.l.bf16 %v9260_v22 }
 0x79f   : > { %3936 = vmatpush.msrb.mxu0 %v7373_v21  ;;  %v7613_v21 = vsel %vm8875_vm7, %v7495_v0, %v8878_v17  ;;  %v7632_v0 = vsel %vm8876_vm4, %v7527_v49, %v8877_v2  ;;  %vm2246_vm7 = vcmask 449536   ;;  %vm8885_vm4 = vcmask 482304  }
 0x7a0   : > { %2213 = vst.msk [vmem:[#allocation8 + $0x468] sm:$0xff] %vm1422_vm2, %v7613_v21  ;;  %v5003_v2 = vunpack.i.l.bf16 %v6567_v38 }
 0x7a1   : > { %3937 = vmatpush.msrb.mxu0 %v7431_v51  ;;  %v8879_v51 = vunpack.i.h.bf16 %v9262_v11  ;;  %2161 = vst.msk [vmem:[#allocation8 + $0x428] sm:$0xff] %vm1422_vm2, %v7632_v0 }
 0x7a2   : > { %2773 = vrot.lane.b32.xlu0 %v7352_v55, %s9257_s28  ;;  %2760 = vrot.lane.b32.xlu1 %v7352_v55, %s9258_s14  ;;  %s9264_s28 = smov 12   ;;  %s9266_s14 = smov 13  }
 0x7a3   : > { %2747 = vrot.lane.b32.xlu2 %v7352_v55, %s9259_s2  ;;  %3938 = vmatpush.msrb.mxu0 %v7450_v1  ;;  %v7651_v1 = vsel %vm8880_vm15, %v7529_v10, %v8879_v51  ;;  %v8887_v51 = vunpack.i.h.bf16 %v6567_v38  ;;  %vm8895_vm15 = vcmask 490496   ;;  %s9268_s2 = smov 8  }
 0x7a4   : > { %v7603_v5 = vpop.permute.xlu0 %2229  ;;  %v7605_v18 = vpop.permute.xlu1 %2216  ;;  %2148 = vst.msk [vmem:[#allocation8 + $0x418] sm:$0xff] %vm1422_vm2, %v7651_v1 }
 0x7a5   : > { %v7615_v59 = vpop.permute.xlu2 %2320  ;;  %3939 = vmatpush.msrb.mxu0 %v7336_v54  ;;  %v7683_v44 = vsel %vm8885_vm4, %v7569_v58, %v8887_v51 }
 0x7a6   : > { %v2325_v19 = vsel %vm2324_vm8, %v5053_v35, %v7615_v59  ;;  %2200 = vst.msk [vmem:[#allocation8 + $0x458] sm:$0xff] %vm1422_vm2, %v7683_v44 }
 0x7a7   : > { %3948 = vmatpush.msra.mxu3 %v2325_v19  ;;  %v9265_v19 = vld [vmem:[#allocation55_spill] sm:$0xff]  ;;  %3940 = vmatpush.msrb.mxu0 %v7383_v29 }
 0x7a8   : > { %v5023_v6 = vunpack.i.l.bf16 %v9265_v19  ;;  %v5024_v49 = vunpack.i.h.bf16 %v9265_v19  ;;  %v7676_v19 = vsel %vm8885_vm4, %v5003_v2, %v7569_v58  ;;  %v9271_v2 = vld [vmem:[#allocation80_spill] sm:$0xff]  ;;  %vm8898_vm4 = vcmask 457728  }
 0x7a9   : > { %3941 = vmatpush.msrb.mxu0 %v7403_v15  ;;  %v5048_v15 = vunpack.i.l.bf16 %v9271_v2  ;;  %v2234_v11 = vsel %vm8898_vm4, %v5018_v28, %v7603_v5 }
 0x7aa   : > { %2812 = vrot.lane.b32.xlu0 %v7352_v55, %s9263_s18  ;;  %2799 = vrot.lane.b32.xlu1 %v7352_v55, %s9264_s28  ;;  %v7664_v17 = vsel %vm2246_vm7, %v5023_v6, %v7534_v53  ;;  %v2248_v54 = vsel %vm2246_vm7, %v7534_v53, %v5024_v49  ;;  %v4998_v6 = vunpack.i.l.bf16 %v9267_v23  ;;  %vm2285_vm7 = vcmask 424960   ;;  %s9269_s18 = smov 9   ;;  %v9270_v53 = vld [vmem:[#allocation57_spill] sm:$0xff]  ;;  %s9272_s28 = smov 10  }
 0x7ab   : > { %2786 = vrot.lane.b32.xlu2 %v7352_v55, %s9266_s14  ;;  %2252 = vst.msk [vmem:[#allocation8 + $0x498] sm:$0xff] %vm1422_vm2, %v2248_v54  ;;  %v5038_v58 = vunpack.i.l.bf16 %v9270_v53  ;;  %v7704_v49 = vsel %vm8895_vm15, %v7571_v30, %v8892_v27  ;;  %3942 = vmatpush.msrb.mxu0 %v7304_v9  ;;  %v5039_v54 = vunpack.i.h.bf16 %v9270_v53  ;;  %v8899_v9 = vunpack.i.h.bf16 %v9274_v26  ;;  %s9276_s14 = smov 3  }
 0x7ac   : > { %v7657_v45 = vpop.permute.xlu0 %2268  ;;  %v7659_v35 = vpop.permute.xlu1 %2255  ;;  %v7690_v29 = vsel %vm8895_vm15, %v4998_v6, %v7571_v30  ;;  %2187 = vst.msk [vmem:[#allocation8 + $0x448] sm:$0xff] %vm1422_vm2, %v7704_v49  ;;  %vm8903_vm15 = vcmask 465920  }
 0x7ad   : > { %v7666_v10 = vpop.permute.xlu2 %2359  ;;  %v2286_v30 = vsel %vm2285_vm7, %v5038_v58, %v7574_v39  ;;  %v2287_v53 = vsel %vm2285_vm7, %v7574_v39, %v5039_v54  ;;  %3943 = vmatpush.msrb.mxu0 %v7346_v61  ;;  %v7737_v20 = vsel %vm8898_vm4, %v7603_v5, %v8899_v9  ;;  %vm2272_vm7 = vcmask 433152  }
 0x7ae   : > { %2291 = vst.msk [vmem:[#allocation8 + $0x4c8] sm:$0xff] %vm1422_vm2, %v2287_v53  ;;  %vm2259_vm4 = vcmask 441344   ;;  %v9280_v53 = vld [vmem:[#allocation45_spill] sm:$0xff] }
 0x7af   : > { %2239 = vst.msk [vmem:[#allocation8 + $0x488] sm:$0xff] %vm1422_vm2, %v7737_v20 }
 0x7b2   : > { %2851 = vrot.lane.b32.xlu0 %v7352_v55, %s9268_s2  ;;  %2838 = vrot.lane.b32.xlu1 %v7352_v55, %s9269_s18  ;;  %s9277_s2 = smov 2   ;;  %s9279_s18 = smov 1  }
 0x7b3   : > { %2825 = vrot.lane.b32.xlu2 %v7352_v55, %s9272_s28  ;;  %s9282_s28 = smov 6  }
 0x7b4   : > { %v7710_v6 = vpop.permute.xlu0 %2307  ;;  %v7712_v51 = vpop.permute.xlu1 %2294 }
 0x7b5   : > { %v2312_v27 = vsel %vm2311_vm6, %v5048_v15, %v7710_v6  ;;  %v7720_v13 = vpop.permute.xlu2 %2398  ;;  %v2299_v58 = vsel %vm2298_vm11, %v5043_v48, %v7712_v51  ;;  %v9275_v15 = vld [vmem:[#allocation44_spill] sm:$0xff]  ;;  %v9278_v48 = vld [vmem:[#allocation78_spill] sm:$0xff] }
 0x7b6   : > { %3949 = vmatpush.msra.mxu3 %v2312_v27  ;;  %v5013_v60 = vunpack.i.l.bf16 %v9275_v15  ;;  %v8901_v39 = vunpack.i.h.bf16 %v9275_v15  ;;  %v5033_v28 = vunpack.i.l.bf16 %v9278_v48 }
 0x7b8   : > { %3950 = vmatpush.msra.mxu3 %v2299_v58  ;;  %v2221_v61 = vsel %vm8903_vm15, %v5013_v60, %v7605_v18  ;;  %v7754_v5 = vsel %vm8903_vm15, %v7605_v18, %v8901_v39  ;;  %v5054_v60 = vunpack.i.h.bf16 %v9260_v22  ;;  %v5028_v58 = vunpack.i.l.bf16 %v9280_v53 }
 0x7b9   : > { %v2273_v9 = vsel %vm2272_vm7, %v5033_v28, %v7657_v45  ;;  %v5034_v18 = vunpack.i.h.bf16 %v9278_v48  ;;  %2226 = vst.msk [vmem:[#allocation8 + $0x478] sm:$0xff] %vm1422_vm2, %v7754_v5  ;;  %v5029_v39 = vunpack.i.h.bf16 %v9280_v53  ;;  %vm2363_vm15 = vcmask 375808   ;;  %v9281_v28 = vld [vmem:[#allocation61_spill] sm:$0xff] }
 0x7ba   : > { %2916 = vrot.lane.b32.xlu0 %v7352_v55, %s9276_s14  ;;  %2929 = vrot.lane.b32.xlu1 %v7352_v55, %s9277_s2  ;;  %v2260_v22 = vsel %vm2259_vm4, %v5028_v58, %v7659_v35  ;;  %v5068_v38 = vunpack.i.l.bf16 %v9281_v28  ;;  %v5069_v48 = vunpack.i.h.bf16 %v9281_v28  ;;  %s9283_s14 = smov 5   ;;  %s9284_s2 = smov 4  }
 0x7bb   : > { %2942 = vrot.lane.b32.xlu2 %v7352_v55, %s9279_s18  ;;  %3951 = vmatpush.msra.mxu3 %v2286_v30  ;;  %v2326_v30 = vsel %vm2324_vm8, %v7615_v59, %v5054_v60  ;;  %v2274_v36 = vsel %vm2272_vm7, %v7657_v45, %v5034_v18  ;;  %v2261_v59 = vsel %vm2259_vm4, %v7659_v35, %v5029_v39  ;;  %vm2402_vm8 = vcmask 351232  }
 0x7bc   : > { %v2347_v27 = vpop.permute.xlu0 %2346  ;;  %v7759_v54 = vpop.permute.xlu1 %2333  ;;  %2330 = vst.msk [vmem:[#allocation8 + $0x4f8] sm:$0xff] %vm1422_vm2, %v2326_v30  ;;  %v7787_v45 = vsel %vm2363_vm15, %v5068_v38, %v7666_v10  ;;  %v2365_v35 = vsel %vm2363_vm15, %v7666_v10, %v5069_v48  ;;  %v7802_v38 = vld [vmem:[%s9285_s22] sm:$0xff]  ;;  %vm2350_vm15 = vcmask 384000   ;;  %v7822_v48 = vld [vmem:[#allocation7 + $0x18] sm:$0xff]  ;;  %vm2389_vm4 = vcmask 359424  }
 0x7bd   : > { %v7764_v50 = vpop.permute.xlu2 %2437  ;;  %3952 = vmatpush.msra.mxu3 %v2273_v9  ;;  %2278 = vst.msk [vmem:[#allocation8 + $0x4b8] sm:$0xff] %vm1422_vm2, %v2274_v36  ;;  %v5049_v9 = vunpack.i.h.bf16 %v9271_v2  ;;  %v5044_v36 = vunpack.i.h.bf16 %v9273_v46  ;;  %v8906_v10 = vperm.slane %v7802_v38, 0  ;;  %v9286_v2 = vld [vmem:[#allocation63_spill] sm:$0xff]  ;;  %vm2376_vm7 = vcmask 367616  }
 0x7be   : > { %2265 = vst.msk [vmem:[#allocation8 + $0x4a8] sm:$0xff] %vm1422_vm2, %v2261_v59  ;;  %v5083_v58 = vunpack.i.l.bf16 %v9286_v2  ;;  %v5084_v18 = vunpack.i.h.bf16 %v9286_v2 }
 0x7bf   : > { %3953 = vmatpush.msra.mxu3 %v2260_v22  ;;  %2369 = vst.msk [vmem:[#allocation8 + $0x528] sm:$0xff] %vm1422_vm2, %v2365_v35  ;;  %v2300_v30 = vsel %vm2298_vm11, %v7712_v51, %v5044_v36  ;;  %v9287_v22 = vld [vmem:[#allocation82_spill] sm:$0xff]  ;;  %v9288_v51 = vld [vmem:[#allocation47_spill] sm:$0xff]  ;;  %vm2441_vm11 = vcmask 326656  }
 0x7c0   : > { %v5063_v46 = vunpack.i.l.bf16 %v9287_v22  ;;  %3884 = vmatmul.f32.vlgmr.msrb.gmra.mxu3 %v8906_v10  ;;  %v2404_v28 = vsel %vm2402_vm8, %v7720_v13, %v5084_v18  ;;  %2304 = vst.msk [vmem:[#allocation8 + $0x4d8] sm:$0xff] %vm1422_vm2, %v2300_v30 }
 0x7c1   : > { %3954 = vmatpush.msra.mxu3 %v7664_v17  ;;  %v2313_v17 = vsel %vm2311_vm6, %v7710_v6, %v5049_v9  ;;  %v7816_v6 = vsel %vm2402_vm8, %v5083_v58, %v7720_v13  ;;  %vm2337_vm6 = vcmask 392192   ;;  %v5059_v13 = vunpack.i.h.bf16 %v9288_v51  ;;  %2408 = vst.msk [vmem:[#allocation8 + $0x558] sm:$0xff] %vm1422_vm2, %v2404_v28  ;;  %v9292_v28 = vld [vmem:[#allocation48_spill] sm:$0xff] }
 0x7c2   : > { %2877 = vrot.lane.b32.xlu0 %v7352_v55, %s9282_s28  ;;  %2890 = vrot.lane.b32.xlu1 %v7352_v55, %s9283_s14  ;;  %2317 = vst.msk [vmem:[#allocation8 + $0x4e8] sm:$0xff] %vm1422_vm2, %v2313_v17  ;;  %v7831_v59 = vsel %vm2350_vm15, %v5063_v46, %v2347_v27  ;;  %v9290_v17 = vld [vmem:[#allocation65_spill] sm:$0xff]  ;;  %vm2480_vm8 = vcmask 302080  }
 0x7c3   : > { %2903 = vrot.lane.b32.xlu2 %v7352_v55, %s9284_s2  ;;  %3955 = vmatpush.msra.mxu3 %v2234_v11  ;;  %v5064_v11 = vunpack.i.h.bf16 %v9287_v22  ;;  %s9289_s2 = smov 7   ;;  %v5098_v2 = vunpack.i.l.bf16 %v9290_v17 }
 0x7c4   : > { %v2386_v39 = vpop.permute.xlu0 %2385  ;;  %v7794_v60 = vpop.permute.xlu1 %2372 }
 0x7c5   : > { %v7797_v53 = vpop.permute.xlu2 %2476  ;;  %3956 = vmatpush.msra.mxu3 %v2221_v61  ;;  %v5058_v61 = vunpack.i.l.bf16 %v9288_v51  ;;  %v2352_v9 = vsel %vm2350_vm15, %v2347_v27, %v5064_v11  ;;  %v9291_v27 = vld [vmem:[#allocation84_spill] sm:$0xff]  ;;  %v7851_v22 = vsel %vm2441_vm11, %v5098_v2, %v7764_v50  ;;  %v5073_v51 = vunpack.i.l.bf16 %v9292_v28 }
 0x7c6   : > { %v5078_v30 = vunpack.i.l.bf16 %v9291_v27  ;;  %2356 = vst.msk [vmem:[#allocation8 + $0x518] sm:$0xff] %vm1422_vm2, %v2352_v9  ;;  %v5079_v46 = vunpack.i.h.bf16 %v9291_v27  ;;  %vm2428_vm15 = vcmask 334848  }
 0x7c7   : > { %3957 = vmatpush.msra.mxu3 %v7601_v33  ;;  %v7842_v58 = vsel %vm2337_vm6, %v5058_v61, %v7759_v54  ;;  %v2339_v33 = vsel %vm2337_vm6, %v7759_v54, %v5059_v13  ;;  %v5294_v13 = vld [vmem:[#allocation7] sm:$0xff]  ;;  %vm2415_vm6 = vcmask 343040  }
 0x7c8   : > { %2343 = vst.msk [vmem:[#allocation8 + $0x508] sm:$0xff] %vm1422_vm2, %v2339_v33  ;;  %v7858_v54 = vsel %vm2389_vm4, %v5078_v30, %v2386_v39  ;;  %v2391_v61 = vsel %vm2389_vm4, %v2386_v39, %v5079_v46  ;;  %v9294_v33 = vld [vmem:[#allocation86_spill] sm:$0xff]  ;;  %vm2467_vm4 = vcmask 310272  }
 0x7c9   : > { %3958 = vmatpush.msra.mxu3 %v7676_v19  ;;  %v5074_v19 = vunpack.i.h.bf16 %v9292_v28  ;;  %v5093_v27 = vunpack.i.l.bf16 %v9294_v33  ;;  %2395 = vst.msk [vmem:[#allocation8 + $0x548] sm:$0xff] %vm1422_vm2, %v2391_v61 }
 0x7ca   : > { %3254 = vrot.lane.b32.xlu0 %v7822_v48, %s9133_s10  ;;  %3266 = vrot.lane.b32.xlu1 %v7822_v48, %s9140_s5  ;;  %s9328_s10 = smov 80   ;;  %s9333_s5 = smov 63  }
 0x7cb   : > { %2864 = vrot.lane.b32.xlu2 %v7352_v55, %s9289_s2  ;;  %v5099_v55 = vunpack.i.h.bf16 %v9290_v17  ;;  %3959 = vmatpush.msra.mxu3 %v7690_v29  ;;  %v7868_v29 = vsel %vm2376_vm7, %v5073_v51, %v7794_v60  ;;  %v2378_v17 = vsel %vm2376_vm7, %v7794_v60, %v5074_v19  ;;  %v9295_v60 = vld [vmem:[#allocation49_spill] sm:$0xff]  ;;  %vm2454_vm7 = vcmask 318464  }
 0x7cc   : > { %v2425_v35 = vpop.permute.xlu0 %2424  ;;  %v2412_v36 = vpop.permute.xlu1 %2411  ;;  %v5088_v28 = vunpack.i.l.bf16 %v9295_v60  ;;  %2382 = vst.msk [vmem:[#allocation8 + $0x538] sm:$0xff] %vm1422_vm2, %v2378_v17  ;;  %v5089_v19 = vunpack.i.h.bf16 %v9295_v60  ;;  %v9297_v17 = vld [vmem:[#allocation88_spill] sm:$0xff] }
 0x7cd   : > { %v2516_v18 = vpop.permute.xlu2 %2515  ;;  %v2443_v11 = vsel %vm2441_vm11, %v7764_v50, %v5099_v55  ;;  %v9293_v50 = vld [vmem:[#allocation68_spill] sm:$0xff]  ;;  %3960 = vmatpush.msra.mxu3 %v7557_v31  ;;  %v7888_v51 = vsel %vm2428_vm15, %v5093_v27, %v2425_v35  ;;  %vm2519_vm11 = vcmask 277504  }
 0x7ce   : > { %v5113_v9 = vunpack.i.l.bf16 %v9293_v50  ;;  %2447 = vst.msk [vmem:[#allocation8 + $0x588] sm:$0xff] %vm1422_vm2, %v2443_v11  ;;  %v5114_v39 = vunpack.i.h.bf16 %v9293_v50  ;;  %v5094_v11 = vunpack.i.h.bf16 %v9294_v33  ;;  %v9296_v50 = vld [vmem:[#allocation70_spill] sm:$0xff] }
 0x7cf   : > { %3961 = vmatpush.msra.mxu3 %v7623_v16  ;;  %v5129_v16 = vunpack.i.h.bf16 %v9296_v50  ;;  %v3716_v33 = vld [vmem:[#allocation8 + $0x8f0] sm:$0xff] }
 0x7d0   : > { %v7880_v30 = vsel %vm2480_vm8, %v5113_v9, %v7797_v53  ;;  %v2482_v31 = vsel %vm2480_vm8, %v7797_v53, %v5114_v39  ;;  %v2430_v61 = vsel %vm2428_vm15, %v2425_v35, %v5094_v11  ;;  %v5128_v9 = vunpack.i.l.bf16 %v9296_v50 }
 0x7d1   : > { %3962 = vmatpush.msra.mxu3 %v7638_v8  ;;  %2486 = vst.msk [vmem:[#allocation8 + $0x5b8] sm:$0xff] %vm1422_vm2, %v2482_v31  ;;  %v7894_v53 = vsel %vm2415_vm6, %v5088_v28, %v2412_v36  ;;  %v2417_v39 = vsel %vm2415_vm6, %v2412_v36, %v5089_v19  ;;  %v5108_v35 = vunpack.i.l.bf16 %v9297_v17  ;;  %v5109_v36 = vunpack.i.h.bf16 %v9297_v17  ;;  %v9298_v31 = vld [vmem:[#allocation50_spill] sm:$0xff] }
 0x7d2   : > { %2879 = vrot.lane.b32.xlu0 %v5294_v13, %s9282_s28  ;;  %3248 = vrot.lane.b32.xlu1 %v7822_v48, %s9134_s25  ;;  %2434 = vst.msk [vmem:[#allocation8 + $0x578] sm:$0xff] %vm1422_vm2, %v2430_v61  ;;  %v7903_v8 = vsel %vm2519_vm11, %v5128_v9, %v2516_v18  ;;  %v5103_v60 = vunpack.i.l.bf16 %v9298_v31  ;;  %v3714_v61 = vld [vmem:[#allocation8 + $0x8e0] sm:$0xff]  ;;  %vm2557_vm8 = vcmask 252928   ;;  %vm2506_vm15 = vcmask 285696   ;;  %s9329_s25 = smov 79  }
 0x7d3   : > { %3260 = vrot.lane.b32.xlu2 %v7822_v48, %s9109_s4  ;;  %3963 = vmatpush.msra.mxu3 %v7512_v57  ;;  %2421 = vst.msk [vmem:[#allocation8 + $0x568] sm:$0xff] %vm1422_vm2, %v2417_v39  ;;  %v5104_v57 = vunpack.i.h.bf16 %v9298_v31  ;;  %v9299_v9 = vld [vmem:[#allocation72_spill] sm:$0xff]  ;;  %v3712_v39 = vld [vmem:[#allocation8 + $0x8d0] sm:$0xff]  ;;  %vm2493_vm6 = vcmask 293888  }
 0x7d4   : > { %v2464_v2 = vpop.permute.xlu0 %2463  ;;  %v2451_v55 = vpop.permute.xlu1 %2450  ;;  %v9300_v31 = vld [vmem:[#allocation90_spill] sm:$0xff] }
 0x7d5   : > { %v2554_v46 = vpop.permute.xlu2 %2553  ;;  %4028 = vmatpush.msrb.mxu3 %v3716_v33  ;;  %v7913_v28 = vsel %vm2467_vm4, %v5108_v35, %v2464_v2  ;;  %v2469_v50 = vsel %vm2467_vm4, %v2464_v2, %v5109_v36  ;;  %v7921_v17 = vsel %vm2454_vm7, %v5103_v60, %v2451_v55  ;;  %v5144_v35 = vunpack.i.h.bf16 %v9299_v9 }
 0x7d6   : > { %v2456_v33 = vsel %vm2454_vm7, %v2451_v55, %v5104_v57  ;;  %v5123_v2 = vunpack.i.l.bf16 %v9300_v31  ;;  %2473 = vst.msk [vmem:[#allocation8 + $0x5a8] sm:$0xff] %vm1422_vm2, %v2469_v50  ;;  %v9301_v55 = vld [vmem:[#allocation51_spill] sm:$0xff]  ;;  %v9302_v50 = vld [vmem:[#allocation52_spill] sm:$0xff]  ;;  %vm2596_vm4 = vcmask 228352   ;;  %vm2635_vm7 = vcmask 203776  }
 0x7d7   : > { %4029 = vmatpush.msrb.mxu3 %v3714_v61  ;;  %v3710_v61 = vld [vmem:[#allocation8 + $0x8c0] sm:$0xff]  ;;  %v2559_v60 = vsel %vm2557_vm8, %v2554_v46, %v5144_v35  ;;  %v5118_v57 = vunpack.i.l.bf16 %v9301_v55  ;;  %2460 = vst.msk [vmem:[#allocation8 + $0x598] sm:$0xff] %vm1422_vm2, %v2456_v33 }
 0x7d8   : > { %2563 = vst.msk [vmem:[#allocation8 + $0x618] sm:$0xff] %vm1422_vm2, %v2559_v60  ;;  %v3704_v60 = vld [vmem:[#allocation8 + $0x890] sm:$0xff] }
 0x7d9   : > { %4030 = vmatpush.msrb.mxu3 %v3712_v39  ;;  %v5119_v39 = vunpack.i.h.bf16 %v9301_v55 }
 0x7da   : > { %2866 = vrot.lane.b32.xlu0 %v5294_v13, %s9289_s2  ;;  %3242 = vrot.lane.b32.xlu1 %v7822_v48, %s9107_s16  ;;  %v2521_v13 = vsel %vm2519_vm11, %v2516_v18, %v5129_v16  ;;  %v8905_v18 = vperm.slane %v7802_v38, 4  ;;  %v5143_v16 = vunpack.i.l.bf16 %v9299_v9  ;;  %vm2532_vm11 = vcmask 269312  }
 0x7db   : > { %3368 = vrot.lane.b32.xlu2 %v7822_v48, %s9166_s27  ;;  %2525 = vst.msk [vmem:[#allocation8 + $0x5e8] sm:$0xff] %vm1422_vm2, %v2521_v13  ;;  %v5124_v13 = vunpack.i.h.bf16 %v9300_v31  ;;  %4031 = vmatpush.msrb.mxu3 %v3710_v61  ;;  %v5133_v9 = vunpack.i.l.bf16 %v9302_v50  ;;  %s9411_s27 = sld [smem:[#allocation111_spill]] }
 0x7dc   : > { %v2503_v27 = vpop.permute.xlu0 %2502  ;;  %v2490_v11 = vpop.permute.xlu1 %2489  ;;  %v7928_v36 = vsel %vm2557_vm8, %v5143_v16, %v2554_v46  ;;  %3964 = vmatmul.f32.vlgmr.msra.gmra.mxu3 %v8905_v18  ;;  %v3708_v46 = vld [vmem:[#allocation8 + $0x8b0] sm:$0xff]  ;;  %vm2570_vm8 = vcmask 244736  }
 0x7dd   : > { %v2593_v19 = vpop.permute.xlu2 %2592  ;;  %v2507_v16 = vsel %vm2506_vm15, %v5123_v2, %v2503_v27  ;;  %v2508_v35 = vsel %vm2506_vm15, %v2503_v27, %v5124_v13  ;;  %4032 = vmatpush.msrb.mxu3 %v3708_v46  ;;  %v9303_v18 = vld [vmem:[#allocation73_spill] sm:$0xff]  ;;  %v2494_v33 = vsel %vm2493_vm6, %v5118_v57, %v2490_v11  ;;  %v2495_v55 = vsel %vm2493_vm6, %v2490_v11, %v5119_v39  ;;  %v9304_v27 = vld [vmem:[#allocation92_spill] sm:$0xff] }
 0x7de   : > { %v5158_v10 = vunpack.i.l.bf16 %v9303_v18  ;;  %v5159_v32 = vunpack.i.h.bf16 %v9303_v18  ;;  %v5138_v13 = vunpack.i.l.bf16 %v9304_v27  ;;  %2512 = vst.msk [vmem:[#allocation8 + $0x5d8] sm:$0xff] %vm1422_vm2, %v2508_v35  ;;  %v5139_v57 = vunpack.i.h.bf16 %v9304_v27  ;;  %v3702_v11 = vld [vmem:[#allocation8 + $0x880] sm:$0xff] }
 0x7df   : > { %4033 = vmatpush.msrb.mxu3 %v3706_v12  ;;  %2499 = vst.msk [vmem:[#allocation8 + $0x5c8] sm:$0xff] %vm1422_vm2, %v2495_v55  ;;  %v5134_v18 = vunpack.i.h.bf16 %v9302_v50  ;;  %vm2673_vm15 = vcmask 179200   ;;  %vm2622_vm6 = vcmask 211968  }
 0x7e0   : > { %v7955_v46 = vsel %vm2596_vm4, %v5158_v10, %v2593_v19  ;;  %v9305_v10 = vld [vmem:[#allocation75_spill] sm:$0xff] }
 0x7e1   : > { %4034 = vmatpush.msrb.mxu3 %v3704_v60  ;;  %v3698_v60 = vld [vmem:[#allocation8 + $0x860] sm:$0xff]  ;;  %s5317_s2 = scalar_lea.hbm %s9411_s27, 4 }
 0x7e2   : > { %3350 = vrot.lane.b32.xlu0 %v7822_v48, %s9160_s7  ;;  %3236 = vrot.lane.b32.xlu1 %v7822_v48, %s9130_s21  ;;  %s9325_s21 = smov 64  }
 0x7e3   : > { %3362 = vrot.lane.b32.xlu2 %v7822_v48, %s9167_s29  ;;  %4035 = vmatpush.msrb.mxu3 %v3702_v11 }
 0x7e4   : > { %v2542_v31 = vpop.permute.xlu0 %2541  ;;  %v2529_v61 = vpop.permute.xlu1 %2528 }
 0x7e5   : > { %v2533_v2 = vsel %vm2532_vm11, %v5133_v9, %v2529_v61  ;;  %v2632_v23 = vpop.permute.xlu2 %2631  ;;  %v2598_v9 = vsel %vm2596_vm4, %v2593_v19, %v5159_v32  ;;  %v7962_v12 = vsel %vm1409_vm9, %v5138_v13, %v2542_v31  ;;  %v2546_v39 = vsel %vm1409_vm9, %v2542_v31, %v5139_v57 }
 0x7e6   : > { %3968 = vmatpush.msra.mxu1 %v2533_v2  ;;  %v5173_v32 = vunpack.i.l.bf16 %v9305_v10  ;;  %2602 = vst.msk [vmem:[#allocation8 + $0x648] sm:$0xff] %vm1422_vm2, %v2598_v9  ;;  %v5174_v19 = vunpack.i.h.bf16 %v9305_v10  ;;  %v2534_v50 = vsel %vm2532_vm11, %v2529_v61, %v5134_v18  ;;  %vm2583_vm9 = vcmask 236544   ;;  %v9306_v2 = vld [vmem:[#allocation93_spill] sm:$0xff]  ;;  %v9307_v61 = vld [vmem:[#allocation54_spill] sm:$0xff] }
 0x7e7   : > { %v5153_v55 = vunpack.i.l.bf16 %v9306_v2  ;;  %2550 = vst.msk [vmem:[#allocation8 + $0x608] sm:$0xff] %vm1422_vm2, %v2546_v39  ;;  %v5154_v57 = vunpack.i.h.bf16 %v9306_v2  ;;  %v5148_v11 = vunpack.i.l.bf16 %v9307_v61  ;;  %v3696_v18 = vld [vmem:[#allocation8 + $0x850] sm:$0xff]  ;;  %v5149_v39 = vunpack.i.h.bf16 %v9307_v61 }
 0x7e8   : > { %3969 = vmatpush.msra.mxu1 %v7903_v8  ;;  %v3700_v8 = vld [vmem:[#allocation8 + $0x870] sm:$0xff]  ;;  %v7979_v27 = vsel %vm2635_vm7, %v5173_v32, %v2632_v23  ;;  %v2637_v9 = vsel %vm2635_vm7, %v2632_v23, %v5174_v19  ;;  %2538 = vst.msk [vmem:[#allocation8 + $0x5f8] sm:$0xff] %vm1422_vm2, %v2534_v50  ;;  %vm2609_vm11 = vcmask 220160   ;;  %vm2712_vm4 = vcmask 154624  }
 0x7e9   : > { %4036 = vmatpush.msrb.mxu3 %v3700_v8  ;;  %v9308_v23 = vld [vmem:[#allocation77_spill] sm:$0xff]  ;;  %2641 = vst.msk [vmem:[#allocation8 + $0x678] sm:$0xff] %vm1422_vm2, %v2637_v9  ;;  %v3694_v8 = vld [vmem:[#allocation8 + $0x840] sm:$0xff]  ;;  %vm2660_vm7 = vcmask 187392  }
 0x7ea   : > { %3332 = vrot.lane.b32.xlu0 %v7822_v48, %s9155_s1  ;;  %3344 = vrot.lane.b32.xlu1 %v7822_v48, %s9161_s12  ;;  %v5188_v32 = vunpack.i.l.bf16 %v9308_v23  ;;  %v5189_v19 = vunpack.i.h.bf16 %v9308_v23  ;;  %v3690_v23 = vld [vmem:[#allocation8 + $0x820] sm:$0xff]  ;;  %s9410_s1 = sld [smem:[#allocation17_spill]] }
 0x7eb   : > { %3356 = vrot.lane.b32.xlu2 %v7822_v48, %s9168_s30  ;;  %3970 = vmatpush.msra.mxu1 %v2507_v16 }
 0x7ec   : > { %v2580_v35 = vpop.permute.xlu0 %2579  ;;  %v2567_v31 = vpop.permute.xlu1 %2566  ;;  %4037 = vmatpush.msrb.mxu3 %v3698_v60 }
 0x7ed   : > { %v2670_v13 = vpop.permute.xlu2 %2669  ;;  %3971 = vmatpush.msra.mxu1 %v2494_v33  ;;  %v7986_v16 = vsel %vm2583_vm9, %v5153_v55, %v2580_v35  ;;  %v2585_v10 = vsel %vm2583_vm9, %v2580_v35, %v5154_v57  ;;  %v7994_v33 = vsel %vm2570_vm8, %v5148_v11, %v2567_v31  ;;  %v2572_v50 = vsel %vm2570_vm8, %v2567_v31, %v5149_v39  ;;  %v9309_v35 = vld [vmem:[#allocation94_spill] sm:$0xff]  ;;  %v9310_v11 = vld [vmem:[#allocation56_spill] sm:$0xff] }
 0x7ee   : > { %4038 = vmatpush.msrb.mxu3 %v3696_v18  ;;  %v5168_v2 = vunpack.i.l.bf16 %v9309_v35  ;;  %2589 = vst.msk [vmem:[#allocation8 + $0x638] sm:$0xff] %vm1422_vm2, %v2585_v10  ;;  %v3692_v55 = vld [vmem:[#allocation8 + $0x830] sm:$0xff]  ;;  %v3842_v31 = vperm.slane %v7802_v38, 1  ;;  %v5169_v60 = vunpack.i.h.bf16 %v9309_v35  ;;  %v2675_v57 = vsel %vm2673_vm15, %v2670_v13, %v5189_v19 }
 0x7ef   : > { %3972 = vmatpush.msra.mxu1 %v7880_v30  ;;  %v8003_v30 = vsel %vm2673_vm15, %v5188_v32, %v2670_v13  ;;  %v5163_v18 = vunpack.i.l.bf16 %v9310_v11  ;;  %2576 = vst.msk [vmem:[#allocation8 + $0x628] sm:$0xff] %vm1422_vm2, %v2572_v50  ;;  %v5164_v32 = vunpack.i.h.bf16 %v9310_v11  ;;  %v9311_v13 = vld [vmem:[#allocation79_spill] sm:$0xff]  ;;  %v3688_v50 = vld [vmem:[#allocation8 + $0x810] sm:$0xff]  ;;  %vm2751_vm9 = vcmask 130048  }
 0x7f0   : > { %4039 = vmatpush.msrb.mxu3 %v3694_v8  ;;  %v5203_v19 = vunpack.i.l.bf16 %v9311_v13  ;;  %2679 = vst.msk [vmem:[#allocation8 + $0x6a8] sm:$0xff] %vm1422_vm2, %v2675_v57  ;;  %3904 = vmatmul.f32.vlgmr.msrb.gmra.mxu1 %v3842_v31  ;;  %v5204_v35 = vunpack.i.h.bf16 %v9311_v13  ;;  %v9314_v13 = vld [vmem:[#allocation81_spill] sm:$0xff]  ;;  %vm2686_vm8 = vcmask 171008   ;;  %vm2790_vm15 = vcmask 105472   ;;  %s4487_s7 = sshll.u32 %s9410_s1, 1 }
 0x7f1   : > { %3973 = vmatpush.msra.mxu1 %v7913_v28  ;;  %s4410_s29 = scalar_lea.hbm %s9411_s27, %s4487_s7 }
 0x7f2   : > { %3422 = vrot.lane.b32.xlu0 %v7822_v48, %s9183_s23  ;;  %3326 = vrot.lane.b32.xlu1 %v7822_v48, %s9156_s3 }
 0x7f3   : > { %3338 = vrot.lane.b32.xlu2 %v7822_v48, %s9163_s20  ;;  %4040 = vmatpush.msrb.mxu3 %v3692_v55 }
 0x7f4   : > { %v2619_v9 = vpop.permute.xlu0 %2618  ;;  %v2606_v61 = vpop.permute.xlu1 %2605  ;;  %3974 = vmatpush.msra.mxu1 %v7921_v17  ;;  %v8034_v17 = vld [vmem:[%s9285_s22 + $0x8] sm:$0x1f] }
 0x7f5   : > { %v8016_v39 = vsel %vm2622_vm6, %v5168_v2, %v2619_v9  ;;  %v2709_v10 = vpop.permute.xlu2 %2708  ;;  %v2624_v8 = vsel %vm2622_vm6, %v2619_v9, %v5169_v60  ;;  %4041 = vmatpush.msrb.mxu3 %v3690_v23  ;;  %v8024_v28 = vsel %vm2609_vm11, %v5163_v18, %v2606_v61  ;;  %v2611_v2 = vsel %vm2609_vm11, %v2606_v61, %v5164_v32  ;;  %v3686_v60 = vld [vmem:[#allocation8 + $0x800] sm:$0xff]  ;;  %v9312_v9 = vld [vmem:[#allocation58_spill] sm:$0xff] }
 0x7f6   : > { %3975 = vmatpush.msra.mxu1 %v7851_v22  ;;  %2628 = vst.msk [vmem:[#allocation8 + $0x668] sm:$0xff] %vm1422_vm2, %v2624_v8  ;;  %v8038_v55 = vsel %vm2712_vm4, %v5203_v19, %v2709_v10  ;;  %v2714_v57 = vsel %vm2712_vm4, %v2709_v10, %v5204_v35  ;;  %v5178_v22 = vunpack.i.l.bf16 %v9312_v9  ;;  %v9313_v61 = vld [vmem:[#allocation95_spill] sm:$0xff]  ;;  %v3849_v10 = vperm.slane %v8034_v17, 0 }
 0x7f7   : > { %4042 = vmatpush.msrb.mxu3 %v3688_v50  ;;  %v5184_v11 = vunpack.i.h.bf16 %v9313_v61  ;;  %v5183_v18 = vunpack.i.l.bf16 %v9313_v61  ;;  %2615 = vst.msk [vmem:[#allocation8 + $0x658] sm:$0xff] %vm1422_vm2, %v2611_v2  ;;  %v5179_v23 = vunpack.i.h.bf16 %v9312_v9  ;;  %v5218_v19 = vunpack.i.l.bf16 %v9314_v13 }
 0x7f8   : > { %3976 = vmatpush.msra.mxu1 %v7888_v51  ;;  %2718 = vst.msk [vmem:[#allocation8 + $0x6d8] sm:$0xff] %vm1422_vm2, %v2714_v57  ;;  %vm2738_vm6 = vcmask 138240   ;;  %vm2725_vm11 = vcmask 146432   ;;  %vm2829_vm4 = vcmask 80896  }
 0x7f9   : > { %4043 = vmatpush.msrb.mxu3 %v3686_v60 }
 0x7fa   : > { %3308 = vrot.lane.b32.xlu0 %v7822_v48, %s9150_s0  ;;  %3314 = vrot.lane.b32.xlu1 %v7822_v48, %s9149_s9 }
 0x7fb   : > { %3320 = vrot.lane.b32.xlu2 %v7822_v48, %s9157_s6  ;;  %4115 = vmatpush.msra.mxu3 %v7737_v20  ;;  %v5219_v20 = vunpack.i.h.bf16 %v9314_v13 }
 0x7fc   : > { %v2657_v32 = vpop.permute.xlu0 %2656  ;;  %v2645_v8 = vpop.permute.xlu1 %2644  ;;  %3977 = vmatpush.msra.mxu1 %v7894_v53  ;;  %4044 = vmatmul.f32.vlgmr.msrb.gmra.mxu3 %v3849_v10 }
 0x7fd   : > { %v8058_v50 = vsel %vm2660_vm7, %v5183_v18, %v2657_v32  ;;  %v2662_v35 = vsel %vm2660_vm7, %v2657_v32, %v5184_v11  ;;  %v8062_v2 = vsel %vm595_vm1, %v5178_v22, %v2645_v8  ;;  %v2748_v60 = vpop.permute.xlu2 %2747  ;;  %v2649_v9 = vsel %vm595_vm1, %v2645_v8, %v5179_v23  ;;  %4116 = vmatpush.msra.mxu3 %v7754_v5  ;;  %v9315_v5 = vld [vmem:[#allocation60_spill] sm:$0xff]  ;;  %v9317_v18 = vld [vmem:[#allocation83_spill] sm:$0xff] }
 0x7fe   : > { %2666 = vst.msk [vmem:[#allocation8 + $0x698] sm:$0xff] %vm1422_vm2, %v2662_v35  ;;  %v8069_v51 = vsel %vm2751_vm9, %v5218_v19, %v2748_v60  ;;  %v2753_v57 = vsel %vm2751_vm9, %v2748_v60, %v5219_v20  ;;  %3978 = vmatpush.msra.mxu1 %v7816_v6  ;;  %vm2699_vm1 = vcmask 162816   ;;  %v5193_v53 = vunpack.i.l.bf16 %v9315_v5  ;;  %v9316_v22 = vld [vmem:[#allocation96_spill] sm:$0xff]  ;;  %v9319_v20 = vld [vmem:[#allocation97_spill] sm:$0xff] }
 0x7ff   : > { %4117 = vmatpush.msra.mxu3 %v7613_v21  ;;  %2653 = vst.msk [vmem:[#allocation8 + $0x688] sm:$0xff] %vm1422_vm2, %v2649_v9  ;;  %v5199_v61 = vunpack.i.h.bf16 %v9316_v22  ;;  %v5198_v11 = vunpack.i.l.bf16 %v9316_v22  ;;  %v5233_v23 = vunpack.i.l.bf16 %v9317_v18  ;;  %v5234_v35 = vunpack.i.h.bf16 %v9317_v18 }
 0x800   : > { %2757 = vst.msk [vmem:[#allocation8 + $0x708] sm:$0xff] %vm1422_vm2, %v2753_v57  ;;  %3979 = vmatpush.msra.mxu1 %v7858_v54  ;;  %v5214_v9 = vunpack.i.h.bf16 %v9319_v20  ;;  %v5213_v57 = vunpack.i.l.bf16 %v9319_v20  ;;  %v3853_v22 = vperm.slane %v8034_v17, 4  ;;  %vm2777_vm7 = vcmask 113664  }
 0x801   : > { %4118 = vmatpush.msra.mxu3 %v7683_v44  ;;  %v5194_v44 = vunpack.i.h.bf16 %v9315_v5  ;;  %vm2764_vm9 = vcmask 121856   ;;  %v3846_v20 = vperm.slane %v7802_v38, 5 }
 0x802   : > { %3404 = vrot.lane.b32.xlu0 %v7822_v48, %s9177_s26  ;;  %3410 = vrot.lane.b32.xlu1 %v7822_v48, %s9185_s17  ;;  %s4414_s26 = sshll.u32 %s4410_s29, 4  ;;  %s4415_s26 = int_to_ptr.hbm [resolvable:$true] %s4414_s26 }
 0x803   : > { %3416 = vrot.lane.b32.xlu2 %v7822_v48, %s9184_s8  ;;  %4119 = vmatpush.msra.mxu3 %v7704_v49  ;;  %s9324_s8 = smov 60   ;;  %s5311_s23 = sshra.s32 %s4415_s26, 4  ;;  %s5312_s23 = int_to_ptr.hbm [resolvable:$true] %s5311_s23 }
 0x804   : > { %v2696_v21 = vpop.permute.xlu0 %2695  ;;  %v2683_v6 = vpop.permute.xlu1 %2682  ;;  %3980 = vmatpush.msra.mxu1 %v7868_v29  ;;  %s5313_s28 = scalar_lea.hbm %s5312_s23, 2  ;;  %p5318_p0 = scmp.lt.s32.totalorder %s5312_s23, %s9411_s27 }
 0x805   : > { %v8092_v32 = vsel %vm2699_vm1, %v5198_v11, %v2696_v21  ;;  %v2701_v8 = vsel %vm2699_vm1, %v2696_v21, %v5199_v61  ;;  %v8096_v13 = vsel %vm2686_vm8, %v5193_v53, %v2683_v6  ;;  %v2787_v19 = vpop.permute.xlu2 %2786  ;;  %v2688_v49 = vsel %vm2686_vm8, %v2683_v6, %v5194_v44  ;;  %4120 = vmatpush.msra.mxu3 %v7567_v47  ;;  %v9318_v47 = vld [vmem:[#allocation62_spill] sm:$0xff]  ;;  %v9320_v61 = vld [vmem:[#allocation85_spill] sm:$0xff]  ;;  %p5314_p11 = scmp.ne.s32.totalorder %s5312_s23, %s5313_s28  ;;  %p5319_p1 = scmp.lt.s32.totalorder %s5317_s2, %s5313_s28 }
 0x806   : > { %2705 = vst.msk [vmem:[#allocation8 + $0x6c8] sm:$0xff] %vm1422_vm2, %v2701_v8  ;;  %v8103_v54 = vsel %vm2790_vm15, %v5233_v23, %v2787_v19  ;;  %v2792_v60 = vsel %vm2790_vm15, %v2787_v19, %v5234_v35  ;;  %3981 = vmatpush.msra.mxu1 %v7787_v45  ;;  %v5208_v29 = vunpack.i.l.bf16 %v9318_v47  ;;  %v3525_v45 = vld [vmem:[#allocation8 + $0x2f8] sm:$0xff]  ;;  %v5248_v11 = vunpack.i.l.bf16 %v9320_v61  ;;  %v3748_v8 = vld [vmem:[#allocation8 + $0x9f0] sm:$0xff]  ;;  %v3523_v19 = vld [vmem:[#allocation8 + $0x2e8] sm:$0xff] }
 0x807   : > { %4121 = vmatpush.msra.mxu3 %v7632_v0  ;;  %2692 = vst.msk [vmem:[#allocation8 + $0x6b8] sm:$0xff] %vm1422_vm2, %v2688_v49  ;;  %v3814_v0 = vld [vmem:[#allocation8 + $0xc00] sm:$0xff]  ;;  %v5249_v23 = vunpack.i.h.bf16 %v9320_v61  ;;  %vm2946_vm1 = vcmask 7168   ;;  %vm2816_vm8 = vcmask 89088   ;;  %vm2803_vm15 = vcmask 97280   ;;  %p5315_p12 = pnand %p5314_p11, %p5581_p5  ;;  %p5320_p2 = por %p5319_p1, %p5318_p0 }
 0x808   : > { %2796 = vst.msk [vmem:[#allocation8 + $0x738] sm:$0xff] %vm1422_vm2, %v2792_v60  ;;  %3982 = vmatpush.msra.mxu1 %v7831_v59  ;;  %v3746_v60 = vld [vmem:[#allocation8 + $0x9e0] sm:$0xff] }
 0x809   : > { %4122 = vmatpush.msra.mxu3 %v7651_v1  ;;  %v5209_v1 = vunpack.i.h.bf16 %v9318_v47  ;;  %v3521_v47 = vld [vmem:[#allocation8 + $0x2d8] sm:$0xff]  ;;  %p5316_p13 = pneg %p5315_p12 }
 0x80a   : > { %3290 = vrot.lane.b32.xlu0 %v7822_v48, %s9144_s11  ;;  %3296 = vrot.lane.b32.xlu1 %v7822_v48, %s9143_s19 }
 0x80b   : > { %3302 = vrot.lane.b32.xlu2 %v7822_v48, %s9151_s13  ;;  %4123 = vmatpush.msra.mxu3 %v3814_v0  ;;  %v9322_v0 = vld [vmem:[#allocation98_spill] sm:$0xff]  ;;  %s9409_s13 = sld [smem:[#allocation14_spill]]  ;;  %p5321_p3 = pnand %p5320_p2, %p5316_p13 }
 0x80c   : > { %v2735_v5 = vpop.permute.xlu0 %2734  ;;  %v2722_v53 = vpop.permute.xlu1 %2721  ;;  %3983 = vmatpush.msra.mxu1 %v7842_v58  ;;  %4484 = vmatmul.msk.f32.vlgmr.msra.gmra.mxu3 %vm2026_vm14, %v3853_v22  ;;  %v3744_v58 = vld [vmem:[#allocation8 + $0x9d0] sm:$0xff] }
 0x80d   : > { %4168 = vmatpush.msrb.mxu3 %v3525_v45  ;;  %v2739_v44 = vsel %vm2738_vm6, %v5213_v57, %v2735_v5  ;;  %v2740_v21 = vsel %vm2738_vm6, %v2735_v5, %v5214_v9  ;;  %v2726_v6 = vsel %vm2725_vm11, %v5208_v29, %v2722_v53  ;;  %v2826_v18 = vpop.permute.xlu2 %2825  ;;  %v2727_v59 = vsel %vm2725_vm11, %v2722_v53, %v5209_v1  ;;  %v3519_v29 = vld [vmem:[#allocation8 + $0x2c8] sm:$0xff]  ;;  %v9323_v53 = vld [vmem:[#allocation87_spill] sm:$0xff] }
 0x80e   : > { %3988 = vmatpush.msra.mxu2 %v2739_v44  ;;  %2744 = vst.msk [vmem:[#allocation8 + $0x6f8] sm:$0xff] %vm1422_vm2, %v2740_v21  ;;  %v8131_v35 = vsel %vm2829_vm4, %v5248_v11, %v2826_v18  ;;  %4048 = vmatpush.msrb.mxu1 %v3748_v8  ;;  %v2831_v49 = vsel %vm2829_vm4, %v2826_v18, %v5249_v23  ;;  %v9321_v9 = vld [vmem:[#allocation64_spill] sm:$0xff]  ;;  %v5229_v1 = vunpack.i.h.bf16 %v9322_v0  ;;  %v5228_v45 = vunpack.i.l.bf16 %v9322_v0  ;;  %v3517_v11 = vld [vmem:[#allocation8 + $0x2b8] sm:$0xff] }
 0x80f   : > { %4169 = vmatpush.msrb.mxu3 %v3523_v19  ;;  %2731 = vst.msk [vmem:[#allocation8 + $0x6e8] sm:$0xff] %vm1422_vm2, %v2727_v59  ;;  %v5223_v57 = vunpack.i.l.bf16 %v9321_v9  ;;  %v5224_v5 = vunpack.i.h.bf16 %v9321_v9  ;;  %v5263_v61 = vunpack.i.l.bf16 %v9323_v53  ;;  %v5264_v8 = vunpack.i.h.bf16 %v9323_v53  ;;  %3984 = vmatmul.f32.vlgmr.msra.gmra.mxu1 %v3846_v20  ;;  %v3513_v9 = vld [vmem:[#allocation8 + $0x298] sm:$0xff] }
 0x810   : > { %3989 = vmatpush.msra.mxu2 %v2726_v6  ;;  %4049 = vmatpush.msrb.mxu1 %v3746_v60  ;;  %2835 = vst.msk [vmem:[#allocation8 + $0x768] sm:$0xff] %vm1422_vm2, %v2831_v49  ;;  %v3740_v60 = vld [vmem:[#allocation8 + $0x9b0] sm:$0xff]  ;;  %vm2907_vm6 = vcmask 31744   ;;  %vm2855_vm11 = vcmask 64512   ;;  %vm2842_vm4 = vcmask 72704  }
 0x811   : > { %4170 = vmatpush.msrb.mxu3 %v3521_v47  ;;  %v3515_v47 = vld [vmem:[#allocation8 + $0x2a8] sm:$0xff]  ;;  %v9326_v0 = vld [vmem:[#allocation66_spill] sm:$0xff]  ;;  %s323_s3 = sand.u32 1, %s9409_s13  }
 0x812   : > { %3386 = vrot.lane.b32.xlu0 %v7822_v48, %s9172_s15  ;;  %3990 = vmatpush.msra.mxu2 %v8038_v55  ;;  %v3742_v55 = vld [vmem:[#allocation8 + $0x9c0] sm:$0xff]  ;;  %v5239_v53 = vunpack.i.h.bf16 %v9326_v0  ;;  %s4478_s6 = sshll.u32 %s323_s3, 1 }
 0x813   : > { %4050 = vmatpush.msrb.mxu1 %v3744_v58  ;;  %4171 = vmatpush.msrb.mxu3 %v3519_v29  ;;  %v3738_v29 = vld [vmem:[#allocation8 + $0x9a0] sm:$0xff]  ;;  %s325_s30 = scalar_lea.vmem [#allocation10], %s4478_s6 }
 0x814   : > { %3392 = vrot.lane.b32.xlu1 %v7822_v48, %s9180_s24  ;;  %3398 = vrot.lane.b32.xlu2 %v7822_v48, %s9324_s8  ;;  %v2774_v44 = vpop.permute.xlu0 %2773  ;;  %v2761_v21 = vpop.permute.xlu1 %2760  ;;  %s4412_s17 = sshll.u32 %s325_s30, 4  ;;  %s4400_s24 = scalar_lea.sflag [#allocation11], %s323_s3  ;;  %s4413_s17 = int_to_ptr.vmem [resolvable:$true] %s4412_s17 }
 0x815   : > { %4051 = vmatpush.msrb.mxu1 %v3742_v55  ;;  %4172 = vmatpush.msrb.mxu3 %v3517_v11  ;;  %v8153_v6 = vsel %vm2777_vm7, %v5228_v45, %v2774_v44  ;;  %v2779_v18 = vsel %vm2777_vm7, %v2774_v44, %v5229_v1  ;;  %v8157_v23 = vsel %vm2764_vm9, %v5223_v57, %v2761_v21  ;;  %v2943_v59 = vpop.permute.xlu2 %2942  ;;  %v3736_v57 = vld [vmem:[#allocation8 + $0x990] sm:$0xff]  ;;  %v5238_v1 = vunpack.i.l.bf16 %v9326_v0  ;;  %v9327_v45 = vld [vmem:[#allocation99_spill] sm:$0xff] }
 0x816   : > { %v2766_v19 = vsel %vm2764_vm9, %v2761_v21, %v5224_v5  ;;  %v2947_v49 = vsel %vm2946_vm1, %v5263_v61, %v2943_v59  ;;  %3991 = vmatpush.msra.mxu2 %v8092_v32  ;;  %2783 = vst.msk [vmem:[#allocation8 + $0x728] sm:$0xff] %vm1422_vm2, %v2779_v18  ;;  %v2948_v58 = vsel %vm2946_vm1, %v2943_v59, %v5264_v8  ;;  %v3511_v32 = vld [vmem:[#allocation8 + $0x288] sm:$0xff]  ;;  %v5244_v5 = vunpack.i.h.bf16 %v9327_v45  ;;  %v3734_v61 = vld [vmem:[#allocation8 + $0x980] sm:$0xff]  ;;  %v3728_v0 = vld [vmem:[#allocation8 + $0x950] sm:$0xff] }
 0x817   : > { %4052 = vmatpush.msrb.mxu1 %v3740_v60  ;;  %4173 = vmatpush.msrb.mxu3 %v3515_v47  ;;  %2770 = vst.msk [vmem:[#allocation8 + $0x718] sm:$0xff] %vm1422_vm2, %v2766_v19  ;;  %v9330_v44 = vld [vmem:[#allocation89_spill] sm:$0xff]  ;;  %vm2868_vm7 = vcmask 56320   ;;  %vm2920_vm9 = vcmask 23552   ;;  %vm2933_vm1 = vcmask 15360  }
 0x818   : > { %3992 = vmatpush.msra.mxu2 %v8096_v13  ;;  %4008 = vmatpush.msra.mxu0 %v2947_v49  ;;  %v5243_v13 = vunpack.i.l.bf16 %v9327_v45  ;;  %2952 = vst.msk [vmem:[#allocation8 + $0x7f8] sm:$0xff] %vm1422_vm2, %v2948_v58  ;;  %v5278_v21 = vunpack.i.l.bf16 %v9330_v44  ;;  %v5279_v49 = vunpack.i.h.bf16 %v9330_v44  ;;  %v3732_v47 = vld [vmem:[#allocation8 + $0x970] sm:$0xff]  ;;  %v3507_v58 = vld [vmem:[#allocation8 + $0x268] sm:$0xff] }
 0x819   : > { %4053 = vmatpush.msrb.mxu1 %v3738_v29  ;;  %4174 = vmatpush.msrb.mxu3 %v3513_v9 }
 0x81a   : > { %3374 = vrot.lane.b32.xlu0 %v7822_v48, %s9325_s21  ;;  %3993 = vmatpush.msra.mxu2 %v8003_v30  ;;  %v3509_v30 = vld [vmem:[#allocation8 + $0x278] sm:$0xff] }
 0x81b   : > { %4054 = vmatpush.msrb.mxu1 %v3736_v57  ;;  %4175 = vmatpush.msrb.mxu3 %v3511_v32  ;;  %v3730_v57 = vld [vmem:[#allocation8 + $0x960] sm:$0xff]  ;;  %v3505_v32 = vld [vmem:[#allocation8 + $0x258] sm:$0xff] }
 0x81c   : > { %3278 = vrot.lane.b32.xlu1 %v7822_v48, %s9328_s10  ;;  %3284 = vrot.lane.b32.xlu2 %v7822_v48, %s9329_s25  ;;  %v2813_v55 = vpop.permute.xlu0 %2812  ;;  %v2800_v11 = vpop.permute.xlu1 %2799 }
 0x81d   : > { %4055 = vmatpush.msrb.mxu1 %v3734_v61  ;;  %4176 = vmatpush.msrb.mxu3 %v3509_v30  ;;  %v8183_v18 = vsel %vm2816_vm8, %v5243_v13, %v2813_v55  ;;  %v2818_v59 = vsel %vm2816_vm8, %v2813_v55, %v5244_v5  ;;  %v8187_v8 = vsel %vm2803_vm15, %v5238_v1, %v2800_v11  ;;  %v2904_v19 = vpop.permute.xlu2 %2903  ;;  %v3503_v1 = vld [vmem:[#allocation8 + $0x248] sm:$0xff]  ;;  %v3726_v61 = vld [vmem:[#allocation8 + $0x940] sm:$0xff]  ;;  %v3501_v30 = vld [vmem:[#allocation8 + $0x238] sm:$0xff]  ;;  %vm2894_vm8 = vcmask 39936  }
 0x81e   : > { %v2805_v60 = vsel %vm2803_vm15, %v2800_v11, %v5239_v53  ;;  %3994 = vmatpush.msra.mxu2 %v8058_v50  ;;  %2822 = vst.msk [vmem:[#allocation8 + $0x758] sm:$0xff] %vm1422_vm2, %v2818_v59  ;;  %v8194_v29 = vsel %vm2907_vm6, %v5278_v21, %v2904_v19  ;;  %v2909_v9 = vsel %vm2907_vm6, %v2904_v19, %v5279_v49  ;;  %v9331_v50 = vld [vmem:[#allocation67_spill] sm:$0xff]  ;;  %v9332_v5 = vld [vmem:[#allocation100_spill] sm:$0xff]  ;;  %v3724_v19 = vld [vmem:[#allocation8 + $0x930] sm:$0xff]  ;;  %vm9356_vm15 = vcmask 596992  }
 0x81f   : > { %4056 = vmatpush.msrb.mxu1 %v3732_v47  ;;  %4177 = vmatpush.msrb.mxu3 %v3507_v58  ;;  %2809 = vst.msk [vmem:[#allocation8 + $0x748] sm:$0xff] %vm1422_vm2, %v2805_v60  ;;  %v5253_v45 = vunpack.i.l.bf16 %v9331_v50  ;;  %v5259_v13 = vunpack.i.h.bf16 %v9332_v5  ;;  %v5258_v53 = vunpack.i.l.bf16 %v9332_v5  ;;  %v3499_v49 = vld [vmem:[#allocation8 + $0x228] sm:$0xff]  ;;  %v3722_v47 = vld [vmem:[#allocation8 + $0x920] sm:$0xff]  ;;  %v3497_v58 = vld [vmem:[#allocation8 + $0x218] sm:$0xff]  ;;  %vm9359_vm6 = vcmask 580608  }
 0x820   : > { %3995 = vmatpush.msra.mxu2 %v8062_v2  ;;  %2913 = vst.msk [vmem:[#allocation8 + $0x7c8] sm:$0xff] %vm1422_vm2, %v2909_v9  ;;  %v5254_v2 = vunpack.i.h.bf16 %v9331_v50  ;;  %v8229_v9 = vld [vmem:[%s9285_s22] sm:$0xff]  ;;  %v3653_v5 = vld [vmem:[#allocation8 + $0x6f8] sm:$0xff] }
 0x821   : > { %4057 = vmatpush.msrb.mxu1 %v3730_v57  ;;  %4178 = vmatpush.msrb.mxu3 %v3505_v32  ;;  %v3720_v57 = vld [vmem:[#allocation8 + $0x910] sm:$0xff]  ;;  %v3495_v32 = vld [vmem:[#allocation8 + $0x208] sm:$0xff] }
 0x822   : > { %3996 = vmatpush.msra.mxu2 %v7979_v27 }
 0x823   : > { %4058 = vmatpush.msrb.mxu1 %v3728_v0  ;;  %4179 = vmatpush.msrb.mxu3 %v3503_v1  ;;  %v9336_v1 = vld [vmem:[#allocation101_spill] sm:$0xff] }
 0x824   : > { %3380 = vrot.lane.b32.xlu2 %v7822_v48, %s9333_s5  ;;  %v2852_v55 = vpop.permute.xlu0 %2851  ;;  %v2839_v11 = vpop.permute.xlu1 %2838  ;;  %3997 = vmatpush.msra.mxu2 %v8016_v39  ;;  %v9334_v39 = vld [vmem:[#allocation91_spill] sm:$0xff]  ;;  %v5274_v50 = vunpack.i.h.bf16 %v9336_v1 }
 0x825   : > { %4059 = vmatpush.msrb.mxu1 %v3726_v61  ;;  %4180 = vmatpush.msrb.mxu3 %v3501_v30  ;;  %v8209_v27 = vsel %vm2855_vm11, %v5258_v53, %v2852_v55  ;;  %v2857_v44 = vsel %vm2855_vm11, %v2852_v55, %v5259_v13  ;;  %v8213_v21 = vsel %vm2842_vm4, %v5253_v45, %v2839_v11  ;;  %v8215_v59 = vpop.permute.xlu2 %2864  ;;  %v5273_v45 = vunpack.i.l.bf16 %v9336_v1  ;;  %v3718_v53 = vld [vmem:[#allocation8 + $0x900] sm:$0xff]  ;;  %v3645_v1 = vld [vmem:[#allocation8 + $0x6b8] sm:$0xff] }
 0x826   : > { %v2844_v48 = vsel %vm2842_vm4, %v2839_v11, %v5254_v2  ;;  %3998 = vmatpush.msra.mxu2 %v8024_v28  ;;  %2861 = vst.msk [vmem:[#allocation8 + $0x788] sm:$0xff] %vm1422_vm2, %v2857_v44  ;;  %v8223_v60 = vsel %vm2868_vm7, %v9334_v39, %v8215_v59  ;;  %v3844_v28 = vperm.slane %v8229_v9, 3  ;;  %v3461_v11 = vld [vmem:[#allocation8 + $0xf8] sm:$0xff]  ;;  %v3459_v39 = vld [vmem:[#allocation8 + $0xe8] sm:$0xff]  ;;  %vm9361_vm11 = vcmask 564224  }
 0x827   : > { %4060 = vmatpush.msrb.mxu1 %v3724_v19  ;;  %4181 = vmatpush.msrb.mxu3 %v3499_v49  ;;  %2848 = vst.msk [vmem:[#allocation8 + $0x778] sm:$0xff] %vm1422_vm2, %v2844_v48  ;;  %v3651_v48 = vld [vmem:[#allocation8 + $0x6e8] sm:$0xff]  ;;  %v9337_v49 = vunpack.i.h.bf16 %v6194_v56  ;;  %v9338_v56 = vld [vmem:[#allocation71_spill] sm:$0xff]  ;;  %vm9363_vm4 = vcmask 465920  }
 0x828   : > { %3999 = vmatpush.msra.mxu2 %v7955_v46  ;;  %3944 = vmatmul.f32.vlgmr.msrb.gmra.mxu0 %v3844_v28  ;;  %v9335_v46 = vld [vmem:[#allocation69_spill] sm:$0xff] }
 0x829   : > { %4061 = vmatpush.msrb.mxu1 %v3722_v47  ;;  %4182 = vmatpush.msrb.mxu3 %v3497_v58  ;;  %v5268_v0 = vunpack.i.l.bf16 %v9335_v46  ;;  %v5269_v13 = vunpack.i.h.bf16 %v9335_v46  ;;  %v3649_v47 = vld [vmem:[#allocation8 + $0x6d8] sm:$0xff]  ;;  %v3843_v58 = vperm.slane %v8229_v9, 2  ;;  %v5283_v46 = vunpack.i.l.bf16 %v9338_v56 }
 0x82a   : > { %4000 = vmatpush.msra.mxu2 %v7986_v16 }
 0x82b   : > { %4062 = vmatpush.msrb.mxu1 %v3720_v57  ;;  %4183 = vmatpush.msrb.mxu3 %v3495_v32  ;;  %v3457_v57 = vld [vmem:[#allocation8 + $0xd8] sm:$0xff]  ;;  %v3647_v32 = vld [vmem:[#allocation8 + $0x6c8] sm:$0xff] }
 0x82c   : > { %v2917_v2 = vpop.permute.xlu0 %2916  ;;  %v2930_v61 = vpop.permute.xlu1 %2929  ;;  %4001 = vmatpush.msra.mxu2 %v7994_v33  ;;  %4184 = vmatmul.f32.vlgmr.msrb.gmra.mxu3 %v3843_v58 }
 0x82d   : > { %4248 = vmatpush.msra.mxu3 %v3653_v5  ;;  %4063 = vmatpush.msrb.mxu1 %v3718_v53  ;;  %v2921_v16 = vsel %vm2920_vm9, %v5273_v45, %v2917_v2  ;;  %v2922_v30 = vsel %vm2920_vm9, %v2917_v2, %v5274_v50  ;;  %v2934_v55 = vsel %vm2933_vm1, %v5268_v0, %v2930_v61  ;;  %v3261_v44 = vpop.permute.xlu2 %3260  ;;  %v3455_v0 = vld [vmem:[#allocation8 + $0xc8] sm:$0xff]  ;;  %v3780_v45 = vld [vmem:[#allocation8 + $0xaf0] sm:$0xff]  ;;  %vm9368_vm9 = vcmask 621568  }
 0x82e   : > { %v2935_v19 = vsel %vm2933_vm1, %v2930_v61, %v5269_v13  ;;  %2926 = vst.msk [vmem:[#allocation8 + $0x7d8] sm:$0xff] %vm1422_vm2, %v2922_v30  ;;  %v3262_v33 = vsel %vm1883_vm12, %v9337_v49, %v3261_v44  ;;  %4002 = vmatpush.msra.mxu2 %v7928_v36  ;;  %4009 = vmatpush.msra.mxu0 %v2934_v55  ;;  %vm2881_vm12 = vcmask 48128   ;;  %v5284_v36 = vunpack.i.h.bf16 %v9338_v56  ;;  %v9339_v5 = vld [vmem:[#allocation102_spill] sm:$0xff]  ;;  %v3643_v30 = vld [vmem:[#allocation8 + $0x6a8] sm:$0xff] }
 0x82f   : > { %4128 = vmatpush.msra.mxu1 %v3461_v11  ;;  %4249 = vmatpush.msra.mxu3 %v3651_v48  ;;  %2939 = vst.msk [vmem:[#allocation8 + $0x7e8] sm:$0xff] %vm1422_vm2, %v2935_v19  ;;  %v3453_v61 = vld [vmem:[#allocation8 + $0xb8] sm:$0xff]  ;;  %v3778_v11 = vld [vmem:[#allocation8 + $0xae0] sm:$0xff]  ;;  %v3451_v44 = vld [vmem:[#allocation8 + $0xa8] sm:$0xff]  ;;  %v9341_v56 = vunpack.i.h.bf16 %v9216_v42  ;;  %vm9371_vm1 = vcmask 613376  }
 0x830   : > { %4003 = vmatpush.msra.mxu2 %v7962_v12  ;;  %4010 = vmatpush.msra.mxu0 %v2921_v16  ;;  %3265 = vst.msk [vmem:[#allocation8 + $0xad8] sm:$0xff] %vm1422_vm2, %v3262_v33  ;;  %v3641_v48 = vld [vmem:[#allocation8 + $0x698] sm:$0xff]  ;;  %v3776_v19 = vld [vmem:[#allocation8 + $0xad0] sm:$0xff]  ;;  %v3639_v33 = vld [vmem:[#allocation8 + $0x688] sm:$0xff] }
 0x831   : > { %4129 = vmatpush.msra.mxu1 %v3459_v39  ;;  %4250 = vmatpush.msra.mxu3 %v3649_v47  ;;  %v3449_v49 = vld [vmem:[#allocation8 + $0x98] sm:$0xff]  ;;  %v3447_v39 = vld [vmem:[#allocation8 + $0x88] sm:$0xff]  ;;  %v3770_v42 = vld [vmem:[#allocation8 + $0xaa0] sm:$0xff] }
 0x832   : > { %3924 = vmatmul.f32.vlgmr.msrb.gmra.mxu2 %v3843_v58  ;;  %4011 = vmatpush.msra.mxu0 %v8194_v29  ;;  %v9340_v29 = vunpack.i.h.bf16 %v9242_v34  ;;  %v3774_v34 = vld [vmem:[#allocation8 + $0xac0] sm:$0xff]  ;;  %v3637_v47 = vld [vmem:[#allocation8 + $0x678] sm:$0xff] }
 0x833   : > { %4130 = vmatpush.msra.mxu1 %v3457_v57  ;;  %4251 = vmatpush.msra.mxu3 %v3647_v32  ;;  %v3772_v32 = vld [vmem:[#allocation8 + $0xab0] sm:$0xff] }
 0x834   : > { %v8257_v50 = vpop.permute.xlu0 %2877  ;;  %v2891_v12 = vpop.permute.xlu1 %2890  ;;  %4068 = vmatpush.msrb.mxu2 %v3780_v45  ;;  %v3635_v45 = vld [vmem:[#allocation8 + $0x668] sm:$0xff] }
 0x835   : > { %4131 = vmatpush.msra.mxu1 %v3455_v0  ;;  %4252 = vmatpush.msra.mxu3 %v3645_v1  ;;  %v2882_v13 = vsel %vm2881_vm12, %v9339_v5, %v8257_v50  ;;  %v2895_v53 = vsel %vm2894_vm8, %v5283_v46, %v2891_v12  ;;  %v2896_v2 = vsel %vm2894_vm8, %v2891_v12, %v5284_v36  ;;  %v3369_v16 = vpop.permute.xlu2 %3368  ;;  %v9342_v46 = vunpack.i.h.bf16 %v6220_v25  ;;  %v3445_v1 = vld [vmem:[#allocation8 + $0x78] sm:$0xff]  ;;  %v3443_v25 = vld [vmem:[#allocation8 + $0x68] sm:$0xff] }
 0x836   : > { %v3370_v55 = vsel %vm2116_vm10, %v9340_v29, %v3369_v16  ;;  %4069 = vmatpush.msrb.mxu2 %v3778_v11  ;;  %4012 = vmatpush.msra.mxu0 %v2895_v53  ;;  %2900 = vst.msk [vmem:[#allocation8 + $0x7b8] sm:$0xff] %vm1422_vm2, %v2896_v2  ;;  %v3441_v53 = vld [vmem:[#allocation8 + $0x58] sm:$0xff]  ;;  %v3631_v2 = vld [vmem:[#allocation8 + $0x648] sm:$0xff]  ;;  %v3764_v11 = vld [vmem:[#allocation8 + $0xa70] sm:$0xff]  ;;  %vm9354_vm10 = vcmask 711680   ;;  %vm9377_vm8 = vcmask 490496  }
 0x837   : > { %4132 = vmatpush.msra.mxu1 %v3453_v61  ;;  %4253 = vmatpush.msra.mxu3 %v3643_v30  ;;  %3373 = vst.msk [vmem:[#allocation8 + $0xbf8] sm:$0xff] %vm1422_vm2, %v3370_v55  ;;  %v3832_v61 = vld [vmem:[#allocation9] sm:$0x1]  ;;  %v3439_v16 = vld [vmem:[#allocation8 + $0x48] sm:$0xff]  ;;  %v3629_v30 = vld [vmem:[#allocation8 + $0x638] sm:$0xff] }
 0x838   : > { %4070 = vmatpush.msrb.mxu2 %v3776_v19  ;;  %4013 = vmatpush.msra.mxu0 %v2882_v13  ;;  %v3633_v13 = vld [vmem:[#allocation8 + $0x658] sm:$0xff] }
 0x839   : > { %4133 = vmatpush.msra.mxu1 %v3451_v44  ;;  %4254 = vmatpush.msra.mxu3 %v3641_v48  ;;  %v3437_v19 = vld [vmem:[#allocation8 + $0x38] sm:$0xff] }
 0x83a   : > { %4071 = vmatpush.msrb.mxu2 %v3774_v34  ;;  %4014 = vmatpush.msra.mxu0 %v8223_v60  ;;  %v9343_v60 = vunpack.i.h.bf16 %v9245_v41  ;;  %v3766_v41 = vld [vmem:[#allocation8 + $0xa80] sm:$0xff]  ;;  %v9345_v34 = vunpack.i.h.bf16 %v9238_v24  ;;  %v3433_v24 = vld [vmem:[#allocation8 + $0x18] sm:$0xff] }
 0x83b   : > { %4134 = vmatpush.msra.mxu1 %v3449_v49  ;;  %4255 = vmatpush.msra.mxu3 %v3639_v33  ;;  %v3627_v33 = vld [vmem:[#allocation8 + $0x628] sm:$0xff] }
 0x83c   : > { %v3255_v58 = vpop.permute.xlu0 %3254  ;;  %v3267_v57 = vpop.permute.xlu1 %3266  ;;  %4072 = vmatpush.msrb.mxu2 %v3772_v32  ;;  %4015 = vmatpush.msra.mxu0 %v8209_v27  ;;  %v3768_v27 = vld [vmem:[#allocation8 + $0xa90] sm:$0xff]  ;;  %v3781_v32 = vld [vmem:[#allocation8 + $0xaf8] sm:$0xff] }
 0x83d   : > { %4135 = vmatpush.msra.mxu1 %v3447_v39  ;;  %4256 = vmatpush.msra.mxu3 %v3637_v47  ;;  %v3256_v36 = vsel %vm1870_vm13, %v9341_v56, %v3255_v58  ;;  %v3268_v0 = vsel %vm1896_vm5, %v9342_v46, %v3267_v57  ;;  %v3363_v12 = vpop.permute.xlu2 %3362  ;;  %v3625_v47 = vld [vmem:[#allocation8 + $0x618] sm:$0xff]  ;;  %v3623_v58 = vld [vmem:[#allocation8 + $0x608] sm:$0xff]  ;;  %v3760_v57 = vld [vmem:[#allocation8 + $0xa50] sm:$0xff]  ;;  %vm9350_vm5 = vcmask 572416   ;;  %vm9352_vm13 = vcmask 556032  }
 0x83e   : > { %3259 = vst.msk [vmem:[#allocation8 + $0xac8] sm:$0xff] %vm1422_vm2, %v3256_v36  ;;  %v3364_v5 = vsel %vm331_vm0, %v9343_v60, %v3363_v12  ;;  %4073 = vmatpush.msrb.mxu2 %v3770_v42  ;;  %4016 = vmatpush.msra.mxu0 %v8213_v21  ;;  %v3850_v21 = vperm.slane %v8034_v17, 1  ;;  %vm9346_vm0 = vcmask 547840   ;;  %v3431_v56 = vld [vmem:[#allocation8 + $0x8] sm:$0xff]  ;;  %v3758_v46 = vld [vmem:[#allocation8 + $0xa40] sm:$0xff]  ;;  %v9349_v42 = vunpack.i.h.bf16 %v9232_v43 }
 0x83f   : > { %4136 = vmatpush.msra.mxu1 %v3445_v1  ;;  %4257 = vmatpush.msra.mxu3 %v3635_v45  ;;  %3271 = vst.msk [vmem:[#allocation8 + $0xae8] sm:$0xff] %vm1422_vm2, %v3268_v0  ;;  %v3589_v0 = vld [vmem:[#allocation8 + $0x4f8] sm:$0xff]  ;;  %v9347_v45 = vunpack.i.h.bf16 %v6180_v63  ;;  %v3754_v63 = vld [vmem:[#allocation8 + $0xa20] sm:$0xff]  ;;  %v3848_v43 = vperm.slane %v8229_v9, 7 }
 0x840   : > { %3367 = vst.msk [vmem:[#allocation8 + $0xbe8] sm:$0xff] %vm1422_vm2, %v3364_v5  ;;  %4074 = vmatpush.msrb.mxu2 %v3768_v27  ;;  %4017 = vmatpush.msra.mxu0 %v8131_v35  ;;  %v9344_v35 = vunpack.i.h.bf16 %v6210_v7  ;;  %v3435_v7 = vld [vmem:[#allocation8 + $0x28] sm:$0xff] }
 0x841   : > { %4137 = vmatpush.msra.mxu1 %v3443_v25  ;;  %4258 = vmatpush.msra.mxu3 %v3633_v13  ;;  %v3756_v13 = vld [vmem:[#allocation8 + $0xa30] sm:$0xff]  ;;  %v3587_v27 = vld [vmem:[#allocation8 + $0x4e8] sm:$0xff] }
 0x842   : > { %4075 = vmatpush.msrb.mxu2 %v3766_v41  ;;  %4018 = vmatpush.msra.mxu0 %v8183_v18  ;;  %v3847_v18 = vperm.slane %v8229_v9, 6  ;;  %v3583_v41 = vld [vmem:[#allocation8 + $0x4c8] sm:$0xff] }
 0x843   : > { %4138 = vmatpush.msra.mxu1 %v3441_v53  ;;  %4259 = vmatpush.msra.mxu3 %v3631_v2 }
 0x844   : > { %v2880_v29 = vpop.permute.xlu0 %2879  ;;  %v3249_v55 = vpop.permute.xlu1 %3248  ;;  %4076 = vmatpush.msrb.mxu2 %v3764_v11  ;;  %3835 = vperm.xlu1 %5285, %v3832_v61   ;;  %v3851_v61 = vperm.slane %v8034_v17, 2 }
 0x845   : > { %4139 = vmatpush.msra.mxu1 %v3439_v16  ;;  %4260 = vmatpush.msra.mxu3 %v3629_v30  ;;  %v2883_v44 = vsel %vm2881_vm12, %v8257_v50, %v2880_v29  ;;  %v3250_v48 = vsel %vm1857_vm3, %v9344_v35, %v3249_v55  ;;  %v3357_v49 = vpop.permute.xlu2 %3356  ;;  %v3762_v50 = vld [vmem:[#allocation8 + $0xa60] sm:$0xff]  ;;  %vm9348_vm3 = vcmask 703488   ;;  %v3775_v53 = vld [vmem:[#allocation8 + $0xac8] sm:$0xff]  ;;  %v3581_v30 = vld [vmem:[#allocation8 + $0x4b8] sm:$0xff]  ;;  %vm9374_vm12 = vcmask 605184  }
 0x846   : > { %2887 = vst.msk [vmem:[#allocation8 + $0x7a8] sm:$0xff] %vm1422_vm2, %v2883_v44  ;;  %v3358_v39 = vsel %vm9346_vm0, %v9345_v34, %v3357_v49  ;;  %4077 = vmatpush.msrb.mxu2 %v3762_v50  ;;  %4064 = vmatmul.f32.vlgmr.msrb.gmra.mxu1 %v3850_v21  ;;  %v3779_v36 = vld [vmem:[#allocation8 + $0xae8] sm:$0xff]  ;;  %v3750_v16 = vld [vmem:[#allocation8 + $0xa00] sm:$0xff]  ;;  %v3493_v44 = vld [vmem:[#allocation8 + $0x1f8] sm:$0xff]  ;;  %v9355_v49 = vunpack.i.h.bf16 %v9225_v4  ;;  %vm9380_vm0 = vcmask 482304  }
 0x847   : > { %4140 = vmatpush.msra.mxu1 %v3437_v19  ;;  %4261 = vmatpush.msra.mxu3 %v3627_v33  ;;  %3253 = vst.msk [vmem:[#allocation8 + $0xab8] sm:$0xff] %vm1422_vm2, %v3250_v48  ;;  %v3812_v35 = vld [vmem:[#allocation8 + $0xbf0] sm:$0xff]  ;;  %v9353_v48 = vunpack.i.h.bf16 %v6056_v14  ;;  %v3579_v34 = vld [vmem:[#allocation8 + $0x4a8] sm:$0xff]  ;;  %v3810_v14 = vld [vmem:[#allocation8 + $0xbe0] sm:$0xff] }
 0x848   : > { %3361 = vst.msk [vmem:[#allocation8 + $0xbd8] sm:$0xff] %vm1422_vm2, %v3358_v39  ;;  %4004 = vmatmul.f32.vlgmr.msra.gmra.mxu2 %v3847_v18  ;;  %4019 = vmatpush.msra.mxu0 %v8187_v8  ;;  %v3491_v39 = vld [vmem:[#allocation8 + $0x1e8] sm:$0xff]  ;;  %v3577_v50 = vld [vmem:[#allocation8 + $0x498] sm:$0xff] }
 0x849   : > { %4141 = vmatpush.msra.mxu1 %v3435_v7  ;;  %4262 = vmatpush.msra.mxu3 %v3625_v47  ;;  %v3489_v4 = vld [vmem:[#allocation8 + $0x1d8] sm:$0xff]  ;;  %v3808_v7 = vld [vmem:[#allocation8 + $0xbd0] sm:$0xff]  ;;  %v3575_v47 = vld [vmem:[#allocation8 + $0x488] sm:$0xff] }
 0x84a   : > { %4078 = vmatpush.msrb.mxu2 %v3760_v57  ;;  %4020 = vmatpush.msra.mxu0 %v8103_v54  ;;  %v3777_v54 = vld [vmem:[#allocation8 + $0xad8] sm:$0xff]  ;;  %v3806_v57 = vld [vmem:[#allocation8 + $0xbc0] sm:$0xff] }
 0x84b   : > { %4142 = vmatpush.msra.mxu1 %v3433_v24  ;;  %4263 = vmatpush.msra.mxu3 %v3623_v58  ;;  %v9357_v24 = vperm.slane %v7802_v38, 0  ;;  %v3487_v58 = vld [vmem:[#allocation8 + $0x1c8] sm:$0xff] }
 0x84c   : > { %v2867_v1 = vpop.permute.xlu0 %2866  ;;  %v3243_v12 = vpop.permute.xlu1 %3242  ;;  %4079 = vmatpush.msrb.mxu2 %v3758_v46  ;;  %4021 = vmatpush.msra.mxu0 %v8153_v6  ;;  %v3752_v6 = vld [vmem:[#allocation8 + $0xa10] sm:$0xff] }
 0x84d   : > { %4328 = vmatpush.msrb.mxu3 %v3781_v32  ;;  %4143 = vmatpush.msra.mxu1 %v3431_v56  ;;  %v2870_v8 = vsel %vm2868_vm7, %v8215_v59, %v2867_v1  ;;  %v3244_v60 = vsel %vm9348_vm3, %v9347_v45, %v3243_v12  ;;  %v3339_v5 = vpop.permute.xlu2 %3338  ;;  %v3585_v59 = vld [vmem:[#allocation8 + $0x4d8] sm:$0xff]  ;;  %vm9365_vm7 = vcmask 457728   ;;  %vm9383_vm3 = vcmask 474112  }
 0x84e   : > { %2874 = vst.msk [vmem:[#allocation8 + $0x798] sm:$0xff] %vm1422_vm2, %v2870_v8  ;;  %v3340_v25 = vsel %vm9350_vm5, %v9349_v42, %v3339_v5  ;;  %4080 = vmatpush.msrb.mxu2 %v3756_v13  ;;  %4022 = vmatpush.msra.mxu0 %v8157_v23  ;;  %v3773_v2 = vld [vmem:[#allocation8 + $0xab8] sm:$0xff]  ;;  %v9351_v23 = vunpack.i.h.bf16 %v9249_v40  ;;  %v9360_v8 = vunpack.i.h.bf16 %v9251_v3  ;;  %v3804_v5 = vld [vmem:[#allocation8 + $0xbb0] sm:$0xff]  ;;  %v3571_v42 = vld [vmem:[#allocation8 + $0x468] sm:$0xff]  ;;  %vm9386_vm5 = vcmask 646144  }
 0x84f   : > { %4208 = vmatpush.msrb.mxu1 %v3589_v0  ;;  %4329 = vmatpush.msrb.mxu3 %v3779_v36  ;;  %3247 = vst.msk [vmem:[#allocation8 + $0xaa8] sm:$0xff] %vm1422_vm2, %v3244_v60  ;;  %v3573_v32 = vld [vmem:[#allocation8 + $0x478] sm:$0xff]  ;;  %v9358_v36 = vunpack.i.h.bf16 %v9239_v62  ;;  %v9362_v60 = vunpack.i.h.bf16 %v9275_v15  ;;  %v3483_v62 = vld [vmem:[#allocation8 + $0x1a8] sm:$0xff]  ;;  %v3802_v3 = vld [vmem:[#allocation8 + $0xba0] sm:$0xff] }
 0x850   : > { %3343 = vst.msk [vmem:[#allocation8 + $0xba8] sm:$0xff] %vm1422_vm2, %v3340_v25  ;;  %4081 = vmatpush.msrb.mxu2 %v3754_v63  ;;  %4023 = vmatpush.msra.mxu0 %v8069_v51  ;;  %v3485_v1 = vld [vmem:[#allocation8 + $0x1b8] sm:$0xff]  ;;  %v3767_v15 = vld [vmem:[#allocation8 + $0xa88] sm:$0xff] }
 0x851   : > { %4209 = vmatpush.msrb.mxu1 %v3587_v27  ;;  %4330 = vmatpush.msrb.mxu3 %v3777_v54  ;;  %v3569_v13 = vld [vmem:[#allocation8 + $0x458] sm:$0xff]  ;;  %v3800_v54 = vld [vmem:[#allocation8 + $0xb90] sm:$0xff]  ;;  %v3567_v63 = vld [vmem:[#allocation8 + $0x448] sm:$0xff] }
 0x852   : > { %4082 = vmatpush.msrb.mxu2 %v3752_v6  ;;  %4024 = vmatmul.f32.vlgmr.msra.gmra.mxu0 %v3848_v43  ;;  %v3481_v27 = vld [vmem:[#allocation8 + $0x198] sm:$0xff] }
 0x853   : > { %4210 = vmatpush.msrb.mxu1 %v3585_v59  ;;  %4331 = vmatpush.msrb.mxu3 %v3775_v53  ;;  %v3479_v59 = vld [vmem:[#allocation8 + $0x188] sm:$0xff]  ;;  %v3765_v53 = vld [vmem:[#allocation8 + $0xa78] sm:$0xff] }
 0x854   : > { %v3351_v29 = vpop.permute.xlu0 %3350  ;;  %4083 = vmatpush.msrb.mxu2 %v3750_v16  ;;  %v3237_v11 = vpop.permute.xlu1 %3236  ;;  %4088 = vmatpush.msrb.mxu0 %v3812_v35  ;;  %v3565_v6 = vld [vmem:[#allocation8 + $0x438] sm:$0xff]  ;;  %v9364_v16 = vunpack.i.h.bf16 %v9274_v26  ;;  %v9367_v35 = vunpack.i.h.bf16 %v9220_v37  ;;  %v3563_v26 = vld [vmem:[#allocation8 + $0x428] sm:$0xff] }
 0x855   : > { %4211 = vmatpush.msrb.mxu1 %v3583_v41  ;;  %4332 = vmatpush.msrb.mxu3 %v3773_v2  ;;  %v3352_v55 = vsel %vm9352_vm13, %v9351_v23, %v3351_v29  ;;  %v3321_v51 = vpop.permute.xlu2 %3320  ;;  %v3238_v19 = vsel %vm9354_vm10, %v9353_v48, %v3237_v11  ;;  %v3798_v2 = vld [vmem:[#allocation8 + $0xb80] sm:$0xff]  ;;  %v3477_v23 = vld [vmem:[#allocation8 + $0x178] sm:$0xff]  ;;  %v3763_v11 = vld [vmem:[#allocation8 + $0xa68] sm:$0xff]  ;;  %vm9389_vm13 = vcmask 637952   ;;  %vm9392_vm10 = vcmask 629760  }
 0x856   : > { %3355 = vst.msk [vmem:[#allocation8 + $0xbc8] sm:$0xff] %vm1422_vm2, %v3352_v55  ;;  %4148 = vmatpush.msra.mxu2 %v3493_v44  ;;  %v3322_v33 = vsel %vm9356_vm15, %v9355_v49, %v3321_v51  ;;  %v3771_v40 = vld [vmem:[#allocation8 + $0xaa8] sm:$0xff]  ;;  %4089 = vmatpush.msrb.mxu0 %v3810_v14  ;;  %v9366_v44 = vunpack.i.h.bf16 %v9244_v52  ;;  %v3794_v52 = vld [vmem:[#allocation8 + $0xb60] sm:$0xff]  ;;  %v3473_v37 = vld [vmem:[#allocation8 + $0x158] sm:$0xff]  ;;  %vm9395_vm15 = vcmask 515072  }
 0x857   : > { %4212 = vmatpush.msrb.mxu1 %v3581_v30  ;;  %3241 = vst.msk [vmem:[#allocation8 + $0xa98] sm:$0xff] %vm1422_vm2, %v3238_v19  ;;  %4084 = vmatmul.f32.vlgmr.msrb.gmra.mxu2 %v3851_v61  ;;  %v3796_v19 = vld [vmem:[#allocation8 + $0xb70] sm:$0xff]  ;;  %v3475_v49 = vld [vmem:[#allocation8 + $0x168] sm:$0xff] }
 0x858   : > { %3325 = vst.msk [vmem:[#allocation8 + $0xb78] sm:$0xff] %vm1422_vm2, %v3322_v33  ;;  %4149 = vmatpush.msra.mxu2 %v3491_v39  ;;  %4333 = vmatpush.msrb.mxu3 %v3771_v40  ;;  %v3761_v33 = vld [vmem:[#allocation8 + $0xa58] sm:$0xff]  ;;  %v3759_v40 = vld [vmem:[#allocation8 + $0xa48] sm:$0xff]  ;;  %v3792_v39 = vld [vmem:[#allocation8 + $0xb50] sm:$0xff] }
 0x859   : > { %4213 = vmatpush.msrb.mxu1 %v3579_v34  ;;  %4090 = vmatpush.msrb.mxu0 %v3808_v7  ;;  %v3561_v34 = vld [vmem:[#allocation8 + $0x418] sm:$0xff]  ;;  %v3559_v14 = vld [vmem:[#allocation8 + $0x408] sm:$0xff] }
 0x85a   : > { %4150 = vmatpush.msra.mxu2 %v3489_v4  ;;  %4144 = vmatmul.f32.vlgmr.msra.gmra.mxu1 %v9357_v24  ;;  %v3717_v4 = vld [vmem:[#allocation8 + $0x8f8] sm:$0xff] }
 0x85b   : > { %4214 = vmatpush.msrb.mxu1 %v3577_v50  ;;  %4264 = vmatmul.f32.vlgmr.msra.gmra.mxu3 %v3847_v18  ;;  %v3471_v50 = vld [vmem:[#allocation8 + $0x148] sm:$0xff]  ;;  %v3757_v7 = vld [vmem:[#allocation8 + $0xa38] sm:$0xff] }
 0x85c   : > { %4151 = vmatpush.msra.mxu2 %v3487_v58  ;;  %v3333_v56 = vpop.permute.xlu0 %3332  ;;  %4091 = vmatpush.msrb.mxu0 %v3806_v57  ;;  %v3345_v0 = vpop.permute.xlu1 %3344  ;;  %v9369_v58 = vld [vmem:[#allocation24_spill] sm:$0xff] }
 0x85d   : > { %4215 = vmatpush.msrb.mxu1 %v3575_v47  ;;  %v3334_v46 = vsel %vm9359_vm6, %v9358_v36, %v3333_v56  ;;  %v3417_v12 = vpop.permute.xlu2 %3416  ;;  %v3346_v45 = vsel %vm9361_vm11, %v9360_v8, %v3345_v0  ;;  %v3790_v47 = vld [vmem:[#allocation8 + $0xb40] sm:$0xff]  ;;  %v9370_v57 = vunpack.i.h.bf16 %v9369_v58  ;;  %v3469_v36 = vld [vmem:[#allocation8 + $0x138] sm:$0xff]  ;;  %vm9398_vm6 = vcmask 506880  }
 0x85e   : > { %3337 = vst.msk [vmem:[#allocation8 + $0xb98] sm:$0xff] %vm1422_vm2, %v3334_v46  ;;  %4152 = vmatpush.msra.mxu2 %v3485_v1  ;;  %v3418_v18 = vsel %vm9363_vm4, %v9362_v60, %v3417_v12  ;;  %v3769_v25 = vld [vmem:[#allocation8 + $0xa98] sm:$0xff]  ;;  %4092 = vmatpush.msrb.mxu0 %v3804_v5  ;;  %v3715_v46 = vld [vmem:[#allocation8 + $0x8e8] sm:$0xff]  ;;  %v3788_v60 = vld [vmem:[#allocation8 + $0xb30] sm:$0xff]  ;;  %vm9401_vm11 = vcmask 498688   ;;  %vm9405_vm4 = vcmask 523264  }
 0x85f   : > { %4216 = vmatpush.msrb.mxu1 %v3573_v32  ;;  %3349 = vst.msk [vmem:[#allocation8 + $0xbb8] sm:$0xff] %vm1422_vm2, %v3346_v45  ;;  %4334 = vmatpush.msrb.mxu3 %v3769_v25  ;;  %v9372_v0 = vld [vmem:[#allocation30_spill] sm:$0xff]  ;;  %v3755_v45 = vld [vmem:[#allocation8 + $0xa28] sm:$0xff] }
 0x860   : > { %3421 = vst.msk [vmem:[#allocation8 + $0xc78] sm:$0xff] %vm1422_vm2, %v3418_v18  ;;  %4153 = vmatpush.msra.mxu2 %v3483_v62  ;;  %4093 = vmatpush.msrb.mxu0 %v3802_v3  ;;  %v9373_v1 = vunpack.i.h.bf16 %v9372_v0  ;;  %v9375_v18 = vld [vmem:[#allocation43_spill] sm:$0xff]  ;;  %v3467_v25 = vld [vmem:[#allocation8 + $0x128] sm:$0xff] }
 0x861   : > { %4217 = vmatpush.msrb.mxu1 %v3571_v42  ;;  %4335 = vmatpush.msrb.mxu3 %v3767_v15  ;;  %v9376_v5 = vunpack.i.h.bf16 %v9375_v18  ;;  %v3713_v62 = vld [vmem:[#allocation8 + $0x8d8] sm:$0xff]  ;;  %v3711_v15 = vld [vmem:[#allocation8 + $0x8c8] sm:$0xff] }
 0x862   : > { %4154 = vmatpush.msra.mxu2 %v3481_v27  ;;  %4094 = vmatpush.msrb.mxu0 %v3800_v54  ;;  %v3753_v3 = vld [vmem:[#allocation8 + $0xa18] sm:$0xff]  ;;  %v3751_v54 = vld [vmem:[#allocation8 + $0xa08] sm:$0xff] }
 0x863   : > { %4218 = vmatpush.msrb.mxu1 %v3569_v13  ;;  %4336 = vmatpush.msrb.mxu3 %v3765_v53  ;;  %v3786_v13 = vld [vmem:[#allocation8 + $0xb20] sm:$0xff]  ;;  %v3465_v27 = vld [vmem:[#allocation8 + $0x118] sm:$0xff] }
 0x864   : > { %4155 = vmatpush.msra.mxu2 %v3479_v59  ;;  %v3423_v41 = vpop.permute.xlu0 %3422  ;;  %4095 = vmatpush.msrb.mxu0 %v3798_v2  ;;  %v3327_v29 = vpop.permute.xlu1 %3326  ;;  %v8378_v59 = vld [vmem:[%s9285_s22 + $0x8] sm:$0x1f]  ;;  %v3463_v2 = vld [vmem:[#allocation8 + $0x108] sm:$0xff]  ;;  %v3797_v17 = vld [vmem:[#allocation8 + $0xb78] sm:$0xff] }
 0x865   : > { %4219 = vmatpush.msrb.mxu1 %v3567_v63  ;;  %v3424_v30 = vsel %vm9365_vm7, %v9364_v16, %v3423_v41  ;;  %v3303_v55 = vpop.permute.xlu2 %3302  ;;  %v3328_v51 = vsel %vm2026_vm14, %v9366_v44, %v3327_v29  ;;  %4337 = vmatpush.msrb.mxu3 %v3763_v11  ;;  %v3784_v63 = vld [vmem:[#allocation8 + $0xb10] sm:$0xff]  ;;  %v3852_v53 = vperm.slane %v8378_v59, 3  ;;  %v3782_v41 = vld [vmem:[#allocation8 + $0xb00] sm:$0xff]  ;;  %v3621_v16 = vld [vmem:[#allocation8 + $0x5f8] sm:$0xff]  ;;  %vm9408_vm7 = vcmask 654336  }
 0x866   : > { %3427 = vst.msk [vmem:[#allocation8 + $0xc88] sm:$0xff] %vm1422_vm2, %v3424_v30  ;;  %4156 = vmatpush.msra.mxu2 %v3477_v23  ;;  %v3304_v48 = vsel %vm9368_vm9, %v9367_v35, %v3303_v55  ;;  %4096 = vmatpush.msrb.mxu0 %v3796_v19  ;;  %v9378_v29 = vld [vmem:[#allocation74_spill] sm:$0xff]  ;;  %v3707_v44 = vld [vmem:[#allocation8 + $0x8a8] sm:$0xff] }
 0x867   : > { %4220 = vmatpush.msrb.mxu1 %v3565_v6  ;;  %3331 = vst.msk [vmem:[#allocation8 + $0xb88] sm:$0xff] %vm1422_vm2, %v3328_v51  ;;  %4338 = vmatpush.msrb.mxu3 %v3761_v33  ;;  %v3709_v6 = vld [vmem:[#allocation8 + $0x8b8] sm:$0xff]  ;;  %v9379_v23 = vunpack.i.h.bf16 %v9378_v29  ;;  %v9381_v51 = vld [vmem:[#allocation53_spill] sm:$0xff] }
 0x868   : > { %3307 = vst.msk [vmem:[#allocation8 + $0xb48] sm:$0xff] %vm1422_vm2, %v3304_v48  ;;  %4157 = vmatpush.msra.mxu2 %v3475_v49  ;;  %4097 = vmatpush.msrb.mxu0 %v3794_v52  ;;  %v9382_v35 = vunpack.i.h.bf16 %v9381_v51  ;;  %v3557_v19 = vld [vmem:[#allocation8 + $0x3f8] sm:$0xff]  ;;  %v3619_v49 = vld [vmem:[#allocation8 + $0x5e8] sm:$0xff] }
 0x869   : > { %4221 = vmatpush.msrb.mxu1 %v3563_v26  ;;  %4339 = vmatpush.msrb.mxu3 %v3759_v40  ;;  %v9384_v33 = vld [vmem:[#allocation31_spill] sm:$0xff]  ;;  %v3555_v40 = vld [vmem:[#allocation8 + $0x3e8] sm:$0xff] }
 0x86a   : > { %4158 = vmatpush.msra.mxu2 %v3473_v37  ;;  %4098 = vmatpush.msrb.mxu0 %v3792_v39  ;;  %v9385_v52 = vunpack.i.h.bf16 %v9384_v33  ;;  %v3705_v37 = vld [vmem:[#allocation8 + $0x898] sm:$0xff]  ;;  %v3599_v33 = vld [vmem:[#allocation8 + $0x548] sm:$0xff] }
 0x86b   : > { %4222 = vmatpush.msrb.mxu1 %v3561_v34  ;;  %4340 = vmatpush.msrb.mxu3 %v3757_v7  ;;  %v3617_v39 = vld [vmem:[#allocation8 + $0x5d8] sm:$0xff] }
 0x86c   : > { %4159 = vmatpush.msra.mxu2 %v3471_v50  ;;  %v3309_v24 = vpop.permute.xlu0 %3308  ;;  %4099 = vmatpush.msrb.mxu0 %v3790_v47  ;;  %v3315_v56 = vpop.permute.xlu1 %3314  ;;  %v3553_v50 = vld [vmem:[#allocation8 + $0x3d8] sm:$0xff]  ;;  %v3551_v47 = vld [vmem:[#allocation8 + $0x3c8] sm:$0xff] }
 0x86d   : > { %4223 = vmatpush.msrb.mxu1 %v3559_v14  ;;  %v3310_v32 = vsel %vm9371_vm1, %v9370_v57, %v3309_v24  ;;  %v3316_v12 = vsel %vm9374_vm12, %v9373_v1, %v3315_v56  ;;  %4341 = vmatpush.msrb.mxu3 %v3755_v45  ;;  %v3703_v14 = vld [vmem:[#allocation8 + $0x888] sm:$0xff]  ;;  %v3701_v7 = vld [vmem:[#allocation8 + $0x878] sm:$0xff] }
 0x86e   : > { %3313 = vst.msk [vmem:[#allocation8 + $0xb58] sm:$0xff] %vm1422_vm2, %v3310_v32  ;;  %4160 = vmatpush.msra.mxu2 %v3469_v36  ;;  %v3399_v8 = vpop.permute.xlu2 %3398  ;;  %4100 = vmatpush.msrb.mxu0 %v3788_v60  ;;  %v3613_v24 = vld [vmem:[#allocation8 + $0x5b8] sm:$0xff]  ;;  %v3699_v36 = vld [vmem:[#allocation8 + $0x868] sm:$0xff] }
 0x86f   : > { %4288 = vmatpush.msra.mxu1 %v3717_v4  ;;  %3319 = vst.msk [vmem:[#allocation8 + $0xb68] sm:$0xff] %vm1422_vm2, %v3316_v12  ;;  %v3400_v42 = vsel %vm9377_vm8, %v9376_v5, %v3399_v8  ;;  %4342 = vmatpush.msrb.mxu3 %v3753_v3  ;;  %v3615_v4 = vld [vmem:[#allocation8 + $0x5c8] sm:$0xff]  ;;  %v9387_v57 = vld [vmem:[#allocation23_spill] sm:$0xff] }
 0x870   : > { %3403 = vst.msk [vmem:[#allocation8 + $0xc48] sm:$0xff] %vm1422_vm2, %v3400_v42  ;;  %4161 = vmatpush.msra.mxu2 %v3467_v25  ;;  %4101 = vmatpush.msrb.mxu0 %v3786_v13  ;;  %v3549_v1 = vld [vmem:[#allocation8 + $0x3b8] sm:$0xff]  ;;  %v3611_v8 = vld [vmem:[#allocation8 + $0x5a8] sm:$0xff] }
 0x871   : > { %4289 = vmatpush.msra.mxu1 %v3715_v46  ;;  %4343 = vmatpush.msrb.mxu3 %v3751_v54  ;;  %v9390_v46 = vld [vmem:[#allocation29_spill] sm:$0xff]  ;;  %v3697_v5 = vld [vmem:[#allocation8 + $0x858] sm:$0xff] }
 0x872   : > { %4162 = vmatpush.msra.mxu2 %v3465_v27  ;;  %4102 = vmatpush.msrb.mxu0 %v3784_v63  ;;  %v9391_v0 = vunpack.i.h.bf16 %v9390_v46  ;;  %v9393_v45 = vld [vmem:[#allocation41_spill] sm:$0xff]  ;;  %v3609_v25 = vld [vmem:[#allocation8 + $0x598] sm:$0xff] }
 0x873   : > { %4290 = vmatpush.msra.mxu1 %v3713_v62  ;;  %4344 = vmatmul.f32.vlgmr.msrb.gmra.mxu3 %v3851_v61  ;;  %v9394_v60 = vunpack.i.h.bf16 %v9393_v45  ;;  %v3547_v42 = vld [vmem:[#allocation8 + $0x3a8] sm:$0xff]  ;;  %v3545_v3 = vld [vmem:[#allocation8 + $0x398] sm:$0xff] }
 0x874   : > { %4163 = vmatpush.msra.mxu2 %v3463_v2  ;;  %v3405_v30 = vpop.permute.xlu0 %3404  ;;  %4103 = vmatpush.msrb.mxu0 %v3782_v41  ;;  %v3411_v11 = vpop.permute.xlu1 %3410  ;;  %v3695_v62 = vld [vmem:[#allocation8 + $0x848] sm:$0xff]  ;;  %v3693_v27 = vld [vmem:[#allocation8 + $0x838] sm:$0xff] }
 0x875   : > { %4291 = vmatpush.msra.mxu1 %v3711_v15  ;;  %v3406_v55 = vsel %vm9380_vm0, %v9379_v23, %v3405_v30  ;;  %v3412_v48 = vsel %vm9383_vm3, %v9382_v35, %v3411_v11  ;;  %4104 = vmatmul.f32.vlgmr.msrb.gmra.mxu0 %v3852_v53  ;;  %v3607_v13 = vld [vmem:[#allocation8 + $0x588] sm:$0xff]  ;;  %v3605_v54 = vld [vmem:[#allocation8 + $0x578] sm:$0xff] }
 0x876   : > { %4228 = vmatpush.msrb.mxu2 %v3621_v16  ;;  %3409 = vst.msk [vmem:[#allocation8 + $0xc58] sm:$0xff] %vm1422_vm2, %v3406_v55  ;;  %v3285_v26 = vpop.permute.xlu2 %3284  ;;  %4188 = vmatpush.msra.mxu0 %v3557_v19  ;;  %v3543_v15 = vld [vmem:[#allocation8 + $0x388] sm:$0xff]  ;;  %v3541_v29 = vld [vmem:[#allocation8 + $0x378] sm:$0xff] }
 0x877   : > { %4292 = vmatpush.msra.mxu1 %v3709_v6  ;;  %3415 = vst.msk [vmem:[#allocation8 + $0xc68] sm:$0xff] %vm1422_vm2, %v3412_v48  ;;  %v3286_v34 = vsel %vm9386_vm5, %v9385_v52, %v3285_v26  ;;  %4164 = vmatmul.f32.vlgmr.msra.gmra.mxu2 %v3842_v31  ;;  %v9388_v31 = vunpack.i.h.bf16 %v9387_v57  ;;  %v9396_v2 = vld [vmem:[#allocation40_spill] sm:$0xff]  ;;  %v9399_v55 = vld [vmem:[#allocation42_spill] sm:$0xff] }
 0x878   : > { %4229 = vmatpush.msrb.mxu2 %v3619_v49  ;;  %3289 = vst.msk [vmem:[#allocation8 + $0xb18] sm:$0xff] %vm1422_vm2, %v3286_v34  ;;  %4189 = vmatpush.msra.mxu0 %v3555_v40  ;;  %v9397_v6 = vunpack.i.h.bf16 %v9396_v2  ;;  %v3691_v16 = vld [vmem:[#allocation8 + $0x828] sm:$0xff]  ;;  %v9400_v11 = vunpack.i.h.bf16 %v9399_v55  ;;  %v3689_v51 = vld [vmem:[#allocation8 + $0x818] sm:$0xff]  ;;  %v9402_v49 = vperm.slane %v7802_v38, 4 }
 0x879   : > { %4293 = vmatpush.msra.mxu1 %v3707_v44  ;;  %v3603_v23 = vld [vmem:[#allocation8 + $0x568] sm:$0xff]  ;;  %v3601_v19 = vld [vmem:[#allocation8 + $0x558] sm:$0xff] }
 0x87a   : > { %4230 = vmatpush.msrb.mxu2 %v3617_v39  ;;  %4190 = vmatpush.msra.mxu0 %v3553_v50  ;;  %v3687_v35 = vld [vmem:[#allocation8 + $0x808] sm:$0xff]  ;;  %v3537_v26 = vld [vmem:[#allocation8 + $0x358] sm:$0xff] }
 0x87b   : > { %4294 = vmatpush.msra.mxu1 %v3705_v37  ;;  %v3539_v48 = vld [vmem:[#allocation8 + $0x368] sm:$0xff]  ;;  %v3597_v40 = vld [vmem:[#allocation8 + $0x538] sm:$0xff] }
 0x87c   : > { %4231 = vmatpush.msrb.mxu2 %v3615_v4  ;;  %v3291_v58 = vpop.permute.xlu0 %3290  ;;  %4191 = vmatpush.msra.mxu0 %v3551_v47  ;;  %v3297_v56 = vpop.permute.xlu1 %3296  ;;  %v3831_v52 = vld [vmem:[#allocation8 + $0xc88] sm:$0xff]  ;;  %v3829_v39 = vld [vmem:[#allocation8 + $0xc78] sm:$0xff] }
 0x87d   : > { %4295 = vmatpush.msra.mxu1 %v3703_v14  ;;  %v3292_v32 = vsel %vm9389_vm13, %v9388_v31, %v3291_v58  ;;  %v3298_v61 = vsel %vm9392_vm10, %v9391_v0, %v3297_v56  ;;  %v3535_v34 = vld [vmem:[#allocation8 + $0x348] sm:$0xff]  ;;  %v9403_v14 = vld [vmem:[#allocation39_spill] sm:$0xff] }
 0x87e   : > { %4232 = vmatpush.msrb.mxu2 %v3613_v24  ;;  %3295 = vst.msk [vmem:[#allocation8 + $0xb28] sm:$0xff] %vm1422_vm2, %v3292_v32  ;;  %v3381_v12 = vpop.permute.xlu2 %3380  ;;  %4192 = vmatpush.msra.mxu0 %v3549_v1  ;;  %v9404_v50 = vunpack.i.h.bf16 %v9403_v14  ;;  %v3533_v47 = vld [vmem:[#allocation8 + $0x338] sm:$0xff]  ;;  %v9406_v24 = vld [vmem:[#allocation28_spill] sm:$0xff] }
 0x87f   : > { %4296 = vmatpush.msra.mxu1 %v3701_v7  ;;  %3301 = vst.msk [vmem:[#allocation8 + $0xb38] sm:$0xff] %vm1422_vm2, %v3298_v61  ;;  %v3382_v18 = vsel %vm9395_vm15, %v9394_v60, %v3381_v12  ;;  %v9407_v58 = vunpack.i.h.bf16 %v9406_v24  ;;  %v3595_v31 = vld [vmem:[#allocation8 + $0x528] sm:$0xff]  ;;  %v3825_v46 = vld [vmem:[#allocation8 + $0xc58] sm:$0xff] }
 0x880   : > { %4233 = vmatpush.msrb.mxu2 %v3611_v8  ;;  %3385 = vst.msk [vmem:[#allocation8 + $0xc18] sm:$0xff] %vm1422_vm2, %v3382_v18  ;;  %4193 = vmatpush.msra.mxu0 %v3547_v42  ;;  %v3827_v32 = vld [vmem:[#allocation8 + $0xc68] sm:$0xff]  ;;  %v3529_v0 = vld [vmem:[#allocation8 + $0x318] sm:$0xff] }
 0x881   : > { %4297 = vmatpush.msra.mxu1 %v3699_v36  ;;  %v3531_v56 = vld [vmem:[#allocation8 + $0x328] sm:$0xff]  ;;  %v3593_v36 = vld [vmem:[#allocation8 + $0x518] sm:$0xff] }
 0x882   : > { %4234 = vmatpush.msrb.mxu2 %v3609_v25  ;;  %4194 = vmatpush.msra.mxu0 %v3545_v3  ;;  %v3591_v61 = vld [vmem:[#allocation8 + $0x508] sm:$0xff]  ;;  %v3749_v45 = vld [vmem:[#allocation8 + $0x9f8] sm:$0xff] }
 0x883   : > { %4298 = vmatpush.msra.mxu1 %v3697_v5  ;;  %v3823_v1 = vld [vmem:[#allocation8 + $0xc48] sm:$0xff]  ;;  %v3685_v60 = vld [vmem:[#allocation8 + $0x7f8] sm:$0xff] }
 0x884   : > { %4235 = vmatpush.msrb.mxu2 %v3607_v13  ;;  %v3387_v63 = vpop.permute.xlu0 %3386  ;;  %4195 = vmatpush.msra.mxu0 %v3543_v15  ;;  %v3527_v8 = vld [vmem:[#allocation8 + $0x308] sm:$0xff]  ;;  %v3745_v25 = vld [vmem:[#allocation8 + $0x9d8] sm:$0xff] }
 0x885   : > { %4299 = vmatpush.msra.mxu1 %v3695_v62  ;;  %v3388_v41 = vsel %vm9398_vm6, %v9397_v6, %v3387_v63  ;;  %v3747_v18 = vld [vmem:[#allocation8 + $0x9e8] sm:$0xff]  ;;  %v3741_v15 = vld [vmem:[#allocation8 + $0x9b8] sm:$0xff] }
 0x886   : > { %4236 = vmatpush.msrb.mxu2 %v3605_v54  ;;  %3391 = vst.msk [vmem:[#allocation8 + $0xc28] sm:$0xff] %vm1422_vm2, %v3388_v41  ;;  %v3393_v30 = vpop.permute.xlu1 %3392  ;;  %4196 = vmatpush.msra.mxu0 %v3541_v29  ;;  %v3683_v5 = vld [vmem:[#allocation8 + $0x7e8] sm:$0xff]  ;;  %v3677_v54 = vld [vmem:[#allocation8 + $0x7b8] sm:$0xff] }
 0x887   : > { %4300 = vmatpush.msra.mxu1 %v3693_v27  ;;  %v3394_v44 = vsel %vm9401_vm11, %v9400_v11, %v3393_v30  ;;  %v3817_v62 = vld [vmem:[#allocation8 + $0xc18] sm:$0xff]  ;;  %v3743_v13 = vld [vmem:[#allocation8 + $0x9c8] sm:$0xff] }
 0x888   : > { %4237 = vmatpush.msrb.mxu2 %v3603_v23  ;;  %3397 = vst.msk [vmem:[#allocation8 + $0xc38] sm:$0xff] %vm1422_vm2, %v3394_v44  ;;  %4197 = vmatpush.msra.mxu0 %v3539_v48  ;;  %v3679_v27 = vld [vmem:[#allocation8 + $0x7c8] sm:$0xff]  ;;  %v3737_v2 = vld [vmem:[#allocation8 + $0x998] sm:$0xff] }
 0x889   : > { %4301 = vmatpush.msra.mxu1 %v3691_v16  ;;  %v3675_v63 = vld [vmem:[#allocation8 + $0x7a8] sm:$0xff]  ;;  %v3673_v6 = vld [vmem:[#allocation8 + $0x798] sm:$0xff] }
 0x88a   : > { %4238 = vmatpush.msrb.mxu2 %v3601_v19  ;;  %4198 = vmatpush.msra.mxu0 %v3537_v26  ;;  %v3735_v41 = vld [vmem:[#allocation8 + $0x988] sm:$0xff]  ;;  %v3733_v30 = vld [vmem:[#allocation8 + $0x978] sm:$0xff] }
 0x88b   : > { %4302 = vmatpush.msra.mxu1 %v3689_v51  ;;  %v3671_v16 = vld [vmem:[#allocation8 + $0x788] sm:$0xff]  ;;  %v3669_v29 = vld [vmem:[#allocation8 + $0x778] sm:$0xff] }
 0x88c   : > { %4224 = vmatmul.f32.vlgmr.msrb.gmra.mxu1 %v9402_v49  ;;  %4239 = vmatpush.msrb.mxu2 %v3599_v33  ;;  %v3375_v37 = vpop.permute.xlu0 %3374  ;;  %v3667_v23 = vld [vmem:[#allocation8 + $0x768] sm:$0xff]  ;;  %v3729_v38 = vld [vmem:[#allocation8 + $0x958] sm:$0xff] }
 0x88d   : > { %4303 = vmatpush.msra.mxu1 %v3687_v35  ;;  %4199 = vmatpush.msra.mxu0 %v3535_v34  ;;  %v3376_v4 = vsel %vm9405_vm4, %v9404_v50, %v3375_v37  ;;  %v3819_v42 = vld [vmem:[#allocation8 + $0xc28] sm:$0xff]  ;;  %v3725_v44 = vld [vmem:[#allocation8 + $0x938] sm:$0xff] }
 0x88e   : > { %4240 = vmatpush.msrb.mxu2 %v3597_v40  ;;  %3379 = vst.msk [vmem:[#allocation8 + $0xc08] sm:$0xff] %vm1422_vm2, %v3376_v4  ;;  %v3279_v7 = vpop.permute.xlu1 %3278  ;;  %v3727_v55 = vld [vmem:[#allocation8 + $0x948] sm:$0xff]  ;;  %v3661_v51 = vld [vmem:[#allocation8 + $0x738] sm:$0xff] }
 0x88f   : > { %4375 = vmatpush.msrb.mxu1 %v3831_v52  ;;  %v3280_v57 = vsel %vm9408_vm7, %v9407_v58, %v3279_v7  ;;  %4200 = vmatpush.msra.mxu0 %v3533_v47  ;;  %v3821_v12 = vld [vmem:[#allocation8 + $0xc38] sm:$0xff]  ;;  %v3663_v11 = vld [vmem:[#allocation8 + $0x748] sm:$0xff] }
 0x890   : > { %3283 = vst.msk [vmem:[#allocation8 + $0xb08] sm:$0xff] %vm1422_vm2, %v3280_v57  ;;  %4241 = vmatpush.msrb.mxu2 %v3595_v31  ;;  %v3723_v35 = vld [vmem:[#allocation8 + $0x928] sm:$0xff]  ;;  %v3721_v19 = vld [vmem:[#allocation8 + $0x918] sm:$0xff]  ;;  %v3885_v57 = vpop.f32.mrf.mxu3  ;;  %v3905_v31 = vpop.f32.mrf.mxu1  ;;  %vm4391_vm2 = vcmask 1040384  }
 0x891   : > { %4376 = vmatpush.msrb.mxu1 %v3829_v39  ;;  %4201 = vmatpush.msra.mxu0 %v3531_v56  ;;  %v3659_v48 = vld [vmem:[#allocation8 + $0x728] sm:$0xff]  ;;  %v3657_v26 = vld [vmem:[#allocation8 + $0x718] sm:$0xff] }
 0x892   : > { %4242 = vmatpush.msrb.mxu2 %v3593_v36  ;;  %v3719_v49 = vld [vmem:[#allocation8 + $0x908] sm:$0xff]  ;;  %v3813_v52 = vld [vmem:[#allocation8 + $0xbf8] sm:$0xff] }
 0x893   : > { %4377 = vmatpush.msrb.mxu1 %v3827_v32  ;;  %4202 = vmatpush.msra.mxu0 %v3529_v0  ;;  %v3655_v33 = vld [vmem:[#allocation8 + $0x708] sm:$0xff]  ;;  %v3809_v37 = vld [vmem:[#allocation8 + $0xbd8] sm:$0xff] }
 0x894   : > { %4304 = vmatmul.f32.vlgmr.msra.gmra.mxu1 %v3849_v10  ;;  %4243 = vmatpush.msrb.mxu2 %v3591_v61  ;;  %v3681_v10 = vld [vmem:[#allocation8 + $0x7d8] sm:$0xff]  ;;  %v3811_v34 = vld [vmem:[#allocation8 + $0xbe8] sm:$0xff] }
 0x895   : > { %4378 = vmatpush.msrb.mxu1 %v3825_v46  ;;  %4203 = vmatpush.msra.mxu0 %v3527_v8  ;;  %v3815_v3 = vld [vmem:[#allocation8 + $0xc08] sm:$0xff]  ;;  %v3805_v39 = vld [vmem:[#allocation8 + $0xbb8] sm:$0xff] }
 0x896   : > { %4308 = vmatpush.msra.mxu2 %v3749_v45  ;;  %4204 = vmatmul.f32.vlgmr.msra.gmra.mxu0 %v3844_v28  ;;  %v3739_v28 = vld [vmem:[#allocation8 + $0x9a8] sm:$0xff]  ;;  %v3801_v50 = vld [vmem:[#allocation8 + $0xb98] sm:$0xff] }
 0x897   : > { %4379 = vmatpush.msrb.mxu1 %v3823_v1  ;;  %4268 = vmatpush.msrb.mxu0 %v3685_v60  ;;  %v3807_v40 = vld [vmem:[#allocation8 + $0xbc8] sm:$0xff]  ;;  %v3789_v7 = vld [vmem:[#allocation8 + $0xb38] sm:$0xff] }
 0x898   : > { %4309 = vmatpush.msra.mxu2 %v3747_v18  ;;  %v3803_v14 = vld [vmem:[#allocation8 + $0xba8] sm:$0xff]  ;;  %v3785_v24 = vld [vmem:[#allocation8 + $0xb18] sm:$0xff]  ;;  %v3965_v56 = vpop.f32.mrf.mxu3  ;;  %v3985_v36 = vpop.f32.mrf.mxu1 }
 0x899   : > { %4380 = vmatpush.msrb.mxu1 %v3821_v12  ;;  %4269 = vmatpush.msrb.mxu0 %v3683_v5  ;;  %v3799_v4 = vld [vmem:[#allocation8 + $0xb88] sm:$0xff] }
 0x89a   : > { %4310 = vmatpush.msra.mxu2 %v3745_v25  ;;  %v3795_v9 = vld [vmem:[#allocation8 + $0xb68] sm:$0xff] }
 0x89b   : > { %4381 = vmatpush.msrb.mxu1 %v3819_v42  ;;  %4270 = vmatpush.msrb.mxu0 %v3681_v10  ;;  %v3787_v47 = vld [vmem:[#allocation8 + $0xb28] sm:$0xff] }
 0x89c   : > { %4311 = vmatpush.msra.mxu2 %v3743_v13  ;;  %v3783_v58 = vld [vmem:[#allocation8 + $0xb08] sm:$0xff] }
 0x89d   : > { %4382 = vmatpush.msrb.mxu1 %v3817_v62  ;;  %4271 = vmatpush.msrb.mxu0 %v3679_v27 }
 0x89e   : > { %4312 = vmatpush.msra.mxu2 %v3741_v15 }
 0x89f   : > { %4383 = vmatpush.msrb.mxu1 %v3815_v3  ;;  %4272 = vmatpush.msrb.mxu0 %v3677_v54 }
 0x8a0   : > { %4485 = vmatmul.msk.f32.vlgmr.msrb.gmra.mxu1 %vm2026_vm14, %v3853_v22  ;;  %4244 = vmatmul.f32.vlgmr.msrb.gmra.mxu2 %v3846_v20  ;;  %v3731_v22 = vld [vmem:[#allocation8 + $0x968] sm:$0xff]  ;;  %v3665_v20 = vld [vmem:[#allocation8 + $0x758] sm:$0xff]  ;;  %v4045_v61 = vpop.f32.mrf.mxu3 }
 0x8a1   : > { %4313 = vmatpush.msra.mxu2 %v3739_v28  ;;  %4273 = vmatpush.msrb.mxu0 %v3675_v63 }
 0x8a3   : > { %4314 = vmatpush.msra.mxu2 %v3737_v2  ;;  %4274 = vmatpush.msrb.mxu0 %v3673_v6 }
 0x8a5   : > { %4315 = vmatpush.msra.mxu2 %v3735_v41  ;;  %4275 = vmatpush.msrb.mxu0 %v3671_v16  ;;  %v3945_v46 = vpop.f32.mrf.mxu0 }
 0x8a7   : > { %4316 = vmatpush.msra.mxu2 %v3733_v30  ;;  %4276 = vmatpush.msrb.mxu0 %v3669_v29 }
 0x8a8   : > { %v4125_v60 = vpop.f32.mrf.mxu3 }
 0x8a9   : > { %4317 = vmatpush.msra.mxu2 %v3731_v22  ;;  %4277 = vmatpush.msrb.mxu0 %v3667_v23 }
 0x8ab   : > { %4318 = vmatpush.msra.mxu2 %v3729_v38  ;;  %4278 = vmatpush.msrb.mxu0 %v3665_v20 }
 0x8ad   : > { %4319 = vmatpush.msra.mxu2 %v3727_v55  ;;  %4279 = vmatpush.msrb.mxu0 %v3663_v11 }
 0x8af   : > { %4320 = vmatpush.msra.mxu2 %v3725_v44  ;;  %4280 = vmatpush.msrb.mxu0 %v3661_v51 }
 0x8b0   : > { %v4185_v62 = vpop.f32.mrf.mxu3 }
 0x8b1   : > { %4321 = vmatpush.msra.mxu2 %v3723_v35  ;;  %4281 = vmatpush.msrb.mxu0 %v3659_v48 }
 0x8b3   : > { %4322 = vmatpush.msra.mxu2 %v3721_v19  ;;  %4282 = vmatpush.msrb.mxu0 %v3657_v26 }
 0x8b5   : > { %4323 = vmatpush.msra.mxu2 %v3719_v49  ;;  %4283 = vmatpush.msrb.mxu0 %v3655_v33  ;;  %v3925_v32 = vpop.f32.mrf.mxu2 }
 0x8b6   : > { %4324 = vmatmul.f32.vlgmr.msra.gmra.mxu2 %v3850_v21  ;;  %4284 = vmatmul.f32.vlgmr.msrb.gmra.mxu0 %v3848_v43  ;;  %v3793_v21 = vld [vmem:[#allocation8 + $0xb58] sm:$0xff]  ;;  %v3791_v43 = vld [vmem:[#allocation8 + $0xb48] sm:$0xff]  ;;  %v3836_v45 = vpop.permute.xlu1 %3835 }
 0x8b7   : > { %4348 = vmatpush.msra.mxu0 %v3813_v52  ;;  %v3838_v5 = vperm.slane %v3836_v45, 0 }
 0x8b9   : > { %4349 = vmatpush.msra.mxu0 %v3811_v34  ;;  %v3886_v59 = vadd.f32 %v3885_v57, %v3838_v5 }
 0x8bb   : > { %4350 = vmatpush.msra.mxu0 %v3809_v37  ;;  %v3906_v3 = vadd.f32 %v3905_v31, %v3886_v59 }
 0x8bd   : > { %4351 = vmatpush.msra.mxu0 %v3807_v40  ;;  %v3926_v15 = vadd.f32 %v3925_v32, %v3906_v3 }
 0x8bf   : > { %4352 = vmatpush.msra.mxu0 %v3805_v39  ;;  %v3946_v63 = vadd.f32 %v3945_v46, %v3926_v15  ;;  %v4394_v39 = vlaneseq }
 0x8c1   : > { %4353 = vmatpush.msra.mxu0 %v3803_v14  ;;  %v3966_v41 = vadd.f32 %v3965_v56, %v3946_v63  ;;  %vm4396_vm14 = vcmp.lt.s32.totalorder %v4394_v39, 216 }
 0x8c3   : > { %4354 = vmatpush.msra.mxu0 %v3801_v50  ;;  %v4065_v1 = vpop.f32.mrf.mxu1  ;;  %v3986_v29 = vadd.f32 %v3985_v36, %v3966_v41 }
 0x8c5   : > { %4355 = vmatpush.msra.mxu0 %v3799_v4 }
 0x8c7   : > { %4356 = vmatpush.msra.mxu0 %v3797_v17 }
 0x8c9   : > { %4357 = vmatpush.msra.mxu0 %v3795_v9 }
 0x8cb   : > { %4358 = vmatpush.msra.mxu0 %v3793_v21  ;;  %v4005_v0 = vpop.f32.mrf.mxu2 }
 0x8cc   : > { %v4006_v38 = vadd.f32 %v4005_v0, %v3986_v29 }
 0x8cd   : > { %4359 = vmatpush.msra.mxu0 %v3791_v43 }
 0x8cf   : > { %4360 = vmatpush.msra.mxu0 %v3789_v7  ;;  %v4025_v12 = vpop.f32.mrf.mxu0 }
 0x8d0   : > { %v4026_v20 = vadd.f32 %v4025_v12, %v4006_v38 }
 0x8d1   : > { %4361 = vmatpush.msra.mxu0 %v3787_v47 }
 0x8d2   : > { %v4046_v44 = vadd.f32 %v4045_v61, %v4026_v20 }
 0x8d3   : > { %4362 = vmatpush.msra.mxu0 %v3785_v24 }
 0x8d4   : > { %v4066_v48 = vadd.f32 %v4065_v1, %v4046_v44 }
 0x8d5   : > { %4363 = vmatpush.msra.mxu0 %v3783_v58 }
 0x8d6   : > { %4364 = vmatmul.f32.vlgmr.msra.gmra.mxu0 %v3852_v53 }
 0x8d7   : > { %v4145_v18 = vpop.f32.mrf.mxu1 }
 0x8d8   : > { %v4146_v42 = vadd.f32 %v4145_v18, %v3838_v5 }
 0x8da   : > { %v4085_v8 = vpop.f32.mrf.mxu2 }
 0x8db   : > { %v4086_v49 = vadd.f32 %v4085_v8, %v4066_v48 }
 0x8de   : > { %v4265_v30 = vpop.f32.mrf.mxu3 }
 0x8f2   : > { %v4105_v25 = vpop.f32.mrf.mxu0 }
 0x8f3   : > { %v4106_v37 = vadd.f32 %v4105_v25, %v4086_v49 }
 0x8f5   : > { %v4126_v50 = vadd.f32 %v4125_v60, %v4106_v37 }
 0x8f6   : > { %v4345_v26 = vpop.f32.mrf.mxu3 }
 0x8fa   : > { %v4165_v10 = vpop.f32.mrf.mxu2 }
 0x8fb   : > { %v4166_v53 = vadd.f32 %v4165_v10, %v4146_v42 }
 0x8fd   : > { %v4186_v13 = vadd.f32 %v4185_v62, %v4166_v53 }
 0x909   : > { %v4225_v28 = vpop.f32.mrf.mxu1 }
 0x911   : > { %v4305_v11 = vpop.f32.mrf.mxu1 }
 0x913   : > { %v4205_v27 = vpop.f32.mrf.mxu0 }
 0x914   : > { %v4206_v54 = vadd.f32 %v4205_v27, %v4186_v13 }
 0x916   : > { %v4226_v2 = vadd.f32 %v4225_v28, %v4206_v54 }
 0x91d   : > { %v4385_v34 = vpop.f32.mrf.mxu1 }
 0x923   : > { %v4245_v6 = vpop.f32.mrf.mxu2 }
 0x924   : > { %v4246_v16 = vadd.f32 %v4245_v6, %v4226_v2 }
 0x926   : > { %v4266_v22 = vadd.f32 %v4265_v30, %v4246_v16 }
 0x933   : > { %v4285_v23 = vpop.f32.mrf.mxu0 }
 0x934   : > { %v4286_v55 = vadd.f32 %v4285_v23, %v4266_v22 }
 0x936   : > { %v4306_v51 = vadd.f32 %v4305_v11, %v4286_v55 }
 0x939   : > { %v4325_v35 = vpop.f32.mrf.mxu2 }
 0x93a   : > { %v4326_v19 = vadd.f32 %v4325_v35, %v4306_v51 }
 0x93c   : > { %v4346_v33 = vadd.f32 %v4345_v26, %v4326_v19 }
 0x953   : > { %v4365_v52 = vpop.f32.mrf.mxu0 }
 0x954   : > { %v4366_v40 = vadd.f32 %v4365_v52, %v4346_v33 }
 0x956   : > { %v4386_v14 = vadd.f32 %v4385_v34, %v4366_v40 }
 0x958   : > { %v4390_v4 = vrot.slane %v4386_v14, 7 }
 0x95a   : > { %v4392_v17 = vsel %vm4391_vm2, %v4126_v50, %v4390_v4 }
 0x95b   : > { %4398 = vst.msk [vmem:[%s325_s30] sm:$0x3] %vm4396_vm14, %v4392_v17 }
 0x95c   : > { %5324 = shalt.err (!%p5321_p3)
}
 0x95d   : > { %4490 = dma.vmem_to_hbm [thread:$0]  (%p5581_p5), %s4413_s17, 32, %s4415_s26, %s4400_s24  }
 0x95e PF: > { %s9413_s8 = sld [smem:[#allocation16_spill]] }
 0x95f   : > { %s9414_s21 = sld [smem:[#allocation13_spill]] }
 0x964   : > { %p4496_p4 = scmp.ge.s32.totalorder %s9413_s8, 2 }
 0x965   : > { %s4426_s25 = sand.u32 1, %s9414_s21  }
 0x966   : > { %p4493_p7 = pnand %p4496_p4, %p5585_p6  ;;  %s4427_s5 = scalar_lea.sflag [#allocation11], %s4426_s25 }
 0x968   : > { %p4494_p8 = pneg %p4493_p7 }
 0x96a   : > { %5342 = dma.done.wait (%p4494_p8), %s4427_s5, 32  }
 0x96b   : > { %5344 = vsyncadd (%p4494_p8), %s4427_s5, 4294967264  ;;  %s9416_s14 = sld [smem:[#allocation18_spill]] }
 0x96c   : > { %s9417_s11 = sld [smem:[#allocation14_spill]] }
 0x96d   : > { %s9418_s12 = sld [smem:[#allocation15_spill]] }
 0x96e   : > { %s9419_s13 = sld [smem:[#allocation19_spill]] }
 0x971   : > { %p21_p9 = scmp.ge.s32.totalorder %s9416_s14, 4  }
 0x973   :  { %23 = sbr.rel (!%p21_p9) target bundleno = 13 (0xd), region = 91 }
 0x978   :  { %4433 = vsyncpa [#allocation11], 1 }
 0x979   :  { %4435 = vsyncpa [#allocation11 + $0x1], 1 }

</bundles_post_ra>
